<compile_context>
chip_gen: v5e
topology: v5e:2x2
jax: 0.10.0
libtpu: 0.0.40
codegen_flags: <defaults>
</compile_context>

<pallas_src>
import functools

import jax
import jax.numpy as jnp
from jax.experimental import pallas as pl
from jax.experimental.pallas import tpu as pltpu

# ----------------------------- model config ---------------------------------
CFG = {"model_params": {"history_num_frames": 10, "future_num_frames": 5}}
NUM_MODES = 3
NUM_IN_CHANNELS = 3 + (CFG["model_params"]["history_num_frames"] + 1) * 2  # = 25
FUTURE_LEN = CFG["model_params"]["future_num_frames"]
NUM_TARGETS = 2 * FUTURE_LEN
NUM_PREDS = NUM_TARGETS * NUM_MODES
OUT_DIM = NUM_PREDS + NUM_MODES

# scaled-down DenseNet backbone config (see TODO above)
GROWTH = 8
BLOCK_CONFIG = (2, 2, 2, 2)
INIT_FEATURES = 16
BN_SIZE = 2
BN_EPS = 1e-5

# matmul tiling knobs (tk=256 matches v6e/v7x 256-wide MXU; use 128 on v5e)
DEF_TM = 512
DEF_TK = 256
K_SINGLE_MAX = 512   # below this, use one full-K block (no K padding at all)


def _round_up(x, m):
    return (x + m - 1) // m * m


# ----------------------------- Pallas kernels --------------------------------
def _mm_kernel(*refs, prologue, relu_out):
    """Tiled MXU matmul with optional fused BN prologue and bias/ReLU epilogue.

    grid = (M tiles, K tiles); output block is VMEM-resident across K.
    prologue:  A-tile -> max(A*scale_k + shift_k, 0)   (pre-activation BN+ReLU)
    epilogue:  out = acc + bias  [; ReLU]               (folded BN / Linear bias)
    """
    if prologue:
        a_ref, b_ref, scale_ref, shift_ref, bias_ref, o_ref, acc_ref = refs
    else:
        a_ref, b_ref, bias_ref, o_ref, acc_ref = refs
        scale_ref = shift_ref = None

    @pl.when(pl.program_id(1) == 0)
    def _():
        acc_ref[...] = jnp.zeros_like(acc_ref)

    a = a_ref[...]
    if prologue:
        a = jnp.maximum(a.astype(jnp.float32) * scale_ref[...] + shift_ref[...],
                        0.0).astype(jnp.bfloat16)
    acc_ref[...] += jnp.dot(a, b_ref[...], preferred_element_type=jnp.float32)

    @pl.when(pl.program_id(1) == pl.num_programs(1) - 1)
    def _():
        out = acc_ref[...] + bias_ref[...]
        if relu_out:
            out = jnp.maximum(out, 0.0)
        o_ref[...] = out.astype(o_ref.dtype)


def pallas_matmul(a, w, *, bias=None, in_scale=None, in_shift=None,
                  relu_out=False, out_dtype=jnp.bfloat16,
                  tm=DEF_TM, tk=DEF_TK):
    """a:(M,K) @ w:(K,N) with fused BN prologue / bias+ReLU epilogue.

    Operands are cast to bf16 (fp32 accumulation). K/N are kept un-padded
    (full-dim blocks) when small; M is tiled (grid axis 0, "parallel"), K is
    the accumulation axis (grid axis 1, "arbitrary").
    """
    M, K = a.shape
    K2, N = w.shape
    assert K == K2
    prologue = in_scale is not None

    tm = min(tm, _round_up(M, 8))
    Mp = _round_up(M, tm)
    if K <= K_SINGLE_MAX:
        tk, Kp = K, K
    else:
        Kp = _round_up(K, tk)
    mt, kt = Mp // tm, Kp // tk

    a = a.astype(jnp.bfloat16)
    if (Mp, Kp) != (M, K):
        a = jnp.pad(a, ((0, Mp - M), (0, Kp - K)))
    w = w.astype(jnp.bfloat16)
    if Kp != K:
        w = jnp.pad(w, ((0, Kp - K), (0, 0)))
    if bias is None:
        bias = jnp.zeros((N,), jnp.float32)
    bias = bias.reshape(1, N).astype(jnp.float32)

    operands = [a, w]
    in_specs = [
        pl.BlockSpec((tm, tk), lambda i, k: (i, k)),
        pl.BlockSpec((tk, N), lambda i, k: (k, 0)),
    ]
    if prologue:
        sc = in_scale.reshape(1, K).astype(jnp.float32)
        sh = in_shift.reshape(1, K).astype(jnp.float32)
        if Kp != K:
            sc = jnp.pad(sc, ((0, 0), (0, Kp - K)))
            sh = jnp.pad(sh, ((0, 0), (0, Kp - K)))
        operands += [sc, sh]
        in_specs += [pl.BlockSpec((1, tk), lambda i, k: (0, k)),
                     pl.BlockSpec((1, tk), lambda i, k: (0, k))]
    operands.append(bias)
    in_specs.append(pl.BlockSpec((1, N), lambda i, k: (0, 0)))

    out = pl.pallas_call(
        functools.partial(_mm_kernel, prologue=prologue, relu_out=relu_out),
        out_shape=jax.ShapeDtypeStruct((Mp, N), out_dtype),
        grid=(mt, kt),
        in_specs=in_specs,
        out_specs=pl.BlockSpec((tm, N), lambda i, k: (i, 0)),
        scratch_shapes=[pltpu.VMEM((tm, N), jnp.float32)],
        compiler_params=pltpu.CompilerParams(
            dimension_semantics=("parallel", "arbitrary")),
    )(*operands)
    return out[:M] if Mp != M else out


def _window_reduce_kernel(x_ref, o_ref, *, op):
    # x_ref: (KK, tr, C) -> reduce over window axis 0 (leading, cheap VPU ops).
    x = x_ref[...]
    if op == "max":
        o_ref[...] = jnp.max(x, axis=0)
    else:
        inv = 1.0 / x_ref.shape[0]
        o_ref[...] = (jnp.sum(x.astype(jnp.float32), axis=0) * inv
                      ).astype(o_ref.dtype)


def pallas_window_reduce(patches, op, tr=1024):
    """patches: (KK, P, C) -> (P, C); tiled over P rows ('parallel')."""
    KK, P, C = patches.shape
    tr = min(tr, _round_up(P, 8))
    Pp = _round_up(P, tr)
    if Pp != P:
        patches = jnp.pad(patches, ((0, 0), (0, Pp - P), (0, 0)))
    out = pl.pallas_call(
        functools.partial(_window_reduce_kernel, op=op),
        out_shape=jax.ShapeDtypeStruct((Pp, C), patches.dtype),
        grid=(Pp // tr,),
        in_specs=[pl.BlockSpec((KK, tr, C), lambda i: (0, i, 0))],
        out_specs=pl.BlockSpec((tr, C), lambda i: (i, 0)),
        compiler_params=pltpu.CompilerParams(dimension_semantics=("parallel",)),
    )(patches)
    return out[:P] if Pp != P else out


def _bn_relu_gap_kernel(x_ref, scale_ref, shift_ref, o_ref):
    # fused norm5 + ReLU + global average pool: (N, HW, C) -> (N, C)
    x = x_ref[...].astype(jnp.float32)
    y = jnp.maximum(x * scale_ref[...] + shift_ref[...], 0.0)
    o_ref[...] = jnp.mean(y, axis=1)


def pallas_bn_relu_gap(x, scale, shift):
    N, H, W, C = x.shape
    x3 = x.reshape(N, H * W, C)
    return pl.pallas_call(
        _bn_relu_gap_kernel,
        out_shape=jax.ShapeDtypeStruct((N, C), jnp.float32),
        grid=(1,),
        in_specs=[pl.BlockSpec((N, H * W, C), lambda i: (0, 0, 0)),
                  pl.BlockSpec((1, 1, C), lambda i: (0, 0, 0)),
                  pl.BlockSpec((1, 1, C), lambda i: (0, 0, 0))],
        out_specs=pl.BlockSpec((N, C), lambda i: (0, 0)),
    )(x3, scale.reshape(1, 1, C).astype(jnp.float32),
      shift.reshape(1, 1, C).astype(jnp.float32))


def _softmax_kernel(x_ref, o_ref):
    x = x_ref[...].astype(jnp.float32)
    m = jnp.max(x, axis=-1, keepdims=True)
    e = jnp.exp(x - m)
    s = jnp.sum(e, axis=-1, keepdims=True)
    o_ref[...] = e * pl.reciprocal(s, approx=True)


def pallas_softmax(x):
    R, C = x.shape
    return pl.pallas_call(
        _softmax_kernel,
        out_shape=jax.ShapeDtypeStruct((R, C), jnp.float32),
        grid=(1,),
        in_specs=[pl.BlockSpec((R, C), lambda i: (0, 0))],
        out_specs=pl.BlockSpec((R, C), lambda i: (0, 0)),
    )(x.astype(jnp.float32))


# ----------------------------- glue (layout / im2col) ------------------------
def _im2col_mat(x, kh, kw, stride, pad):
    """x: NHWC -> A:(N*OH*OW, kh*kw*C) for the conv matmul (zero padding)."""
    N, H, W, C = x.shape
    xp = jnp.pad(x, ((0, 0), (pad, pad), (pad, pad), (0, 0)))
    OH = (H + 2 * pad - kh) // stride + 1
    OW = (W + 2 * pad - kw) // stride + 1
    cols = [xp[:, i:i + stride * OH:stride, j:j + stride * OW:stride, :]
            for i in range(kh) for j in range(kw)]
    patches = jnp.stack(cols, axis=3)          # (N, OH, OW, kh*kw, C)
    return patches.reshape(N * OH * OW, kh * kw * C), (N, OH, OW)


def _pool_patches(x, k, stride, pad, pad_value):
    """x: NHWC -> (k*k, N*OH*OW, C); rows stay on sublanes, no transpose."""
    N, H, W, C = x.shape
    xp = jnp.pad(x, ((0, 0), (pad, pad), (pad, pad), (0, 0)),
                 constant_values=pad_value)
    OH = (H + 2 * pad - k) // stride + 1
    OW = (W + 2 * pad - k) // stride + 1
    cols = [xp[:, i:i + stride * OH:stride, j:j + stride * OW:stride, :]
            for i in range(k) for j in range(k)]
    patches = jnp.stack(cols, axis=0)          # (k*k, N, OH, OW, C)
    return patches.reshape(k * k, N * OH * OW, C), (N, OH, OW)


def conv2d_fused(x, cp, *, kh, kw, stride, pad, relu_out):
    """x: NHWC bf16; cp: prepped conv params (wmat [+bias, in_scale/shift])."""
    N, H, W, C = x.shape
    if kh == 1 and kw == 1:
        a = x.reshape(N * H * W, C)
        OH, OW = H, W
    else:
        a, (N, OH, OW) = _im2col_mat(x, kh, kw, stride, pad)
    out = pallas_matmul(a, cp["wmat"], bias=cp.get("bias"),
                        in_scale=cp.get("in_scale"), in_shift=cp.get("in_shift"),
                        relu_out=relu_out, out_dtype=jnp.bfloat16)
    return out.reshape(N, OH, OW, -1)


def max_pool(x, k, stride, pad):
    neg = float(jnp.finfo(x.dtype).min)
    patches, (N, OH, OW) = _pool_patches(x, k, stride, pad, neg)
    out = pallas_window_reduce(patches, "max")
    return out.reshape(N, OH, OW, x.shape[-1])


def avg_pool2(x):
    patches, (N, OH, OW) = _pool_patches(x, 2, 2, 0, 0.0)
    out = pallas_window_reduce(patches, "mean")
    return out.reshape(N, OH, OW, x.shape[-1])


# ----------------------------- parameters ------------------------------------
def init_params(key):
    """Raw PyTorch-style parameters (conv OIHW, BN gamma/beta/mean/var)."""
    keys = iter(jax.random.split(key, 512))

    def conv_w(cout, cin, k):
        std = (2.0 / (cin * k * k)) ** 0.5
        return std * jax.random.normal(next(keys), (cout, cin, k, k), jnp.float32)

    def bn_p(c):
        return {
            "gamma": 1.0 + 0.05 * jax.random.normal(next(keys), (c,), jnp.float32),
            "beta": 0.05 * jax.random.normal(next(keys), (c,), jnp.float32),
            "mean": 0.05 * jax.random.normal(next(keys), (c,), jnp.float32),
            "var": 1.0 + 0.05 * jnp.abs(jax.random.normal(next(keys), (c,), jnp.float32)),
        }

    params = {}
    # conv0: analog of the repeated-and-sliced pretrained weight -> (F0, 25, 7, 7)
    params["conv0"] = conv_w(INIT_FEATURES, NUM_IN_CHANNELS, 7)
    params["norm0"] = bn_p(INIT_FEATURES)

    blocks, trans = [], []
    nfeat = INIT_FEATURES
    for bi, nlayers in enumerate(BLOCK_CONFIG):
        layers = []
        for _ in range(nlayers):
            layers.append({
                "norm1": bn_p(nfeat),
                "conv1": conv_w(BN_SIZE * GROWTH, nfeat, 1),
                "norm2": bn_p(BN_SIZE * GROWTH),
                "conv2": conv_w(GROWTH, BN_SIZE * GROWTH, 3),
            })
            nfeat += GROWTH
        blocks.append(layers)
        if bi != len(BLOCK_CONFIG) - 1:
            trans.append({
                "norm": bn_p(nfeat),
                "conv": conv_w(nfeat // 2, nfeat, 1),
            })
            nfeat = nfeat // 2
    params["blocks"] = blocks
    params["trans"] = trans
    params["norm5"] = bn_p(nfeat)
    params["cls_w"] = (1.0 / (nfeat ** 0.5)) * jax.random.normal(
        next(keys), (OUT_DIM, nfeat), jnp.float32)
    params["cls_b"] = 0.01 * jax.random.normal(next(keys), (OUT_DIM,), jnp.float32)
    return params


def _bn_scale_shift(bn):
    scale = bn["gamma"] / jnp.sqrt(bn["var"] + BN_EPS)
    shift = bn["beta"] - bn["mean"] * scale
    return scale, shift


def _prep_conv(w, out_scale=None, out_shift=None, in_scale=None, in_shift=None):
    """One-time: fold output BN into weights, transpose to (kh*kw*Cin, Cout), bf16."""
    Cout, Cin, kh, kw = w.shape
    if out_scale is not None:
        w = w * out_scale[:, None, None, None]
    wmat = jnp.transpose(w, (2, 3, 1, 0)).reshape(kh * kw * Cin, Cout)
    d = {"wmat": wmat.astype(jnp.bfloat16)}
    if out_shift is not None:
        d["bias"] = out_shift.astype(jnp.float32)
    if in_scale is not None:
        d["in_scale"] = in_scale.astype(jnp.float32)
        d["in_shift"] = in_shift.astype(jnp.float32)
    return d


def prep_params(raw):
    """Hoisted (one-time) BN folding, weight transposition and bf16 cast."""
    P = {}
    s0, h0 = _bn_scale_shift(raw["norm0"])
    P["conv0"] = _prep_conv(raw["conv0"], out_scale=s0, out_shift=h0)

    blocks = []
    for layer_list in raw["blocks"]:
        layers = []
        for lp in layer_list:
            s1, h1 = _bn_scale_shift(lp["norm1"])   # pre-activation -> conv1 prologue
            s2, h2 = _bn_scale_shift(lp["norm2"])   # folded into conv1 epilogue
            layers.append({
                "conv1": _prep_conv(lp["conv1"], out_scale=s2, out_shift=h2,
                                    in_scale=s1, in_shift=h1),
                "conv2": _prep_conv(lp["conv2"]),
            })
        blocks.append(layers)
    P["blocks"] = blocks

    trans = []
    for tp in raw["trans"]:
        st, ht = _bn_scale_shift(tp["norm"])
        trans.append({"conv": _prep_conv(tp["conv"], in_scale=st, in_shift=ht)})
    P["trans"] = trans

    s5, h5 = _bn_scale_shift(raw["norm5"])
    P["norm5_scale"] = s5
    P["norm5_shift"] = h5
    P["cls_w"] = raw["cls_w"].T.astype(jnp.bfloat16)   # (in_features, OUT_DIM)
    P["cls_b"] = raw["cls_b"].astype(jnp.float32)
    return P


# ----------------------------- forward ---------------------------------------
def lyft_densenet_forward(P, x_nchw):
    # NCHW (PyTorch) -> NHWC bf16 (kernel layout)
    x = jnp.transpose(x_nchw, (0, 2, 3, 1)).astype(jnp.bfloat16)

    # features.conv0 (+ folded norm0 + relu0) / pool0
    x = conv2d_fused(x, P["conv0"], kh=7, kw=7, stride=2, pad=3, relu_out=True)
    x = max_pool(x, 3, 2, 1)

    # dense blocks + transitions
    for bi, nlayers in enumerate(BLOCK_CONFIG):
        for li in range(nlayers):
            lp = P["blocks"][bi][li]
            # norm1+relu1 fused as conv1 prologue; norm2+relu2 folded as conv1 epilogue
            h = conv2d_fused(x, lp["conv1"], kh=1, kw=1, stride=1, pad=0,
                             relu_out=True)
            h = conv2d_fused(h, lp["conv2"], kh=3, kw=3, stride=1, pad=1,
                             relu_out=False)
            # TODO(synk): replace with preallocated lane-padded channel buffer.
            x = jnp.concatenate([x, h], axis=-1)
        if bi != len(BLOCK_CONFIG) - 1:
            tp = P["trans"][bi]
            # transition norm+relu fused as conv prologue
            x = conv2d_fused(x, tp["conv"], kh=1, kw=1, stride=1, pad=0,
                             relu_out=False)
            x = avg_pool2(x)

    # norm5 + F.relu + adaptive_avg_pool2d(1,1) + flatten  (single fused kernel)
    feat = pallas_bn_relu_gap(x, P["norm5_scale"], P["norm5_shift"])   # (bs, C) f32
    logits = pallas_matmul(feat, P["cls_w"], bias=P["cls_b"],
                           relu_out=False, out_dtype=jnp.float32)

    # Lyft head: split -> pred view + softmax confidences
    bs = logits.shape[0]
    pred = logits[:, :NUM_PREDS].reshape(bs, NUM_MODES, FUTURE_LEN, 2)
    conf = pallas_softmax(logits[:, NUM_PREDS:])                       # (bs, NUM_MODES)
    return pred, conf


# ----------------------------- main -------------------------------------------
if __name__ == "__main__":
    key = jax.random.PRNGKey(0)
    kx, kp = jax.random.split(key)

    # input like PyTorch: NCHW with 25 raster channels
    x = jax.random.normal(kx, (2, NUM_IN_CHANNELS, 32, 32), jnp.float32)
    raw_params = init_params(kp)
    params = prep_params(raw_params)   # one-time BN fold / transpose / bf16 cast

    fwd = jax.jit(lyft_densenet_forward)
    pred, conf = fwd(params, x)
    jax.block_until_ready((pred, conf))

    assert pred.shape == (2, NUM_MODES, FUTURE_LEN, 2), pred.shape
    assert conf.shape == (2, NUM_MODES), conf.shape
    # approx-reciprocal softmax -> sums to 1 within EUP approximation error
    assert jnp.allclose(jnp.sum(conf, axis=1), 1.0, atol=2e-2)
    assert jnp.all(jnp.isfinite(pred)) and jnp.all(jnp.isfinite(conf))
    print("KERNEL_OK")
</pallas_src>

<mosaic_0001>
module attributes {stable_mosaic.version = 11 : i64} {
  func.func @_mm_kernel(%arg0: i32, %arg1: i32, %arg2: memref<512x256xbf16, #tpu.memory_space<vmem>>, %arg3: memref<256x16xbf16, #tpu.memory_space<vmem>>, %arg4: memref<1x16xf32, #tpu.memory_space<vmem>>, %arg5: memref<512x16xbf16, #tpu.memory_space<vmem>>, %arg6: memref<512x16xf32, #tpu.memory_space<vmem>>) attributes {dimension_semantics = [#tpu.dimension_semantics<parallel>, #tpu.dimension_semantics<arbitrary>], iteration_bounds = array<i64: 1, 5>, scalar_prefetch = 0 : i64, scratch_operands = 1 : i64, tpu.core_type = #tpu.core_type<tc>, window_params = [{transform_indices = @transform_0, window_bounds = array<i64: 512, 256>}, {transform_indices = @transform_1, window_bounds = array<i64: 256, 16>}, {pipeline_mode = #tpu.pipeline_mode<synchronous>, transform_indices = @transform_2, window_bounds = array<i64: 1, 16>}, {transform_indices = @transform_3, window_bounds = array<i64: 512, 16>}]} {
    %c0_i32 = arith.constant 0 : i32
    %0 = arith.cmpi eq, %arg1, %c0_i32 : i32
    %1 = arith.extui %0 : i1 to i32
    %c0_i32_0 = arith.constant 0 : i32
    %2 = arith.cmpi ne, %1, %c0_i32_0 : i32
    scf.if %2 {
      %cst_9 = arith.constant 0.000000e+00 : f32
      %12 = vector.broadcast %cst_9 : f32 to vector<512x16xf32>
      %c0_10 = arith.constant 0 : index
      %c0_11 = arith.constant 0 : index
      %13 = vector.load %arg6[%c0_10, %c0_11] : memref<512x16xf32, #tpu.memory_space<vmem>>, vector<512x16xf32>
      tpu.vector_store %arg6[%c0_10, %c0_11], %12 {strides = array<i32>} : memref<512x16xf32, #tpu.memory_space<vmem>>, vector<512x16xf32>,
    } else {
    }
    %c0 = arith.constant 0 : index
    %c0_1 = arith.constant 0 : index
    %3 = vector.load %arg2[%c0, %c0_1] : memref<512x256xbf16, #tpu.memory_space<vmem>>, vector<512x256xbf16>
    %c0_2 = arith.constant 0 : index
    %c0_3 = arith.constant 0 : index
    %4 = vector.load %arg6[%c0_2, %c0_3] : memref<512x16xf32, #tpu.memory_space<vmem>>, vector<512x16xf32>
    %c0_4 = arith.constant 0 : index
    %c0_5 = arith.constant 0 : index
    %5 = vector.load %arg3[%c0_4, %c0_5] : memref<256x16xbf16, #tpu.memory_space<vmem>>, vector<256x16xbf16>
    %cst = arith.constant dense<0.000000e+00> : vector<512x16xf32>
    %6 = tpu.matmul %3, %5, %cst {dimension_numbers = #tpu.dot_dimension_numbers<[1], [0], [0], [1], [0, 0, 1, 1], [], []>} : vector<512x256xbf16>, vector<256x16xbf16>, vector<512x16xf32> -> vector<512x16xf32>
    %7 = arith.addf %4, %6 : vector<512x16xf32>
    %c0_6 = arith.constant 0 : index
    %c0_7 = arith.constant 0 : index
    %8 = vector.load %arg6[%c0_6, %c0_7] : memref<512x16xf32, #tpu.memory_space<vmem>>, vector<512x16xf32>
    tpu.vector_store %arg6[%c0_6, %c0_7], %7 {strides = array<i32>} : memref<512x16xf32, #tpu.memory_space<vmem>>, vector<512x16xf32>,
    %c4_i32 = arith.constant 4 : i32
    %9 = arith.cmpi eq, %arg1, %c4_i32 : i32
    %10 = arith.extui %9 : i1 to i32
    %c0_i32_8 = arith.constant 0 : i32
    %11 = arith.cmpi ne, %10, %c0_i32_8 : i32
    scf.if %11 {
      %c0_9 = arith.constant 0 : index
      %c0_10 = arith.constant 0 : index
      %12 = vector.load %arg6[%c0_9, %c0_10] : memref<512x16xf32, #tpu.memory_space<vmem>>, vector<512x16xf32>
      %c0_11 = arith.constant 0 : index
      %c0_12 = arith.constant 0 : index
      %13 = vector.load %arg4[%c0_11, %c0_12] : memref<1x16xf32, #tpu.memory_space<vmem>>, vector<1x16xf32>
      %14 = vector.broadcast %13 : vector<1x16xf32> to vector<512x16xf32>
      %15 = arith.addf %12, %14 : vector<512x16xf32>
      %cst_13 = arith.constant 0.000000e+00 : f32
      %16 = vector.broadcast %cst_13 : f32 to vector<512x16xf32>
      %17 = arith.maximumf %15, %16 : vector<512x16xf32>
      %18 = arith.truncf %17 : vector<512x16xf32> to vector<512x16xbf16>
      %c0_14 = arith.constant 0 : index
      %c0_15 = arith.constant 0 : index
      %19 = vector.load %arg5[%c0_14, %c0_15] : memref<512x16xbf16, #tpu.memory_space<vmem>>, vector<512x16xbf16>
      tpu.vector_store %arg5[%c0_14, %c0_15], %18 {strides = array<i32>} : memref<512x16xbf16, #tpu.memory_space<vmem>>, vector<512x16xbf16>,
    } else {
    }
    return
  }
  func.func @transform_0(%arg0: i32, %arg1: i32) -> (i32, i32) {
    %c0_i32 = arith.constant 0 : i32
    return %arg0, %arg1 : i32, i32
  }
  func.func @transform_1(%arg0: i32, %arg1: i32) -> (i32, i32) {
    %c0_i32 = arith.constant 0 : i32
    %c0_i32_0 = arith.constant 0 : i32
    return %arg1, %c0_i32 : i32, i32
  }
  func.func @transform_2(%arg0: i32, %arg1: i32) -> (i32, i32) {
    %c0_i32 = arith.constant 0 : i32
    %c0_i32_0 = arith.constant 0 : i32
    %c0_i32_1 = arith.constant 0 : i32
    return %c0_i32, %c0_i32_0 : i32, i32
  }
  func.func @transform_3(%arg0: i32, %arg1: i32) -> (i32, i32) {
    %c0_i32 = arith.constant 0 : i32
    %c0_i32_0 = arith.constant 0 : i32
    return %arg0, %c0_i32 : i32, i32
  }
}

module attributes {stable_mosaic.version = 11 : i64} {
  func.func @_window_reduce_kernel(%arg0: i32, %arg1: memref<9x128x16xbf16, #tpu.memory_space<vmem>>, %arg2: memref<128x16xbf16, #tpu.memory_space<vmem>>) attributes {dimension_semantics = [#tpu.dimension_semantics<parallel>], iteration_bounds = array<i64: 1>, scalar_prefetch = 0 : i64, scratch_operands = 0 : i64, tpu.core_type = #tpu.core_type<tc>, window_params = [{transform_indices = @transform_0, window_bounds = array<i64: 9, 128, 16>}, {transform_indices = @transform_1, window_bounds = array<i64: 128, 16>}]} {
    %c0 = arith.constant 0 : index
    %c0_0 = arith.constant 0 : index
    %c0_1 = arith.constant 0 : index
    %0 = vector.load %arg1[%c0, %c0_0, %c0_1] : memref<9x128x16xbf16, #tpu.memory_space<vmem>>, vector<9x128x16xbf16>
    %cst = arith.constant dense<0xFF80> : vector<128x16xbf16>
    %1 = vector.multi_reduction <maximumf>, %0, %cst [0] : vector<9x128x16xbf16> to vector<128x16xbf16>
    %c0_2 = arith.constant 0 : index
    %c0_3 = arith.constant 0 : index
    %2 = vector.load %arg2[%c0_2, %c0_3] : memref<128x16xbf16, #tpu.memory_space<vmem>>, vector<128x16xbf16>
    tpu.vector_store %arg2[%c0_2, %c0_3], %1 {strides = array<i32>} : memref<128x16xbf16, #tpu.memory_space<vmem>>, vector<128x16xbf16>,
    return
  }
  func.func @transform_0(%arg0: i32) -> (i32, i32, i32) {
    %c0_i32 = arith.constant 0 : i32
    %c0_i32_0 = arith.constant 0 : i32
    %c0_i32_1 = arith.constant 0 : i32
    return %c0_i32, %arg0, %c0_i32_0 : i32, i32, i32
  }
  func.func @transform_1(%arg0: i32) -> (i32, i32) {
    %c0_i32 = arith.constant 0 : i32
    %c0_i32_0 = arith.constant 0 : i32
    return %arg0, %c0_i32 : i32, i32
  }
}

module attributes {stable_mosaic.version = 11 : i64} {
  func.func @_mm_kernel(%arg0: i32, %arg1: i32, %arg2: memref<128x16xbf16, #tpu.memory_space<vmem>>, %arg3: memref<16x16xbf16, #tpu.memory_space<vmem>>, %arg4: memref<1x16xf32, #tpu.memory_space<vmem>>, %arg5: memref<1x16xf32, #tpu.memory_space<vmem>>, %arg6: memref<1x16xf32, #tpu.memory_space<vmem>>, %arg7: memref<128x16xbf16, #tpu.memory_space<vmem>>, %arg8: memref<128x16xf32, #tpu.memory_space<vmem>>) attributes {dimension_semantics = [#tpu.dimension_semantics<parallel>, #tpu.dimension_semantics<arbitrary>], iteration_bounds = array<i64: 1, 1>, scalar_prefetch = 0 : i64, scratch_operands = 1 : i64, tpu.core_type = #tpu.core_type<tc>, window_params = [{transform_indices = @transform_0, window_bounds = array<i64: 128, 16>}, {transform_indices = @transform_1, window_bounds = array<i64: 16, 16>}, {transform_indices = @transform_2, window_bounds = array<i64: 1, 16>}, {transform_indices = @transform_3, window_bounds = array<i64: 1, 16>}, {pipeline_mode = #tpu.pipeline_mode<synchronous>, transform_indices = @transform_4, window_bounds = array<i64: 1, 16>}, {transform_indices = @transform_5, window_bounds = array<i64: 128, 16>}]} {
    %c0_i32 = arith.constant 0 : i32
    %0 = arith.cmpi eq, %arg1, %c0_i32 : i32
    %1 = arith.extui %0 : i1 to i32
    %c0_i32_0 = arith.constant 0 : i32
    %2 = arith.cmpi ne, %1, %c0_i32_0 : i32
    scf.if %2 {
      %cst_15 = arith.constant 0.000000e+00 : f32
      %22 = vector.broadcast %cst_15 : f32 to vector<128x16xf32>
      %c0_16 = arith.constant 0 : index
      %c0_17 = arith.constant 0 : index
      %23 = vector.load %arg8[%c0_16, %c0_17] : memref<128x16xf32, #tpu.memory_space<vmem>>, vector<128x16xf32>
      tpu.vector_store %arg8[%c0_16, %c0_17], %22 {strides = array<i32>} : memref<128x16xf32, #tpu.memory_space<vmem>>, vector<128x16xf32>,
    } else {
    }
    %c0 = arith.constant 0 : index
    %c0_1 = arith.constant 0 : index
    %3 = vector.load %arg2[%c0, %c0_1] : memref<128x16xbf16, #tpu.memory_space<vmem>>, vector<128x16xbf16>
    %4 = arith.extf %3 : vector<128x16xbf16> to vector<128x16xf32>
    %c0_2 = arith.constant 0 : index
    %c0_3 = arith.constant 0 : index
    %5 = vector.load %arg4[%c0_2, %c0_3] : memref<1x16xf32, #tpu.memory_space<vmem>>, vector<1x16xf32>
    %6 = vector.broadcast %5 : vector<1x16xf32> to vector<128x16xf32>
    %7 = arith.mulf %4, %6 : vector<128x16xf32>
    %c0_4 = arith.constant 0 : index
    %c0_5 = arith.constant 0 : index
    %8 = vector.load %arg5[%c0_4, %c0_5] : memref<1x16xf32, #tpu.memory_space<vmem>>, vector<1x16xf32>
    %9 = vector.broadcast %8 : vector<1x16xf32> to vector<128x16xf32>
    %10 = arith.addf %7, %9 : vector<128x16xf32>
    %cst = arith.constant 0.000000e+00 : f32
    %11 = vector.broadcast %cst : f32 to vector<128x16xf32>
    %12 = arith.maximumf %10, %11 : vector<128x16xf32>
    %13 = arith.truncf %12 : vector<128x16xf32> to vector<128x16xbf16>
    %c0_6 = arith.constant 0 : index
    %c0_7 = arith.constant 0 : index
    %14 = vector.load %arg8[%c0_6, %c0_7] : memref<128x16xf32, #tpu.memory_space<vmem>>, vector<128x16xf32>
    %c0_8 = arith.constant 0 : index
    %c0_9 = arith.constant 0 : index
    %15 = vector.load %arg3[%c0_8, %c0_9] : memref<16x16xbf16, #tpu.memory_space<vmem>>, vector<16x16xbf16>
    %cst_10 = arith.constant dense<0.000000e+00> : vector<128x16xf32>
    %16 = tpu.matmul %13, %15, %cst_10 {dimension_numbers = #tpu.dot_dimension_numbers<[1], [0], [0], [1], [0, 0, 1, 1], [], []>} : vector<128x16xbf16>, vector<16x16xbf16>, vector<128x16xf32> -> vector<128x16xf32>
    %17 = arith.addf %14, %16 : vector<128x16xf32>
    %c0_11 = arith.constant 0 : index
    %c0_12 = arith.constant 0 : index
    %18 = vector.load %arg8[%c0_11, %c0_12] : memref<128x16xf32, #tpu.memory_space<vmem>>, vector<128x16xf32>
    tpu.vector_store %arg8[%c0_11, %c0_12], %17 {strides = array<i32>} : memref<128x16xf32, #tpu.memory_space<vmem>>, vector<128x16xf32>,
    %c0_i32_13 = arith.constant 0 : i32
    %19 = arith.cmpi eq, %arg1, %c0_i32_13 : i32
    %20 = arith.extui %19 : i1 to i32
    %c0_i32_14 = arith.constant 0 : i32
    %21 = arith.cmpi ne, %20, %c0_i32_14 : i32
    scf.if %21 {
      %c0_15 = arith.constant 0 : index
      %c0_16 = arith.constant 0 : index
      %22 = vector.load %arg8[%c0_15, %c0_16] : memref<128x16xf32, #tpu.memory_space<vmem>>, vector<128x16xf32>
      %c0_17 = arith.constant 0 : index
      %c0_18 = arith.constant 0 : index
      %23 = vector.load %arg6[%c0_17, %c0_18] : memref<1x16xf32, #tpu.memory_space<vmem>>, vector<1x16xf32>
      %24 = vector.broadcast %23 : vector<1x16xf32> to vector<128x16xf32>
      %25 = arith.addf %22, %24 : vector<128x16xf32>
      %cst_19 = arith.constant 0.000000e+00 : f32
      %26 = vector.broadcast %cst_19 : f32 to vector<128x16xf32>
      %27 = arith.maximumf %25, %26 : vector<128x16xf32>
      %28 = arith.truncf %27 : vector<128x16xf32> to vector<128x16xbf16>
      %c0_20 = arith.constant 0 : index
      %c0_21 = arith.constant 0 : index
      %29 = vector.load %arg7[%c0_20, %c0_21] : memref<128x16xbf16, #tpu.memory_space<vmem>>, vector<128x16xbf16>
      tpu.vector_store %arg7[%c0_20, %c0_21], %28 {strides = array<i32>} : memref<128x16xbf16, #tpu.memory_space<vmem>>, vector<128x16xbf16>,
    } else {
    }
    return
  }
  func.func @transform_0(%arg0: i32, %arg1: i32) -> (i32, i32) {
    %c0_i32 = arith.constant 0 : i32
    return %arg0, %arg1 : i32, i32
  }
  func.func @transform_1(%arg0: i32, %arg1: i32) -> (i32, i32) {
    %c0_i32 = arith.constant 0 : i32
    %c0_i32_0 = arith.constant 0 : i32
    return %arg1, %c0_i32 : i32, i32
  }
  func.func @transform_2(%arg0: i32, %arg1: i32) -> (i32, i32) {
    %c0_i32 = arith.constant 0 : i32
    %c0_i32_0 = arith.constant 0 : i32
    return %c0_i32, %arg1 : i32, i32
  }
  func.func @transform_3(%arg0: i32, %arg1: i32) -> (i32, i32) {
    %c0_i32 = arith.constant 0 : i32
    %c0_i32_0 = arith.constant 0 : i32
    return %c0_i32, %arg1 : i32, i32
  }
  func.func @transform_4(%arg0: i32, %arg1: i32) -> (i32, i32) {
    %c0_i32 = arith.constant 0 : i32
    %c0_i32_0 = arith.constant 0 : i32
    %c0_i32_1 = arith.constant 0 : i32
    return %c0_i32, %c0_i32_0 : i32, i32
  }
  func.func @transform_5(%arg0: i32, %arg1: i32) -> (i32, i32) {
    %c0_i32 = arith.constant 0 : i32
    %c0_i32_0 = arith.constant 0 : i32
    return %arg0, %c0_i32 : i32, i32
  }
}

module attributes {stable_mosaic.version = 11 : i64} {
  func.func @_mm_kernel(%arg0: i32, %arg1: i32, %arg2: memref<128x144xbf16, #tpu.memory_space<vmem>>, %arg3: memref<144x8xbf16, #tpu.memory_space<vmem>>, %arg4: memref<1x8xf32, #tpu.memory_space<vmem>>, %arg5: memref<128x8xbf16, #tpu.memory_space<vmem>>, %arg6: memref<128x8xf32, #tpu.memory_space<vmem>>) attributes {dimension_semantics = [#tpu.dimension_semantics<parallel>, #tpu.dimension_semantics<arbitrary>], iteration_bounds = array<i64: 1, 1>, scalar_prefetch = 0 : i64, scratch_operands = 1 : i64, tpu.core_type = #tpu.core_type<tc>, window_params = [{transform_indices = @transform_0, window_bounds = array<i64: 128, 144>}, {transform_indices = @transform_1, window_bounds = array<i64: 144, 8>}, {pipeline_mode = #tpu.pipeline_mode<synchronous>, transform_indices = @transform_2, window_bounds = array<i64: 1, 8>}, {transform_indices = @transform_3, window_bounds = array<i64: 128, 8>}]} {
    %c0_i32 = arith.constant 0 : i32
    %0 = arith.cmpi eq, %arg1, %c0_i32 : i32
    %1 = arith.extui %0 : i1 to i32
    %c0_i32_0 = arith.constant 0 : i32
    %2 = arith.cmpi ne, %1, %c0_i32_0 : i32
    scf.if %2 {
      %cst_10 = arith.constant 0.000000e+00 : f32
      %12 = vector.broadcast %cst_10 : f32 to vector<128x8xf32>
      %c0_11 = arith.constant 0 : index
      %c0_12 = arith.constant 0 : index
      %13 = vector.load %arg6[%c0_11, %c0_12] : memref<128x8xf32, #tpu.memory_space<vmem>>, vector<128x8xf32>
      tpu.vector_store %arg6[%c0_11, %c0_12], %12 {strides = array<i32>} : memref<128x8xf32, #tpu.memory_space<vmem>>, vector<128x8xf32>,
    } else {
    }
    %c0 = arith.constant 0 : index
    %c0_1 = arith.constant 0 : index
    %3 = vector.load %arg2[%c0, %c0_1] : memref<128x144xbf16, #tpu.memory_space<vmem>>, vector<128x144xbf16>
    %c0_2 = arith.constant 0 : index
    %c0_3 = arith.constant 0 : index
    %4 = vector.load %arg6[%c0_2, %c0_3] : memref<128x8xf32, #tpu.memory_space<vmem>>, vector<128x8xf32>
    %c0_4 = arith.constant 0 : index
    %c0_5 = arith.constant 0 : index
    %5 = vector.load %arg3[%c0_4, %c0_5] : memref<144x8xbf16, #tpu.memory_space<vmem>>, vector<144x8xbf16>
    %cst = arith.constant dense<0.000000e+00> : vector<128x8xf32>
    %6 = tpu.matmul %3, %5, %cst {dimension_numbers = #tpu.dot_dimension_numbers<[1], [0], [0], [1], [0, 0, 1, 1], [], []>} : vector<128x144xbf16>, vector<144x8xbf16>, vector<128x8xf32> -> vector<128x8xf32>
    %7 = arith.addf %4, %6 : vector<128x8xf32>
    %c0_6 = arith.constant 0 : index
    %c0_7 = arith.constant 0 : index
    %8 = vector.load %arg6[%c0_6, %c0_7] : memref<128x8xf32, #tpu.memory_space<vmem>>, vector<128x8xf32>
    tpu.vector_store %arg6[%c0_6, %c0_7], %7 {strides = array<i32>} : memref<128x8xf32, #tpu.memory_space<vmem>>, vector<128x8xf32>,
    %c0_i32_8 = arith.constant 0 : i32
    %9 = arith.cmpi eq, %arg1, %c0_i32_8 : i32
    %10 = arith.extui %9 : i1 to i32
    %c0_i32_9 = arith.constant 0 : i32
    %11 = arith.cmpi ne, %10, %c0_i32_9 : i32
    scf.if %11 {
      %c0_10 = arith.constant 0 : index
      %c0_11 = arith.constant 0 : index
      %12 = vector.load %arg6[%c0_10, %c0_11] : memref<128x8xf32, #tpu.memory_space<vmem>>, vector<128x8xf32>
      %c0_12 = arith.constant 0 : index
      %c0_13 = arith.constant 0 : index
      %13 = vector.load %arg4[%c0_12, %c0_13] : memref<1x8xf32, #tpu.memory_space<vmem>>, vector<1x8xf32>
      %14 = vector.broadcast %13 : vector<1x8xf32> to vector<128x8xf32>
      %15 = arith.addf %12, %14 : vector<128x8xf32>
      %16 = arith.truncf %15 : vector<128x8xf32> to vector<128x8xbf16>
      %c0_14 = arith.constant 0 : index
      %c0_15 = arith.constant 0 : index
      %17 = vector.load %arg5[%c0_14, %c0_15] : memref<128x8xbf16, #tpu.memory_space<vmem>>, vector<128x8xbf16>
      tpu.vector_store %arg5[%c0_14, %c0_15], %16 {strides = array<i32>} : memref<128x8xbf16, #tpu.memory_space<vmem>>, vector<128x8xbf16>,
    } else {
    }
    return
  }
  func.func @transform_0(%arg0: i32, %arg1: i32) -> (i32, i32) {
    %c0_i32 = arith.constant 0 : i32
    return %arg0, %arg1 : i32, i32
  }
  func.func @transform_1(%arg0: i32, %arg1: i32) -> (i32, i32) {
    %c0_i32 = arith.constant 0 : i32
    %c0_i32_0 = arith.constant 0 : i32
    return %arg1, %c0_i32 : i32, i32
  }
  func.func @transform_2(%arg0: i32, %arg1: i32) -> (i32, i32) {
    %c0_i32 = arith.constant 0 : i32
    %c0_i32_0 = arith.constant 0 : i32
    %c0_i32_1 = arith.constant 0 : i32
    return %c0_i32, %c0_i32_0 : i32, i32
  }
  func.func @transform_3(%arg0: i32, %arg1: i32) -> (i32, i32) {
    %c0_i32 = arith.constant 0 : i32
    %c0_i32_0 = arith.constant 0 : i32
    return %arg0, %c0_i32 : i32, i32
  }
}

module attributes {stable_mosaic.version = 11 : i64} {
  func.func @_mm_kernel(%arg0: i32, %arg1: i32, %arg2: memref<128x24xbf16, #tpu.memory_space<vmem>>, %arg3: memref<24x16xbf16, #tpu.memory_space<vmem>>, %arg4: memref<1x24xf32, #tpu.memory_space<vmem>>, %arg5: memref<1x24xf32, #tpu.memory_space<vmem>>, %arg6: memref<1x16xf32, #tpu.memory_space<vmem>>, %arg7: memref<128x16xbf16, #tpu.memory_space<vmem>>, %arg8: memref<128x16xf32, #tpu.memory_space<vmem>>) attributes {dimension_semantics = [#tpu.dimension_semantics<parallel>, #tpu.dimension_semantics<arbitrary>], iteration_bounds = array<i64: 1, 1>, scalar_prefetch = 0 : i64, scratch_operands = 1 : i64, tpu.core_type = #tpu.core_type<tc>, window_params = [{transform_indices = @transform_0, window_bounds = array<i64: 128, 24>}, {transform_indices = @transform_1, window_bounds = array<i64: 24, 16>}, {transform_indices = @transform_2, window_bounds = array<i64: 1, 24>}, {transform_indices = @transform_3, window_bounds = array<i64: 1, 24>}, {pipeline_mode = #tpu.pipeline_mode<synchronous>, transform_indices = @transform_4, window_bounds = array<i64: 1, 16>}, {transform_indices = @transform_5, window_bounds = array<i64: 128, 16>}]} {
    %c0_i32 = arith.constant 0 : i32
    %0 = arith.cmpi eq, %arg1, %c0_i32 : i32
    %1 = arith.extui %0 : i1 to i32
    %c0_i32_0 = arith.constant 0 : i32
    %2 = arith.cmpi ne, %1, %c0_i32_0 : i32
    scf.if %2 {
      %cst_15 = arith.constant 0.000000e+00 : f32
      %22 = vector.broadcast %cst_15 : f32 to vector<128x16xf32>
      %c0_16 = arith.constant 0 : index
      %c0_17 = arith.constant 0 : index
      %23 = vector.load %arg8[%c0_16, %c0_17] : memref<128x16xf32, #tpu.memory_space<vmem>>, vector<128x16xf32>
      tpu.vector_store %arg8[%c0_16, %c0_17], %22 {strides = array<i32>} : memref<128x16xf32, #tpu.memory_space<vmem>>, vector<128x16xf32>,
    } else {
    }
    %c0 = arith.constant 0 : index
    %c0_1 = arith.constant 0 : index
    %3 = vector.load %arg2[%c0, %c0_1] : memref<128x24xbf16, #tpu.memory_space<vmem>>, vector<128x24xbf16>
    %4 = arith.extf %3 : vector<128x24xbf16> to vector<128x24xf32>
    %c0_2 = arith.constant 0 : index
    %c0_3 = arith.constant 0 : index
    %5 = vector.load %arg4[%c0_2, %c0_3] : memref<1x24xf32, #tpu.memory_space<vmem>>, vector<1x24xf32>
    %6 = vector.broadcast %5 : vector<1x24xf32> to vector<128x24xf32>
    %7 = arith.mulf %4, %6 : vector<128x24xf32>
    %c0_4 = arith.constant 0 : index
    %c0_5 = arith.constant 0 : index
    %8 = vector.load %arg5[%c0_4, %c0_5] : memref<1x24xf32, #tpu.memory_space<vmem>>, vector<1x24xf32>
    %9 = vector.broadcast %8 : vector<1x24xf32> to vector<128x24xf32>
    %10 = arith.addf %7, %9 : vector<128x24xf32>
    %cst = arith.constant 0.000000e+00 : f32
    %11 = vector.broadcast %cst : f32 to vector<128x24xf32>
    %12 = arith.maximumf %10, %11 : vector<128x24xf32>
    %13 = arith.truncf %12 : vector<128x24xf32> to vector<128x24xbf16>
    %c0_6 = arith.constant 0 : index
    %c0_7 = arith.constant 0 : index
    %14 = vector.load %arg8[%c0_6, %c0_7] : memref<128x16xf32, #tpu.memory_space<vmem>>, vector<128x16xf32>
    %c0_8 = arith.constant 0 : index
    %c0_9 = arith.constant 0 : index
    %15 = vector.load %arg3[%c0_8, %c0_9] : memref<24x16xbf16, #tpu.memory_space<vmem>>, vector<24x16xbf16>
    %cst_10 = arith.constant dense<0.000000e+00> : vector<128x16xf32>
    %16 = tpu.matmul %13, %15, %cst_10 {dimension_numbers = #tpu.dot_dimension_numbers<[1], [0], [0], [1], [0, 0, 1, 1], [], []>} : vector<128x24xbf16>, vector<24x16xbf16>, vector<128x16xf32> -> vector<128x16xf32>
    %17 = arith.addf %14, %16 : vector<128x16xf32>
    %c0_11 = arith.constant 0 : index
    %c0_12 = arith.constant 0 : index
    %18 = vector.load %arg8[%c0_11, %c0_12] : memref<128x16xf32, #tpu.memory_space<vmem>>, vector<128x16xf32>
    tpu.vector_store %arg8[%c0_11, %c0_12], %17 {strides = array<i32>} : memref<128x16xf32, #tpu.memory_space<vmem>>, vector<128x16xf32>,
    %c0_i32_13 = arith.constant 0 : i32
    %19 = arith.cmpi eq, %arg1, %c0_i32_13 : i32
    %20 = arith.extui %19 : i1 to i32
    %c0_i32_14 = arith.constant 0 : i32
    %21 = arith.cmpi ne, %20, %c0_i32_14 : i32
    scf.if %21 {
      %c0_15 = arith.constant 0 : index
      %c0_16 = arith.constant 0 : index
      %22 = vector.load %arg8[%c0_15, %c0_16] : memref<128x16xf32, #tpu.memory_space<vmem>>, vector<128x16xf32>
      %c0_17 = arith.constant 0 : index
      %c0_18 = arith.constant 0 : index
      %23 = vector.load %arg6[%c0_17, %c0_18] : memref<1x16xf32, #tpu.memory_space<vmem>>, vector<1x16xf32>
      %24 = vector.broadcast %23 : vector<1x16xf32> to vector<128x16xf32>
      %25 = arith.addf %22, %24 : vector<128x16xf32>
      %cst_19 = arith.constant 0.000000e+00 : f32
      %26 = vector.broadcast %cst_19 : f32 to vector<128x16xf32>
      %27 = arith.maximumf %25, %26 : vector<128x16xf32>
      %28 = arith.truncf %27 : vector<128x16xf32> to vector<128x16xbf16>
      %c0_20 = arith.constant 0 : index
      %c0_21 = arith.constant 0 : index
      %29 = vector.load %arg7[%c0_20, %c0_21] : memref<128x16xbf16, #tpu.memory_space<vmem>>, vector<128x16xbf16>
      tpu.vector_store %arg7[%c0_20, %c0_21], %28 {strides = array<i32>} : memref<128x16xbf16, #tpu.memory_space<vmem>>, vector<128x16xbf16>,
    } else {
    }
    return
  }
  func.func @transform_0(%arg0: i32, %arg1: i32) -> (i32, i32) {
    %c0_i32 = arith.constant 0 : i32
    return %arg0, %arg1 : i32, i32
  }
  func.func @transform_1(%arg0: i32, %arg1: i32) -> (i32, i32) {
    %c0_i32 = arith.constant 0 : i32
    %c0_i32_0 = arith.constant 0 : i32
    return %arg1, %c0_i32 : i32, i32
  }
  func.func @transform_2(%arg0: i32, %arg1: i32) -> (i32, i32) {
    %c0_i32 = arith.constant 0 : i32
    %c0_i32_0 = arith.constant 0 : i32
    return %c0_i32, %arg1 : i32, i32
  }
  func.func @transform_3(%arg0: i32, %arg1: i32) -> (i32, i32) {
    %c0_i32 = arith.constant 0 : i32
    %c0_i32_0 = arith.constant 0 : i32
    return %c0_i32, %arg1 : i32, i32
  }
  func.func @transform_4(%arg0: i32, %arg1: i32) -> (i32, i32) {
    %c0_i32 = arith.constant 0 : i32
    %c0_i32_0 = arith.constant 0 : i32
    %c0_i32_1 = arith.constant 0 : i32
    return %c0_i32, %c0_i32_0 : i32, i32
  }
  func.func @transform_5(%arg0: i32, %arg1: i32) -> (i32, i32) {
    %c0_i32 = arith.constant 0 : i32
    %c0_i32_0 = arith.constant 0 : i32
    return %arg0, %c0_i32 : i32, i32
  }
}

module attributes {stable_mosaic.version = 11 : i64} {
  func.func @_mm_kernel(%arg0: i32, %arg1: i32, %arg2: memref<128x32xbf16, #tpu.memory_space<vmem>>, %arg3: memref<32x16xbf16, #tpu.memory_space<vmem>>, %arg4: memref<1x32xf32, #tpu.memory_space<vmem>>, %arg5: memref<1x32xf32, #tpu.memory_space<vmem>>, %arg6: memref<1x16xf32, #tpu.memory_space<vmem>>, %arg7: memref<128x16xbf16, #tpu.memory_space<vmem>>, %arg8: memref<128x16xf32, #tpu.memory_space<vmem>>) attributes {dimension_semantics = [#tpu.dimension_semantics<parallel>, #tpu.dimension_semantics<arbitrary>], iteration_bounds = array<i64: 1, 1>, scalar_prefetch = 0 : i64, scratch_operands = 1 : i64, tpu.core_type = #tpu.core_type<tc>, window_params = [{transform_indices = @transform_0, window_bounds = array<i64: 128, 32>}, {transform_indices = @transform_1, window_bounds = array<i64: 32, 16>}, {transform_indices = @transform_2, window_bounds = array<i64: 1, 32>}, {transform_indices = @transform_3, window_bounds = array<i64: 1, 32>}, {pipeline_mode = #tpu.pipeline_mode<synchronous>, transform_indices = @transform_4, window_bounds = array<i64: 1, 16>}, {transform_indices = @transform_5, window_bounds = array<i64: 128, 16>}]} {
    %c0_i32 = arith.constant 0 : i32
    %0 = arith.cmpi eq, %arg1, %c0_i32 : i32
    %1 = arith.extui %0 : i1 to i32
    %c0_i32_0 = arith.constant 0 : i32
    %2 = arith.cmpi ne, %1, %c0_i32_0 : i32
    scf.if %2 {
      %cst_15 = arith.constant 0.000000e+00 : f32
      %22 = vector.broadcast %cst_15 : f32 to vector<128x16xf32>
      %c0_16 = arith.constant 0 : index
      %c0_17 = arith.constant 0 : index
      %23 = vector.load %arg8[%c0_16, %c0_17] : memref<128x16xf32, #tpu.memory_space<vmem>>, vector<128x16xf32>
      tpu.vector_store %arg8[%c0_16, %c0_17], %22 {strides = array<i32>} : memref<128x16xf32, #tpu.memory_space<vmem>>, vector<128x16xf32>,
    } else {
    }
    %c0 = arith.constant 0 : index
    %c0_1 = arith.constant 0 : index
    %3 = vector.load %arg2[%c0, %c0_1] : memref<128x32xbf16, #tpu.memory_space<vmem>>, vector<128x32xbf16>
    %4 = arith.extf %3 : vector<128x32xbf16> to vector<128x32xf32>
    %c0_2 = arith.constant 0 : index
    %c0_3 = arith.constant 0 : index
    %5 = vector.load %arg4[%c0_2, %c0_3] : memref<1x32xf32, #tpu.memory_space<vmem>>, vector<1x32xf32>
    %6 = vector.broadcast %5 : vector<1x32xf32> to vector<128x32xf32>
    %7 = arith.mulf %4, %6 : vector<128x32xf32>
    %c0_4 = arith.constant 0 : index
    %c0_5 = arith.constant 0 : index
    %8 = vector.load %arg5[%c0_4, %c0_5] : memref<1x32xf32, #tpu.memory_space<vmem>>, vector<1x32xf32>
    %9 = vector.broadcast %8 : vector<1x32xf32> to vector<128x32xf32>
    %10 = arith.addf %7, %9 : vector<128x32xf32>
    %cst = arith.constant 0.000000e+00 : f32
    %11 = vector.broadcast %cst : f32 to vector<128x32xf32>
    %12 = arith.maximumf %10, %11 : vector<128x32xf32>
    %13 = arith.truncf %12 : vector<128x32xf32> to vector<128x32xbf16>
    %c0_6 = arith.constant 0 : index
    %c0_7 = arith.constant 0 : index
    %14 = vector.load %arg8[%c0_6, %c0_7] : memref<128x16xf32, #tpu.memory_space<vmem>>, vector<128x16xf32>
    %c0_8 = arith.constant 0 : index
    %c0_9 = arith.constant 0 : index
    %15 = vector.load %arg3[%c0_8, %c0_9] : memref<32x16xbf16, #tpu.memory_space<vmem>>, vector<32x16xbf16>
    %cst_10 = arith.constant dense<0.000000e+00> : vector<128x16xf32>
    %16 = tpu.matmul %13, %15, %cst_10 {dimension_numbers = #tpu.dot_dimension_numbers<[1], [0], [0], [1], [0, 0, 1, 1], [], []>} : vector<128x32xbf16>, vector<32x16xbf16>, vector<128x16xf32> -> vector<128x16xf32>
    %17 = arith.addf %14, %16 : vector<128x16xf32>
    %c0_11 = arith.constant 0 : index
    %c0_12 = arith.constant 0 : index
    %18 = vector.load %arg8[%c0_11, %c0_12] : memref<128x16xf32, #tpu.memory_space<vmem>>, vector<128x16xf32>
    tpu.vector_store %arg8[%c0_11, %c0_12], %17 {strides = array<i32>} : memref<128x16xf32, #tpu.memory_space<vmem>>, vector<128x16xf32>,
    %c0_i32_13 = arith.constant 0 : i32
    %19 = arith.cmpi eq, %arg1, %c0_i32_13 : i32
    %20 = arith.extui %19 : i1 to i32
    %c0_i32_14 = arith.constant 0 : i32
    %21 = arith.cmpi ne, %20, %c0_i32_14 : i32
    scf.if %21 {
      %c0_15 = arith.constant 0 : index
      %c0_16 = arith.constant 0 : index
      %22 = vector.load %arg8[%c0_15, %c0_16] : memref<128x16xf32, #tpu.memory_space<vmem>>, vector<128x16xf32>
      %c0_17 = arith.constant 0 : index
      %c0_18 = arith.constant 0 : index
      %23 = vector.load %arg6[%c0_17, %c0_18] : memref<1x16xf32, #tpu.memory_space<vmem>>, vector<1x16xf32>
      %24 = vector.broadcast %23 : vector<1x16xf32> to vector<128x16xf32>
      %25 = arith.addf %22, %24 : vector<128x16xf32>
      %26 = arith.truncf %25 : vector<128x16xf32> to vector<128x16xbf16>
      %c0_19 = arith.constant 0 : index
      %c0_20 = arith.constant 0 : index
      %27 = vector.load %arg7[%c0_19, %c0_20] : memref<128x16xbf16, #tpu.memory_space<vmem>>, vector<128x16xbf16>
      tpu.vector_store %arg7[%c0_19, %c0_20], %26 {strides = array<i32>} : memref<128x16xbf16, #tpu.memory_space<vmem>>, vector<128x16xbf16>,
    } else {
    }
    return
  }
  func.func @transform_0(%arg0: i32, %arg1: i32) -> (i32, i32) {
    %c0_i32 = arith.constant 0 : i32
    return %arg0, %arg1 : i32, i32
  }
  func.func @transform_1(%arg0: i32, %arg1: i32) -> (i32, i32) {
    %c0_i32 = arith.constant 0 : i32
    %c0_i32_0 = arith.constant 0 : i32
    return %arg1, %c0_i32 : i32, i32
  }
  func.func @transform_2(%arg0: i32, %arg1: i32) -> (i32, i32) {
    %c0_i32 = arith.constant 0 : i32
    %c0_i32_0 = arith.constant 0 : i32
    return %c0_i32, %arg1 : i32, i32
  }
  func.func @transform_3(%arg0: i32, %arg1: i32) -> (i32, i32) {
    %c0_i32 = arith.constant 0 : i32
    %c0_i32_0 = arith.constant 0 : i32
    return %c0_i32, %arg1 : i32, i32
  }
  func.func @transform_4(%arg0: i32, %arg1: i32) -> (i32, i32) {
    %c0_i32 = arith.constant 0 : i32
    %c0_i32_0 = arith.constant 0 : i32
    %c0_i32_1 = arith.constant 0 : i32
    return %c0_i32, %c0_i32_0 : i32, i32
  }
  func.func @transform_5(%arg0: i32, %arg1: i32) -> (i32, i32) {
    %c0_i32 = arith.constant 0 : i32
    %c0_i32_0 = arith.constant 0 : i32
    return %arg0, %c0_i32 : i32, i32
  }
}

module attributes {stable_mosaic.version = 11 : i64} {
  func.func @_window_reduce_kernel(%arg0: i32, %arg1: memref<4x32x16xbf16, #tpu.memory_space<vmem>>, %arg2: memref<32x16xbf16, #tpu.memory_space<vmem>>) attributes {dimension_semantics = [#tpu.dimension_semantics<parallel>], iteration_bounds = array<i64: 1>, scalar_prefetch = 0 : i64, scratch_operands = 0 : i64, tpu.core_type = #tpu.core_type<tc>, window_params = [{transform_indices = @transform_0, window_bounds = array<i64: 4, 32, 16>}, {transform_indices = @transform_1, window_bounds = array<i64: 32, 16>}]} {
    %c0 = arith.constant 0 : index
    %c0_0 = arith.constant 0 : index
    %c0_1 = arith.constant 0 : index
    %0 = vector.load %arg1[%c0, %c0_0, %c0_1] : memref<4x32x16xbf16, #tpu.memory_space<vmem>>, vector<4x32x16xbf16>
    %1 = arith.extf %0 : vector<4x32x16xbf16> to vector<4x32x16xf32>
    %cst = arith.constant dense<0.000000e+00> : vector<32x16xf32>
    %2 = vector.multi_reduction <add>, %1, %cst [0] : vector<4x32x16xf32> to vector<32x16xf32>
    %cst_2 = arith.constant 2.500000e-01 : f32
    %3 = vector.broadcast %cst_2 : f32 to vector<32x16xf32>
    %4 = arith.mulf %2, %3 : vector<32x16xf32>
    %5 = arith.truncf %4 : vector<32x16xf32> to vector<32x16xbf16>
    %c0_3 = arith.constant 0 : index
    %c0_4 = arith.constant 0 : index
    %6 = vector.load %arg2[%c0_3, %c0_4] : memref<32x16xbf16, #tpu.memory_space<vmem>>, vector<32x16xbf16>
    tpu.vector_store %arg2[%c0_3, %c0_4], %5 {strides = array<i32>} : memref<32x16xbf16, #tpu.memory_space<vmem>>, vector<32x16xbf16>,
    return
  }
  func.func @transform_0(%arg0: i32) -> (i32, i32, i32) {
    %c0_i32 = arith.constant 0 : i32
    %c0_i32_0 = arith.constant 0 : i32
    %c0_i32_1 = arith.constant 0 : i32
    return %c0_i32, %arg0, %c0_i32_0 : i32, i32, i32
  }
  func.func @transform_1(%arg0: i32) -> (i32, i32) {
    %c0_i32 = arith.constant 0 : i32
    %c0_i32_0 = arith.constant 0 : i32
    return %arg0, %c0_i32 : i32, i32
  }
}

module attributes {stable_mosaic.version = 11 : i64} {
  func.func @_mm_kernel(%arg0: i32, %arg1: i32, %arg2: memref<32x16xbf16, #tpu.memory_space<vmem>>, %arg3: memref<16x16xbf16, #tpu.memory_space<vmem>>, %arg4: memref<1x16xf32, #tpu.memory_space<vmem>>, %arg5: memref<1x16xf32, #tpu.memory_space<vmem>>, %arg6: memref<1x16xf32, #tpu.memory_space<vmem>>, %arg7: memref<32x16xbf16, #tpu.memory_space<vmem>>, %arg8: memref<32x16xf32, #tpu.memory_space<vmem>>) attributes {dimension_semantics = [#tpu.dimension_semantics<parallel>, #tpu.dimension_semantics<arbitrary>], iteration_bounds = array<i64: 1, 1>, scalar_prefetch = 0 : i64, scratch_operands = 1 : i64, tpu.core_type = #tpu.core_type<tc>, window_params = [{transform_indices = @transform_0, window_bounds = array<i64: 32, 16>}, {transform_indices = @transform_1, window_bounds = array<i64: 16, 16>}, {transform_indices = @transform_2, window_bounds = array<i64: 1, 16>}, {transform_indices = @transform_3, window_bounds = array<i64: 1, 16>}, {pipeline_mode = #tpu.pipeline_mode<synchronous>, transform_indices = @transform_4, window_bounds = array<i64: 1, 16>}, {transform_indices = @transform_5, window_bounds = array<i64: 32, 16>}]} {
    %c0_i32 = arith.constant 0 : i32
    %0 = arith.cmpi eq, %arg1, %c0_i32 : i32
    %1 = arith.extui %0 : i1 to i32
    %c0_i32_0 = arith.constant 0 : i32
    %2 = arith.cmpi ne, %1, %c0_i32_0 : i32
    scf.if %2 {
      %cst_15 = arith.constant 0.000000e+00 : f32
      %22 = vector.broadcast %cst_15 : f32 to vector<32x16xf32>
      %c0_16 = arith.constant 0 : index
      %c0_17 = arith.constant 0 : index
      %23 = vector.load %arg8[%c0_16, %c0_17] : memref<32x16xf32, #tpu.memory_space<vmem>>, vector<32x16xf32>
      tpu.vector_store %arg8[%c0_16, %c0_17], %22 {strides = array<i32>} : memref<32x16xf32, #tpu.memory_space<vmem>>, vector<32x16xf32>,
    } else {
    }
    %c0 = arith.constant 0 : index
    %c0_1 = arith.constant 0 : index
    %3 = vector.load %arg2[%c0, %c0_1] : memref<32x16xbf16, #tpu.memory_space<vmem>>, vector<32x16xbf16>
    %4 = arith.extf %3 : vector<32x16xbf16> to vector<32x16xf32>
    %c0_2 = arith.constant 0 : index
    %c0_3 = arith.constant 0 : index
    %5 = vector.load %arg4[%c0_2, %c0_3] : memref<1x16xf32, #tpu.memory_space<vmem>>, vector<1x16xf32>
    %6 = vector.broadcast %5 : vector<1x16xf32> to vector<32x16xf32>
    %7 = arith.mulf %4, %6 : vector<32x16xf32>
    %c0_4 = arith.constant 0 : index
    %c0_5 = arith.constant 0 : index
    %8 = vector.load %arg5[%c0_4, %c0_5] : memref<1x16xf32, #tpu.memory_space<vmem>>, vector<1x16xf32>
    %9 = vector.broadcast %8 : vector<1x16xf32> to vector<32x16xf32>
    %10 = arith.addf %7, %9 : vector<32x16xf32>
    %cst = arith.constant 0.000000e+00 : f32
    %11 = vector.broadcast %cst : f32 to vector<32x16xf32>
    %12 = arith.maximumf %10, %11 : vector<32x16xf32>
    %13 = arith.truncf %12 : vector<32x16xf32> to vector<32x16xbf16>
    %c0_6 = arith.constant 0 : index
    %c0_7 = arith.constant 0 : index
    %14 = vector.load %arg8[%c0_6, %c0_7] : memref<32x16xf32, #tpu.memory_space<vmem>>, vector<32x16xf32>
    %c0_8 = arith.constant 0 : index
    %c0_9 = arith.constant 0 : index
    %15 = vector.load %arg3[%c0_8, %c0_9] : memref<16x16xbf16, #tpu.memory_space<vmem>>, vector<16x16xbf16>
    %cst_10 = arith.constant dense<0.000000e+00> : vector<32x16xf32>
    %16 = tpu.matmul %13, %15, %cst_10 {dimension_numbers = #tpu.dot_dimension_numbers<[1], [0], [0], [1], [0, 0, 1, 1], [], []>} : vector<32x16xbf16>, vector<16x16xbf16>, vector<32x16xf32> -> vector<32x16xf32>
    %17 = arith.addf %14, %16 : vector<32x16xf32>
    %c0_11 = arith.constant 0 : index
    %c0_12 = arith.constant 0 : index
    %18 = vector.load %arg8[%c0_11, %c0_12] : memref<32x16xf32, #tpu.memory_space<vmem>>, vector<32x16xf32>
    tpu.vector_store %arg8[%c0_11, %c0_12], %17 {strides = array<i32>} : memref<32x16xf32, #tpu.memory_space<vmem>>, vector<32x16xf32>,
    %c0_i32_13 = arith.constant 0 : i32
    %19 = arith.cmpi eq, %arg1, %c0_i32_13 : i32
    %20 = arith.extui %19 : i1 to i32
    %c0_i32_14 = arith.constant 0 : i32
    %21 = arith.cmpi ne, %20, %c0_i32_14 : i32
    scf.if %21 {
      %c0_15 = arith.constant 0 : index
      %c0_16 = arith.constant 0 : index
      %22 = vector.load %arg8[%c0_15, %c0_16] : memref<32x16xf32, #tpu.memory_space<vmem>>, vector<32x16xf32>
      %c0_17 = arith.constant 0 : index
      %c0_18 = arith.constant 0 : index
      %23 = vector.load %arg6[%c0_17, %c0_18] : memref<1x16xf32, #tpu.memory_space<vmem>>, vector<1x16xf32>
      %24 = vector.broadcast %23 : vector<1x16xf32> to vector<32x16xf32>
      %25 = arith.addf %22, %24 : vector<32x16xf32>
      %cst_19 = arith.constant 0.000000e+00 : f32
      %26 = vector.broadcast %cst_19 : f32 to vector<32x16xf32>
      %27 = arith.maximumf %25, %26 : vector<32x16xf32>
      %28 = arith.truncf %27 : vector<32x16xf32> to vector<32x16xbf16>
      %c0_20 = arith.constant 0 : index
      %c0_21 = arith.constant 0 : index
      %29 = vector.load %arg7[%c0_20, %c0_21] : memref<32x16xbf16, #tpu.memory_space<vmem>>, vector<32x16xbf16>
      tpu.vector_store %arg7[%c0_20, %c0_21], %28 {strides = array<i32>} : memref<32x16xbf16, #tpu.memory_space<vmem>>, vector<32x16xbf16>,
    } else {
    }
    return
  }
  func.func @transform_0(%arg0: i32, %arg1: i32) -> (i32, i32) {
    %c0_i32 = arith.constant 0 : i32
    return %arg0, %arg1 : i32, i32
  }
  func.func @transform_1(%arg0: i32, %arg1: i32) -> (i32, i32) {
    %c0_i32 = arith.constant 0 : i32
    %c0_i32_0 = arith.constant 0 : i32
    return %arg1, %c0_i32 : i32, i32
  }
  func.func @transform_2(%arg0: i32, %arg1: i32) -> (i32, i32) {
    %c0_i32 = arith.constant 0 : i32
    %c0_i32_0 = arith.constant 0 : i32
    return %c0_i32, %arg1 : i32, i32
  }
  func.func @transform_3(%arg0: i32, %arg1: i32) -> (i32, i32) {
    %c0_i32 = arith.constant 0 : i32
    %c0_i32_0 = arith.constant 0 : i32
    return %c0_i32, %arg1 : i32, i32
  }
  func.func @transform_4(%arg0: i32, %arg1: i32) -> (i32, i32) {
    %c0_i32 = arith.constant 0 : i32
    %c0_i32_0 = arith.constant 0 : i32
    %c0_i32_1 = arith.constant 0 : i32
    return %c0_i32, %c0_i32_0 : i32, i32
  }
  func.func @transform_5(%arg0: i32, %arg1: i32) -> (i32, i32) {
    %c0_i32 = arith.constant 0 : i32
    %c0_i32_0 = arith.constant 0 : i32
    return %arg0, %c0_i32 : i32, i32
  }
}

module attributes {stable_mosaic.version = 11 : i64} {
  func.func @_mm_kernel(%arg0: i32, %arg1: i32, %arg2: memref<32x24xbf16, #tpu.memory_space<vmem>>, %arg3: memref<24x16xbf16, #tpu.memory_space<vmem>>, %arg4: memref<1x24xf32, #tpu.memory_space<vmem>>, %arg5: memref<1x24xf32, #tpu.memory_space<vmem>>, %arg6: memref<1x16xf32, #tpu.memory_space<vmem>>, %arg7: memref<32x16xbf16, #tpu.memory_space<vmem>>, %arg8: memref<32x16xf32, #tpu.memory_space<vmem>>) attributes {dimension_semantics = [#tpu.dimension_semantics<parallel>, #tpu.dimension_semantics<arbitrary>], iteration_bounds = array<i64: 1, 1>, scalar_prefetch = 0 : i64, scratch_operands = 1 : i64, tpu.core_type = #tpu.core_type<tc>, window_params = [{transform_indices = @transform_0, window_bounds = array<i64: 32, 24>}, {transform_indices = @transform_1, window_bounds = array<i64: 24, 16>}, {transform_indices = @transform_2, window_bounds = array<i64: 1, 24>}, {transform_indices = @transform_3, window_bounds = array<i64: 1, 24>}, {pipeline_mode = #tpu.pipeline_mode<synchronous>, transform_indices = @transform_4, window_bounds = array<i64: 1, 16>}, {transform_indices = @transform_5, window_bounds = array<i64: 32, 16>}]} {
    %c0_i32 = arith.constant 0 : i32
    %0 = arith.cmpi eq, %arg1, %c0_i32 : i32
    %1 = arith.extui %0 : i1 to i32
    %c0_i32_0 = arith.constant 0 : i32
    %2 = arith.cmpi ne, %1, %c0_i32_0 : i32
    scf.if %2 {
      %cst_15 = arith.constant 0.000000e+00 : f32
      %22 = vector.broadcast %cst_15 : f32 to vector<32x16xf32>
      %c0_16 = arith.constant 0 : index
      %c0_17 = arith.constant 0 : index
      %23 = vector.load %arg8[%c0_16, %c0_17] : memref<32x16xf32, #tpu.memory_space<vmem>>, vector<32x16xf32>
      tpu.vector_store %arg8[%c0_16, %c0_17], %22 {strides = array<i32>} : memref<32x16xf32, #tpu.memory_space<vmem>>, vector<32x16xf32>,
    } else {
    }
    %c0 = arith.constant 0 : index
    %c0_1 = arith.constant 0 : index
    %3 = vector.load %arg2[%c0, %c0_1] : memref<32x24xbf16, #tpu.memory_space<vmem>>, vector<32x24xbf16>
    %4 = arith.extf %3 : vector<32x24xbf16> to vector<32x24xf32>
    %c0_2 = arith.constant 0 : index
    %c0_3 = arith.constant 0 : index
    %5 = vector.load %arg4[%c0_2, %c0_3] : memref<1x24xf32, #tpu.memory_space<vmem>>, vector<1x24xf32>
    %6 = vector.broadcast %5 : vector<1x24xf32> to vector<32x24xf32>
    %7 = arith.mulf %4, %6 : vector<32x24xf32>
    %c0_4 = arith.constant 0 : index
    %c0_5 = arith.constant 0 : index
    %8 = vector.load %arg5[%c0_4, %c0_5] : memref<1x24xf32, #tpu.memory_space<vmem>>, vector<1x24xf32>
    %9 = vector.broadcast %8 : vector<1x24xf32> to vector<32x24xf32>
    %10 = arith.addf %7, %9 : vector<32x24xf32>
    %cst = arith.constant 0.000000e+00 : f32
    %11 = vector.broadcast %cst : f32 to vector<32x24xf32>
    %12 = arith.maximumf %10, %11 : vector<32x24xf32>
    %13 = arith.truncf %12 : vector<32x24xf32> to vector<32x24xbf16>
    %c0_6 = arith.constant 0 : index
    %c0_7 = arith.constant 0 : index
    %14 = vector.load %arg8[%c0_6, %c0_7] : memref<32x16xf32, #tpu.memory_space<vmem>>, vector<32x16xf32>
    %c0_8 = arith.constant 0 : index
    %c0_9 = arith.constant 0 : index
    %15 = vector.load %arg3[%c0_8, %c0_9] : memref<24x16xbf16, #tpu.memory_space<vmem>>, vector<24x16xbf16>
    %cst_10 = arith.constant dense<0.000000e+00> : vector<32x16xf32>
    %16 = tpu.matmul %13, %15, %cst_10 {dimension_numbers = #tpu.dot_dimension_numbers<[1], [0], [0], [1], [0, 0, 1, 1], [], []>} : vector<32x24xbf16>, vector<24x16xbf16>, vector<32x16xf32> -> vector<32x16xf32>
    %17 = arith.addf %14, %16 : vector<32x16xf32>
    %c0_11 = arith.constant 0 : index
    %c0_12 = arith.constant 0 : index
    %18 = vector.load %arg8[%c0_11, %c0_12] : memref<32x16xf32, #tpu.memory_space<vmem>>, vector<32x16xf32>
    tpu.vector_store %arg8[%c0_11, %c0_12], %17 {strides = array<i32>} : memref<32x16xf32, #tpu.memory_space<vmem>>, vector<32x16xf32>,
    %c0_i32_13 = arith.constant 0 : i32
    %19 = arith.cmpi eq, %arg1, %c0_i32_13 : i32
    %20 = arith.extui %19 : i1 to i32
    %c0_i32_14 = arith.constant 0 : i32
    %21 = arith.cmpi ne, %20, %c0_i32_14 : i32
    scf.if %21 {
      %c0_15 = arith.constant 0 : index
      %c0_16 = arith.constant 0 : index
      %22 = vector.load %arg8[%c0_15, %c0_16] : memref<32x16xf32, #tpu.memory_space<vmem>>, vector<32x16xf32>
      %c0_17 = arith.constant 0 : index
      %c0_18 = arith.constant 0 : index
      %23 = vector.load %arg6[%c0_17, %c0_18] : memref<1x16xf32, #tpu.memory_space<vmem>>, vector<1x16xf32>
      %24 = vector.broadcast %23 : vector<1x16xf32> to vector<32x16xf32>
      %25 = arith.addf %22, %24 : vector<32x16xf32>
      %cst_19 = arith.constant 0.000000e+00 : f32
      %26 = vector.broadcast %cst_19 : f32 to vector<32x16xf32>
      %27 = arith.maximumf %25, %26 : vector<32x16xf32>
      %28 = arith.truncf %27 : vector<32x16xf32> to vector<32x16xbf16>
      %c0_20 = arith.constant 0 : index
      %c0_21 = arith.constant 0 : index
      %29 = vector.load %arg7[%c0_20, %c0_21] : memref<32x16xbf16, #tpu.memory_space<vmem>>, vector<32x16xbf16>
      tpu.vector_store %arg7[%c0_20, %c0_21], %28 {strides = array<i32>} : memref<32x16xbf16, #tpu.memory_space<vmem>>, vector<32x16xbf16>,
    } else {
    }
    return
  }
  func.func @transform_0(%arg0: i32, %arg1: i32) -> (i32, i32) {
    %c0_i32 = arith.constant 0 : i32
    return %arg0, %arg1 : i32, i32
  }
  func.func @transform_1(%arg0: i32, %arg1: i32) -> (i32, i32) {
    %c0_i32 = arith.constant 0 : i32
    %c0_i32_0 = arith.constant 0 : i32
    return %arg1, %c0_i32 : i32, i32
  }
  func.func @transform_2(%arg0: i32, %arg1: i32) -> (i32, i32) {
    %c0_i32 = arith.constant 0 : i32
    %c0_i32_0 = arith.constant 0 : i32
    return %c0_i32, %arg1 : i32, i32
  }
  func.func @transform_3(%arg0: i32, %arg1: i32) -> (i32, i32) {
    %c0_i32 = arith.constant 0 : i32
    %c0_i32_0 = arith.constant 0 : i32
    return %c0_i32, %arg1 : i32, i32
  }
  func.func @transform_4(%arg0: i32, %arg1: i32) -> (i32, i32) {
    %c0_i32 = arith.constant 0 : i32
    %c0_i32_0 = arith.constant 0 : i32
    %c0_i32_1 = arith.constant 0 : i32
    return %c0_i32, %c0_i32_0 : i32, i32
  }
  func.func @transform_5(%arg0: i32, %arg1: i32) -> (i32, i32) {
    %c0_i32 = arith.constant 0 : i32
    %c0_i32_0 = arith.constant 0 : i32
    return %arg0, %c0_i32 : i32, i32
  }
}

module attributes {stable_mosaic.version = 11 : i64} {
  func.func @_mm_kernel(%arg0: i32, %arg1: i32, %arg2: memref<32x144xbf16, #tpu.memory_space<vmem>>, %arg3: memref<144x8xbf16, #tpu.memory_space<vmem>>, %arg4: memref<1x8xf32, #tpu.memory_space<vmem>>, %arg5: memref<32x8xbf16, #tpu.memory_space<vmem>>, %arg6: memref<32x8xf32, #tpu.memory_space<vmem>>) attributes {dimension_semantics = [#tpu.dimension_semantics<parallel>, #tpu.dimension_semantics<arbitrary>], iteration_bounds = array<i64: 1, 1>, scalar_prefetch = 0 : i64, scratch_operands = 1 : i64, tpu.core_type = #tpu.core_type<tc>, window_params = [{transform_indices = @transform_0, window_bounds = array<i64: 32, 144>}, {transform_indices = @transform_1, window_bounds = array<i64: 144, 8>}, {pipeline_mode = #tpu.pipeline_mode<synchronous>, transform_indices = @transform_2, window_bounds = array<i64: 1, 8>}, {transform_indices = @transform_3, window_bounds = array<i64: 32, 8>}]} {
    %c0_i32 = arith.constant 0 : i32
    %0 = arith.cmpi eq, %arg1, %c0_i32 : i32
    %1 = arith.extui %0 : i1 to i32
    %c0_i32_0 = arith.constant 0 : i32
    %2 = arith.cmpi ne, %1, %c0_i32_0 : i32
    scf.if %2 {
      %cst_10 = arith.constant 0.000000e+00 : f32
      %12 = vector.broadcast %cst_10 : f32 to vector<32x8xf32>
      %c0_11 = arith.constant 0 : index
      %c0_12 = arith.constant 0 : index
      %13 = vector.load %arg6[%c0_11, %c0_12] : memref<32x8xf32, #tpu.memory_space<vmem>>, vector<32x8xf32>
      tpu.vector_store %arg6[%c0_11, %c0_12], %12 {strides = array<i32>} : memref<32x8xf32, #tpu.memory_space<vmem>>, vector<32x8xf32>,
    } else {
    }
    %c0 = arith.constant 0 : index
    %c0_1 = arith.constant 0 : index
    %3 = vector.load %arg2[%c0, %c0_1] : memref<32x144xbf16, #tpu.memory_space<vmem>>, vector<32x144xbf16>
    %c0_2 = arith.constant 0 : index
    %c0_3 = arith.constant 0 : index
    %4 = vector.load %arg6[%c0_2, %c0_3] : memref<32x8xf32, #tpu.memory_space<vmem>>, vector<32x8xf32>
    %c0_4 = arith.constant 0 : index
    %c0_5 = arith.constant 0 : index
    %5 = vector.load %arg3[%c0_4, %c0_5] : memref<144x8xbf16, #tpu.memory_space<vmem>>, vector<144x8xbf16>
    %cst = arith.constant dense<0.000000e+00> : vector<32x8xf32>
    %6 = tpu.matmul %3, %5, %cst {dimension_numbers = #tpu.dot_dimension_numbers<[1], [0], [0], [1], [0, 0, 1, 1], [], []>} : vector<32x144xbf16>, vector<144x8xbf16>, vector<32x8xf32> -> vector<32x8xf32>
    %7 = arith.addf %4, %6 : vector<32x8xf32>
    %c0_6 = arith.constant 0 : index
    %c0_7 = arith.constant 0 : index
    %8 = vector.load %arg6[%c0_6, %c0_7] : memref<32x8xf32, #tpu.memory_space<vmem>>, vector<32x8xf32>
    tpu.vector_store %arg6[%c0_6, %c0_7], %7 {strides = array<i32>} : memref<32x8xf32, #tpu.memory_space<vmem>>, vector<32x8xf32>,
    %c0_i32_8 = arith.constant 0 : i32
    %9 = arith.cmpi eq, %arg1, %c0_i32_8 : i32
    %10 = arith.extui %9 : i1 to i32
    %c0_i32_9 = arith.constant 0 : i32
    %11 = arith.cmpi ne, %10, %c0_i32_9 : i32
    scf.if %11 {
      %c0_10 = arith.constant 0 : index
      %c0_11 = arith.constant 0 : index
      %12 = vector.load %arg6[%c0_10, %c0_11] : memref<32x8xf32, #tpu.memory_space<vmem>>, vector<32x8xf32>
      %c0_12 = arith.constant 0 : index
      %c0_13 = arith.constant 0 : index
      %13 = vector.load %arg4[%c0_12, %c0_13] : memref<1x8xf32, #tpu.memory_space<vmem>>, vector<1x8xf32>
      %14 = vector.broadcast %13 : vector<1x8xf32> to vector<32x8xf32>
      %15 = arith.addf %12, %14 : vector<32x8xf32>
      %16 = arith.truncf %15 : vector<32x8xf32> to vector<32x8xbf16>
      %c0_14 = arith.constant 0 : index
      %c0_15 = arith.constant 0 : index
      %17 = vector.load %arg5[%c0_14, %c0_15] : memref<32x8xbf16, #tpu.memory_space<vmem>>, vector<32x8xbf16>
      tpu.vector_store %arg5[%c0_14, %c0_15], %16 {strides = array<i32>} : memref<32x8xbf16, #tpu.memory_space<vmem>>, vector<32x8xbf16>,
    } else {
    }
    return
  }
  func.func @transform_0(%arg0: i32, %arg1: i32) -> (i32, i32) {
    %c0_i32 = arith.constant 0 : i32
    return %arg0, %arg1 : i32, i32
  }
  func.func @transform_1(%arg0: i32, %arg1: i32) -> (i32, i32) {
    %c0_i32 = arith.constant 0 : i32
    %c0_i32_0 = arith.constant 0 : i32
    return %arg1, %c0_i32 : i32, i32
  }
  func.func @transform_2(%arg0: i32, %arg1: i32) -> (i32, i32) {
    %c0_i32 = arith.constant 0 : i32
    %c0_i32_0 = arith.constant 0 : i32
    %c0_i32_1 = arith.constant 0 : i32
    return %c0_i32, %c0_i32_0 : i32, i32
  }
  func.func @transform_3(%arg0: i32, %arg1: i32) -> (i32, i32) {
    %c0_i32 = arith.constant 0 : i32
    %c0_i32_0 = arith.constant 0 : i32
    return %arg0, %c0_i32 : i32, i32
  }
}

module attributes {stable_mosaic.version = 11 : i64} {
  func.func @_mm_kernel(%arg0: i32, %arg1: i32, %arg2: memref<32x32xbf16, #tpu.memory_space<vmem>>, %arg3: memref<32x16xbf16, #tpu.memory_space<vmem>>, %arg4: memref<1x32xf32, #tpu.memory_space<vmem>>, %arg5: memref<1x32xf32, #tpu.memory_space<vmem>>, %arg6: memref<1x16xf32, #tpu.memory_space<vmem>>, %arg7: memref<32x16xbf16, #tpu.memory_space<vmem>>, %arg8: memref<32x16xf32, #tpu.memory_space<vmem>>) attributes {dimension_semantics = [#tpu.dimension_semantics<parallel>, #tpu.dimension_semantics<arbitrary>], iteration_bounds = array<i64: 1, 1>, scalar_prefetch = 0 : i64, scratch_operands = 1 : i64, tpu.core_type = #tpu.core_type<tc>, window_params = [{transform_indices = @transform_0, window_bounds = array<i64: 32, 32>}, {transform_indices = @transform_1, window_bounds = array<i64: 32, 16>}, {transform_indices = @transform_2, window_bounds = array<i64: 1, 32>}, {transform_indices = @transform_3, window_bounds = array<i64: 1, 32>}, {pipeline_mode = #tpu.pipeline_mode<synchronous>, transform_indices = @transform_4, window_bounds = array<i64: 1, 16>}, {transform_indices = @transform_5, window_bounds = array<i64: 32, 16>}]} {
    %c0_i32 = arith.constant 0 : i32
    %0 = arith.cmpi eq, %arg1, %c0_i32 : i32
    %1 = arith.extui %0 : i1 to i32
    %c0_i32_0 = arith.constant 0 : i32
    %2 = arith.cmpi ne, %1, %c0_i32_0 : i32
    scf.if %2 {
      %cst_15 = arith.constant 0.000000e+00 : f32
      %22 = vector.broadcast %cst_15 : f32 to vector<32x16xf32>
      %c0_16 = arith.constant 0 : index
      %c0_17 = arith.constant 0 : index
      %23 = vector.load %arg8[%c0_16, %c0_17] : memref<32x16xf32, #tpu.memory_space<vmem>>, vector<32x16xf32>
      tpu.vector_store %arg8[%c0_16, %c0_17], %22 {strides = array<i32>} : memref<32x16xf32, #tpu.memory_space<vmem>>, vector<32x16xf32>,
    } else {
    }
    %c0 = arith.constant 0 : index
    %c0_1 = arith.constant 0 : index
    %3 = vector.load %arg2[%c0, %c0_1] : memref<32x32xbf16, #tpu.memory_space<vmem>>, vector<32x32xbf16>
    %4 = arith.extf %3 : vector<32x32xbf16> to vector<32x32xf32>
    %c0_2 = arith.constant 0 : index
    %c0_3 = arith.constant 0 : index
    %5 = vector.load %arg4[%c0_2, %c0_3] : memref<1x32xf32, #tpu.memory_space<vmem>>, vector<1x32xf32>
    %6 = vector.broadcast %5 : vector<1x32xf32> to vector<32x32xf32>
    %7 = arith.mulf %4, %6 : vector<32x32xf32>
    %c0_4 = arith.constant 0 : index
    %c0_5 = arith.constant 0 : index
    %8 = vector.load %arg5[%c0_4, %c0_5] : memref<1x32xf32, #tpu.memory_space<vmem>>, vector<1x32xf32>
    %9 = vector.broadcast %8 : vector<1x32xf32> to vector<32x32xf32>
    %10 = arith.addf %7, %9 : vector<32x32xf32>
    %cst = arith.constant 0.000000e+00 : f32
    %11 = vector.broadcast %cst : f32 to vector<32x32xf32>
    %12 = arith.maximumf %10, %11 : vector<32x32xf32>
    %13 = arith.truncf %12 : vector<32x32xf32> to vector<32x32xbf16>
    %c0_6 = arith.constant 0 : index
    %c0_7 = arith.constant 0 : index
    %14 = vector.load %arg8[%c0_6, %c0_7] : memref<32x16xf32, #tpu.memory_space<vmem>>, vector<32x16xf32>
    %c0_8 = arith.constant 0 : index
    %c0_9 = arith.constant 0 : index
    %15 = vector.load %arg3[%c0_8, %c0_9] : memref<32x16xbf16, #tpu.memory_space<vmem>>, vector<32x16xbf16>
    %cst_10 = arith.constant dense<0.000000e+00> : vector<32x16xf32>
    %16 = tpu.matmul %13, %15, %cst_10 {dimension_numbers = #tpu.dot_dimension_numbers<[1], [0], [0], [1], [0, 0, 1, 1], [], []>} : vector<32x32xbf16>, vector<32x16xbf16>, vector<32x16xf32> -> vector<32x16xf32>
    %17 = arith.addf %14, %16 : vector<32x16xf32>
    %c0_11 = arith.constant 0 : index
    %c0_12 = arith.constant 0 : index
    %18 = vector.load %arg8[%c0_11, %c0_12] : memref<32x16xf32, #tpu.memory_space<vmem>>, vector<32x16xf32>
    tpu.vector_store %arg8[%c0_11, %c0_12], %17 {strides = array<i32>} : memref<32x16xf32, #tpu.memory_space<vmem>>, vector<32x16xf32>,
    %c0_i32_13 = arith.constant 0 : i32
    %19 = arith.cmpi eq, %arg1, %c0_i32_13 : i32
    %20 = arith.extui %19 : i1 to i32
    %c0_i32_14 = arith.constant 0 : i32
    %21 = arith.cmpi ne, %20, %c0_i32_14 : i32
    scf.if %21 {
      %c0_15 = arith.constant 0 : index
      %c0_16 = arith.constant 0 : index
      %22 = vector.load %arg8[%c0_15, %c0_16] : memref<32x16xf32, #tpu.memory_space<vmem>>, vector<32x16xf32>
      %c0_17 = arith.constant 0 : index
      %c0_18 = arith.constant 0 : index
      %23 = vector.load %arg6[%c0_17, %c0_18] : memref<1x16xf32, #tpu.memory_space<vmem>>, vector<1x16xf32>
      %24 = vector.broadcast %23 : vector<1x16xf32> to vector<32x16xf32>
      %25 = arith.addf %22, %24 : vector<32x16xf32>
      %26 = arith.truncf %25 : vector<32x16xf32> to vector<32x16xbf16>
      %c0_19 = arith.constant 0 : index
      %c0_20 = arith.constant 0 : index
      %27 = vector.load %arg7[%c0_19, %c0_20] : memref<32x16xbf16, #tpu.memory_space<vmem>>, vector<32x16xbf16>
      tpu.vector_store %arg7[%c0_19, %c0_20], %26 {strides = array<i32>} : memref<32x16xbf16, #tpu.memory_space<vmem>>, vector<32x16xbf16>,
    } else {
    }
    return
  }
  func.func @transform_0(%arg0: i32, %arg1: i32) -> (i32, i32) {
    %c0_i32 = arith.constant 0 : i32
    return %arg0, %arg1 : i32, i32
  }
  func.func @transform_1(%arg0: i32, %arg1: i32) -> (i32, i32) {
    %c0_i32 = arith.constant 0 : i32
    %c0_i32_0 = arith.constant 0 : i32
    return %arg1, %c0_i32 : i32, i32
  }
  func.func @transform_2(%arg0: i32, %arg1: i32) -> (i32, i32) {
    %c0_i32 = arith.constant 0 : i32
    %c0_i32_0 = arith.constant 0 : i32
    return %c0_i32, %arg1 : i32, i32
  }
  func.func @transform_3(%arg0: i32, %arg1: i32) -> (i32, i32) {
    %c0_i32 = arith.constant 0 : i32
    %c0_i32_0 = arith.constant 0 : i32
    return %c0_i32, %arg1 : i32, i32
  }
  func.func @transform_4(%arg0: i32, %arg1: i32) -> (i32, i32) {
    %c0_i32 = arith.constant 0 : i32
    %c0_i32_0 = arith.constant 0 : i32
    %c0_i32_1 = arith.constant 0 : i32
    return %c0_i32, %c0_i32_0 : i32, i32
  }
  func.func @transform_5(%arg0: i32, %arg1: i32) -> (i32, i32) {
    %c0_i32 = arith.constant 0 : i32
    %c0_i32_0 = arith.constant 0 : i32
    return %arg0, %c0_i32 : i32, i32
  }
}

module attributes {stable_mosaic.version = 11 : i64} {
  func.func @_mm_kernel(%arg0: i32, %arg1: i32, %arg2: memref<8x16xbf16, #tpu.memory_space<vmem>>, %arg3: memref<16x16xbf16, #tpu.memory_space<vmem>>, %arg4: memref<1x16xf32, #tpu.memory_space<vmem>>, %arg5: memref<1x16xf32, #tpu.memory_space<vmem>>, %arg6: memref<1x16xf32, #tpu.memory_space<vmem>>, %arg7: memref<8x16xbf16, #tpu.memory_space<vmem>>, %arg8: memref<8x16xf32, #tpu.memory_space<vmem>>) attributes {dimension_semantics = [#tpu.dimension_semantics<parallel>, #tpu.dimension_semantics<arbitrary>], iteration_bounds = array<i64: 1, 1>, scalar_prefetch = 0 : i64, scratch_operands = 1 : i64, tpu.core_type = #tpu.core_type<tc>, window_params = [{transform_indices = @transform_0, window_bounds = array<i64: 8, 16>}, {transform_indices = @transform_1, window_bounds = array<i64: 16, 16>}, {transform_indices = @transform_2, window_bounds = array<i64: 1, 16>}, {transform_indices = @transform_3, window_bounds = array<i64: 1, 16>}, {pipeline_mode = #tpu.pipeline_mode<synchronous>, transform_indices = @transform_4, window_bounds = array<i64: 1, 16>}, {transform_indices = @transform_5, window_bounds = array<i64: 8, 16>}]} {
    %c0_i32 = arith.constant 0 : i32
    %0 = arith.cmpi eq, %arg1, %c0_i32 : i32
    %1 = arith.extui %0 : i1 to i32
    %c0_i32_0 = arith.constant 0 : i32
    %2 = arith.cmpi ne, %1, %c0_i32_0 : i32
    scf.if %2 {
      %cst_15 = arith.constant 0.000000e+00 : f32
      %22 = vector.broadcast %cst_15 : f32 to vector<8x16xf32>
      %c0_16 = arith.constant 0 : index
      %c0_17 = arith.constant 0 : index
      %23 = vector.load %arg8[%c0_16, %c0_17] : memref<8x16xf32, #tpu.memory_space<vmem>>, vector<8x16xf32>
      tpu.vector_store %arg8[%c0_16, %c0_17], %22 {strides = array<i32>} : memref<8x16xf32, #tpu.memory_space<vmem>>, vector<8x16xf32>,
    } else {
    }
    %c0 = arith.constant 0 : index
    %c0_1 = arith.constant 0 : index
    %3 = vector.load %arg2[%c0, %c0_1] : memref<8x16xbf16, #tpu.memory_space<vmem>>, vector<8x16xbf16>
    %4 = arith.extf %3 : vector<8x16xbf16> to vector<8x16xf32>
    %c0_2 = arith.constant 0 : index
    %c0_3 = arith.constant 0 : index
    %5 = vector.load %arg4[%c0_2, %c0_3] : memref<1x16xf32, #tpu.memory_space<vmem>>, vector<1x16xf32>
    %6 = vector.broadcast %5 : vector<1x16xf32> to vector<8x16xf32>
    %7 = arith.mulf %4, %6 : vector<8x16xf32>
    %c0_4 = arith.constant 0 : index
    %c0_5 = arith.constant 0 : index
    %8 = vector.load %arg5[%c0_4, %c0_5] : memref<1x16xf32, #tpu.memory_space<vmem>>, vector<1x16xf32>
    %9 = vector.broadcast %8 : vector<1x16xf32> to vector<8x16xf32>
    %10 = arith.addf %7, %9 : vector<8x16xf32>
    %cst = arith.constant 0.000000e+00 : f32
    %11 = vector.broadcast %cst : f32 to vector<8x16xf32>
    %12 = arith.maximumf %10, %11 : vector<8x16xf32>
    %13 = arith.truncf %12 : vector<8x16xf32> to vector<8x16xbf16>
    %c0_6 = arith.constant 0 : index
    %c0_7 = arith.constant 0 : index
    %14 = vector.load %arg8[%c0_6, %c0_7] : memref<8x16xf32, #tpu.memory_space<vmem>>, vector<8x16xf32>
    %c0_8 = arith.constant 0 : index
    %c0_9 = arith.constant 0 : index
    %15 = vector.load %arg3[%c0_8, %c0_9] : memref<16x16xbf16, #tpu.memory_space<vmem>>, vector<16x16xbf16>
    %cst_10 = arith.constant dense<0.000000e+00> : vector<8x16xf32>
    %16 = tpu.matmul %13, %15, %cst_10 {dimension_numbers = #tpu.dot_dimension_numbers<[1], [0], [0], [1], [0, 0, 1, 1], [], []>} : vector<8x16xbf16>, vector<16x16xbf16>, vector<8x16xf32> -> vector<8x16xf32>
    %17 = arith.addf %14, %16 : vector<8x16xf32>
    %c0_11 = arith.constant 0 : index
    %c0_12 = arith.constant 0 : index
    %18 = vector.load %arg8[%c0_11, %c0_12] : memref<8x16xf32, #tpu.memory_space<vmem>>, vector<8x16xf32>
    tpu.vector_store %arg8[%c0_11, %c0_12], %17 {strides = array<i32>} : memref<8x16xf32, #tpu.memory_space<vmem>>, vector<8x16xf32>,
    %c0_i32_13 = arith.constant 0 : i32
    %19 = arith.cmpi eq, %arg1, %c0_i32_13 : i32
    %20 = arith.extui %19 : i1 to i32
    %c0_i32_14 = arith.constant 0 : i32
    %21 = arith.cmpi ne, %20, %c0_i32_14 : i32
    scf.if %21 {
      %c0_15 = arith.constant 0 : index
      %c0_16 = arith.constant 0 : index
      %22 = vector.load %arg8[%c0_15, %c0_16] : memref<8x16xf32, #tpu.memory_space<vmem>>, vector<8x16xf32>
      %c0_17 = arith.constant 0 : index
      %c0_18 = arith.constant 0 : index
      %23 = vector.load %arg6[%c0_17, %c0_18] : memref<1x16xf32, #tpu.memory_space<vmem>>, vector<1x16xf32>
      %24 = vector.broadcast %23 : vector<1x16xf32> to vector<8x16xf32>
      %25 = arith.addf %22, %24 : vector<8x16xf32>
      %cst_19 = arith.constant 0.000000e+00 : f32
      %26 = vector.broadcast %cst_19 : f32 to vector<8x16xf32>
      %27 = arith.maximumf %25, %26 : vector<8x16xf32>
      %28 = arith.truncf %27 : vector<8x16xf32> to vector<8x16xbf16>
      %c0_20 = arith.constant 0 : index
      %c0_21 = arith.constant 0 : index
      %29 = vector.load %arg7[%c0_20, %c0_21] : memref<8x16xbf16, #tpu.memory_space<vmem>>, vector<8x16xbf16>
      tpu.vector_store %arg7[%c0_20, %c0_21], %28 {strides = array<i32>} : memref<8x16xbf16, #tpu.memory_space<vmem>>, vector<8x16xbf16>,
    } else {
    }
    return
  }
  func.func @transform_0(%arg0: i32, %arg1: i32) -> (i32, i32) {
    %c0_i32 = arith.constant 0 : i32
    return %arg0, %arg1 : i32, i32
  }
  func.func @transform_1(%arg0: i32, %arg1: i32) -> (i32, i32) {
    %c0_i32 = arith.constant 0 : i32
    %c0_i32_0 = arith.constant 0 : i32
    return %arg1, %c0_i32 : i32, i32
  }
  func.func @transform_2(%arg0: i32, %arg1: i32) -> (i32, i32) {
    %c0_i32 = arith.constant 0 : i32
    %c0_i32_0 = arith.constant 0 : i32
    return %c0_i32, %arg1 : i32, i32
  }
  func.func @transform_3(%arg0: i32, %arg1: i32) -> (i32, i32) {
    %c0_i32 = arith.constant 0 : i32
    %c0_i32_0 = arith.constant 0 : i32
    return %c0_i32, %arg1 : i32, i32
  }
  func.func @transform_4(%arg0: i32, %arg1: i32) -> (i32, i32) {
    %c0_i32 = arith.constant 0 : i32
    %c0_i32_0 = arith.constant 0 : i32
    %c0_i32_1 = arith.constant 0 : i32
    return %c0_i32, %c0_i32_0 : i32, i32
  }
  func.func @transform_5(%arg0: i32, %arg1: i32) -> (i32, i32) {
    %c0_i32 = arith.constant 0 : i32
    %c0_i32_0 = arith.constant 0 : i32
    return %arg0, %c0_i32 : i32, i32
  }
}

module attributes {stable_mosaic.version = 11 : i64} {
  func.func @_window_reduce_kernel(%arg0: i32, %arg1: memref<4x8x16xbf16, #tpu.memory_space<vmem>>, %arg2: memref<8x16xbf16, #tpu.memory_space<vmem>>) attributes {dimension_semantics = [#tpu.dimension_semantics<parallel>], iteration_bounds = array<i64: 1>, scalar_prefetch = 0 : i64, scratch_operands = 0 : i64, tpu.core_type = #tpu.core_type<tc>, window_params = [{transform_indices = @transform_0, window_bounds = array<i64: 4, 8, 16>}, {transform_indices = @transform_1, window_bounds = array<i64: 8, 16>}]} {
    %c0 = arith.constant 0 : index
    %c0_0 = arith.constant 0 : index
    %c0_1 = arith.constant 0 : index
    %0 = vector.load %arg1[%c0, %c0_0, %c0_1] : memref<4x8x16xbf16, #tpu.memory_space<vmem>>, vector<4x8x16xbf16>
    %1 = arith.extf %0 : vector<4x8x16xbf16> to vector<4x8x16xf32>
    %cst = arith.constant dense<0.000000e+00> : vector<8x16xf32>
    %2 = vector.multi_reduction <add>, %1, %cst [0] : vector<4x8x16xf32> to vector<8x16xf32>
    %cst_2 = arith.constant 2.500000e-01 : f32
    %3 = vector.broadcast %cst_2 : f32 to vector<8x16xf32>
    %4 = arith.mulf %2, %3 : vector<8x16xf32>
    %5 = arith.truncf %4 : vector<8x16xf32> to vector<8x16xbf16>
    %c0_3 = arith.constant 0 : index
    %c0_4 = arith.constant 0 : index
    %6 = vector.load %arg2[%c0_3, %c0_4] : memref<8x16xbf16, #tpu.memory_space<vmem>>, vector<8x16xbf16>
    tpu.vector_store %arg2[%c0_3, %c0_4], %5 {strides = array<i32>} : memref<8x16xbf16, #tpu.memory_space<vmem>>, vector<8x16xbf16>,
    return
  }
  func.func @transform_0(%arg0: i32) -> (i32, i32, i32) {
    %c0_i32 = arith.constant 0 : i32
    %c0_i32_0 = arith.constant 0 : i32
    %c0_i32_1 = arith.constant 0 : i32
    return %c0_i32, %arg0, %c0_i32_0 : i32, i32, i32
  }
  func.func @transform_1(%arg0: i32) -> (i32, i32) {
    %c0_i32 = arith.constant 0 : i32
    %c0_i32_0 = arith.constant 0 : i32
    return %arg0, %c0_i32 : i32, i32
  }
}

module attributes {stable_mosaic.version = 11 : i64} {
  func.func @_mm_kernel(%arg0: i32, %arg1: i32, %arg2: memref<8x144xbf16, #tpu.memory_space<vmem>>, %arg3: memref<144x8xbf16, #tpu.memory_space<vmem>>, %arg4: memref<1x8xf32, #tpu.memory_space<vmem>>, %arg5: memref<8x8xbf16, #tpu.memory_space<vmem>>, %arg6: memref<8x8xf32, #tpu.memory_space<vmem>>) attributes {dimension_semantics = [#tpu.dimension_semantics<parallel>, #tpu.dimension_semantics<arbitrary>], iteration_bounds = array<i64: 1, 1>, scalar_prefetch = 0 : i64, scratch_operands = 1 : i64, tpu.core_type = #tpu.core_type<tc>, window_params = [{transform_indices = @transform_0, window_bounds = array<i64: 8, 144>}, {transform_indices = @transform_1, window_bounds = array<i64: 144, 8>}, {pipeline_mode = #tpu.pipeline_mode<synchronous>, transform_indices = @transform_2, window_bounds = array<i64: 1, 8>}, {transform_indices = @transform_3, window_bounds = array<i64: 8, 8>}]} {
    %c0_i32 = arith.constant 0 : i32
    %0 = arith.cmpi eq, %arg1, %c0_i32 : i32
    %1 = arith.extui %0 : i1 to i32
    %c0_i32_0 = arith.constant 0 : i32
    %2 = arith.cmpi ne, %1, %c0_i32_0 : i32
    scf.if %2 {
      %cst_10 = arith.constant 0.000000e+00 : f32
      %12 = vector.broadcast %cst_10 : f32 to vector<8x8xf32>
      %c0_11 = arith.constant 0 : index
      %c0_12 = arith.constant 0 : index
      %13 = vector.load %arg6[%c0_11, %c0_12] : memref<8x8xf32, #tpu.memory_space<vmem>>, vector<8x8xf32>
      tpu.vector_store %arg6[%c0_11, %c0_12], %12 {strides = array<i32>} : memref<8x8xf32, #tpu.memory_space<vmem>>, vector<8x8xf32>,
    } else {
    }
    %c0 = arith.constant 0 : index
    %c0_1 = arith.constant 0 : index
    %3 = vector.load %arg2[%c0, %c0_1] : memref<8x144xbf16, #tpu.memory_space<vmem>>, vector<8x144xbf16>
    %c0_2 = arith.constant 0 : index
    %c0_3 = arith.constant 0 : index
    %4 = vector.load %arg6[%c0_2, %c0_3] : memref<8x8xf32, #tpu.memory_space<vmem>>, vector<8x8xf32>
    %c0_4 = arith.constant 0 : index
    %c0_5 = arith.constant 0 : index
    %5 = vector.load %arg3[%c0_4, %c0_5] : memref<144x8xbf16, #tpu.memory_space<vmem>>, vector<144x8xbf16>
    %cst = arith.constant dense<0.000000e+00> : vector<8x8xf32>
    %6 = tpu.matmul %3, %5, %cst {dimension_numbers = #tpu.dot_dimension_numbers<[1], [0], [0], [1], [0, 0, 1, 1], [], []>} : vector<8x144xbf16>, vector<144x8xbf16>, vector<8x8xf32> -> vector<8x8xf32>
    %7 = arith.addf %4, %6 : vector<8x8xf32>
    %c0_6 = arith.constant 0 : index
    %c0_7 = arith.constant 0 : index
    %8 = vector.load %arg6[%c0_6, %c0_7] : memref<8x8xf32, #tpu.memory_space<vmem>>, vector<8x8xf32>
    tpu.vector_store %arg6[%c0_6, %c0_7], %7 {strides = array<i32>} : memref<8x8xf32, #tpu.memory_space<vmem>>, vector<8x8xf32>,
    %c0_i32_8 = arith.constant 0 : i32
    %9 = arith.cmpi eq, %arg1, %c0_i32_8 : i32
    %10 = arith.extui %9 : i1 to i32
    %c0_i32_9 = arith.constant 0 : i32
    %11 = arith.cmpi ne, %10, %c0_i32_9 : i32
    scf.if %11 {
      %c0_10 = arith.constant 0 : index
      %c0_11 = arith.constant 0 : index
      %12 = vector.load %arg6[%c0_10, %c0_11] : memref<8x8xf32, #tpu.memory_space<vmem>>, vector<8x8xf32>
      %c0_12 = arith.constant 0 : index
      %c0_13 = arith.constant 0 : index
      %13 = vector.load %arg4[%c0_12, %c0_13] : memref<1x8xf32, #tpu.memory_space<vmem>>, vector<1x8xf32>
      %14 = vector.broadcast %13 : vector<1x8xf32> to vector<8x8xf32>
      %15 = arith.addf %12, %14 : vector<8x8xf32>
      %16 = arith.truncf %15 : vector<8x8xf32> to vector<8x8xbf16>
      %c0_14 = arith.constant 0 : index
      %c0_15 = arith.constant 0 : index
      %17 = vector.load %arg5[%c0_14, %c0_15] : memref<8x8xbf16, #tpu.memory_space<vmem>>, vector<8x8xbf16>
      tpu.vector_store %arg5[%c0_14, %c0_15], %16 {strides = array<i32>} : memref<8x8xbf16, #tpu.memory_space<vmem>>, vector<8x8xbf16>,
    } else {
    }
    return
  }
  func.func @transform_0(%arg0: i32, %arg1: i32) -> (i32, i32) {
    %c0_i32 = arith.constant 0 : i32
    return %arg0, %arg1 : i32, i32
  }
  func.func @transform_1(%arg0: i32, %arg1: i32) -> (i32, i32) {
    %c0_i32 = arith.constant 0 : i32
    %c0_i32_0 = arith.constant 0 : i32
    return %arg1, %c0_i32 : i32, i32
  }
  func.func @transform_2(%arg0: i32, %arg1: i32) -> (i32, i32) {
    %c0_i32 = arith.constant 0 : i32
    %c0_i32_0 = arith.constant 0 : i32
    %c0_i32_1 = arith.constant 0 : i32
    return %c0_i32, %c0_i32_0 : i32, i32
  }
  func.func @transform_3(%arg0: i32, %arg1: i32) -> (i32, i32) {
    %c0_i32 = arith.constant 0 : i32
    %c0_i32_0 = arith.constant 0 : i32
    return %arg0, %c0_i32 : i32, i32
  }
}

module attributes {stable_mosaic.version = 11 : i64} {
  func.func @_mm_kernel(%arg0: i32, %arg1: i32, %arg2: memref<8x32xbf16, #tpu.memory_space<vmem>>, %arg3: memref<32x16xbf16, #tpu.memory_space<vmem>>, %arg4: memref<1x32xf32, #tpu.memory_space<vmem>>, %arg5: memref<1x32xf32, #tpu.memory_space<vmem>>, %arg6: memref<1x16xf32, #tpu.memory_space<vmem>>, %arg7: memref<8x16xbf16, #tpu.memory_space<vmem>>, %arg8: memref<8x16xf32, #tpu.memory_space<vmem>>) attributes {dimension_semantics = [#tpu.dimension_semantics<parallel>, #tpu.dimension_semantics<arbitrary>], iteration_bounds = array<i64: 1, 1>, scalar_prefetch = 0 : i64, scratch_operands = 1 : i64, tpu.core_type = #tpu.core_type<tc>, window_params = [{transform_indices = @transform_0, window_bounds = array<i64: 8, 32>}, {transform_indices = @transform_1, window_bounds = array<i64: 32, 16>}, {transform_indices = @transform_2, window_bounds = array<i64: 1, 32>}, {transform_indices = @transform_3, window_bounds = array<i64: 1, 32>}, {pipeline_mode = #tpu.pipeline_mode<synchronous>, transform_indices = @transform_4, window_bounds = array<i64: 1, 16>}, {transform_indices = @transform_5, window_bounds = array<i64: 8, 16>}]} {
    %c0_i32 = arith.constant 0 : i32
    %0 = arith.cmpi eq, %arg1, %c0_i32 : i32
    %1 = arith.extui %0 : i1 to i32
    %c0_i32_0 = arith.constant 0 : i32
    %2 = arith.cmpi ne, %1, %c0_i32_0 : i32
    scf.if %2 {
      %cst_15 = arith.constant 0.000000e+00 : f32
      %22 = vector.broadcast %cst_15 : f32 to vector<8x16xf32>
      %c0_16 = arith.constant 0 : index
      %c0_17 = arith.constant 0 : index
      %23 = vector.load %arg8[%c0_16, %c0_17] : memref<8x16xf32, #tpu.memory_space<vmem>>, vector<8x16xf32>
      tpu.vector_store %arg8[%c0_16, %c0_17], %22 {strides = array<i32>} : memref<8x16xf32, #tpu.memory_space<vmem>>, vector<8x16xf32>,
    } else {
    }
    %c0 = arith.constant 0 : index
    %c0_1 = arith.constant 0 : index
    %3 = vector.load %arg2[%c0, %c0_1] : memref<8x32xbf16, #tpu.memory_space<vmem>>, vector<8x32xbf16>
    %4 = arith.extf %3 : vector<8x32xbf16> to vector<8x32xf32>
    %c0_2 = arith.constant 0 : index
    %c0_3 = arith.constant 0 : index
    %5 = vector.load %arg4[%c0_2, %c0_3] : memref<1x32xf32, #tpu.memory_space<vmem>>, vector<1x32xf32>
    %6 = vector.broadcast %5 : vector<1x32xf32> to vector<8x32xf32>
    %7 = arith.mulf %4, %6 : vector<8x32xf32>
    %c0_4 = arith.constant 0 : index
    %c0_5 = arith.constant 0 : index
    %8 = vector.load %arg5[%c0_4, %c0_5] : memref<1x32xf32, #tpu.memory_space<vmem>>, vector<1x32xf32>
    %9 = vector.broadcast %8 : vector<1x32xf32> to vector<8x32xf32>
    %10 = arith.addf %7, %9 : vector<8x32xf32>
    %cst = arith.constant 0.000000e+00 : f32
    %11 = vector.broadcast %cst : f32 to vector<8x32xf32>
    %12 = arith.maximumf %10, %11 : vector<8x32xf32>
    %13 = arith.truncf %12 : vector<8x32xf32> to vector<8x32xbf16>
    %c0_6 = arith.constant 0 : index
    %c0_7 = arith.constant 0 : index
    %14 = vector.load %arg8[%c0_6, %c0_7] : memref<8x16xf32, #tpu.memory_space<vmem>>, vector<8x16xf32>
    %c0_8 = arith.constant 0 : index
    %c0_9 = arith.constant 0 : index
    %15 = vector.load %arg3[%c0_8, %c0_9] : memref<32x16xbf16, #tpu.memory_space<vmem>>, vector<32x16xbf16>
    %cst_10 = arith.constant dense<0.000000e+00> : vector<8x16xf32>
    %16 = tpu.matmul %13, %15, %cst_10 {dimension_numbers = #tpu.dot_dimension_numbers<[1], [0], [0], [1], [0, 0, 1, 1], [], []>} : vector<8x32xbf16>, vector<32x16xbf16>, vector<8x16xf32> -> vector<8x16xf32>
    %17 = arith.addf %14, %16 : vector<8x16xf32>
    %c0_11 = arith.constant 0 : index
    %c0_12 = arith.constant 0 : index
    %18 = vector.load %arg8[%c0_11, %c0_12] : memref<8x16xf32, #tpu.memory_space<vmem>>, vector<8x16xf32>
    tpu.vector_store %arg8[%c0_11, %c0_12], %17 {strides = array<i32>} : memref<8x16xf32, #tpu.memory_space<vmem>>, vector<8x16xf32>,
    %c0_i32_13 = arith.constant 0 : i32
    %19 = arith.cmpi eq, %arg1, %c0_i32_13 : i32
    %20 = arith.extui %19 : i1 to i32
    %c0_i32_14 = arith.constant 0 : i32
    %21 = arith.cmpi ne, %20, %c0_i32_14 : i32
    scf.if %21 {
      %c0_15 = arith.constant 0 : index
      %c0_16 = arith.constant 0 : index
      %22 = vector.load %arg8[%c0_15, %c0_16] : memref<8x16xf32, #tpu.memory_space<vmem>>, vector<8x16xf32>
      %c0_17 = arith.constant 0 : index
      %c0_18 = arith.constant 0 : index
      %23 = vector.load %arg6[%c0_17, %c0_18] : memref<1x16xf32, #tpu.memory_space<vmem>>, vector<1x16xf32>
      %24 = vector.broadcast %23 : vector<1x16xf32> to vector<8x16xf32>
      %25 = arith.addf %22, %24 : vector<8x16xf32>
      %26 = arith.truncf %25 : vector<8x16xf32> to vector<8x16xbf16>
      %c0_19 = arith.constant 0 : index
      %c0_20 = arith.constant 0 : index
      %27 = vector.load %arg7[%c0_19, %c0_20] : memref<8x16xbf16, #tpu.memory_space<vmem>>, vector<8x16xbf16>
      tpu.vector_store %arg7[%c0_19, %c0_20], %26 {strides = array<i32>} : memref<8x16xbf16, #tpu.memory_space<vmem>>, vector<8x16xbf16>,
    } else {
    }
    return
  }
  func.func @transform_0(%arg0: i32, %arg1: i32) -> (i32, i32) {
    %c0_i32 = arith.constant 0 : i32
    return %arg0, %arg1 : i32, i32
  }
  func.func @transform_1(%arg0: i32, %arg1: i32) -> (i32, i32) {
    %c0_i32 = arith.constant 0 : i32
    %c0_i32_0 = arith.constant 0 : i32
    return %arg1, %c0_i32 : i32, i32
  }
  func.func @transform_2(%arg0: i32, %arg1: i32) -> (i32, i32) {
    %c0_i32 = arith.constant 0 : i32
    %c0_i32_0 = arith.constant 0 : i32
    return %c0_i32, %arg1 : i32, i32
  }
  func.func @transform_3(%arg0: i32, %arg1: i32) -> (i32, i32) {
    %c0_i32 = arith.constant 0 : i32
    %c0_i32_0 = arith.constant 0 : i32
    return %c0_i32, %arg1 : i32, i32
  }
  func.func @transform_4(%arg0: i32, %arg1: i32) -> (i32, i32) {
    %c0_i32 = arith.constant 0 : i32
    %c0_i32_0 = arith.constant 0 : i32
    %c0_i32_1 = arith.constant 0 : i32
    return %c0_i32, %c0_i32_0 : i32, i32
  }
  func.func @transform_5(%arg0: i32, %arg1: i32) -> (i32, i32) {
    %c0_i32 = arith.constant 0 : i32
    %c0_i32_0 = arith.constant 0 : i32
    return %arg0, %c0_i32 : i32, i32
  }
}

module attributes {stable_mosaic.version = 11 : i64} {
  func.func @_mm_kernel(%arg0: i32, %arg1: i32, %arg2: memref<8x24xbf16, #tpu.memory_space<vmem>>, %arg3: memref<24x16xbf16, #tpu.memory_space<vmem>>, %arg4: memref<1x24xf32, #tpu.memory_space<vmem>>, %arg5: memref<1x24xf32, #tpu.memory_space<vmem>>, %arg6: memref<1x16xf32, #tpu.memory_space<vmem>>, %arg7: memref<8x16xbf16, #tpu.memory_space<vmem>>, %arg8: memref<8x16xf32, #tpu.memory_space<vmem>>) attributes {dimension_semantics = [#tpu.dimension_semantics<parallel>, #tpu.dimension_semantics<arbitrary>], iteration_bounds = array<i64: 1, 1>, scalar_prefetch = 0 : i64, scratch_operands = 1 : i64, tpu.core_type = #tpu.core_type<tc>, window_params = [{transform_indices = @transform_0, window_bounds = array<i64: 8, 24>}, {transform_indices = @transform_1, window_bounds = array<i64: 24, 16>}, {transform_indices = @transform_2, window_bounds = array<i64: 1, 24>}, {transform_indices = @transform_3, window_bounds = array<i64: 1, 24>}, {pipeline_mode = #tpu.pipeline_mode<synchronous>, transform_indices = @transform_4, window_bounds = array<i64: 1, 16>}, {transform_indices = @transform_5, window_bounds = array<i64: 8, 16>}]} {
    %c0_i32 = arith.constant 0 : i32
    %0 = arith.cmpi eq, %arg1, %c0_i32 : i32
    %1 = arith.extui %0 : i1 to i32
    %c0_i32_0 = arith.constant 0 : i32
    %2 = arith.cmpi ne, %1, %c0_i32_0 : i32
    scf.if %2 {
      %cst_15 = arith.constant 0.000000e+00 : f32
      %22 = vector.broadcast %cst_15 : f32 to vector<8x16xf32>
      %c0_16 = arith.constant 0 : index
      %c0_17 = arith.constant 0 : index
      %23 = vector.load %arg8[%c0_16, %c0_17] : memref<8x16xf32, #tpu.memory_space<vmem>>, vector<8x16xf32>
      tpu.vector_store %arg8[%c0_16, %c0_17], %22 {strides = array<i32>} : memref<8x16xf32, #tpu.memory_space<vmem>>, vector<8x16xf32>,
    } else {
    }
    %c0 = arith.constant 0 : index
    %c0_1 = arith.constant 0 : index
    %3 = vector.load %arg2[%c0, %c0_1] : memref<8x24xbf16, #tpu.memory_space<vmem>>, vector<8x24xbf16>
    %4 = arith.extf %3 : vector<8x24xbf16> to vector<8x24xf32>
    %c0_2 = arith.constant 0 : index
    %c0_3 = arith.constant 0 : index
    %5 = vector.load %arg4[%c0_2, %c0_3] : memref<1x24xf32, #tpu.memory_space<vmem>>, vector<1x24xf32>
    %6 = vector.broadcast %5 : vector<1x24xf32> to vector<8x24xf32>
    %7 = arith.mulf %4, %6 : vector<8x24xf32>
    %c0_4 = arith.constant 0 : index
    %c0_5 = arith.constant 0 : index
    %8 = vector.load %arg5[%c0_4, %c0_5] : memref<1x24xf32, #tpu.memory_space<vmem>>, vector<1x24xf32>
    %9 = vector.broadcast %8 : vector<1x24xf32> to vector<8x24xf32>
    %10 = arith.addf %7, %9 : vector<8x24xf32>
    %cst = arith.constant 0.000000e+00 : f32
    %11 = vector.broadcast %cst : f32 to vector<8x24xf32>
    %12 = arith.maximumf %10, %11 : vector<8x24xf32>
    %13 = arith.truncf %12 : vector<8x24xf32> to vector<8x24xbf16>
    %c0_6 = arith.constant 0 : index
    %c0_7 = arith.constant 0 : index
    %14 = vector.load %arg8[%c0_6, %c0_7] : memref<8x16xf32, #tpu.memory_space<vmem>>, vector<8x16xf32>
    %c0_8 = arith.constant 0 : index
    %c0_9 = arith.constant 0 : index
    %15 = vector.load %arg3[%c0_8, %c0_9] : memref<24x16xbf16, #tpu.memory_space<vmem>>, vector<24x16xbf16>
    %cst_10 = arith.constant dense<0.000000e+00> : vector<8x16xf32>
    %16 = tpu.matmul %13, %15, %cst_10 {dimension_numbers = #tpu.dot_dimension_numbers<[1], [0], [0], [1], [0, 0, 1, 1], [], []>} : vector<8x24xbf16>, vector<24x16xbf16>, vector<8x16xf32> -> vector<8x16xf32>
    %17 = arith.addf %14, %16 : vector<8x16xf32>
    %c0_11 = arith.constant 0 : index
    %c0_12 = arith.constant 0 : index
    %18 = vector.load %arg8[%c0_11, %c0_12] : memref<8x16xf32, #tpu.memory_space<vmem>>, vector<8x16xf32>
    tpu.vector_store %arg8[%c0_11, %c0_12], %17 {strides = array<i32>} : memref<8x16xf32, #tpu.memory_space<vmem>>, vector<8x16xf32>,
    %c0_i32_13 = arith.constant 0 : i32
    %19 = arith.cmpi eq, %arg1, %c0_i32_13 : i32
    %20 = arith.extui %19 : i1 to i32
    %c0_i32_14 = arith.constant 0 : i32
    %21 = arith.cmpi ne, %20, %c0_i32_14 : i32
    scf.if %21 {
      %c0_15 = arith.constant 0 : index
      %c0_16 = arith.constant 0 : index
      %22 = vector.load %arg8[%c0_15, %c0_16] : memref<8x16xf32, #tpu.memory_space<vmem>>, vector<8x16xf32>
      %c0_17 = arith.constant 0 : index
      %c0_18 = arith.constant 0 : index
      %23 = vector.load %arg6[%c0_17, %c0_18] : memref<1x16xf32, #tpu.memory_space<vmem>>, vector<1x16xf32>
      %24 = vector.broadcast %23 : vector<1x16xf32> to vector<8x16xf32>
      %25 = arith.addf %22, %24 : vector<8x16xf32>
      %cst_19 = arith.constant 0.000000e+00 : f32
      %26 = vector.broadcast %cst_19 : f32 to vector<8x16xf32>
      %27 = arith.maximumf %25, %26 : vector<8x16xf32>
      %28 = arith.truncf %27 : vector<8x16xf32> to vector<8x16xbf16>
      %c0_20 = arith.constant 0 : index
      %c0_21 = arith.constant 0 : index
      %29 = vector.load %arg7[%c0_20, %c0_21] : memref<8x16xbf16, #tpu.memory_space<vmem>>, vector<8x16xbf16>
      tpu.vector_store %arg7[%c0_20, %c0_21], %28 {strides = array<i32>} : memref<8x16xbf16, #tpu.memory_space<vmem>>, vector<8x16xbf16>,
    } else {
    }
    return
  }
  func.func @transform_0(%arg0: i32, %arg1: i32) -> (i32, i32) {
    %c0_i32 = arith.constant 0 : i32
    return %arg0, %arg1 : i32, i32
  }
  func.func @transform_1(%arg0: i32, %arg1: i32) -> (i32, i32) {
    %c0_i32 = arith.constant 0 : i32
    %c0_i32_0 = arith.constant 0 : i32
    return %arg1, %c0_i32 : i32, i32
  }
  func.func @transform_2(%arg0: i32, %arg1: i32) -> (i32, i32) {
    %c0_i32 = arith.constant 0 : i32
    %c0_i32_0 = arith.constant 0 : i32
    return %c0_i32, %arg1 : i32, i32
  }
  func.func @transform_3(%arg0: i32, %arg1: i32) -> (i32, i32) {
    %c0_i32 = arith.constant 0 : i32
    %c0_i32_0 = arith.constant 0 : i32
    return %c0_i32, %arg1 : i32, i32
  }
  func.func @transform_4(%arg0: i32, %arg1: i32) -> (i32, i32) {
    %c0_i32 = arith.constant 0 : i32
    %c0_i32_0 = arith.constant 0 : i32
    %c0_i32_1 = arith.constant 0 : i32
    return %c0_i32, %c0_i32_0 : i32, i32
  }
  func.func @transform_5(%arg0: i32, %arg1: i32) -> (i32, i32) {
    %c0_i32 = arith.constant 0 : i32
    %c0_i32_0 = arith.constant 0 : i32
    return %arg0, %c0_i32 : i32, i32
  }
}

module attributes {stable_mosaic.version = 11 : i64} {
  func.func @_mm_kernel(%arg0: i32, %arg1: i32, %arg2: memref<8x16xbf16, #tpu.memory_space<vmem>>, %arg3: memref<16x16xbf16, #tpu.memory_space<vmem>>, %arg4: memref<1x16xf32, #tpu.memory_space<vmem>>, %arg5: memref<1x16xf32, #tpu.memory_space<vmem>>, %arg6: memref<1x16xf32, #tpu.memory_space<vmem>>, %arg7: memref<8x16xbf16, #tpu.memory_space<vmem>>, %arg8: memref<8x16xf32, #tpu.memory_space<vmem>>) attributes {dimension_semantics = [#tpu.dimension_semantics<parallel>, #tpu.dimension_semantics<arbitrary>], iteration_bounds = array<i64: 1, 1>, scalar_prefetch = 0 : i64, scratch_operands = 1 : i64, tpu.core_type = #tpu.core_type<tc>, window_params = [{transform_indices = @transform_0, window_bounds = array<i64: 8, 16>}, {transform_indices = @transform_1, window_bounds = array<i64: 16, 16>}, {transform_indices = @transform_2, window_bounds = array<i64: 1, 16>}, {transform_indices = @transform_3, window_bounds = array<i64: 1, 16>}, {pipeline_mode = #tpu.pipeline_mode<synchronous>, transform_indices = @transform_4, window_bounds = array<i64: 1, 16>}, {transform_indices = @transform_5, window_bounds = array<i64: 8, 16>}]} {
    %c0_i32 = arith.constant 0 : i32
    %0 = arith.cmpi eq, %arg1, %c0_i32 : i32
    %1 = arith.extui %0 : i1 to i32
    %c0_i32_0 = arith.constant 0 : i32
    %2 = arith.cmpi ne, %1, %c0_i32_0 : i32
    scf.if %2 {
      %cst_15 = arith.constant 0.000000e+00 : f32
      %22 = vector.broadcast %cst_15 : f32 to vector<8x16xf32>
      %c0_16 = arith.constant 0 : index
      %c0_17 = arith.constant 0 : index
      %23 = vector.load %arg8[%c0_16, %c0_17] : memref<8x16xf32, #tpu.memory_space<vmem>>, vector<8x16xf32>
      tpu.vector_store %arg8[%c0_16, %c0_17], %22 {strides = array<i32>} : memref<8x16xf32, #tpu.memory_space<vmem>>, vector<8x16xf32>,
    } else {
    }
    %c0 = arith.constant 0 : index
    %c0_1 = arith.constant 0 : index
    %3 = vector.load %arg2[%c0, %c0_1] : memref<8x16xbf16, #tpu.memory_space<vmem>>, vector<8x16xbf16>
    %4 = arith.extf %3 : vector<8x16xbf16> to vector<8x16xf32>
    %c0_2 = arith.constant 0 : index
    %c0_3 = arith.constant 0 : index
    %5 = vector.load %arg4[%c0_2, %c0_3] : memref<1x16xf32, #tpu.memory_space<vmem>>, vector<1x16xf32>
    %6 = vector.broadcast %5 : vector<1x16xf32> to vector<8x16xf32>
    %7 = arith.mulf %4, %6 : vector<8x16xf32>
    %c0_4 = arith.constant 0 : index
    %c0_5 = arith.constant 0 : index
    %8 = vector.load %arg5[%c0_4, %c0_5] : memref<1x16xf32, #tpu.memory_space<vmem>>, vector<1x16xf32>
    %9 = vector.broadcast %8 : vector<1x16xf32> to vector<8x16xf32>
    %10 = arith.addf %7, %9 : vector<8x16xf32>
    %cst = arith.constant 0.000000e+00 : f32
    %11 = vector.broadcast %cst : f32 to vector<8x16xf32>
    %12 = arith.maximumf %10, %11 : vector<8x16xf32>
    %13 = arith.truncf %12 : vector<8x16xf32> to vector<8x16xbf16>
    %c0_6 = arith.constant 0 : index
    %c0_7 = arith.constant 0 : index
    %14 = vector.load %arg8[%c0_6, %c0_7] : memref<8x16xf32, #tpu.memory_space<vmem>>, vector<8x16xf32>
    %c0_8 = arith.constant 0 : index
    %c0_9 = arith.constant 0 : index
    %15 = vector.load %arg3[%c0_8, %c0_9] : memref<16x16xbf16, #tpu.memory_space<vmem>>, vector<16x16xbf16>
    %cst_10 = arith.constant dense<0.000000e+00> : vector<8x16xf32>
    %16 = tpu.matmul %13, %15, %cst_10 {dimension_numbers = #tpu.dot_dimension_numbers<[1], [0], [0], [1], [0, 0, 1, 1], [], []>} : vector<8x16xbf16>, vector<16x16xbf16>, vector<8x16xf32> -> vector<8x16xf32>
    %17 = arith.addf %14, %16 : vector<8x16xf32>
    %c0_11 = arith.constant 0 : index
    %c0_12 = arith.constant 0 : index
    %18 = vector.load %arg8[%c0_11, %c0_12] : memref<8x16xf32, #tpu.memory_space<vmem>>, vector<8x16xf32>
    tpu.vector_store %arg8[%c0_11, %c0_12], %17 {strides = array<i32>} : memref<8x16xf32, #tpu.memory_space<vmem>>, vector<8x16xf32>,
    %c0_i32_13 = arith.constant 0 : i32
    %19 = arith.cmpi eq, %arg1, %c0_i32_13 : i32
    %20 = arith.extui %19 : i1 to i32
    %c0_i32_14 = arith.constant 0 : i32
    %21 = arith.cmpi ne, %20, %c0_i32_14 : i32
    scf.if %21 {
      %c0_15 = arith.constant 0 : index
      %c0_16 = arith.constant 0 : index
      %22 = vector.load %arg8[%c0_15, %c0_16] : memref<8x16xf32, #tpu.memory_space<vmem>>, vector<8x16xf32>
      %c0_17 = arith.constant 0 : index
      %c0_18 = arith.constant 0 : index
      %23 = vector.load %arg6[%c0_17, %c0_18] : memref<1x16xf32, #tpu.memory_space<vmem>>, vector<1x16xf32>
      %24 = vector.broadcast %23 : vector<1x16xf32> to vector<8x16xf32>
      %25 = arith.addf %22, %24 : vector<8x16xf32>
      %cst_19 = arith.constant 0.000000e+00 : f32
      %26 = vector.broadcast %cst_19 : f32 to vector<8x16xf32>
      %27 = arith.maximumf %25, %26 : vector<8x16xf32>
      %28 = arith.truncf %27 : vector<8x16xf32> to vector<8x16xbf16>
      %c0_20 = arith.constant 0 : index
      %c0_21 = arith.constant 0 : index
      %29 = vector.load %arg7[%c0_20, %c0_21] : memref<8x16xbf16, #tpu.memory_space<vmem>>, vector<8x16xbf16>
      tpu.vector_store %arg7[%c0_20, %c0_21], %28 {strides = array<i32>} : memref<8x16xbf16, #tpu.memory_space<vmem>>, vector<8x16xbf16>,
    } else {
    }
    return
  }
  func.func @transform_0(%arg0: i32, %arg1: i32) -> (i32, i32) {
    %c0_i32 = arith.constant 0 : i32
    return %arg0, %arg1 : i32, i32
  }
  func.func @transform_1(%arg0: i32, %arg1: i32) -> (i32, i32) {
    %c0_i32 = arith.constant 0 : i32
    %c0_i32_0 = arith.constant 0 : i32
    return %arg1, %c0_i32 : i32, i32
  }
  func.func @transform_2(%arg0: i32, %arg1: i32) -> (i32, i32) {
    %c0_i32 = arith.constant 0 : i32
    %c0_i32_0 = arith.constant 0 : i32
    return %c0_i32, %arg1 : i32, i32
  }
  func.func @transform_3(%arg0: i32, %arg1: i32) -> (i32, i32) {
    %c0_i32 = arith.constant 0 : i32
    %c0_i32_0 = arith.constant 0 : i32
    return %c0_i32, %arg1 : i32, i32
  }
  func.func @transform_4(%arg0: i32, %arg1: i32) -> (i32, i32) {
    %c0_i32 = arith.constant 0 : i32
    %c0_i32_0 = arith.constant 0 : i32
    %c0_i32_1 = arith.constant 0 : i32
    return %c0_i32, %c0_i32_0 : i32, i32
  }
  func.func @transform_5(%arg0: i32, %arg1: i32) -> (i32, i32) {
    %c0_i32 = arith.constant 0 : i32
    %c0_i32_0 = arith.constant 0 : i32
    return %arg0, %c0_i32 : i32, i32
  }
}

module attributes {stable_mosaic.version = 11 : i64} {
  func.func @_mm_kernel(%arg0: i32, %arg1: i32, %arg2: memref<8x32xbf16, #tpu.memory_space<vmem>>, %arg3: memref<32x33xbf16, #tpu.memory_space<vmem>>, %arg4: memref<1x33xf32, #tpu.memory_space<vmem>>, %arg5: memref<8x33xf32, #tpu.memory_space<vmem>>, %arg6: memref<8x33xf32, #tpu.memory_space<vmem>>) attributes {dimension_semantics = [#tpu.dimension_semantics<parallel>, #tpu.dimension_semantics<arbitrary>], iteration_bounds = array<i64: 1, 1>, scalar_prefetch = 0 : i64, scratch_operands = 1 : i64, tpu.core_type = #tpu.core_type<tc>, window_params = [{transform_indices = @transform_0, window_bounds = array<i64: 8, 32>}, {transform_indices = @transform_1, window_bounds = array<i64: 32, 33>}, {pipeline_mode = #tpu.pipeline_mode<synchronous>, transform_indices = @transform_2, window_bounds = array<i64: 1, 33>}, {transform_indices = @transform_3, window_bounds = array<i64: 8, 33>}]} {
    %c0_i32 = arith.constant 0 : i32
    %0 = arith.cmpi eq, %arg1, %c0_i32 : i32
    %1 = arith.extui %0 : i1 to i32
    %c0_i32_0 = arith.constant 0 : i32
    %2 = arith.cmpi ne, %1, %c0_i32_0 : i32
    scf.if %2 {
      %cst_10 = arith.constant 0.000000e+00 : f32
      %12 = vector.broadcast %cst_10 : f32 to vector<8x33xf32>
      %c0_11 = arith.constant 0 : index
      %c0_12 = arith.constant 0 : index
      %13 = vector.load %arg6[%c0_11, %c0_12] : memref<8x33xf32, #tpu.memory_space<vmem>>, vector<8x33xf32>
      tpu.vector_store %arg6[%c0_11, %c0_12], %12 {strides = array<i32>} : memref<8x33xf32, #tpu.memory_space<vmem>>, vector<8x33xf32>,
    } else {
    }
    %c0 = arith.constant 0 : index
    %c0_1 = arith.constant 0 : index
    %3 = vector.load %arg2[%c0, %c0_1] : memref<8x32xbf16, #tpu.memory_space<vmem>>, vector<8x32xbf16>
    %c0_2 = arith.constant 0 : index
    %c0_3 = arith.constant 0 : index
    %4 = vector.load %arg6[%c0_2, %c0_3] : memref<8x33xf32, #tpu.memory_space<vmem>>, vector<8x33xf32>
    %c0_4 = arith.constant 0 : index
    %c0_5 = arith.constant 0 : index
    %5 = vector.load %arg3[%c0_4, %c0_5] : memref<32x33xbf16, #tpu.memory_space<vmem>>, vector<32x33xbf16>
    %cst = arith.constant dense<0.000000e+00> : vector<8x33xf32>
    %6 = tpu.matmul %3, %5, %cst {dimension_numbers = #tpu.dot_dimension_numbers<[1], [0], [0], [1], [0, 0, 1, 1], [], []>} : vector<8x32xbf16>, vector<32x33xbf16>, vector<8x33xf32> -> vector<8x33xf32>
    %7 = arith.addf %4, %6 : vector<8x33xf32>
    %c0_6 = arith.constant 0 : index
    %c0_7 = arith.constant 0 : index
    %8 = vector.load %arg6[%c0_6, %c0_7] : memref<8x33xf32, #tpu.memory_space<vmem>>, vector<8x33xf32>
    tpu.vector_store %arg6[%c0_6, %c0_7], %7 {strides = array<i32>} : memref<8x33xf32, #tpu.memory_space<vmem>>, vector<8x33xf32>,
    %c0_i32_8 = arith.constant 0 : i32
    %9 = arith.cmpi eq, %arg1, %c0_i32_8 : i32
    %10 = arith.extui %9 : i1 to i32
    %c0_i32_9 = arith.constant 0 : i32
    %11 = arith.cmpi ne, %10, %c0_i32_9 : i32
    scf.if %11 {
      %c0_10 = arith.constant 0 : index
      %c0_11 = arith.constant 0 : index
      %12 = vector.load %arg6[%c0_10, %c0_11] : memref<8x33xf32, #tpu.memory_space<vmem>>, vector<8x33xf32>
      %c0_12 = arith.constant 0 : index
      %c0_13 = arith.constant 0 : index
      %13 = vector.load %arg4[%c0_12, %c0_13] : memref<1x33xf32, #tpu.memory_space<vmem>>, vector<1x33xf32>
      %14 = vector.broadcast %13 : vector<1x33xf32> to vector<8x33xf32>
      %15 = arith.addf %12, %14 : vector<8x33xf32>
      %c0_14 = arith.constant 0 : index
      %c0_15 = arith.constant 0 : index
      %16 = vector.load %arg5[%c0_14, %c0_15] : memref<8x33xf32, #tpu.memory_space<vmem>>, vector<8x33xf32>
      tpu.vector_store %arg5[%c0_14, %c0_15], %15 {strides = array<i32>} : memref<8x33xf32, #tpu.memory_space<vmem>>, vector<8x33xf32>,
    } else {
    }
    return
  }
  func.func @transform_0(%arg0: i32, %arg1: i32) -> (i32, i32) {
    %c0_i32 = arith.constant 0 : i32
    return %arg0, %arg1 : i32, i32
  }
  func.func @transform_1(%arg0: i32, %arg1: i32) -> (i32, i32) {
    %c0_i32 = arith.constant 0 : i32
    %c0_i32_0 = arith.constant 0 : i32
    return %arg1, %c0_i32 : i32, i32
  }
  func.func @transform_2(%arg0: i32, %arg1: i32) -> (i32, i32) {
    %c0_i32 = arith.constant 0 : i32
    %c0_i32_0 = arith.constant 0 : i32
    %c0_i32_1 = arith.constant 0 : i32
    return %c0_i32, %c0_i32_0 : i32, i32
  }
  func.func @transform_3(%arg0: i32, %arg1: i32) -> (i32, i32) {
    %c0_i32 = arith.constant 0 : i32
    %c0_i32_0 = arith.constant 0 : i32
    return %arg0, %c0_i32 : i32, i32
  }
}

module attributes {stable_mosaic.version = 11 : i64} {
  func.func @_bn_relu_gap_kernel(%arg0: i32, %arg1: memref<2x1x32xbf16, #tpu.memory_space<vmem>>, %arg2: memref<1x1x32xf32, #tpu.memory_space<vmem>>, %arg3: memref<1x1x32xf32, #tpu.memory_space<vmem>>, %arg4: memref<2x32xf32, #tpu.memory_space<vmem>>) attributes {dimension_semantics = [#tpu.dimension_semantics<arbitrary>], iteration_bounds = array<i64: 1>, scalar_prefetch = 0 : i64, scratch_operands = 0 : i64, tpu.core_type = #tpu.core_type<tc>, window_params = [{pipeline_mode = #tpu.pipeline_mode<synchronous>, transform_indices = @transform_0, window_bounds = array<i64: 2, 1, 32>}, {pipeline_mode = #tpu.pipeline_mode<synchronous>, transform_indices = @transform_1, window_bounds = array<i64: 1, 1, 32>}, {pipeline_mode = #tpu.pipeline_mode<synchronous>, transform_indices = @transform_2, window_bounds = array<i64: 1, 1, 32>}, {pipeline_mode = #tpu.pipeline_mode<synchronous>, transform_indices = @transform_3, window_bounds = array<i64: 2, 32>}]} {
    %c0 = arith.constant 0 : index
    %c0_0 = arith.constant 0 : index
    %c0_1 = arith.constant 0 : index
    %0 = vector.load %arg1[%c0, %c0_0, %c0_1] : memref<2x1x32xbf16, #tpu.memory_space<vmem>>, vector<2x1x32xbf16>
    %1 = arith.extf %0 : vector<2x1x32xbf16> to vector<2x1x32xf32>
    %c0_2 = arith.constant 0 : index
    %c0_3 = arith.constant 0 : index
    %c0_4 = arith.constant 0 : index
    %2 = vector.load %arg2[%c0_2, %c0_3, %c0_4] : memref<1x1x32xf32, #tpu.memory_space<vmem>>, vector<1x1x32xf32>
    %3 = vector.broadcast %2 : vector<1x1x32xf32> to vector<2x1x32xf32>
    %4 = arith.mulf %1, %3 : vector<2x1x32xf32>
    %c0_5 = arith.constant 0 : index
    %c0_6 = arith.constant 0 : index
    %c0_7 = arith.constant 0 : index
    %5 = vector.load %arg3[%c0_5, %c0_6, %c0_7] : memref<1x1x32xf32, #tpu.memory_space<vmem>>, vector<1x1x32xf32>
    %6 = vector.broadcast %5 : vector<1x1x32xf32> to vector<2x1x32xf32>
    %7 = arith.addf %4, %6 : vector<2x1x32xf32>
    %cst = arith.constant 0.000000e+00 : f32
    %8 = vector.broadcast %cst : f32 to vector<2x1x32xf32>
    %9 = arith.maximumf %7, %8 : vector<2x1x32xf32>
    %cst_8 = arith.constant dense<0.000000e+00> : vector<2x32xf32>
    %10 = vector.multi_reduction <add>, %9, %cst_8 [1] : vector<2x1x32xf32> to vector<2x32xf32>
    %cst_9 = arith.constant 1.000000e+00 : f32
    %11 = vector.broadcast %cst_9 : f32 to vector<2x32xf32>
    %12 = arith.divf %10, %11 : vector<2x32xf32>
    %c0_10 = arith.constant 0 : index
    %c0_11 = arith.constant 0 : index
    %13 = vector.load %arg4[%c0_10, %c0_11] : memref<2x32xf32, #tpu.memory_space<vmem>>, vector<2x32xf32>
    tpu.vector_store %arg4[%c0_10, %c0_11], %12 {strides = array<i32>} : memref<2x32xf32, #tpu.memory_space<vmem>>, vector<2x32xf32>,
    return
  }
  func.func @transform_0(%arg0: i32) -> (i32, i32, i32) {
    %c0_i32 = arith.constant 0 : i32
    %c0_i32_0 = arith.constant 0 : i32
    %c0_i32_1 = arith.constant 0 : i32
    %c0_i32_2 = arith.constant 0 : i32
    return %c0_i32, %c0_i32_0, %c0_i32_1 : i32, i32, i32
  }
  func.func @transform_1(%arg0: i32) -> (i32, i32, i32) {
    %c0_i32 = arith.constant 0 : i32
    %c0_i32_0 = arith.constant 0 : i32
    %c0_i32_1 = arith.constant 0 : i32
    %c0_i32_2 = arith.constant 0 : i32
    return %c0_i32, %c0_i32_0, %c0_i32_1 : i32, i32, i32
  }
  func.func @transform_2(%arg0: i32) -> (i32, i32, i32) {
    %c0_i32 = arith.constant 0 : i32
    %c0_i32_0 = arith.constant 0 : i32
    %c0_i32_1 = arith.constant 0 : i32
    %c0_i32_2 = arith.constant 0 : i32
    return %c0_i32, %c0_i32_0, %c0_i32_1 : i32, i32, i32
  }
  func.func @transform_3(%arg0: i32) -> (i32, i32) {
    %c0_i32 = arith.constant 0 : i32
    %c0_i32_0 = arith.constant 0 : i32
    %c0_i32_1 = arith.constant 0 : i32
    return %c0_i32, %c0_i32_0 : i32, i32
  }
}

module attributes {stable_mosaic.version = 11 : i64} {
  func.func @_softmax_kernel(%arg0: i32, %arg1: memref<2x3xf32, #tpu.memory_space<vmem>>, %arg2: memref<2x3xf32, #tpu.memory_space<vmem>>) attributes {dimension_semantics = [#tpu.dimension_semantics<arbitrary>], iteration_bounds = array<i64: 1>, scalar_prefetch = 0 : i64, scratch_operands = 0 : i64, tpu.core_type = #tpu.core_type<tc>, window_params = [{pipeline_mode = #tpu.pipeline_mode<synchronous>, transform_indices = @transform_0, window_bounds = array<i64: 2, 3>}, {pipeline_mode = #tpu.pipeline_mode<synchronous>, transform_indices = @transform_1, window_bounds = array<i64: 2, 3>}]} {
    %c0 = arith.constant 0 : index
    %c0_0 = arith.constant 0 : index
    %0 = vector.load %arg1[%c0, %c0_0] : memref<2x3xf32, #tpu.memory_space<vmem>>, vector<2x3xf32>
    %cst = arith.constant dense<0xFF800000> : vector<2xf32>
    %1 = vector.multi_reduction <maximumf>, %0, %cst [1] : vector<2x3xf32> to vector<2xf32>
    %2 = vector.shape_cast %1 : vector<2xf32> to vector<2x1xf32>
    %3 = vector.broadcast %2 : vector<2x1xf32> to vector<2x3xf32>
    %4 = arith.subf %0, %3 : vector<2x3xf32>
    %5 = math.exp %4 : vector<2x3xf32>
    %cst_1 = arith.constant dense<0.000000e+00> : vector<2xf32>
    %6 = vector.multi_reduction <add>, %5, %cst_1 [1] : vector<2x3xf32> to vector<2xf32>
    %7 = vector.shape_cast %6 : vector<2xf32> to vector<2x1xf32>
    %8 = tpu.reciprocal %7 {approx = true} : vector<2x1xf32> -> vector<2x1xf32>
    %9 = vector.broadcast %8 : vector<2x1xf32> to vector<2x3xf32>
    %10 = arith.mulf %5, %9 : vector<2x3xf32>
    %c0_2 = arith.constant 0 : index
    %c0_3 = arith.constant 0 : index
    %11 = vector.load %arg2[%c0_2, %c0_3] : memref<2x3xf32, #tpu.memory_space<vmem>>, vector<2x3xf32>
    tpu.vector_store %arg2[%c0_2, %c0_3], %10 {strides = array<i32>} : memref<2x3xf32, #tpu.memory_space<vmem>>, vector<2x3xf32>,
    return
  }
  func.func @transform_0(%arg0: i32) -> (i32, i32) {
    %c0_i32 = arith.constant 0 : i32
    %c0_i32_0 = arith.constant 0 : i32
    %c0_i32_1 = arith.constant 0 : i32
    return %c0_i32, %c0_i32_0 : i32, i32
  }
  func.func @transform_1(%arg0: i32) -> (i32, i32) {
    %c0_i32 = arith.constant 0 : i32
    %c0_i32_0 = arith.constant 0 : i32
    %c0_i32_1 = arith.constant 0 : i32
    return %c0_i32, %c0_i32_0 : i32, i32
  }
}

</mosaic_0001>

<bundles_post_ra>
// kernel: lyft_densenet_forward.27
= control target key start
LH: loop header
LB: loop body
LE: loop exit
PB: predicated region body
PF: predicated region fallthrough
CT: control target
= control target key end

     0   :  { %s2561_s12 = smov 0   ;;  %s2563_s13 = smov 0   ;;  %s3425_s0 = inlined_call_operand.vmem [shape: bf16[512,1280], index: 0, kind: input, shape index: {}]   ;;  %s3426_s1 = inlined_call_operand.vmem [shape: bf16[1280,16], index: 1, kind: input, shape index: {}]   ;;  %s3427_s2 = inlined_call_operand.vmem [shape: f32[1,16], index: 2, kind: input, shape index: {}]   ;;  %s3428_s3 = inlined_call_operand.vmem [shape: bf16[512,16], index: 3, kind: output, shape index: {}]  }
   0x1   :  { %s2565_s14 = smov 0   ;;  %s2567_s15 = smov 0  }
   0x2   :  { %s2569_s16 = smov 0  }
   0x3 LB: > { %s22_s17 = sadd.s32 1, %s2534_s15  ;;  %p41_p1 = scmp.ne.s32.totalorder %s2526_s13, %s2522_s12  ;;  %s2538_s16 = sphi %s2569_s16, %s13_s16   ;;  %s2534_s15 = sphi %s2567_s15, %s3432_s15   ;;  %s2530_s14 = sphi %s2565_s14, %s3431_s14   ;;  %s2526_s13 = sphi %s2563_s13, %s3430_s13   ;;  %s2522_s12 = sphi %s2561_s12, %s3429_s12  }
   0x4   : > { %p23_p0 = scmp.ge.s32.totalorder %s22_s17, 5  ;;  %p42_p2 = scmp.eq.s32.totalorder %s2538_s16, 0 }
   0x5   : > { %s34_s19 = sadd.s32 1, %s2526_s13  ;;  %p2027_p5 = scmp.ge.s32.totalorder %s2538_s16, 5 }
   0x6   : > { %s3434_s17 = smov (%p23_p0, %s22_s17), 0  ;;  %p43_p3 = por %p42_p2, %p41_p1 }
   0x7   : > { %s30_s18 = ssub.s32 %s2534_s15, %s3434_s17  ;;  %143 = sbr.rel (%p2027_p5) target bundleno = 80 (0x50), region = 20 }
   0x8   : > { %p32_p4 = scmp.eq.s32.totalorder %s30_s18, 0 }
   0xa   : > { %s2596_s20 = scalar_select %p32_p4, %s2526_s13, %s34_s19  }
   0xc   : > { %146 = sbr.rel (!%p43_p3) target bundleno = 80 (0x50), region = 24  ;;  %s148_s21 = sand.u32 (%p43_p3), 1, %s2526_s13  }
   0xd   : > { %s2361_s22 = sshll.u32 (%p43_p3), %s2534_s15, 3  ;;  %s2028_s23 = sshll.u32 (%p43_p3), %s148_s21, 9 }
   0xe   : > { %s2604_s26 = scalar_lea.vmem (%p43_p3), %s3425_s0, %s2361_s22  ;;  %s2609_s27 = scalar_lea.vmem (%p43_p3), [#allocation3], %s2028_s23 }
   0xf   : > { %v311_v0 = vld [vmem:[%s2604_s26] sm:$0xff] (%p43_p3)  ;;  %v313_v1 = vld [vmem:[%s2604_s26 + $0x28] sm:$0xff] (%p43_p3)  ;;  %v315_v2 = vld [vmem:[%s2604_s26 + $0x50] sm:$0xff] (%p43_p3) }
  0x10   : > { %312 = vst [vmem:[%s2609_s27] sm:$0xff] (%p43_p3), %v311_v0  ;;  %v317_v3 = vld [vmem:[%s2604_s26 + $0x78] sm:$0xff] (%p43_p3)  ;;  %v319_v4 = vld [vmem:[%s2604_s26 + $0xa0] sm:$0xff] (%p43_p3)  ;;  %v321_v5 = vld [vmem:[%s2604_s26 + $0xc8] sm:$0xff] (%p43_p3) }
  0x11   : > { %314 = vst [vmem:[%s2609_s27 + $0x8] sm:$0xff] %v313_v1  ;;  %v323_v6 = vld [vmem:[%s2604_s26 + $0xf0] sm:$0xff]  ;;  %v325_v7 = vld [vmem:[%s2604_s26 + $0x118] sm:$0xff]  ;;  %v327_v8 = vld [vmem:[%s2604_s26 + $0x140] sm:$0xff] }
  0x12   : > { %316 = vst [vmem:[%s2609_s27 + $0x10] sm:$0xff] %v315_v2  ;;  %v329_v9 = vld [vmem:[%s2604_s26 + $0x168] sm:$0xff]  ;;  %v331_v10 = vld [vmem:[%s2604_s26 + $0x190] sm:$0xff]  ;;  %v333_v11 = vld [vmem:[%s2604_s26 + $0x1b8] sm:$0xff] }
  0x13   : > { %318 = vst [vmem:[%s2609_s27 + $0x18] sm:$0xff] %v317_v3  ;;  %v335_v12 = vld [vmem:[%s2604_s26 + $0x1e0] sm:$0xff]  ;;  %v337_v13 = vld [vmem:[%s2604_s26 + $0x208] sm:$0xff]  ;;  %v339_v14 = vld [vmem:[%s2604_s26 + $0x230] sm:$0xff] }
  0x14   : > { %320 = vst [vmem:[%s2609_s27 + $0x20] sm:$0xff] %v319_v4  ;;  %v341_v15 = vld [vmem:[%s2604_s26 + $0x258] sm:$0xff]  ;;  %v343_v16 = vld [vmem:[%s2604_s26 + $0x280] sm:$0xff]  ;;  %v345_v17 = vld [vmem:[%s2604_s26 + $0x2a8] sm:$0xff] }
  0x15   : > { %322 = vst [vmem:[%s2609_s27 + $0x28] sm:$0xff] %v321_v5  ;;  %v347_v18 = vld [vmem:[%s2604_s26 + $0x2d0] sm:$0xff]  ;;  %v349_v19 = vld [vmem:[%s2604_s26 + $0x2f8] sm:$0xff]  ;;  %v351_v20 = vld [vmem:[%s2604_s26 + $0x320] sm:$0xff] }
  0x16   : > { %324 = vst [vmem:[%s2609_s27 + $0x30] sm:$0xff] %v323_v6  ;;  %v353_v21 = vld [vmem:[%s2604_s26 + $0x348] sm:$0xff]  ;;  %v355_v22 = vld [vmem:[%s2604_s26 + $0x370] sm:$0xff]  ;;  %v357_v23 = vld [vmem:[%s2604_s26 + $0x398] sm:$0xff] }
  0x17   : > { %326 = vst [vmem:[%s2609_s27 + $0x38] sm:$0xff] %v325_v7  ;;  %v359_v24 = vld [vmem:[%s2604_s26 + $0x3c0] sm:$0xff]  ;;  %v361_v25 = vld [vmem:[%s2604_s26 + $0x3e8] sm:$0xff]  ;;  %v363_v26 = vld [vmem:[%s2604_s26 + $0x410] sm:$0xff] }
  0x18   : > { %328 = vst [vmem:[%s2609_s27 + $0x40] sm:$0xff] %v327_v8  ;;  %v365_v27 = vld [vmem:[%s2604_s26 + $0x438] sm:$0xff]  ;;  %v367_v28 = vld [vmem:[%s2604_s26 + $0x460] sm:$0xff]  ;;  %v369_v29 = vld [vmem:[%s2604_s26 + $0x488] sm:$0xff] }
  0x19   : > { %330 = vst [vmem:[%s2609_s27 + $0x48] sm:$0xff] %v329_v9  ;;  %v371_v30 = vld [vmem:[%s2604_s26 + $0x4b0] sm:$0xff]  ;;  %v373_v31 = vld [vmem:[%s2604_s26 + $0x4d8] sm:$0xff]  ;;  %v375_v32 = vld [vmem:[%s2604_s26 + $0x500] sm:$0xff] }
  0x1a   : > { %332 = vst [vmem:[%s2609_s27 + $0x50] sm:$0xff] %v331_v10  ;;  %v377_v33 = vld [vmem:[%s2604_s26 + $0x528] sm:$0xff]  ;;  %v379_v34 = vld [vmem:[%s2604_s26 + $0x550] sm:$0xff]  ;;  %v381_v35 = vld [vmem:[%s2604_s26 + $0x578] sm:$0xff] }
  0x1b   : > { %334 = vst [vmem:[%s2609_s27 + $0x58] sm:$0xff] %v333_v11  ;;  %v383_v36 = vld [vmem:[%s2604_s26 + $0x5a0] sm:$0xff]  ;;  %v385_v37 = vld [vmem:[%s2604_s26 + $0x5c8] sm:$0xff]  ;;  %v387_v38 = vld [vmem:[%s2604_s26 + $0x5f0] sm:$0xff] }
  0x1c   : > { %336 = vst [vmem:[%s2609_s27 + $0x60] sm:$0xff] %v335_v12  ;;  %v389_v39 = vld [vmem:[%s2604_s26 + $0x618] sm:$0xff]  ;;  %v391_v40 = vld [vmem:[%s2604_s26 + $0x640] sm:$0xff]  ;;  %v393_v41 = vld [vmem:[%s2604_s26 + $0x668] sm:$0xff] }
  0x1d   : > { %338 = vst [vmem:[%s2609_s27 + $0x68] sm:$0xff] %v337_v13  ;;  %v395_v42 = vld [vmem:[%s2604_s26 + $0x690] sm:$0xff]  ;;  %v397_v43 = vld [vmem:[%s2604_s26 + $0x6b8] sm:$0xff]  ;;  %v399_v44 = vld [vmem:[%s2604_s26 + $0x6e0] sm:$0xff] }
  0x1e   : > { %340 = vst [vmem:[%s2609_s27 + $0x70] sm:$0xff] %v339_v14  ;;  %v401_v45 = vld [vmem:[%s2604_s26 + $0x708] sm:$0xff]  ;;  %v403_v46 = vld [vmem:[%s2604_s26 + $0x730] sm:$0xff]  ;;  %v405_v47 = vld [vmem:[%s2604_s26 + $0x758] sm:$0xff] }
  0x1f   : > { %342 = vst [vmem:[%s2609_s27 + $0x78] sm:$0xff] %v341_v15  ;;  %v407_v48 = vld [vmem:[%s2604_s26 + $0x780] sm:$0xff]  ;;  %v409_v49 = vld [vmem:[%s2604_s26 + $0x7a8] sm:$0xff]  ;;  %v411_v50 = vld [vmem:[%s2604_s26 + $0x7d0] sm:$0xff] }
  0x20   : > { %344 = vst [vmem:[%s2609_s27 + $0x80] sm:$0xff] %v343_v16  ;;  %v413_v51 = vld [vmem:[%s2604_s26 + $0x7f8] sm:$0xff]  ;;  %v415_v52 = vld [vmem:[%s2604_s26 + $0x820] sm:$0xff]  ;;  %v417_v53 = vld [vmem:[%s2604_s26 + $0x848] sm:$0xff] }
  0x21   : > { %346 = vst [vmem:[%s2609_s27 + $0x88] sm:$0xff] %v345_v17  ;;  %v419_v54 = vld [vmem:[%s2604_s26 + $0x870] sm:$0xff]  ;;  %v421_v55 = vld [vmem:[%s2604_s26 + $0x898] sm:$0xff]  ;;  %v423_v56 = vld [vmem:[%s2604_s26 + $0x8c0] sm:$0xff] }
  0x22   : > { %348 = vst [vmem:[%s2609_s27 + $0x90] sm:$0xff] %v347_v18  ;;  %v425_v57 = vld [vmem:[%s2604_s26 + $0x8e8] sm:$0xff]  ;;  %v427_v58 = vld [vmem:[%s2604_s26 + $0x910] sm:$0xff]  ;;  %v429_v59 = vld [vmem:[%s2604_s26 + $0x938] sm:$0xff] }
  0x23   : > { %350 = vst [vmem:[%s2609_s27 + $0x98] sm:$0xff] %v349_v19  ;;  %v431_v60 = vld [vmem:[%s2604_s26 + $0x960] sm:$0xff]  ;;  %v433_v61 = vld [vmem:[%s2604_s26 + $0x988] sm:$0xff]  ;;  %v435_v62 = vld [vmem:[%s2604_s26 + $0x9b0] sm:$0xff] }
  0x24   : > { %352 = vst [vmem:[%s2609_s27 + $0xa0] sm:$0xff] %v351_v20  ;;  %v437_v63 = vld [vmem:[%s2604_s26 + $0x9d8] sm:$0xff] }
  0x25   : > { %354 = vst [vmem:[%s2609_s27 + $0xa8] sm:$0xff] %v353_v21 }
  0x26   : > { %356 = vst [vmem:[%s2609_s27 + $0xb0] sm:$0xff] %v355_v22 }
  0x27   : > { %358 = vst [vmem:[%s2609_s27 + $0xb8] sm:$0xff] %v357_v23 }
  0x28   : > { %360 = vst [vmem:[%s2609_s27 + $0xc0] sm:$0xff] %v359_v24 }
  0x29   : > { %362 = vst [vmem:[%s2609_s27 + $0xc8] sm:$0xff] %v361_v25 }
  0x2a   : > { %364 = vst [vmem:[%s2609_s27 + $0xd0] sm:$0xff] %v363_v26 }
  0x2b   : > { %366 = vst [vmem:[%s2609_s27 + $0xd8] sm:$0xff] %v365_v27 }
  0x2c   : > { %368 = vst [vmem:[%s2609_s27 + $0xe0] sm:$0xff] %v367_v28 }
  0x2d   : > { %370 = vst [vmem:[%s2609_s27 + $0xe8] sm:$0xff] %v369_v29 }
  0x2e   : > { %372 = vst [vmem:[%s2609_s27 + $0xf0] sm:$0xff] %v371_v30 }
  0x2f   : > { %374 = vst [vmem:[%s2609_s27 + $0xf8] sm:$0xff] %v373_v31 }
  0x30   : > { %376 = vst [vmem:[%s2609_s27 + $0x100] sm:$0xff] %v375_v32 }
  0x31   : > { %378 = vst [vmem:[%s2609_s27 + $0x108] sm:$0xff] %v377_v33 }
  0x32   : > { %380 = vst [vmem:[%s2609_s27 + $0x110] sm:$0xff] %v379_v34 }
  0x33   : > { %382 = vst [vmem:[%s2609_s27 + $0x118] sm:$0xff] %v381_v35 }
  0x34   : > { %384 = vst [vmem:[%s2609_s27 + $0x120] sm:$0xff] %v383_v36 }
  0x35   : > { %386 = vst [vmem:[%s2609_s27 + $0x128] sm:$0xff] %v385_v37 }
  0x36   : > { %388 = vst [vmem:[%s2609_s27 + $0x130] sm:$0xff] %v387_v38 }
  0x37   : > { %390 = vst [vmem:[%s2609_s27 + $0x138] sm:$0xff] %v389_v39 }
  0x38   : > { %392 = vst [vmem:[%s2609_s27 + $0x140] sm:$0xff] %v391_v40 }
  0x39   : > { %394 = vst [vmem:[%s2609_s27 + $0x148] sm:$0xff] %v393_v41 }
  0x3a   : > { %396 = vst [vmem:[%s2609_s27 + $0x150] sm:$0xff] %v395_v42 }
  0x3b   : > { %398 = vst [vmem:[%s2609_s27 + $0x158] sm:$0xff] %v397_v43 }
  0x3c   : > { %400 = vst [vmem:[%s2609_s27 + $0x160] sm:$0xff] %v399_v44 }
  0x3d   : > { %402 = vst [vmem:[%s2609_s27 + $0x168] sm:$0xff] %v401_v45 }
  0x3e   : > { %404 = vst [vmem:[%s2609_s27 + $0x170] sm:$0xff] %v403_v46 }
  0x3f   : > { %406 = vst [vmem:[%s2609_s27 + $0x178] sm:$0xff] %v405_v47 }
  0x40   : > { %408 = vst [vmem:[%s2609_s27 + $0x180] sm:$0xff] %v407_v48 }
  0x41   : > { %410 = vst [vmem:[%s2609_s27 + $0x188] sm:$0xff] %v409_v49 }
  0x42   : > { %412 = vst [vmem:[%s2609_s27 + $0x190] sm:$0xff] %v411_v50 }
  0x43   : > { %414 = vst [vmem:[%s2609_s27 + $0x198] sm:$0xff] %v413_v51 }
  0x44   : > { %416 = vst [vmem:[%s2609_s27 + $0x1a0] sm:$0xff] %v415_v52 }
  0x45   : > { %418 = vst [vmem:[%s2609_s27 + $0x1a8] sm:$0xff] %v417_v53 }
  0x46   : > { %420 = vst [vmem:[%s2609_s27 + $0x1b0] sm:$0xff] %v419_v54 }
  0x47   : > { %422 = vst [vmem:[%s2609_s27 + $0x1b8] sm:$0xff] %v421_v55 }
  0x48   : > { %424 = vst [vmem:[%s2609_s27 + $0x1c0] sm:$0xff] %v423_v56 }
  0x49   : > { %426 = vst [vmem:[%s2609_s27 + $0x1c8] sm:$0xff] %v425_v57 }
  0x4a   : > { %428 = vst [vmem:[%s2609_s27 + $0x1d0] sm:$0xff] %v427_v58 }
  0x4b   : > { %430 = vst [vmem:[%s2609_s27 + $0x1d8] sm:$0xff] %v429_v59 }
  0x4c   : > { %432 = vst [vmem:[%s2609_s27 + $0x1e0] sm:$0xff] %v431_v60 }
  0x4d   : > { %434 = vst [vmem:[%s2609_s27 + $0x1e8] sm:$0xff] %v433_v61 }
  0x4e   : > { %436 = vst [vmem:[%s2609_s27 + $0x1f0] sm:$0xff] %v435_v62 }
  0x4f   : > { %438 = vst [vmem:[%s2609_s27 + $0x1f8] sm:$0xff] %v437_v63 }
  0x50 PF: > { %p2031_p6 = scmp.ge.s32.totalorder %s2538_s16, 1  ;;  %p452_p7 = scmp.lt.s32.totalorder %s2538_s16, 6 }
  0x52   : > { %p453_p8 = pnand %p2031_p6, %p452_p7 }
  0x53   : > { %s459_s28 = sand.u32 (!%p453_p8), 1, %s2522_s12   ;;  %s2033_s29 = sshll.u32 (!%p453_p8), %s2530_s14, 5 }
  0x54   : > { %456 = sbr.rel (%p453_p8) target bundleno = 649 (0x289), region = 66  ;;  %s2032_s30 = sshll.u32 (!%p453_p8), %s459_s28, 9 }
  0x55   : > { %p490_p9 = scmp.lt.s32.totalorder (!%p453_p8), %s2033_s29, 159  ;;  %s2745_s8 = scalar_lea.vmem (!%p453_p8), [#allocation3], %s2032_s30 }
  0x56   : > { %p2035_p10 = scmp.ne.s32.totalorder (!%p453_p8), %s2530_s14, 0 }
  0x59   : > { %s3436_s29 = smov (!%p490_p9, %s2033_s29), 159  ;;  %504 = sbr.rel (%p2035_p10) target bundleno = 159 (0x9f), region = 74 }
  0x5a   : > { %s2034_s4 = sshll.u32 %s3436_s29, 2 }
  0x5b   : > { %s2743_s7 = scalar_lea.vmem %s3426_s1, %s2034_s4 }
  0x5e   : > { %vm505_vm0 = vcmask 130048   ;;  %v2540_v0 = vmov 0.0  }
  0x5f   : > { %506 = vst.msk [vmem:[#allocation2] sm:$0xff] %vm505_vm0, %v2540_v0 }
  0x60   : > { %507 = vst.msk [vmem:[#allocation2 + $0x8] sm:$0xff] %vm505_vm0, %v2540_v0 }
  0x61   : > { %508 = vst.msk [vmem:[#allocation2 + $0x10] sm:$0xff] %vm505_vm0, %v2540_v0 }
  0x62   : > { %509 = vst.msk [vmem:[#allocation2 + $0x18] sm:$0xff] %vm505_vm0, %v2540_v0 }
  0x63   : > { %510 = vst.msk [vmem:[#allocation2 + $0x20] sm:$0xff] %vm505_vm0, %v2540_v0 }
  0x64   : > { %511 = vst.msk [vmem:[#allocation2 + $0x28] sm:$0xff] %vm505_vm0, %v2540_v0 }
  0x65   : > { %512 = vst.msk [vmem:[#allocation2 + $0x30] sm:$0xff] %vm505_vm0, %v2540_v0 }
  0x66   : > { %513 = vst.msk [vmem:[#allocation2 + $0x38] sm:$0xff] %vm505_vm0, %v2540_v0 }
  0x67   : > { %514 = vst.msk [vmem:[#allocation2 + $0x40] sm:$0xff] %vm505_vm0, %v2540_v0 }
  0x68   : > { %515 = vst.msk [vmem:[#allocation2 + $0x48] sm:$0xff] %vm505_vm0, %v2540_v0 }
  0x69   : > { %516 = vst.msk [vmem:[#allocation2 + $0x50] sm:$0xff] %vm505_vm0, %v2540_v0 }
  0x6a   : > { %517 = vst.msk [vmem:[#allocation2 + $0x58] sm:$0xff] %vm505_vm0, %v2540_v0 }
  0x6b   : > { %518 = vst.msk [vmem:[#allocation2 + $0x60] sm:$0xff] %vm505_vm0, %v2540_v0 }
  0x6c   : > { %519 = vst.msk [vmem:[#allocation2 + $0x68] sm:$0xff] %vm505_vm0, %v2540_v0 }
  0x6d   : > { %520 = vst.msk [vmem:[#allocation2 + $0x70] sm:$0xff] %vm505_vm0, %v2540_v0 }
  0x6e   : > { %521 = vst.msk [vmem:[#allocation2 + $0x78] sm:$0xff] %vm505_vm0, %v2540_v0 }
  0x6f   : > { %522 = vst.msk [vmem:[#allocation2 + $0x80] sm:$0xff] %vm505_vm0, %v2540_v0 }
  0x70   : > { %523 = vst.msk [vmem:[#allocation2 + $0x88] sm:$0xff] %vm505_vm0, %v2540_v0 }
  0x71   : > { %524 = vst.msk [vmem:[#allocation2 + $0x90] sm:$0xff] %vm505_vm0, %v2540_v0 }
  0x72   : > { %525 = vst.msk [vmem:[#allocation2 + $0x98] sm:$0xff] %vm505_vm0, %v2540_v0 }
  0x73   : > { %526 = vst.msk [vmem:[#allocation2 + $0xa0] sm:$0xff] %vm505_vm0, %v2540_v0 }
  0x74   : > { %527 = vst.msk [vmem:[#allocation2 + $0xa8] sm:$0xff] %vm505_vm0, %v2540_v0 }
  0x75   : > { %528 = vst.msk [vmem:[#allocation2 + $0xb0] sm:$0xff] %vm505_vm0, %v2540_v0 }
  0x76   : > { %529 = vst.msk [vmem:[#allocation2 + $0xb8] sm:$0xff] %vm505_vm0, %v2540_v0 }
  0x77   : > { %530 = vst.msk [vmem:[#allocation2 + $0xc0] sm:$0xff] %vm505_vm0, %v2540_v0 }
  0x78   : > { %531 = vst.msk [vmem:[#allocation2 + $0xc8] sm:$0xff] %vm505_vm0, %v2540_v0 }
  0x79   : > { %532 = vst.msk [vmem:[#allocation2 + $0xd0] sm:$0xff] %vm505_vm0, %v2540_v0 }
  0x7a   : > { %533 = vst.msk [vmem:[#allocation2 + $0xd8] sm:$0xff] %vm505_vm0, %v2540_v0 }
  0x7b   : > { %534 = vst.msk [vmem:[#allocation2 + $0xe0] sm:$0xff] %vm505_vm0, %v2540_v0 }
  0x7c   : > { %535 = vst.msk [vmem:[#allocation2 + $0xe8] sm:$0xff] %vm505_vm0, %v2540_v0 }
  0x7d   : > { %536 = vst.msk [vmem:[#allocation2 + $0xf0] sm:$0xff] %vm505_vm0, %v2540_v0 }
  0x7e   : > { %537 = vst.msk [vmem:[#allocation2 + $0xf8] sm:$0xff] %vm505_vm0, %v2540_v0 }
  0x7f   : > { %538 = vst.msk [vmem:[#allocation2 + $0x100] sm:$0xff] %vm505_vm0, %v2540_v0 }
  0x80   : > { %539 = vst.msk [vmem:[#allocation2 + $0x108] sm:$0xff] %vm505_vm0, %v2540_v0 }
  0x81   : > { %540 = vst.msk [vmem:[#allocation2 + $0x110] sm:$0xff] %vm505_vm0, %v2540_v0 }
  0x82   : > { %541 = vst.msk [vmem:[#allocation2 + $0x118] sm:$0xff] %vm505_vm0, %v2540_v0 }
  0x83   : > { %542 = vst.msk [vmem:[#allocation2 + $0x120] sm:$0xff] %vm505_vm0, %v2540_v0 }
  0x84   : > { %543 = vst.msk [vmem:[#allocation2 + $0x128] sm:$0xff] %vm505_vm0, %v2540_v0 }
  0x85   : > { %544 = vst.msk [vmem:[#allocation2 + $0x130] sm:$0xff] %vm505_vm0, %v2540_v0 }
  0x86   : > { %545 = vst.msk [vmem:[#allocation2 + $0x138] sm:$0xff] %vm505_vm0, %v2540_v0 }
  0x87   : > { %546 = vst.msk [vmem:[#allocation2 + $0x140] sm:$0xff] %vm505_vm0, %v2540_v0 }
  0x88   : > { %547 = vst.msk [vmem:[#allocation2 + $0x148] sm:$0xff] %vm505_vm0, %v2540_v0 }
  0x89   : > { %548 = vst.msk [vmem:[#allocation2 + $0x150] sm:$0xff] %vm505_vm0, %v2540_v0 }
  0x8a   : > { %549 = vst.msk [vmem:[#allocation2 + $0x158] sm:$0xff] %vm505_vm0, %v2540_v0 }
  0x8b   : > { %550 = vst.msk [vmem:[#allocation2 + $0x160] sm:$0xff] %vm505_vm0, %v2540_v0 }
  0x8c   : > { %551 = vst.msk [vmem:[#allocation2 + $0x168] sm:$0xff] %vm505_vm0, %v2540_v0 }
  0x8d   : > { %552 = vst.msk [vmem:[#allocation2 + $0x170] sm:$0xff] %vm505_vm0, %v2540_v0 }
  0x8e   : > { %553 = vst.msk [vmem:[#allocation2 + $0x178] sm:$0xff] %vm505_vm0, %v2540_v0 }
  0x8f   : > { %554 = vst.msk [vmem:[#allocation2 + $0x180] sm:$0xff] %vm505_vm0, %v2540_v0 }
  0x90   : > { %555 = vst.msk [vmem:[#allocation2 + $0x188] sm:$0xff] %vm505_vm0, %v2540_v0 }
  0x91   : > { %556 = vst.msk [vmem:[#allocation2 + $0x190] sm:$0xff] %vm505_vm0, %v2540_v0 }
  0x92   : > { %557 = vst.msk [vmem:[#allocation2 + $0x198] sm:$0xff] %vm505_vm0, %v2540_v0 }
  0x93   : > { %558 = vst.msk [vmem:[#allocation2 + $0x1a0] sm:$0xff] %vm505_vm0, %v2540_v0 }
  0x94   : > { %559 = vst.msk [vmem:[#allocation2 + $0x1a8] sm:$0xff] %vm505_vm0, %v2540_v0 }
  0x95   : > { %560 = vst.msk [vmem:[#allocation2 + $0x1b0] sm:$0xff] %vm505_vm0, %v2540_v0 }
  0x96   : > { %561 = vst.msk [vmem:[#allocation2 + $0x1b8] sm:$0xff] %vm505_vm0, %v2540_v0 }
  0x97   : > { %562 = vst.msk [vmem:[#allocation2 + $0x1c0] sm:$0xff] %vm505_vm0, %v2540_v0 }
  0x98   : > { %563 = vst.msk [vmem:[#allocation2 + $0x1c8] sm:$0xff] %vm505_vm0, %v2540_v0 }
  0x99   : > { %564 = vst.msk [vmem:[#allocation2 + $0x1d0] sm:$0xff] %vm505_vm0, %v2540_v0 }
  0x9a   : > { %565 = vst.msk [vmem:[#allocation2 + $0x1d8] sm:$0xff] %vm505_vm0, %v2540_v0 }
  0x9b   : > { %566 = vst.msk [vmem:[#allocation2 + $0x1e0] sm:$0xff] %vm505_vm0, %v2540_v0 }
  0x9c   : > { %567 = vst.msk [vmem:[#allocation2 + $0x1e8] sm:$0xff] %vm505_vm0, %v2540_v0 }
  0x9d   : > { %568 = vst.msk [vmem:[#allocation2 + $0x1f0] sm:$0xff] %vm505_vm0, %v2540_v0 }
  0x9e   : > { %569 = vst.msk [vmem:[#allocation2 + $0x1f8] sm:$0xff] %vm505_vm0, %v2540_v0 }
  0x9f PF: > { %v2433_v1 = vld [vmem:[%s2743_s7 + $0x38] sm:$0xff]  ;;  %v2432_v3 = vld [vmem:[%s2743_s7 + $0x30] sm:$0xff]  ;;  %v2431_v5 = vld [vmem:[%s2743_s7 + $0x28] sm:$0xff]  ;;  %vm1548_vm1 = vcmask 130048   ;;  %p2356_p11 = scmp.ne.s32.totalorder %s2530_s14, 4 }
  0xa0   : > { %v2441_v2 = vld [vmem:[%s2743_s7 + $0x78] sm:$0xff]  ;;  %1146 = vmatpush.bf16.msra.mxu0 %v2433_v1  ;;  %2442 = vmatpush.bf16.msra.mxu2 %v2433_v1  ;;  %v2440_v4 = vld [vmem:[%s2743_s7 + $0x70] sm:$0xff]  ;;  %v2439_v6 = vld [vmem:[%s2743_s7 + $0x68] sm:$0xff] }
  0xa1   : > { %1315 = vmatpush.bf16.msra.mxu1 %v2441_v2  ;;  %2450 = vmatpush.bf16.msra.mxu3 %v2441_v2  ;;  %v2430_v7 = vld [vmem:[%s2743_s7 + $0x20] sm:$0xff]  ;;  %v2429_v9 = vld [vmem:[%s2743_s7 + $0x18] sm:$0xff]  ;;  %v2428_v11 = vld [vmem:[%s2743_s7 + $0x10] sm:$0xff] }
  0xa2   : > { %v2438_v8 = vld [vmem:[%s2743_s7 + $0x60] sm:$0xff]  ;;  %v2437_v10 = vld [vmem:[%s2743_s7 + $0x58] sm:$0xff]  ;;  %v2436_v12 = vld [vmem:[%s2743_s7 + $0x50] sm:$0xff] }
  0xa3   : > { %v2427_v13 = vld [vmem:[%s2743_s7 + $0x8] sm:$0xff]  ;;  %v2426_v15 = vld [vmem:[%s2743_s7] sm:$0xff]  ;;  %v2046_v29 = vld [vmem:[%s2745_s8 + $0x10] sm:$0xf] }
  0xa4   : > { %1147 = vmatpush.bf16.msra.mxu0 %v2432_v3  ;;  %2443 = vmatpush.bf16.msra.mxu2 %v2432_v3  ;;  %v2435_v14 = vld [vmem:[%s2743_s7 + $0x48] sm:$0xff]  ;;  %v2434_v16 = vld [vmem:[%s2743_s7 + $0x40] sm:$0xff]  ;;  %v2365_v30 = vld [vmem:[%s2745_s8 + $0x14] sm:$0xf0] }
  0xa5   : > { %1316 = vmatpush.bf16.msra.mxu1 %v2440_v4  ;;  %2451 = vmatpush.bf16.msra.mxu3 %v2440_v4  ;;  %v2038_v17 = vld [vmem:[%s2745_s8] sm:$0xf]  ;;  %v2363_v18 = vld [vmem:[%s2745_s8 + $0x4] sm:$0xf0]  ;;  %v2362_v21 = vld [vmem:[%s2745_s8 + $0x4] sm:$0xf]  ;;  %v2047_v37 = vor.u32 %v2365_v30, %v2046_v29 }
  0xa6   : > { %v2166_v19 = vld [vmem:[%s2745_s8 + $0x100] sm:$0xf]  ;;  %v2395_v20 = vld [vmem:[%s2745_s8 + $0x104] sm:$0xf0]  ;;  %v2040_v22 = vld [vmem:[%s2745_s8 + $0x8] sm:$0xf0]  ;;  %v2039_v25 = vor.u32 %v2363_v18, %v2038_v17 }
  0xa7   : > { %v2394_v23 = vld [vmem:[%s2745_s8 + $0x104] sm:$0xf]  ;;  %v2168_v24 = vld [vmem:[%s2745_s8 + $0x108] sm:$0xf0]  ;;  %v2167_v26 = vor.u32 %v2395_v20, %v2166_v19  ;;  %v2043_v27 = vor.u32 %v2362_v21, %v2040_v22  ;;  %v2174_v31 = vld [vmem:[%s2745_s8 + $0x110] sm:$0xf] }
  0xa8   : > { %1148 = vmatpush.bf16.msra.mxu0 %v2431_v5  ;;  %2444 = vmatpush.bf16.msra.mxu2 %v2431_v5  ;;  %v2171_v28 = vor.u32 %v2394_v23, %v2168_v24  ;;  %v2397_v32 = vld [vmem:[%s2745_s8 + $0x114] sm:$0xf0]  ;;  %v2364_v33 = vld [vmem:[%s2745_s8 + $0x14] sm:$0xf]  ;;  %v2048_v34 = vld [vmem:[%s2745_s8 + $0x18] sm:$0xf0] }
  0xa9   : > { %1317 = vmatpush.bf16.msra.mxu1 %v2439_v6  ;;  %2452 = vmatpush.bf16.msra.mxu3 %v2439_v6  ;;  %v2396_v35 = vld [vmem:[%s2745_s8 + $0x114] sm:$0xf]  ;;  %v2176_v36 = vld [vmem:[%s2745_s8 + $0x118] sm:$0xf0]  ;;  %v2175_v38 = vor.u32 %v2397_v32, %v2174_v31  ;;  %v2051_v39 = vor.u32 %v2364_v33, %v2048_v34  ;;  %v2054_v41 = vld [vmem:[%s2745_s8 + $0x20] sm:$0xf] }
  0xaa   : > { %v2179_v40 = vor.u32 %v2396_v35, %v2176_v36  ;;  %v2367_v42 = vld [vmem:[%s2745_s8 + $0x24] sm:$0xf0]  ;;  %v2182_v43 = vld [vmem:[%s2745_s8 + $0x120] sm:$0xf]  ;;  %v2366_v45 = vld [vmem:[%s2745_s8 + $0x24] sm:$0xf] }
  0xab   : > { %v2399_v44 = vld [vmem:[%s2745_s8 + $0x124] sm:$0xf0]  ;;  %v2056_v46 = vld [vmem:[%s2745_s8 + $0x28] sm:$0xf0]  ;;  %v2398_v47 = vld [vmem:[%s2745_s8 + $0x124] sm:$0xf]  ;;  %v2055_v49 = vor.u32 %v2367_v42, %v2054_v41 }
  0xac   : > { %1149 = vmatpush.bf16.msra.mxu0 %v2430_v7  ;;  %2445 = vmatpush.bf16.msra.mxu2 %v2430_v7  ;;  %v2184_v48 = vld [vmem:[%s2745_s8 + $0x128] sm:$0xf0]  ;;  %v2183_v50 = vor.u32 %v2399_v44, %v2182_v43  ;;  %v2059_v51 = vor.u32 %v2366_v45, %v2056_v46  ;;  %v2062_v53 = vld [vmem:[%s2745_s8 + $0x30] sm:$0xf]  ;;  %v2369_v54 = vld [vmem:[%s2745_s8 + $0x34] sm:$0xf0] }
  0xad   : > { %1318 = vmatpush.bf16.msra.mxu1 %v2438_v8  ;;  %2453 = vmatpush.bf16.msra.mxu3 %v2438_v8  ;;  %v2187_v52 = vor.u32 %v2398_v47, %v2184_v48  ;;  %v2190_v55 = vld [vmem:[%s2745_s8 + $0x130] sm:$0xf]  ;;  %v2401_v56 = vld [vmem:[%s2745_s8 + $0x134] sm:$0xf0]  ;;  %v2368_v57 = vld [vmem:[%s2745_s8 + $0x34] sm:$0xf]  ;;  %v2063_v61 = vor.u32 %v2369_v54, %v2062_v53 }
  0xae   : > { %v2064_v58 = vld [vmem:[%s2745_s8 + $0x38] sm:$0xf0]  ;;  %v2400_v59 = vld [vmem:[%s2745_s8 + $0x134] sm:$0xf]  ;;  %v2191_v62 = vor.u32 %v2401_v56, %v2190_v55  ;;  %v2070_v1 = vld [vmem:[%s2745_s8 + $0x40] sm:$0xf] }
  0xaf   : > { %v2192_v60 = vld [vmem:[%s2745_s8 + $0x138] sm:$0xf0]  ;;  %v2067_v63 = vor.u32 %v2368_v57, %v2064_v58  ;;  %v2371_v2 = vld [vmem:[%s2745_s8 + $0x44] sm:$0xf0]  ;;  %v2198_v3 = vld [vmem:[%s2745_s8 + $0x140] sm:$0xf] }
  0xb0   : > { %1150 = vmatpush.bf16.msra.mxu0 %v2429_v9  ;;  %2446 = vmatpush.bf16.msra.mxu2 %v2429_v9  ;;  %v2195_v0 = vor.u32 %v2400_v59, %v2192_v60  ;;  %v2403_v4 = vld [vmem:[%s2745_s8 + $0x144] sm:$0xf0]  ;;  %v2370_v5 = vld [vmem:[%s2745_s8 + $0x44] sm:$0xf]  ;;  %v2072_v6 = vld [vmem:[%s2745_s8 + $0x48] sm:$0xf0]  ;;  %v2071_v9 = vor.u32 %v2371_v2, %v2070_v1 }
  0xb1   : > { %1319 = vmatpush.bf16.msra.mxu1 %v2437_v10  ;;  %2454 = vmatpush.bf16.msra.mxu3 %v2437_v10  ;;  %v2402_v7 = vld [vmem:[%s2745_s8 + $0x144] sm:$0xf]  ;;  %v2200_v8 = vld [vmem:[%s2745_s8 + $0x148] sm:$0xf0]  ;;  %v2199_v10 = vor.u32 %v2403_v4, %v2198_v3  ;;  %v2372_v17 = vld [vmem:[%s2745_s8 + $0x54] sm:$0xf] }
  0xb2   : > { %v2080_v18 = vld [vmem:[%s2745_s8 + $0x58] sm:$0xf0]  ;;  %v2404_v19 = vld [vmem:[%s2745_s8 + $0x154] sm:$0xf]  ;;  %v2374_v29 = vld [vmem:[%s2745_s8 + $0x64] sm:$0xf] }
  0xb3   : > { %v2208_v20 = vld [vmem:[%s2745_s8 + $0x158] sm:$0xf0]  ;;  %v2083_v23 = vor.u32 %v2372_v17, %v2080_v18  ;;  %v2088_v30 = vld [vmem:[%s2745_s8 + $0x68] sm:$0xf0]  ;;  %v2406_v31 = vld [vmem:[%s2745_s8 + $0x164] sm:$0xf] }
  0xb4   : > { %1151 = vmatpush.bf16.msra.mxu0 %v2428_v11  ;;  %2447 = vmatpush.bf16.msra.mxu2 %v2428_v11  ;;  %v2075_v11 = vor.u32 %v2370_v5, %v2072_v6  ;;  %v2211_v24 = vor.u32 %v2404_v19, %v2208_v20  ;;  %v2216_v32 = vld [vmem:[%s2745_s8 + $0x168] sm:$0xf0]  ;;  %v2091_v35 = vor.u32 %v2374_v29, %v2088_v30  ;;  %v2376_v41 = vld [vmem:[%s2745_s8 + $0x74] sm:$0xf]  ;;  %v2096_v42 = vld [vmem:[%s2745_s8 + $0x78] sm:$0xf0] }
  0xb5   : > { %1320 = vmatpush.bf16.msra.mxu1 %v2436_v12  ;;  %2455 = vmatpush.bf16.msra.mxu3 %v2436_v12  ;;  %v2203_v12 = vor.u32 %v2402_v7, %v2200_v8  ;;  %v2219_v36 = vor.u32 %v2406_v31, %v2216_v32  ;;  %v2408_v43 = vld [vmem:[%s2745_s8 + $0x174] sm:$0xf]  ;;  %v2224_v44 = vld [vmem:[%s2745_s8 + $0x178] sm:$0xf0]  ;;  %v2099_v47 = vor.u32 %v2376_v41, %v2096_v42  ;;  %v2378_v53 = vld [vmem:[%s2745_s8 + $0x84] sm:$0xf] }
  0xb6   : > { %v2227_v48 = vor.u32 %v2408_v43, %v2224_v44  ;;  %v2104_v54 = vld [vmem:[%s2745_s8 + $0x88] sm:$0xf0]  ;;  %v2410_v55 = vld [vmem:[%s2745_s8 + $0x184] sm:$0xf]  ;;  %v2112_v17 = vld [vmem:[%s2745_s8 + $0x98] sm:$0xf0] }
  0xb7   : > { %v2232_v56 = vld [vmem:[%s2745_s8 + $0x188] sm:$0xf0]  ;;  %v2107_v60 = vor.u32 %v2378_v53, %v2104_v54  ;;  %v666_v3 = vld [vmem:[#allocation2 + $0x100] sm:$0xff]  ;;  %v2412_v18 = vld [vmem:[%s2745_s8 + $0x194] sm:$0xf] }
  0xb8   : > { %1152 = vmatpush.bf16.msra.mxu0 %v2427_v13  ;;  %2448 = vmatpush.bf16.msra.mxu2 %v2427_v13  ;;  %v2078_v13 = vld [vmem:[%s2745_s8 + $0x50] sm:$0xf]  ;;  %v635_v7 = vld [vmem:[#allocation2 + $0x8] sm:$0xff]  ;;  %v2240_v19 = vld [vmem:[%s2745_s8 + $0x198] sm:$0xf0] }
  0xb9   : > { %1321 = vmatpush.bf16.msra.mxu1 %v2435_v14  ;;  %2456 = vmatpush.bf16.msra.mxu3 %v2435_v14  ;;  %v2373_v14 = vld [vmem:[%s2745_s8 + $0x54] sm:$0xf0]  ;;  %v636_v29 = vld [vmem:[#allocation2 + $0x10] sm:$0xff]  ;;  %v2118_v43 = vld [vmem:[%s2745_s8 + $0xa0] sm:$0xf] }
  0xba   : > { %v2079_v21 = vor.u32 %v2373_v14, %v2078_v13  ;;  %v2238_v13 = vld [vmem:[%s2745_s8 + $0x190] sm:$0xf]  ;;  %v2383_v44 = vld [vmem:[%s2745_s8 + $0xa4] sm:$0xf0]  ;;  %v669_v53 = vld [vmem:[#allocation2 + $0x118] sm:$0xff] }
  0xbc   : > { %1153 = vmatpush.bf16.msra.mxu0 %v2426_v15  ;;  %2449 = vmatpush.bf16.msra.mxu2 %v2426_v15  ;;  %v2206_v15 = vld [vmem:[%s2745_s8 + $0x150] sm:$0xf] }
  0xbd   : > { %1322 = vmatpush.bf16.msra.mxu1 %v2434_v16  ;;  %2457 = vmatpush.bf16.msra.mxu3 %v2434_v16  ;;  %v2405_v16 = vld [vmem:[%s2745_s8 + $0x154] sm:$0xf0] }
  0xbe   : > { %v2207_v22 = vor.u32 %v2405_v16, %v2206_v15  ;;  %v2413_v15 = vld [vmem:[%s2745_s8 + $0x194] sm:$0xf0]  ;;  %v2380_v16 = vld [vmem:[%s2745_s8 + $0x94] sm:$0xf] }
  0xbf   : > { %1154 = vmatmul.bf16.vlgmr.msra.gmra.mxu0 %v2039_v25  ;;  %1234 = vmatmul.bf16.vlgmr.msra.gmra.mxu2 %v2167_v26  ;;  %v2086_v25 = vld [vmem:[%s2745_s8 + $0x60] sm:$0xf]  ;;  %v2375_v26 = vld [vmem:[%s2745_s8 + $0x64] sm:$0xf0] }
  0xc0   : > { %1323 = vmatmul.bf16.vlgmr.msra.gmra.mxu1 %v2043_v27  ;;  %1403 = vmatmul.bf16.vlgmr.msra.gmra.mxu3 %v2171_v28  ;;  %v2214_v27 = vld [vmem:[%s2745_s8 + $0x160] sm:$0xf]  ;;  %v2407_v28 = vld [vmem:[%s2745_s8 + $0x164] sm:$0xf0]  ;;  %v2087_v33 = vor.u32 %v2375_v26, %v2086_v25 }
  0xc1   : > { %v2215_v34 = vor.u32 %v2407_v28, %v2214_v27  ;;  %v2115_v27 = vor.u32 %v2380_v16, %v2112_v17  ;;  %v2243_v28 = vor.u32 %v2412_v18, %v2240_v19  ;;  %v2384_v16 = vld [vmem:[%s2745_s8 + $0xb4] sm:$0xf]  ;;  %v2128_v17 = vld [vmem:[%s2745_s8 + $0xb8] sm:$0xf0] }
  0xc2   : > { %v2416_v18 = vld [vmem:[%s2745_s8 + $0x1b4] sm:$0xf]  ;;  %v2256_v19 = vld [vmem:[%s2745_s8 + $0x1b8] sm:$0xf0] }
  0xcf   : > { %1159 = vmatmul.bf16.gmra.mxu0 %v2047_v37  ;;  %1239 = vmatmul.bf16.gmra.mxu2 %v2175_v38  ;;  %v2094_v37 = vld [vmem:[%s2745_s8 + $0x70] sm:$0xf]  ;;  %v2377_v38 = vld [vmem:[%s2745_s8 + $0x74] sm:$0xf0] }
  0xd0   : > { %1328 = vmatmul.bf16.gmra.mxu1 %v2051_v39  ;;  %1408 = vmatmul.bf16.gmra.mxu3 %v2179_v40  ;;  %v2222_v39 = vld [vmem:[%s2745_s8 + $0x170] sm:$0xf]  ;;  %v2409_v40 = vld [vmem:[%s2745_s8 + $0x174] sm:$0xf0]  ;;  %v2095_v45 = vor.u32 %v2377_v38, %v2094_v37 }
  0xd1   : > { %v2223_v46 = vor.u32 %v2409_v40, %v2222_v39  ;;  %v637_v39 = vld [vmem:[#allocation2 + $0x18] sm:$0xff] }
  0xdf   : > { %1164 = vmatmul.bf16.gmra.mxu0 %v2055_v49  ;;  %1244 = vmatmul.bf16.gmra.mxu2 %v2183_v50  ;;  %v2102_v49 = vld [vmem:[%s2745_s8 + $0x80] sm:$0xf]  ;;  %v2379_v50 = vld [vmem:[%s2745_s8 + $0x84] sm:$0xf0] }
  0xe0   : > { %1333 = vmatmul.bf16.gmra.mxu1 %v2059_v51  ;;  %1413 = vmatmul.bf16.gmra.mxu3 %v2187_v52  ;;  %v2230_v51 = vld [vmem:[%s2745_s8 + $0x180] sm:$0xf]  ;;  %v2411_v52 = vld [vmem:[%s2745_s8 + $0x184] sm:$0xf0]  ;;  %v2103_v57 = vor.u32 %v2379_v50, %v2102_v49  ;;  %v2120_v49 = vld [vmem:[%s2745_s8 + $0xa8] sm:$0xf0] }
  0xe1   : > { %v2231_v58 = vor.u32 %v2411_v52, %v2230_v51  ;;  %v2414_v50 = vld [vmem:[%s2745_s8 + $0x1a4] sm:$0xf]  ;;  %v2248_v51 = vld [vmem:[%s2745_s8 + $0x1a8] sm:$0xf0] }
  0xef   : > { %1169 = vmatmul.bf16.gmra.mxu0 %v2063_v61  ;;  %1249 = vmatmul.bf16.gmra.mxu2 %v2191_v62  ;;  %v2235_v61 = vor.u32 %v2410_v55, %v2232_v56  ;;  %v634_v62 = vld [vmem:[#allocation2] sm:$0xff]  ;;  %v2119_v55 = vor.u32 %v2383_v44, %v2118_v43  ;;  %v2387_v44 = vld [vmem:[%s2745_s8 + $0xc4] sm:$0xf0] }
  0xf0   : > { %1338 = vmatmul.bf16.gmra.mxu1 %v2067_v63  ;;  %1418 = vmatmul.bf16.gmra.mxu3 %v2195_v0  ;;  %v2134_v43 = vld [vmem:[%s2745_s8 + $0xc0] sm:$0xf] }
  0xff   : > { %1174 = vmatmul.bf16.gmra.mxu0 %v2071_v9  ;;  %1254 = vmatmul.bf16.gmra.mxu2 %v2199_v10 }
 0x100   : > { %1343 = vmatmul.bf16.gmra.mxu1 %v2075_v11  ;;  %1423 = vmatmul.bf16.gmra.mxu3 %v2203_v12  ;;  %v2110_v11 = vld [vmem:[%s2745_s8 + $0x90] sm:$0xf]  ;;  %v2381_v12 = vld [vmem:[%s2745_s8 + $0x94] sm:$0xf0] }
 0x10f   : > { %1179 = vmatmul.bf16.gmra.mxu0 %v2079_v21  ;;  %1259 = vmatmul.bf16.gmra.mxu2 %v2207_v22  ;;  %v667_v21 = vld [vmem:[#allocation2 + $0x108] sm:$0xff] }
 0x110   : > { %1348 = vmatmul.bf16.gmra.mxu1 %v2083_v23  ;;  %1428 = vmatmul.bf16.gmra.mxu3 %v2211_v24  ;;  %v2111_v23 = vor.u32 %v2381_v12, %v2110_v11  ;;  %v2239_v24 = vor.u32 %v2413_v15, %v2238_v13  ;;  %v2126_v11 = vld [vmem:[%s2745_s8 + $0xb0] sm:$0xf]  ;;  %v2385_v12 = vld [vmem:[%s2745_s8 + $0xb4] sm:$0xf0] }
 0x111   : > { %v2254_v13 = vld [vmem:[%s2745_s8 + $0x1b0] sm:$0xf]  ;;  %v2417_v15 = vld [vmem:[%s2745_s8 + $0x1b4] sm:$0xf0] }
 0x11f   : > { %1184 = vmatmul.bf16.gmra.mxu0 %v2087_v33  ;;  %1264 = vmatmul.bf16.gmra.mxu2 %v2215_v34 }
 0x120   : > { %1353 = vmatmul.bf16.gmra.mxu1 %v2091_v35  ;;  %1433 = vmatmul.bf16.gmra.mxu3 %v2219_v36  ;;  %v668_v35 = vld [vmem:[#allocation2 + $0x110] sm:$0xff] }
 0x12f   : > { %1189 = vmatmul.bf16.gmra.mxu0 %v2095_v45  ;;  %1269 = vmatmul.bf16.gmra.mxu2 %v2223_v46  ;;  %v2246_v45 = vld [vmem:[%s2745_s8 + $0x1a0] sm:$0xf] }
 0x130   : > { %1358 = vmatmul.bf16.gmra.mxu1 %v2099_v47  ;;  %1438 = vmatmul.bf16.gmra.mxu3 %v2227_v48  ;;  %v2415_v47 = vld [vmem:[%s2745_s8 + $0x1a4] sm:$0xf0]  ;;  %v2382_v48 = vld [vmem:[%s2745_s8 + $0xa4] sm:$0xf] }
 0x131   : > { %v2247_v56 = vor.u32 %v2415_v47, %v2246_v45  ;;  %v2262_v45 = vld [vmem:[%s2745_s8 + $0x1c0] sm:$0xf]  ;;  %v2419_v47 = vld [vmem:[%s2745_s8 + $0x1c4] sm:$0xf0] }
 0x13c   : > { %v1155_v59 = vpop.f32.mrf.mxu0 }
 0x13d   : > { %v1324_v63 = vpop.f32.mrf.mxu1 }
 0x13e   : > { %v1325_v0 = vadd.f32 %v1324_v63, %v1155_v59  ;;  %v2123_v59 = vor.u32 %v2382_v48, %v2120_v49  ;;  %v2386_v48 = vld [vmem:[%s2745_s8 + $0xc4] sm:$0xf]  ;;  %v2136_v49 = vld [vmem:[%s2745_s8 + $0xc8] sm:$0xf0] }
 0x13f   : > { %1194 = vmatmul.bf16.gmra.mxu0 %v2103_v57  ;;  %1274 = vmatmul.bf16.gmra.mxu2 %v2231_v58 }
 0x140   : > { %v1484_v1 = vadd.f32 %v1325_v0, %v634_v62  ;;  %1363 = vmatmul.bf16.gmra.mxu1 %v2107_v60  ;;  %1443 = vmatmul.bf16.gmra.mxu3 %v2235_v61  ;;  %v2251_v60 = vor.u32 %v2414_v50, %v2248_v51  ;;  %v638_v61 = vld [vmem:[#allocation2 + $0x20] sm:$0xff]  ;;  %v2264_v51 = vld [vmem:[%s2745_s8 + $0x1c8] sm:$0xf0] }
 0x141   : > { %v2418_v50 = vld [vmem:[%s2745_s8 + $0x1c4] sm:$0xf] }
 0x142   : > { %1549 = vst.msk [vmem:[#allocation2] sm:$0xff] %vm1548_vm1, %v1484_v1  ;;  %v1235_v2 = vpop.f32.mrf.mxu2 }
 0x143   : > { %v1404_v4 = vpop.f32.mrf.mxu3 }
 0x144   : > { %v1405_v5 = vadd.f32 %v1404_v4, %v1235_v2  ;;  %v1157_v6 = vpop.f32.mrf.mxu0 }
 0x145   : > { %v1326_v8 = vpop.f32.mrf.mxu1 }
 0x146   : > { %v1516_v9 = vadd.f32 %v1405_v5, %v666_v3  ;;  %v1327_v10 = vadd.f32 %v1326_v8, %v1157_v6  ;;  %v670_v3 = vld [vmem:[#allocation2 + $0x120] sm:$0xff] }
 0x148   : > { %1581 = vst.msk [vmem:[#allocation2 + $0x100] sm:$0xff] %vm1548_vm1, %v1516_v9  ;;  %v1485_v14 = vadd.f32 %v1327_v10, %v635_v7  ;;  %v639_v7 = vld [vmem:[#allocation2 + $0x28] sm:$0xff] }
 0x14a   : > { %1550 = vst.msk [vmem:[#allocation2 + $0x8] sm:$0xff] %vm1548_vm1, %v1485_v14  ;;  %v1237_v20 = vpop.f32.mrf.mxu2 }
 0x14b   : > { %v1406_v22 = vpop.f32.mrf.mxu3 }
 0x14c   : > { %v1407_v25 = vadd.f32 %v1406_v22, %v1237_v20  ;;  %v1160_v26 = vpop.f32.mrf.mxu0 }
 0x14d   : > { %v1329_v30 = vpop.f32.mrf.mxu1 }
 0x14e   : > { %v1517_v31 = vadd.f32 %v1407_v25, %v667_v21  ;;  %v1330_v32 = vadd.f32 %v1329_v30, %v1160_v26  ;;  %v671_v21 = vld [vmem:[#allocation2 + $0x128] sm:$0xff] }
 0x14f   : > { %1199 = vmatmul.bf16.gmra.mxu0 %v2111_v23  ;;  %1279 = vmatmul.bf16.gmra.mxu2 %v2239_v24  ;;  %v2127_v23 = vor.u32 %v2385_v12, %v2126_v11  ;;  %v2255_v24 = vor.u32 %v2417_v15, %v2254_v13  ;;  %v2142_v11 = vld [vmem:[%s2745_s8 + $0xd0] sm:$0xf]  ;;  %v2389_v12 = vld [vmem:[%s2745_s8 + $0xd4] sm:$0xf0] }
 0x150   : > { %1582 = vst.msk [vmem:[#allocation2 + $0x108] sm:$0xff] %vm1548_vm1, %v1517_v31  ;;  %v1486_v33 = vadd.f32 %v1330_v32, %v636_v29  ;;  %1368 = vmatmul.bf16.gmra.mxu1 %v2115_v27  ;;  %1448 = vmatmul.bf16.gmra.mxu3 %v2243_v28  ;;  %v2131_v27 = vor.u32 %v2384_v16, %v2128_v17  ;;  %v640_v29 = vld [vmem:[#allocation2 + $0x30] sm:$0xff]  ;;  %v2421_v15 = vld [vmem:[%s2745_s8 + $0x1d4] sm:$0xf0]  ;;  %v2144_v17 = vld [vmem:[%s2745_s8 + $0xd8] sm:$0xf0] }
 0x151   : > { %v2259_v28 = vor.u32 %v2416_v18, %v2256_v19  ;;  %v2270_v13 = vld [vmem:[%s2745_s8 + $0x1d0] sm:$0xf]  ;;  %v2388_v16 = vld [vmem:[%s2745_s8 + $0xd4] sm:$0xf]  ;;  %v2272_v19 = vld [vmem:[%s2745_s8 + $0x1d8] sm:$0xf0] }
 0x152   : > { %1551 = vst.msk [vmem:[#allocation2 + $0x10] sm:$0xff] %vm1548_vm1, %v1486_v33  ;;  %v1240_v34 = vpop.f32.mrf.mxu2  ;;  %v2420_v18 = vld [vmem:[%s2745_s8 + $0x1d4] sm:$0xf] }
 0x153   : > { %v1409_v36 = vpop.f32.mrf.mxu3 }
 0x154   : > { %v1410_v37 = vadd.f32 %v1409_v36, %v1240_v34  ;;  %v1162_v38 = vpop.f32.mrf.mxu0 }
 0x155   : > { %v1331_v40 = vpop.f32.mrf.mxu1 }
 0x156   : > { %v1518_v41 = vadd.f32 %v1410_v37, %v668_v35  ;;  %v1332_v42 = vadd.f32 %v1331_v40, %v1162_v38  ;;  %v672_v35 = vld [vmem:[#allocation2 + $0x130] sm:$0xff] }
 0x158   : > { %1583 = vst.msk [vmem:[#allocation2 + $0x110] sm:$0xff] %vm1548_vm1, %v1518_v41  ;;  %v1487_v46 = vadd.f32 %v1332_v42, %v637_v39  ;;  %v641_v39 = vld [vmem:[#allocation2 + $0x38] sm:$0xff] }
 0x15a   : > { %1552 = vst.msk [vmem:[#allocation2 + $0x18] sm:$0xff] %vm1548_vm1, %v1487_v46  ;;  %v1242_v52 = vpop.f32.mrf.mxu2 }
 0x15b   : > { %v1411_v54 = vpop.f32.mrf.mxu3 }
 0x15c   : > { %v1412_v57 = vadd.f32 %v1411_v54, %v1242_v52  ;;  %v1165_v58 = vpop.f32.mrf.mxu0 }
 0x15d   : > { %v1334_v62 = vpop.f32.mrf.mxu1 }
 0x15e   : > { %v1519_v63 = vadd.f32 %v1412_v57, %v669_v53  ;;  %v1335_v0 = vadd.f32 %v1334_v62, %v1165_v58  ;;  %v673_v53 = vld [vmem:[#allocation2 + $0x138] sm:$0xff] }
 0x15f   : > { %1204 = vmatmul.bf16.gmra.mxu0 %v2119_v55  ;;  %1284 = vmatmul.bf16.gmra.mxu2 %v2247_v56  ;;  %v2135_v55 = vor.u32 %v2387_v44, %v2134_v43  ;;  %v2263_v56 = vor.u32 %v2419_v47, %v2262_v45  ;;  %v2150_v43 = vld [vmem:[%s2745_s8 + $0xe0] sm:$0xf]  ;;  %v2391_v44 = vld [vmem:[%s2745_s8 + $0xe4] sm:$0xf0] }
 0x160   : > { %1584 = vst.msk [vmem:[#allocation2 + $0x118] sm:$0xff] %vm1548_vm1, %v1519_v63  ;;  %v1488_v1 = vadd.f32 %v1335_v0, %v638_v61  ;;  %1373 = vmatmul.bf16.gmra.mxu1 %v2123_v59  ;;  %1453 = vmatmul.bf16.gmra.mxu3 %v2251_v60  ;;  %v2139_v59 = vor.u32 %v2386_v48, %v2136_v49  ;;  %v642_v61 = vld [vmem:[#allocation2 + $0x40] sm:$0xff]  ;;  %v2423_v47 = vld [vmem:[%s2745_s8 + $0x1e4] sm:$0xf0]  ;;  %v2152_v49 = vld [vmem:[%s2745_s8 + $0xe8] sm:$0xf0] }
 0x161   : > { %v2267_v60 = vor.u32 %v2418_v50, %v2264_v51  ;;  %v2278_v45 = vld [vmem:[%s2745_s8 + $0x1e0] sm:$0xf]  ;;  %v2390_v48 = vld [vmem:[%s2745_s8 + $0xe4] sm:$0xf]  ;;  %v2280_v51 = vld [vmem:[%s2745_s8 + $0x1e8] sm:$0xf0] }
 0x162   : > { %1553 = vst.msk [vmem:[#allocation2 + $0x20] sm:$0xff] %vm1548_vm1, %v1488_v1  ;;  %v1245_v2 = vpop.f32.mrf.mxu2  ;;  %v2422_v50 = vld [vmem:[%s2745_s8 + $0x1e4] sm:$0xf] }
 0x163   : > { %v1414_v4 = vpop.f32.mrf.mxu3 }
 0x164   : > { %v1415_v5 = vadd.f32 %v1414_v4, %v1245_v2  ;;  %v1167_v6 = vpop.f32.mrf.mxu0 }
 0x165   : > { %v1336_v8 = vpop.f32.mrf.mxu1 }
 0x166   : > { %v1520_v9 = vadd.f32 %v1415_v5, %v670_v3  ;;  %v1337_v10 = vadd.f32 %v1336_v8, %v1167_v6  ;;  %v674_v3 = vld [vmem:[#allocation2 + $0x140] sm:$0xff] }
 0x168   : > { %1585 = vst.msk [vmem:[#allocation2 + $0x120] sm:$0xff] %vm1548_vm1, %v1520_v9  ;;  %v1489_v14 = vadd.f32 %v1337_v10, %v639_v7  ;;  %v643_v7 = vld [vmem:[#allocation2 + $0x48] sm:$0xff] }
 0x16a   : > { %1554 = vst.msk [vmem:[#allocation2 + $0x28] sm:$0xff] %vm1548_vm1, %v1489_v14  ;;  %v1247_v20 = vpop.f32.mrf.mxu2 }
 0x16b   : > { %v1416_v22 = vpop.f32.mrf.mxu3 }
 0x16c   : > { %v1417_v25 = vadd.f32 %v1416_v22, %v1247_v20  ;;  %v1170_v26 = vpop.f32.mrf.mxu0 }
 0x16d   : > { %v1339_v30 = vpop.f32.mrf.mxu1 }
 0x16e   : > { %v1521_v31 = vadd.f32 %v1417_v25, %v671_v21  ;;  %v1340_v32 = vadd.f32 %v1339_v30, %v1170_v26  ;;  %v675_v21 = vld [vmem:[#allocation2 + $0x148] sm:$0xff] }
 0x16f   : > { %1209 = vmatmul.bf16.gmra.mxu0 %v2127_v23  ;;  %1289 = vmatmul.bf16.gmra.mxu2 %v2255_v24  ;;  %v2143_v23 = vor.u32 %v2389_v12, %v2142_v11  ;;  %v2271_v24 = vor.u32 %v2421_v15, %v2270_v13  ;;  %v2158_v11 = vld [vmem:[%s2745_s8 + $0xf0] sm:$0xf]  ;;  %v2393_v12 = vld [vmem:[%s2745_s8 + $0xf4] sm:$0xf0] }
 0x170   : > { %1586 = vst.msk [vmem:[#allocation2 + $0x128] sm:$0xff] %vm1548_vm1, %v1521_v31  ;;  %v1490_v33 = vadd.f32 %v1340_v32, %v640_v29  ;;  %1378 = vmatmul.bf16.gmra.mxu1 %v2131_v27  ;;  %1458 = vmatmul.bf16.gmra.mxu3 %v2259_v28  ;;  %v2147_v27 = vor.u32 %v2388_v16, %v2144_v17  ;;  %v644_v29 = vld [vmem:[#allocation2 + $0x50] sm:$0xff]  ;;  %v2425_v15 = vld [vmem:[%s2745_s8 + $0x1f4] sm:$0xf0]  ;;  %v2160_v17 = vld [vmem:[%s2745_s8 + $0xf8] sm:$0xf0] }
 0x171   : > { %v2275_v28 = vor.u32 %v2420_v18, %v2272_v19  ;;  %v2286_v13 = vld [vmem:[%s2745_s8 + $0x1f0] sm:$0xf]  ;;  %v2392_v16 = vld [vmem:[%s2745_s8 + $0xf4] sm:$0xf]  ;;  %v2288_v19 = vld [vmem:[%s2745_s8 + $0x1f8] sm:$0xf0] }
 0x172   : > { %1555 = vst.msk [vmem:[#allocation2 + $0x30] sm:$0xff] %vm1548_vm1, %v1490_v33  ;;  %v1250_v34 = vpop.f32.mrf.mxu2  ;;  %v2424_v18 = vld [vmem:[%s2745_s8 + $0x1f4] sm:$0xf] }
 0x173   : > { %v1419_v36 = vpop.f32.mrf.mxu3 }
 0x174   : > { %v1420_v37 = vadd.f32 %v1419_v36, %v1250_v34  ;;  %v1172_v38 = vpop.f32.mrf.mxu0 }
 0x175   : > { %v1341_v40 = vpop.f32.mrf.mxu1 }
 0x176   : > { %v1522_v41 = vadd.f32 %v1420_v37, %v672_v35  ;;  %v1342_v42 = vadd.f32 %v1341_v40, %v1172_v38  ;;  %v676_v35 = vld [vmem:[#allocation2 + $0x150] sm:$0xff] }
 0x178   : > { %1587 = vst.msk [vmem:[#allocation2 + $0x130] sm:$0xff] %vm1548_vm1, %v1522_v41  ;;  %v1491_v46 = vadd.f32 %v1342_v42, %v641_v39  ;;  %v645_v39 = vld [vmem:[#allocation2 + $0x58] sm:$0xff] }
 0x17a   : > { %1556 = vst.msk [vmem:[#allocation2 + $0x38] sm:$0xff] %vm1548_vm1, %v1491_v46  ;;  %v1252_v52 = vpop.f32.mrf.mxu2 }
 0x17b   : > { %v1421_v54 = vpop.f32.mrf.mxu3 }
 0x17c   : > { %v1422_v57 = vadd.f32 %v1421_v54, %v1252_v52  ;;  %v1175_v58 = vpop.f32.mrf.mxu0 }
 0x17d   : > { %v1344_v62 = vpop.f32.mrf.mxu1 }
 0x17e   : > { %v1523_v63 = vadd.f32 %v1422_v57, %v673_v53  ;;  %v1345_v0 = vadd.f32 %v1344_v62, %v1175_v58  ;;  %v677_v53 = vld [vmem:[#allocation2 + $0x158] sm:$0xff] }
 0x17f   : > { %1214 = vmatmul.bf16.gmra.mxu0 %v2135_v55  ;;  %1294 = vmatmul.bf16.gmra.mxu2 %v2263_v56  ;;  %v2151_v55 = vor.u32 %v2391_v44, %v2150_v43  ;;  %v2279_v56 = vor.u32 %v2423_v47, %v2278_v45  ;;  %v681_v45 = vld [vmem:[#allocation2 + $0x178] sm:$0xff] }
 0x180   : > { %1588 = vst.msk [vmem:[#allocation2 + $0x138] sm:$0xff] %vm1548_vm1, %v1523_v63  ;;  %v1492_v1 = vadd.f32 %v1345_v0, %v642_v61  ;;  %1383 = vmatmul.bf16.gmra.mxu1 %v2139_v59  ;;  %1463 = vmatmul.bf16.gmra.mxu3 %v2267_v60  ;;  %v2155_v59 = vor.u32 %v2390_v48, %v2152_v49  ;;  %v646_v61 = vld [vmem:[#allocation2 + $0x60] sm:$0xff] }
 0x181   : > { %v2283_v60 = vor.u32 %v2422_v50, %v2280_v51  ;;  %v650_v49 = vld [vmem:[#allocation2 + $0x80] sm:$0xff] }
 0x182   : > { %1557 = vst.msk [vmem:[#allocation2 + $0x40] sm:$0xff] %vm1548_vm1, %v1492_v1  ;;  %v1255_v2 = vpop.f32.mrf.mxu2 }
 0x183   : > { %v1424_v4 = vpop.f32.mrf.mxu3 }
 0x184   : > { %v1425_v5 = vadd.f32 %v1424_v4, %v1255_v2  ;;  %v1177_v6 = vpop.f32.mrf.mxu0 }
 0x185   : > { %v1346_v8 = vpop.f32.mrf.mxu1 }
 0x186   : > { %v1524_v9 = vadd.f32 %v1425_v5, %v674_v3  ;;  %v1347_v10 = vadd.f32 %v1346_v8, %v1177_v6  ;;  %v678_v3 = vld [vmem:[#allocation2 + $0x160] sm:$0xff] }
 0x188   : > { %1589 = vst.msk [vmem:[#allocation2 + $0x140] sm:$0xff] %vm1548_vm1, %v1524_v9  ;;  %v1493_v14 = vadd.f32 %v1347_v10, %v643_v7  ;;  %v647_v7 = vld [vmem:[#allocation2 + $0x68] sm:$0xff] }
 0x18a   : > { %1558 = vst.msk [vmem:[#allocation2 + $0x48] sm:$0xff] %vm1548_vm1, %v1493_v14  ;;  %v1257_v20 = vpop.f32.mrf.mxu2 }
 0x18b   : > { %v1426_v22 = vpop.f32.mrf.mxu3 }
 0x18c   : > { %v1427_v25 = vadd.f32 %v1426_v22, %v1257_v20  ;;  %v1180_v26 = vpop.f32.mrf.mxu0 }
 0x18d   : > { %v1349_v30 = vpop.f32.mrf.mxu1 }
 0x18e   : > { %v1525_v31 = vadd.f32 %v1427_v25, %v675_v21  ;;  %v1350_v32 = vadd.f32 %v1349_v30, %v1180_v26  ;;  %v679_v21 = vld [vmem:[#allocation2 + $0x168] sm:$0xff] }
 0x18f   : > { %1219 = vmatmul.bf16.gmra.mxu0 %v2143_v23  ;;  %1299 = vmatmul.bf16.gmra.mxu2 %v2271_v24  ;;  %v2159_v23 = vor.u32 %v2393_v12, %v2158_v11  ;;  %v2287_v24 = vor.u32 %v2425_v15, %v2286_v13  ;;  %v684_v11 = vld [vmem:[#allocation2 + $0x190] sm:$0xff]  ;;  %v653_v15 = vld [vmem:[#allocation2 + $0x98] sm:$0xff] }
 0x190   : > { %1590 = vst.msk [vmem:[#allocation2 + $0x148] sm:$0xff] %vm1548_vm1, %v1525_v31  ;;  %v1494_v33 = vadd.f32 %v1350_v32, %v644_v29  ;;  %1388 = vmatmul.bf16.gmra.mxu1 %v2147_v27  ;;  %1468 = vmatmul.bf16.gmra.mxu3 %v2275_v28  ;;  %v2163_v27 = vor.u32 %v2392_v16, %v2160_v17  ;;  %v648_v29 = vld [vmem:[#allocation2 + $0x70] sm:$0xff] }
 0x191   : > { %v2291_v28 = vor.u32 %v2424_v18, %v2288_v19 }
 0x192   : > { %1559 = vst.msk [vmem:[#allocation2 + $0x50] sm:$0xff] %vm1548_vm1, %v1494_v33  ;;  %v1260_v34 = vpop.f32.mrf.mxu2 }
 0x193   : > { %v1429_v36 = vpop.f32.mrf.mxu3 }
 0x194   : > { %v1430_v37 = vadd.f32 %v1429_v36, %v1260_v34  ;;  %v1182_v38 = vpop.f32.mrf.mxu0 }
 0x195   : > { %v1351_v40 = vpop.f32.mrf.mxu1 }
 0x196   : > { %v1526_v41 = vadd.f32 %v1430_v37, %v676_v35  ;;  %v1352_v42 = vadd.f32 %v1351_v40, %v1182_v38  ;;  %v680_v35 = vld [vmem:[#allocation2 + $0x170] sm:$0xff] }
 0x198   : > { %1591 = vst.msk [vmem:[#allocation2 + $0x150] sm:$0xff] %vm1548_vm1, %v1526_v41  ;;  %v1495_v46 = vadd.f32 %v1352_v42, %v645_v39  ;;  %v649_v39 = vld [vmem:[#allocation2 + $0x78] sm:$0xff] }
 0x19a   : > { %1560 = vst.msk [vmem:[#allocation2 + $0x58] sm:$0xff] %vm1548_vm1, %v1495_v46  ;;  %v1262_v52 = vpop.f32.mrf.mxu2 }
 0x19b   : > { %v1431_v54 = vpop.f32.mrf.mxu3 }
 0x19c   : > { %v1432_v57 = vadd.f32 %v1431_v54, %v1262_v52  ;;  %v1185_v58 = vpop.f32.mrf.mxu0 }
 0x19d   : > { %v1354_v62 = vpop.f32.mrf.mxu1 }
 0x19e   : > { %v1527_v63 = vadd.f32 %v1432_v57, %v677_v53  ;;  %v1355_v0 = vadd.f32 %v1354_v62, %v1185_v58 }
 0x19f   : > { %1224 = vmatmul.bf16.gmra.mxu0 %v2151_v55  ;;  %1304 = vmatmul.bf16.gmra.mxu2 %v2279_v56  ;;  %v682_v55 = vld [vmem:[#allocation2 + $0x180] sm:$0xff] }
 0x1a0   : > { %1592 = vst.msk [vmem:[#allocation2 + $0x158] sm:$0xff] %vm1548_vm1, %v1527_v63  ;;  %v1496_v1 = vadd.f32 %v1355_v0, %v646_v61  ;;  %1393 = vmatmul.bf16.gmra.mxu1 %v2155_v59  ;;  %1473 = vmatmul.bf16.gmra.mxu3 %v2283_v60  ;;  %v651_v59 = vld [vmem:[#allocation2 + $0x88] sm:$0xff] }
 0x1a2   : > { %1561 = vst.msk [vmem:[#allocation2 + $0x60] sm:$0xff] %vm1548_vm1, %v1496_v1  ;;  %v1265_v2 = vpop.f32.mrf.mxu2  ;;  %v683_v1 = vld [vmem:[#allocation2 + $0x188] sm:$0xff] }
 0x1a3   : > { %v1434_v4 = vpop.f32.mrf.mxu3 }
 0x1a4   : > { %v1435_v5 = vadd.f32 %v1434_v4, %v1265_v2  ;;  %v1187_v6 = vpop.f32.mrf.mxu0 }
 0x1a5   : > { %v1356_v8 = vpop.f32.mrf.mxu1 }
 0x1a6   : > { %v1528_v9 = vadd.f32 %v1435_v5, %v678_v3  ;;  %v1357_v10 = vadd.f32 %v1356_v8, %v1187_v6  ;;  %v652_v5 = vld [vmem:[#allocation2 + $0x90] sm:$0xff] }
 0x1a8   : > { %1593 = vst.msk [vmem:[#allocation2 + $0x160] sm:$0xff] %vm1548_vm1, %v1528_v9  ;;  %v1497_v14 = vadd.f32 %v1357_v10, %v647_v7 }
 0x1aa   : > { %1562 = vst.msk [vmem:[#allocation2 + $0x68] sm:$0xff] %vm1548_vm1, %v1497_v14  ;;  %v1267_v20 = vpop.f32.mrf.mxu2 }
 0x1ab   : > { %v1436_v22 = vpop.f32.mrf.mxu3 }
 0x1ac   : > { %v1437_v25 = vadd.f32 %v1436_v22, %v1267_v20  ;;  %v1190_v26 = vpop.f32.mrf.mxu0 }
 0x1ad   : > { %v1359_v30 = vpop.f32.mrf.mxu1 }
 0x1ae   : > { %v1529_v31 = vadd.f32 %v1437_v25, %v679_v21  ;;  %v1360_v32 = vadd.f32 %v1359_v30, %v1190_v26  ;;  %v685_v21 = vld [vmem:[#allocation2 + $0x198] sm:$0xff]  ;;  %v654_v25 = vld [vmem:[#allocation2 + $0xa0] sm:$0xff] }
 0x1af   : > { %1229 = vmatmul.bf16.gmra.mxu0 %v2159_v23  ;;  %1309 = vmatmul.bf16.gmra.mxu2 %v2287_v24 }
 0x1b0   : > { %1594 = vst.msk [vmem:[#allocation2 + $0x168] sm:$0xff] %vm1548_vm1, %v1529_v31  ;;  %v1498_v33 = vadd.f32 %v1360_v32, %v648_v29  ;;  %1398 = vmatmul.bf16.gmra.mxu1 %v2163_v27  ;;  %1478 = vmatmul.bf16.gmra.mxu3 %v2291_v28  ;;  %v686_v31 = vld [vmem:[#allocation2 + $0x1a0] sm:$0xff] }
 0x1b2   : > { %1563 = vst.msk [vmem:[#allocation2 + $0x70] sm:$0xff] %vm1548_vm1, %v1498_v33  ;;  %v1270_v34 = vpop.f32.mrf.mxu2 }
 0x1b3   : > { %v1439_v36 = vpop.f32.mrf.mxu3 }
 0x1b4   : > { %v1440_v37 = vadd.f32 %v1439_v36, %v1270_v34  ;;  %v1192_v38 = vpop.f32.mrf.mxu0 }
 0x1b5   : > { %v1361_v40 = vpop.f32.mrf.mxu1 }
 0x1b6   : > { %v1530_v41 = vadd.f32 %v1440_v37, %v680_v35  ;;  %v1362_v42 = vadd.f32 %v1361_v40, %v1192_v38  ;;  %v655_v35 = vld [vmem:[#allocation2 + $0xa8] sm:$0xff] }
 0x1b8   : > { %1595 = vst.msk [vmem:[#allocation2 + $0x170] sm:$0xff] %vm1548_vm1, %v1530_v41  ;;  %v1499_v43 = vadd.f32 %v1362_v42, %v649_v39  ;;  %v687_v41 = vld [vmem:[#allocation2 + $0x1a8] sm:$0xff] }
 0x1ba   : > { %1564 = vst.msk [vmem:[#allocation2 + $0x78] sm:$0xff] %vm1548_vm1, %v1499_v43  ;;  %v1272_v44 = vpop.f32.mrf.mxu2 }
 0x1bb   : > { %v1441_v46 = vpop.f32.mrf.mxu3 }
 0x1bc   : > { %v1442_v47 = vadd.f32 %v1441_v46, %v1272_v44  ;;  %v1195_v48 = vpop.f32.mrf.mxu0 }
 0x1bd   : > { %v1364_v50 = vpop.f32.mrf.mxu1 }
 0x1be   : > { %v1531_v51 = vadd.f32 %v1442_v47, %v681_v45  ;;  %v1365_v52 = vadd.f32 %v1364_v50, %v1195_v48  ;;  %v656_v45 = vld [vmem:[#allocation2 + $0xb0] sm:$0xff] }
 0x1c0   : > { %1596 = vst.msk [vmem:[#allocation2 + $0x178] sm:$0xff] %vm1548_vm1, %v1531_v51  ;;  %v1500_v53 = vadd.f32 %v1365_v52, %v650_v49  ;;  %v688_v51 = vld [vmem:[#allocation2 + $0x1b0] sm:$0xff] }
 0x1c2   : > { %1565 = vst.msk [vmem:[#allocation2 + $0x80] sm:$0xff] %vm1548_vm1, %v1500_v53  ;;  %v1275_v54 = vpop.f32.mrf.mxu2 }
 0x1c3   : > { %v1444_v56 = vpop.f32.mrf.mxu3 }
 0x1c4   : > { %v1445_v57 = vadd.f32 %v1444_v56, %v1275_v54  ;;  %v1197_v58 = vpop.f32.mrf.mxu0 }
 0x1c5   : > { %v1366_v60 = vpop.f32.mrf.mxu1 }
 0x1c6   : > { %v1532_v61 = vadd.f32 %v1445_v57, %v682_v55  ;;  %v1367_v62 = vadd.f32 %v1366_v60, %v1197_v58  ;;  %v657_v55 = vld [vmem:[#allocation2 + $0xb8] sm:$0xff] }
 0x1c8   : > { %1597 = vst.msk [vmem:[#allocation2 + $0x180] sm:$0xff] %vm1548_vm1, %v1532_v61  ;;  %v1501_v63 = vadd.f32 %v1367_v62, %v651_v59  ;;  %v689_v61 = vld [vmem:[#allocation2 + $0x1b8] sm:$0xff] }
 0x1ca   : > { %1566 = vst.msk [vmem:[#allocation2 + $0x88] sm:$0xff] %vm1548_vm1, %v1501_v63  ;;  %v1277_v0 = vpop.f32.mrf.mxu2 }
 0x1cb   : > { %v1446_v2 = vpop.f32.mrf.mxu3 }
 0x1cc   : > { %v1447_v3 = vadd.f32 %v1446_v2, %v1277_v0  ;;  %v1200_v4 = vpop.f32.mrf.mxu0 }
 0x1cd   : > { %v1369_v6 = vpop.f32.mrf.mxu1 }
 0x1ce   : > { %v1533_v7 = vadd.f32 %v1447_v3, %v683_v1  ;;  %v1370_v8 = vadd.f32 %v1369_v6, %v1200_v4  ;;  %v658_v1 = vld [vmem:[#allocation2 + $0xc0] sm:$0xff] }
 0x1d0   : > { %1598 = vst.msk [vmem:[#allocation2 + $0x188] sm:$0xff] %vm1548_vm1, %v1533_v7  ;;  %v1502_v9 = vadd.f32 %v1370_v8, %v652_v5  ;;  %v690_v7 = vld [vmem:[#allocation2 + $0x1c0] sm:$0xff] }
 0x1d2   : > { %1567 = vst.msk [vmem:[#allocation2 + $0x90] sm:$0xff] %vm1548_vm1, %v1502_v9  ;;  %v1280_v10 = vpop.f32.mrf.mxu2 }
 0x1d3   : > { %v1449_v12 = vpop.f32.mrf.mxu3 }
 0x1d4   : > { %v1450_v13 = vadd.f32 %v1449_v12, %v1280_v10  ;;  %v1202_v14 = vpop.f32.mrf.mxu0 }
 0x1d5   : > { %v1371_v16 = vpop.f32.mrf.mxu1 }
 0x1d6   : > { %v1534_v17 = vadd.f32 %v1450_v13, %v684_v11  ;;  %v1372_v18 = vadd.f32 %v1371_v16, %v1202_v14  ;;  %v659_v11 = vld [vmem:[#allocation2 + $0xc8] sm:$0xff] }
 0x1d8   : > { %1599 = vst.msk [vmem:[#allocation2 + $0x190] sm:$0xff] %vm1548_vm1, %v1534_v17  ;;  %v1503_v19 = vadd.f32 %v1372_v18, %v653_v15  ;;  %v691_v17 = vld [vmem:[#allocation2 + $0x1c8] sm:$0xff] }
 0x1da   : > { %1568 = vst.msk [vmem:[#allocation2 + $0x98] sm:$0xff] %vm1548_vm1, %v1503_v19  ;;  %v1282_v20 = vpop.f32.mrf.mxu2 }
 0x1db   : > { %v1451_v22 = vpop.f32.mrf.mxu3 }
 0x1dc   : > { %v1452_v23 = vadd.f32 %v1451_v22, %v1282_v20  ;;  %v1205_v24 = vpop.f32.mrf.mxu0 }
 0x1dd   : > { %v1374_v26 = vpop.f32.mrf.mxu1 }
 0x1de   : > { %v1535_v27 = vadd.f32 %v1452_v23, %v685_v21  ;;  %v1375_v28 = vadd.f32 %v1374_v26, %v1205_v24  ;;  %v660_v21 = vld [vmem:[#allocation2 + $0xd0] sm:$0xff] }
 0x1e0   : > { %1600 = vst.msk [vmem:[#allocation2 + $0x198] sm:$0xff] %vm1548_vm1, %v1535_v27  ;;  %v1504_v29 = vadd.f32 %v1375_v28, %v654_v25  ;;  %v692_v27 = vld [vmem:[#allocation2 + $0x1d0] sm:$0xff] }
 0x1e2   : > { %1569 = vst.msk [vmem:[#allocation2 + $0xa0] sm:$0xff] %vm1548_vm1, %v1504_v29  ;;  %v1285_v30 = vpop.f32.mrf.mxu2 }
 0x1e3   : > { %v1454_v32 = vpop.f32.mrf.mxu3 }
 0x1e4   : > { %v1455_v33 = vadd.f32 %v1454_v32, %v1285_v30  ;;  %v1207_v34 = vpop.f32.mrf.mxu0 }
 0x1e5   : > { %v1376_v36 = vpop.f32.mrf.mxu1 }
 0x1e6   : > { %v1536_v37 = vadd.f32 %v1455_v33, %v686_v31  ;;  %v1377_v38 = vadd.f32 %v1376_v36, %v1207_v34  ;;  %v661_v31 = vld [vmem:[#allocation2 + $0xd8] sm:$0xff] }
 0x1e8   : > { %1601 = vst.msk [vmem:[#allocation2 + $0x1a0] sm:$0xff] %vm1548_vm1, %v1536_v37  ;;  %v1505_v39 = vadd.f32 %v1377_v38, %v655_v35  ;;  %v693_v37 = vld [vmem:[#allocation2 + $0x1d8] sm:$0xff] }
 0x1ea   : > { %1570 = vst.msk [vmem:[#allocation2 + $0xa8] sm:$0xff] %vm1548_vm1, %v1505_v39  ;;  %v1287_v40 = vpop.f32.mrf.mxu2 }
 0x1eb   : > { %v1456_v42 = vpop.f32.mrf.mxu3 }
 0x1ec   : > { %v1457_v43 = vadd.f32 %v1456_v42, %v1287_v40  ;;  %v1210_v44 = vpop.f32.mrf.mxu0 }
 0x1ed   : > { %v1379_v46 = vpop.f32.mrf.mxu1 }
 0x1ee   : > { %v1537_v47 = vadd.f32 %v1457_v43, %v687_v41  ;;  %v1380_v48 = vadd.f32 %v1379_v46, %v1210_v44  ;;  %v662_v41 = vld [vmem:[#allocation2 + $0xe0] sm:$0xff] }
 0x1f0   : > { %1602 = vst.msk [vmem:[#allocation2 + $0x1a8] sm:$0xff] %vm1548_vm1, %v1537_v47  ;;  %v1506_v49 = vadd.f32 %v1380_v48, %v656_v45  ;;  %v694_v47 = vld [vmem:[#allocation2 + $0x1e0] sm:$0xff] }
 0x1f2   : > { %1571 = vst.msk [vmem:[#allocation2 + $0xb0] sm:$0xff] %vm1548_vm1, %v1506_v49  ;;  %v1290_v50 = vpop.f32.mrf.mxu2 }
 0x1f3   : > { %v1459_v52 = vpop.f32.mrf.mxu3 }
 0x1f4   : > { %v1460_v53 = vadd.f32 %v1459_v52, %v1290_v50  ;;  %v1212_v54 = vpop.f32.mrf.mxu0 }
 0x1f5   : > { %v1381_v56 = vpop.f32.mrf.mxu1 }
 0x1f6   : > { %v1538_v57 = vadd.f32 %v1460_v53, %v688_v51  ;;  %v1382_v58 = vadd.f32 %v1381_v56, %v1212_v54  ;;  %v663_v51 = vld [vmem:[#allocation2 + $0xe8] sm:$0xff] }
 0x1f8   : > { %1603 = vst.msk [vmem:[#allocation2 + $0x1b0] sm:$0xff] %vm1548_vm1, %v1538_v57  ;;  %v1507_v59 = vadd.f32 %v1382_v58, %v657_v55  ;;  %v695_v57 = vld [vmem:[#allocation2 + $0x1e8] sm:$0xff] }
 0x1fa   : > { %1572 = vst.msk [vmem:[#allocation2 + $0xb8] sm:$0xff] %vm1548_vm1, %v1507_v59  ;;  %v1292_v60 = vpop.f32.mrf.mxu2 }
 0x1fb   : > { %v1461_v62 = vpop.f32.mrf.mxu3 }
 0x1fc   : > { %v1462_v63 = vadd.f32 %v1461_v62, %v1292_v60  ;;  %v1215_v0 = vpop.f32.mrf.mxu0 }
 0x1fd   : > { %v1384_v2 = vpop.f32.mrf.mxu1 }
 0x1fe   : > { %v1539_v3 = vadd.f32 %v1462_v63, %v689_v61  ;;  %v1385_v4 = vadd.f32 %v1384_v2, %v1215_v0  ;;  %v664_v61 = vld [vmem:[#allocation2 + $0xf0] sm:$0xff] }
 0x200   : > { %1604 = vst.msk [vmem:[#allocation2 + $0x1b8] sm:$0xff] %vm1548_vm1, %v1539_v3  ;;  %v1508_v5 = vadd.f32 %v1385_v4, %v658_v1  ;;  %v696_v3 = vld [vmem:[#allocation2 + $0x1f0] sm:$0xff] }
 0x202   : > { %1573 = vst.msk [vmem:[#allocation2 + $0xc0] sm:$0xff] %vm1548_vm1, %v1508_v5  ;;  %v1295_v6 = vpop.f32.mrf.mxu2 }
 0x203   : > { %v1464_v8 = vpop.f32.mrf.mxu3 }
 0x204   : > { %v1465_v9 = vadd.f32 %v1464_v8, %v1295_v6  ;;  %v1217_v10 = vpop.f32.mrf.mxu0 }
 0x205   : > { %v1386_v12 = vpop.f32.mrf.mxu1 }
 0x206   : > { %v1540_v13 = vadd.f32 %v1465_v9, %v690_v7  ;;  %v1387_v14 = vadd.f32 %v1386_v12, %v1217_v10  ;;  %v665_v7 = vld [vmem:[#allocation2 + $0xf8] sm:$0xff] }
 0x208   : > { %1605 = vst.msk [vmem:[#allocation2 + $0x1c0] sm:$0xff] %vm1548_vm1, %v1540_v13  ;;  %v1509_v15 = vadd.f32 %v1387_v14, %v659_v11  ;;  %v697_v13 = vld [vmem:[#allocation2 + $0x1f8] sm:$0xff] }
 0x20a   : > { %1574 = vst.msk [vmem:[#allocation2 + $0xc8] sm:$0xff] %vm1548_vm1, %v1509_v15  ;;  %v1297_v16 = vpop.f32.mrf.mxu2 }
 0x20b   : > { %v1466_v18 = vpop.f32.mrf.mxu3 }
 0x20c   : > { %v1467_v19 = vadd.f32 %v1466_v18, %v1297_v16  ;;  %v1220_v20 = vpop.f32.mrf.mxu0 }
 0x20d   : > { %v1389_v22 = vpop.f32.mrf.mxu1 }
 0x20e   : > { %v1541_v23 = vadd.f32 %v1467_v19, %v691_v17  ;;  %v1390_v24 = vadd.f32 %v1389_v22, %v1220_v20 }
 0x210   : > { %1606 = vst.msk [vmem:[#allocation2 + $0x1c8] sm:$0xff] %vm1548_vm1, %v1541_v23  ;;  %v1510_v25 = vadd.f32 %v1390_v24, %v660_v21 }
 0x212   : > { %1575 = vst.msk [vmem:[#allocation2 + $0xd0] sm:$0xff] %vm1548_vm1, %v1510_v25  ;;  %v1300_v26 = vpop.f32.mrf.mxu2 }
 0x213   : > { %v1469_v28 = vpop.f32.mrf.mxu3 }
 0x214   : > { %v1470_v29 = vadd.f32 %v1469_v28, %v1300_v26  ;;  %v1222_v30 = vpop.f32.mrf.mxu0 }
 0x215   : > { %v1391_v32 = vpop.f32.mrf.mxu1 }
 0x216   : > { %v1542_v33 = vadd.f32 %v1470_v29, %v692_v27  ;;  %v1392_v34 = vadd.f32 %v1391_v32, %v1222_v30 }
 0x218   : > { %1607 = vst.msk [vmem:[#allocation2 + $0x1d0] sm:$0xff] %vm1548_vm1, %v1542_v33  ;;  %v1511_v35 = vadd.f32 %v1392_v34, %v661_v31 }
 0x21a   : > { %1576 = vst.msk [vmem:[#allocation2 + $0xd8] sm:$0xff] %vm1548_vm1, %v1511_v35  ;;  %v1302_v36 = vpop.f32.mrf.mxu2 }
 0x21b   : > { %v1471_v38 = vpop.f32.mrf.mxu3 }
 0x21c   : > { %v1472_v39 = vadd.f32 %v1471_v38, %v1302_v36  ;;  %v1225_v40 = vpop.f32.mrf.mxu0 }
 0x21d   : > { %v1394_v42 = vpop.f32.mrf.mxu1 }
 0x21e   : > { %v1543_v43 = vadd.f32 %v1472_v39, %v693_v37  ;;  %v1395_v44 = vadd.f32 %v1394_v42, %v1225_v40 }
 0x220   : > { %1608 = vst.msk [vmem:[#allocation2 + $0x1d8] sm:$0xff] %vm1548_vm1, %v1543_v43  ;;  %v1512_v45 = vadd.f32 %v1395_v44, %v662_v41 }
 0x222   : > { %1577 = vst.msk [vmem:[#allocation2 + $0xe0] sm:$0xff] %vm1548_vm1, %v1512_v45  ;;  %v1305_v46 = vpop.f32.mrf.mxu2 }
 0x223   : > { %v1474_v48 = vpop.f32.mrf.mxu3 }
 0x224   : > { %v1475_v49 = vadd.f32 %v1474_v48, %v1305_v46  ;;  %v1227_v50 = vpop.f32.mrf.mxu0 }
 0x225   : > { %v1396_v52 = vpop.f32.mrf.mxu1 }
 0x226   : > { %v1544_v53 = vadd.f32 %v1475_v49, %v694_v47  ;;  %v1397_v54 = vadd.f32 %v1396_v52, %v1227_v50 }
 0x228   : > { %1609 = vst.msk [vmem:[#allocation2 + $0x1e0] sm:$0xff] %vm1548_vm1, %v1544_v53  ;;  %v1513_v55 = vadd.f32 %v1397_v54, %v663_v51 }
 0x22a   : > { %1578 = vst.msk [vmem:[#allocation2 + $0xe8] sm:$0xff] %vm1548_vm1, %v1513_v55  ;;  %v1307_v56 = vpop.f32.mrf.mxu2 }
 0x22b   : > { %v1476_v58 = vpop.f32.mrf.mxu3 }
 0x22c   : > { %v1477_v59 = vadd.f32 %v1476_v58, %v1307_v56  ;;  %v1230_v60 = vpop.f32.mrf.mxu0 }
 0x22d   : > { %v1399_v62 = vpop.f32.mrf.mxu1 }
 0x22e   : > { %v1545_v63 = vadd.f32 %v1477_v59, %v695_v57  ;;  %v1400_v0 = vadd.f32 %v1399_v62, %v1230_v60 }
 0x230   : > { %1610 = vst.msk [vmem:[#allocation2 + $0x1e8] sm:$0xff] %vm1548_vm1, %v1545_v63  ;;  %v1514_v1 = vadd.f32 %v1400_v0, %v664_v61 }
 0x232   : > { %1579 = vst.msk [vmem:[#allocation2 + $0xf0] sm:$0xff] %vm1548_vm1, %v1514_v1  ;;  %v1310_v2 = vpop.f32.mrf.mxu2 }
 0x233   : > { %v1479_v4 = vpop.f32.mrf.mxu3 }
 0x234   : > { %v1480_v5 = vadd.f32 %v1479_v4, %v1310_v2  ;;  %v1232_v6 = vpop.f32.mrf.mxu0 }
 0x235   : > { %v1401_v8 = vpop.f32.mrf.mxu1 }
 0x236   : > { %v1546_v9 = vadd.f32 %v1480_v5, %v696_v3  ;;  %v1402_v10 = vadd.f32 %v1401_v8, %v1232_v6 }
 0x238   : > { %1611 = vst.msk [vmem:[#allocation2 + $0x1f0] sm:$0xff] %vm1548_vm1, %v1546_v9  ;;  %v1515_v11 = vadd.f32 %v1402_v10, %v665_v7 }
 0x23a   : > { %1580 = vst.msk [vmem:[#allocation2 + $0xf8] sm:$0xff] %vm1548_vm1, %v1515_v11  ;;  %v1312_v12 = vpop.f32.mrf.mxu2 }
 0x23b   : > { %v1481_v14 = vpop.f32.mrf.mxu3 }
 0x23c   : > { %v1482_v15 = vadd.f32 %v1481_v14, %v1312_v12  ;;  %1616 = sbr.rel (%p2356_p11) target bundleno = 649 (0x289), region = 78 }
 0x23e   : > { %v1547_v16 = vadd.f32 %v1482_v15, %v697_v13 }
 0x240   : > { %1612 = vst.msk [vmem:[#allocation2 + $0x1f8] sm:$0xff] %vm1548_vm1, %v1547_v16 }
 0x241   : > { %v1617_v17 = vld [vmem:[#allocation2] sm:$0xff]  ;;  %v1618_v19 = vld [vmem:[#allocation2 + $0x8] sm:$0xff]  ;;  %v1619_v20 = vld [vmem:[#allocation2 + $0x10] sm:$0xff]  ;;  %vm1877_vm2 = vcmask 125952  }
 0x242   : > { %v3088_v18 = vld [vmem:[%s3427_s2] ss:$0 sm:$0xff]  ;;  %v1620_v21 = vld [vmem:[#allocation2 + $0x18] sm:$0xff]  ;;  %v1622_v27 = vld [vmem:[#allocation2 + $0x28] sm:$0xff] }
 0x243   : > { %v1685_v22 = vadd.f32 %v3088_v18, %v1617_v17  ;;  %v1686_v23 = vadd.f32 %v3088_v18, %v1618_v19  ;;  %v1687_v24 = vadd.f32 %v3088_v18, %v1619_v20  ;;  %v1688_v25 = vadd.f32 %v3088_v18, %v1620_v21  ;;  %v1621_v26 = vld [vmem:[#allocation2 + $0x20] sm:$0xff]  ;;  %v1623_v28 = vld [vmem:[#allocation2 + $0x30] sm:$0xff]  ;;  %v1624_v32 = vld [vmem:[#allocation2 + $0x38] sm:$0xff] }
 0x244   : > { %v1689_v29 = vadd.f32 %v3088_v18, %v1621_v26  ;;  %v1690_v30 = vadd.f32 %v3088_v18, %v1622_v27  ;;  %v1691_v31 = vadd.f32 %v3088_v18, %v1623_v28  ;;  %v1625_v37 = vld [vmem:[#allocation2 + $0x40] sm:$0xff]  ;;  %v1692_v40 = vadd.f32 %v3088_v18, %v1624_v32  ;;  %v1626_v41 = vld [vmem:[#allocation2 + $0x48] sm:$0xff]  ;;  %v1627_v42 = vld [vmem:[#allocation2 + $0x50] sm:$0xff] }
 0x245   : > { %v1749_v33 = vmax.f32 %v1685_v22, 0.0  ;;  %v1750_v34 = vmax.f32 %v1686_v23, 0.0  ;;  %v1751_v35 = vmax.f32 %v1687_v24, 0.0  ;;  %v1752_v36 = vmax.f32 %v1688_v25, 0.0  ;;  %v1628_v43 = vld [vmem:[#allocation2 + $0x58] sm:$0xff]  ;;  %v1629_v48 = vld [vmem:[#allocation2 + $0x60] sm:$0xff] }
 0x246   : > { %v1753_v38 = vmax.f32 %v1689_v29, 0.0  ;;  %v1754_v39 = vmax.f32 %v1690_v30, 0.0  ;;  %v1755_v47 = vmax.f32 %v1691_v31, 0.0  ;;  %v1630_v49 = vld [vmem:[#allocation2 + $0x68] sm:$0xff]  ;;  %v1631_v50 = vld [vmem:[#allocation2 + $0x70] sm:$0xff]  ;;  %v1756_v53 = vmax.f32 %v1692_v40, 0.0 }
 0x247   : > { %v1813_v44 = vpack.c.bf16 %v1749_v33, %v1749_v33  ;;  %v1814_v45 = vpack.c.bf16 %v1750_v34, %v1750_v34  ;;  %v1815_v46 = vpack.c.bf16 %v1751_v35, %v1751_v35  ;;  %v1816_v51 = vpack.c.bf16 %v1752_v36, %v1752_v36  ;;  %v1632_v58 = vld [vmem:[#allocation2 + $0x78] sm:$0xff]  ;;  %v1633_v6 = vld [vmem:[#allocation2 + $0x80] sm:$0xff]  ;;  %v1634_v7 = vld [vmem:[#allocation2 + $0x88] sm:$0xff] }
 0x248   : > { %v1817_v52 = vpack.c.bf16 %v1753_v38, %v1753_v38  ;;  %v1693_v54 = vadd.f32 %v3088_v18, %v1625_v37  ;;  %v1694_v55 = vadd.f32 %v3088_v18, %v1626_v41  ;;  %v1695_v56 = vadd.f32 %v3088_v18, %v1627_v42  ;;  %v1635_v8 = vld [vmem:[#allocation2 + $0x90] sm:$0xff]  ;;  %v1636_v11 = vld [vmem:[#allocation2 + $0x98] sm:$0xff]  ;;  %v1637_v15 = vld [vmem:[#allocation2 + $0xa0] sm:$0xff] }
 0x249   : > { %1878 = vst.msk [vmem:[%s3428_s3] sm:$0xf] %vm1877_vm2, %v1813_v44  ;;  %v1696_v57 = vadd.f32 %v3088_v18, %v1628_v43  ;;  %v1818_v59 = vpack.c.bf16 %v1754_v39, %v1754_v39  ;;  %v1697_v60 = vadd.f32 %v3088_v18, %v1629_v48  ;;  %v1698_v61 = vadd.f32 %v3088_v18, %v1630_v49  ;;  %v1638_v21 = vld [vmem:[#allocation2 + $0xa8] sm:$0xff]  ;;  %v1639_v25 = vld [vmem:[#allocation2 + $0xb0] sm:$0xff]  ;;  %v1640_v29 = vld [vmem:[#allocation2 + $0xb8] sm:$0xff] }
 0x24a   : > { %1879 = vst.msk [vmem:[%s3428_s3 + $0x4] sm:$0xf] %vm1877_vm2, %v1814_v45  ;;  %v1699_v62 = vadd.f32 %v3088_v18, %v1631_v50  ;;  %v1819_v63 = vpack.c.bf16 %v1755_v47, %v1755_v47  ;;  %v1757_v0 = vmax.f32 %v1693_v54, 0.0  ;;  %v1758_v1 = vmax.f32 %v1694_v55, 0.0  ;;  %v1641_v33 = vld [vmem:[#allocation2 + $0xc0] sm:$0xff]  ;;  %v1642_v37 = vld [vmem:[#allocation2 + $0xc8] sm:$0xff] }
 0x24b   : > { %1880 = vst.msk [vmem:[%s3428_s3 + $0x8] sm:$0xf] %vm1877_vm2, %v1815_v46  ;;  %v1759_v2 = vmax.f32 %v1695_v56, 0.0  ;;  %v1820_v3 = vpack.c.bf16 %v1756_v53, %v1756_v53  ;;  %v1760_v4 = vmax.f32 %v1696_v57, 0.0  ;;  %v1700_v5 = vadd.f32 %v3088_v18, %v1632_v58  ;;  %v1643_v41 = vld [vmem:[#allocation2 + $0xd0] sm:$0xff]  ;;  %v1644_v45 = vld [vmem:[#allocation2 + $0xd8] sm:$0xff] }
 0x24c   : > { %1881 = vst.msk [vmem:[%s3428_s3 + $0xc] sm:$0xf] %vm1877_vm2, %v1816_v51  ;;  %v1821_v9 = vpack.c.bf16 %v1757_v0, %v1757_v0  ;;  %v1761_v10 = vmax.f32 %v1697_v60, 0.0  ;;  %v1822_v12 = vpack.c.bf16 %v1758_v1, %v1758_v1  ;;  %v1762_v13 = vmax.f32 %v1698_v61, 0.0  ;;  %v1645_v49 = vld [vmem:[#allocation2 + $0xe0] sm:$0xff]  ;;  %v1646_v53 = vld [vmem:[#allocation2 + $0xe8] sm:$0xff] }
 0x24d   : > { %1882 = vst.msk [vmem:[%s3428_s3 + $0x10] sm:$0xf] %vm1877_vm2, %v1817_v52  ;;  %v1763_v14 = vmax.f32 %v1699_v62, 0.0  ;;  %v1823_v16 = vpack.c.bf16 %v1759_v2, %v1759_v2  ;;  %v1701_v17 = vadd.f32 %v3088_v18, %v1633_v6  ;;  %v1702_v19 = vadd.f32 %v3088_v18, %v1634_v7  ;;  %v1647_v57 = vld [vmem:[#allocation2 + $0xf0] sm:$0xff]  ;;  %v1648_v61 = vld [vmem:[#allocation2 + $0xf8] sm:$0xff]  ;;  %v1649_v1 = vld [vmem:[#allocation2 + $0x100] sm:$0xff] }
 0x24e   : > { %1883 = vst.msk [vmem:[%s3428_s3 + $0x14] sm:$0xf] %vm1877_vm2, %v1818_v59  ;;  %v1703_v20 = vadd.f32 %v3088_v18, %v1635_v8  ;;  %v1824_v22 = vpack.c.bf16 %v1760_v4, %v1760_v4  ;;  %v1764_v23 = vmax.f32 %v1700_v5, 0.0  ;;  %v1704_v24 = vadd.f32 %v3088_v18, %v1636_v11  ;;  %v1650_v5 = vld [vmem:[#allocation2 + $0x108] sm:$0xff] }
 0x24f   : > { %1884 = vst.msk [vmem:[%s3428_s3 + $0x18] sm:$0xf] %vm1877_vm2, %v1819_v63  ;;  %v1825_v26 = vpack.c.bf16 %v1761_v10, %v1761_v10  ;;  %v1765_v27 = vmax.f32 %v1701_v17, 0.0  ;;  %v1705_v28 = vadd.f32 %v3088_v18, %v1637_v15  ;;  %v1826_v30 = vpack.c.bf16 %v1762_v13, %v1762_v13  ;;  %v1652_v13 = vld [vmem:[#allocation2 + $0x118] sm:$0xff]  ;;  %v1653_v17 = vld [vmem:[#allocation2 + $0x120] sm:$0xff] }
 0x250   : > { %1885 = vst.msk [vmem:[%s3428_s3 + $0x1c] sm:$0xf] %vm1877_vm2, %v1820_v3  ;;  %v1766_v31 = vmax.f32 %v1702_v19, 0.0  ;;  %v1706_v32 = vadd.f32 %v3088_v18, %v1638_v21  ;;  %v1827_v34 = vpack.c.bf16 %v1763_v14, %v1763_v14  ;;  %v1767_v35 = vmax.f32 %v1703_v20, 0.0 }
 0x251   : > { %1886 = vst.msk [vmem:[%s3428_s3 + $0x20] sm:$0xf] %vm1877_vm2, %v1821_v9  ;;  %v1707_v36 = vadd.f32 %v3088_v18, %v1639_v25  ;;  %v1828_v38 = vpack.c.bf16 %v1764_v23, %v1764_v23  ;;  %v1768_v39 = vmax.f32 %v1704_v24, 0.0  ;;  %v1708_v40 = vadd.f32 %v3088_v18, %v1640_v29  ;;  %v1651_v9 = vld [vmem:[#allocation2 + $0x110] sm:$0xff] }
 0x252   : > { %1887 = vst.msk [vmem:[%s3428_s3 + $0x24] sm:$0xf] %vm1877_vm2, %v1822_v12  ;;  %v1829_v42 = vpack.c.bf16 %v1765_v27, %v1765_v27  ;;  %v1769_v43 = vmax.f32 %v1705_v28, 0.0  ;;  %v1709_v44 = vadd.f32 %v3088_v18, %v1641_v33  ;;  %v1830_v46 = vpack.c.bf16 %v1766_v31, %v1766_v31 }
 0x253   : > { %1888 = vst.msk [vmem:[%s3428_s3 + $0x28] sm:$0xf] %vm1877_vm2, %v1823_v16  ;;  %v1770_v47 = vmax.f32 %v1706_v32, 0.0  ;;  %v1710_v48 = vadd.f32 %v3088_v18, %v1642_v37  ;;  %v1831_v50 = vpack.c.bf16 %v1767_v35, %v1767_v35  ;;  %v1771_v51 = vmax.f32 %v1707_v36, 0.0 }
 0x254   : > { %1889 = vst.msk [vmem:[%s3428_s3 + $0x2c] sm:$0xf] %vm1877_vm2, %v1824_v22  ;;  %v1711_v52 = vadd.f32 %v3088_v18, %v1643_v41  ;;  %v1832_v54 = vpack.c.bf16 %v1768_v39, %v1768_v39  ;;  %v1772_v55 = vmax.f32 %v1708_v40, 0.0  ;;  %v1712_v56 = vadd.f32 %v3088_v18, %v1644_v45  ;;  %v1654_v22 = vld [vmem:[#allocation2 + $0x128] sm:$0xff] }
 0x255   : > { %1890 = vst.msk [vmem:[%s3428_s3 + $0x30] sm:$0xf] %vm1877_vm2, %v1825_v26  ;;  %v1833_v58 = vpack.c.bf16 %v1769_v43, %v1769_v43  ;;  %v1773_v59 = vmax.f32 %v1709_v44, 0.0  ;;  %v1713_v60 = vadd.f32 %v3088_v18, %v1645_v49  ;;  %v1834_v62 = vpack.c.bf16 %v1770_v47, %v1770_v47  ;;  %v1655_v26 = vld [vmem:[#allocation2 + $0x130] sm:$0xff] }
 0x256   : > { %1891 = vst.msk [vmem:[%s3428_s3 + $0x34] sm:$0xf] %vm1877_vm2, %v1826_v30  ;;  %v1774_v63 = vmax.f32 %v1710_v48, 0.0  ;;  %v1714_v0 = vadd.f32 %v3088_v18, %v1646_v53  ;;  %v1835_v2 = vpack.c.bf16 %v1771_v51, %v1771_v51  ;;  %v1775_v3 = vmax.f32 %v1711_v52, 0.0  ;;  %v1656_v30 = vld [vmem:[#allocation2 + $0x138] sm:$0xff] }
 0x257   : > { %1892 = vst.msk [vmem:[%s3428_s3 + $0x38] sm:$0xf] %vm1877_vm2, %v1827_v34  ;;  %v1715_v4 = vadd.f32 %v3088_v18, %v1647_v57  ;;  %v1836_v6 = vpack.c.bf16 %v1772_v55, %v1772_v55  ;;  %v1776_v7 = vmax.f32 %v1712_v56, 0.0  ;;  %v1716_v8 = vadd.f32 %v3088_v18, %v1648_v61  ;;  %v1657_v34 = vld [vmem:[#allocation2 + $0x140] sm:$0xff] }
 0x258   : > { %1893 = vst.msk [vmem:[%s3428_s3 + $0x3c] sm:$0xf] %vm1877_vm2, %v1828_v38  ;;  %v1837_v10 = vpack.c.bf16 %v1773_v59, %v1773_v59  ;;  %v1777_v11 = vmax.f32 %v1713_v60, 0.0  ;;  %v1717_v12 = vadd.f32 %v3088_v18, %v1649_v1  ;;  %v1838_v14 = vpack.c.bf16 %v1774_v63, %v1774_v63  ;;  %v1658_v38 = vld [vmem:[#allocation2 + $0x148] sm:$0xff] }
 0x259   : > { %1894 = vst.msk [vmem:[%s3428_s3 + $0x40] sm:$0xf] %vm1877_vm2, %v1829_v42  ;;  %v1778_v15 = vmax.f32 %v1714_v0, 0.0  ;;  %v1718_v16 = vadd.f32 %v3088_v18, %v1650_v5  ;;  %v1839_v19 = vpack.c.bf16 %v1775_v3, %v1775_v3  ;;  %v1779_v20 = vmax.f32 %v1715_v4, 0.0  ;;  %v1659_v42 = vld [vmem:[#allocation2 + $0x150] sm:$0xff] }
 0x25a   : > { %1895 = vst.msk [vmem:[%s3428_s3 + $0x44] sm:$0xf] %vm1877_vm2, %v1830_v46  ;;  %v1719_v21 = vadd.f32 %v3088_v18, %v1651_v9  ;;  %v1840_v23 = vpack.c.bf16 %v1776_v7, %v1776_v7  ;;  %v1780_v24 = vmax.f32 %v1716_v8, 0.0  ;;  %v1720_v25 = vadd.f32 %v3088_v18, %v1652_v13  ;;  %v1660_v46 = vld [vmem:[#allocation2 + $0x158] sm:$0xff] }
 0x25b   : > { %1896 = vst.msk [vmem:[%s3428_s3 + $0x48] sm:$0xf] %vm1877_vm2, %v1831_v50  ;;  %v1841_v27 = vpack.c.bf16 %v1777_v11, %v1777_v11  ;;  %v1781_v28 = vmax.f32 %v1717_v12, 0.0  ;;  %v1721_v29 = vadd.f32 %v3088_v18, %v1653_v17  ;;  %v1842_v31 = vpack.c.bf16 %v1778_v15, %v1778_v15  ;;  %v1661_v50 = vld [vmem:[#allocation2 + $0x160] sm:$0xff] }
 0x25c   : > { %1897 = vst.msk [vmem:[%s3428_s3 + $0x4c] sm:$0xf] %vm1877_vm2, %v1832_v54  ;;  %v1782_v32 = vmax.f32 %v1718_v16, 0.0  ;;  %v1722_v33 = vadd.f32 %v3088_v18, %v1654_v22  ;;  %v1843_v35 = vpack.c.bf16 %v1779_v20, %v1779_v20  ;;  %v1783_v36 = vmax.f32 %v1719_v21, 0.0  ;;  %v1662_v54 = vld [vmem:[#allocation2 + $0x168] sm:$0xff] }
 0x25d   : > { %1898 = vst.msk [vmem:[%s3428_s3 + $0x50] sm:$0xf] %vm1877_vm2, %v1833_v58  ;;  %v1723_v37 = vadd.f32 %v3088_v18, %v1655_v26  ;;  %v1844_v39 = vpack.c.bf16 %v1780_v24, %v1780_v24  ;;  %v1784_v40 = vmax.f32 %v1720_v25, 0.0  ;;  %v1724_v41 = vadd.f32 %v3088_v18, %v1656_v30  ;;  %v1663_v58 = vld [vmem:[#allocation2 + $0x170] sm:$0xff] }
 0x25e   : > { %1899 = vst.msk [vmem:[%s3428_s3 + $0x54] sm:$0xf] %vm1877_vm2, %v1834_v62  ;;  %v1845_v43 = vpack.c.bf16 %v1781_v28, %v1781_v28  ;;  %v1785_v44 = vmax.f32 %v1721_v29, 0.0  ;;  %v1725_v45 = vadd.f32 %v3088_v18, %v1657_v34  ;;  %v1846_v47 = vpack.c.bf16 %v1782_v32, %v1782_v32  ;;  %v1664_v62 = vld [vmem:[#allocation2 + $0x178] sm:$0xff] }
 0x25f   : > { %1900 = vst.msk [vmem:[%s3428_s3 + $0x58] sm:$0xf] %vm1877_vm2, %v1835_v2  ;;  %v1786_v48 = vmax.f32 %v1722_v33, 0.0  ;;  %v1726_v49 = vadd.f32 %v3088_v18, %v1658_v38  ;;  %v1847_v51 = vpack.c.bf16 %v1783_v36, %v1783_v36  ;;  %v1787_v52 = vmax.f32 %v1723_v37, 0.0  ;;  %v1665_v2 = vld [vmem:[#allocation2 + $0x180] sm:$0xff] }
 0x260   : > { %1901 = vst.msk [vmem:[%s3428_s3 + $0x5c] sm:$0xf] %vm1877_vm2, %v1836_v6  ;;  %v1727_v53 = vadd.f32 %v3088_v18, %v1659_v42  ;;  %v1848_v55 = vpack.c.bf16 %v1784_v40, %v1784_v40  ;;  %v1788_v56 = vmax.f32 %v1724_v41, 0.0  ;;  %v1728_v57 = vadd.f32 %v3088_v18, %v1660_v46  ;;  %v1666_v6 = vld [vmem:[#allocation2 + $0x188] sm:$0xff] }
 0x261   : > { %1902 = vst.msk [vmem:[%s3428_s3 + $0x60] sm:$0xf] %vm1877_vm2, %v1837_v10  ;;  %v1849_v59 = vpack.c.bf16 %v1785_v44, %v1785_v44  ;;  %v1789_v60 = vmax.f32 %v1725_v45, 0.0  ;;  %v1729_v61 = vadd.f32 %v3088_v18, %v1661_v50  ;;  %v1850_v63 = vpack.c.bf16 %v1786_v48, %v1786_v48  ;;  %v1667_v10 = vld [vmem:[#allocation2 + $0x190] sm:$0xff] }
 0x262   : > { %1903 = vst.msk [vmem:[%s3428_s3 + $0x64] sm:$0xf] %vm1877_vm2, %v1838_v14  ;;  %v1790_v0 = vmax.f32 %v1726_v49, 0.0  ;;  %v1730_v1 = vadd.f32 %v3088_v18, %v1662_v54  ;;  %v1851_v3 = vpack.c.bf16 %v1787_v52, %v1787_v52  ;;  %v1791_v4 = vmax.f32 %v1727_v53, 0.0  ;;  %v1668_v14 = vld [vmem:[#allocation2 + $0x198] sm:$0xff] }
 0x263   : > { %1904 = vst.msk [vmem:[%s3428_s3 + $0x68] sm:$0xf] %vm1877_vm2, %v1839_v19  ;;  %v1731_v5 = vadd.f32 %v3088_v18, %v1663_v58  ;;  %v1852_v7 = vpack.c.bf16 %v1788_v56, %v1788_v56  ;;  %v1792_v8 = vmax.f32 %v1728_v57, 0.0  ;;  %v1732_v9 = vadd.f32 %v3088_v18, %v1664_v62  ;;  %v1669_v19 = vld [vmem:[#allocation2 + $0x1a0] sm:$0xff] }
 0x264   : > { %1905 = vst.msk [vmem:[%s3428_s3 + $0x6c] sm:$0xf] %vm1877_vm2, %v1840_v23  ;;  %v1853_v11 = vpack.c.bf16 %v1789_v60, %v1789_v60  ;;  %v1793_v12 = vmax.f32 %v1729_v61, 0.0  ;;  %v1733_v13 = vadd.f32 %v3088_v18, %v1665_v2  ;;  %v1854_v15 = vpack.c.bf16 %v1790_v0, %v1790_v0  ;;  %v1670_v23 = vld [vmem:[#allocation2 + $0x1a8] sm:$0xff] }
 0x265   : > { %1906 = vst.msk [vmem:[%s3428_s3 + $0x70] sm:$0xf] %vm1877_vm2, %v1841_v27  ;;  %v1794_v16 = vmax.f32 %v1730_v1, 0.0  ;;  %v1734_v17 = vadd.f32 %v3088_v18, %v1666_v6  ;;  %v1855_v20 = vpack.c.bf16 %v1791_v4, %v1791_v4  ;;  %v1795_v21 = vmax.f32 %v1731_v5, 0.0  ;;  %v1671_v27 = vld [vmem:[#allocation2 + $0x1b0] sm:$0xff] }
 0x266   : > { %1907 = vst.msk [vmem:[%s3428_s3 + $0x74] sm:$0xf] %vm1877_vm2, %v1842_v31  ;;  %v1735_v22 = vadd.f32 %v3088_v18, %v1667_v10  ;;  %v1856_v24 = vpack.c.bf16 %v1792_v8, %v1792_v8  ;;  %v1796_v25 = vmax.f32 %v1732_v9, 0.0  ;;  %v1736_v26 = vadd.f32 %v3088_v18, %v1668_v14  ;;  %v1672_v31 = vld [vmem:[#allocation2 + $0x1b8] sm:$0xff] }
 0x267   : > { %1908 = vst.msk [vmem:[%s3428_s3 + $0x78] sm:$0xf] %vm1877_vm2, %v1843_v35  ;;  %v1857_v28 = vpack.c.bf16 %v1793_v12, %v1793_v12  ;;  %v1797_v29 = vmax.f32 %v1733_v13, 0.0  ;;  %v1737_v30 = vadd.f32 %v3088_v18, %v1669_v19  ;;  %v1858_v32 = vpack.c.bf16 %v1794_v16, %v1794_v16  ;;  %v1673_v35 = vld [vmem:[#allocation2 + $0x1c0] sm:$0xff] }
 0x268   : > { %1909 = vst.msk [vmem:[%s3428_s3 + $0x7c] sm:$0xf] %vm1877_vm2, %v1844_v39  ;;  %v1798_v33 = vmax.f32 %v1734_v17, 0.0  ;;  %v1738_v34 = vadd.f32 %v3088_v18, %v1670_v23  ;;  %v1859_v36 = vpack.c.bf16 %v1795_v21, %v1795_v21  ;;  %v1799_v37 = vmax.f32 %v1735_v22, 0.0  ;;  %v1674_v39 = vld [vmem:[#allocation2 + $0x1c8] sm:$0xff] }
 0x269   : > { %1910 = vst.msk [vmem:[%s3428_s3 + $0x80] sm:$0xf] %vm1877_vm2, %v1845_v43  ;;  %v1739_v38 = vadd.f32 %v3088_v18, %v1671_v27  ;;  %v1860_v40 = vpack.c.bf16 %v1796_v25, %v1796_v25  ;;  %v1800_v41 = vmax.f32 %v1736_v26, 0.0  ;;  %v1740_v42 = vadd.f32 %v3088_v18, %v1672_v31  ;;  %v1675_v43 = vld [vmem:[#allocation2 + $0x1d0] sm:$0xff] }
 0x26a   : > { %1911 = vst.msk [vmem:[%s3428_s3 + $0x84] sm:$0xf] %vm1877_vm2, %v1846_v47  ;;  %v1861_v44 = vpack.c.bf16 %v1797_v29, %v1797_v29  ;;  %v1801_v45 = vmax.f32 %v1737_v30, 0.0  ;;  %v1741_v46 = vadd.f32 %v3088_v18, %v1673_v35  ;;  %v1676_v47 = vld [vmem:[#allocation2 + $0x1d8] sm:$0xff]  ;;  %v1862_v48 = vpack.c.bf16 %v1798_v33, %v1798_v33 }
 0x26b   : > { %1912 = vst.msk [vmem:[%s3428_s3 + $0x88] sm:$0xf] %vm1877_vm2, %v1847_v51  ;;  %v1802_v49 = vmax.f32 %v1738_v34, 0.0  ;;  %v1742_v50 = vadd.f32 %v3088_v18, %v1674_v39  ;;  %v1677_v51 = vld [vmem:[#allocation2 + $0x1e0] sm:$0xff]  ;;  %v1863_v52 = vpack.c.bf16 %v1799_v37, %v1799_v37  ;;  %v1803_v53 = vmax.f32 %v1739_v38, 0.0 }
 0x26c   : > { %1913 = vst.msk [vmem:[%s3428_s3 + $0x8c] sm:$0xf] %vm1877_vm2, %v1848_v55  ;;  %v1743_v54 = vadd.f32 %v3088_v18, %v1675_v43  ;;  %v1678_v55 = vld [vmem:[#allocation2 + $0x1e8] sm:$0xff]  ;;  %v1864_v56 = vpack.c.bf16 %v1800_v41, %v1800_v41  ;;  %v1804_v57 = vmax.f32 %v1740_v42, 0.0  ;;  %v1744_v58 = vadd.f32 %v3088_v18, %v1676_v47 }
 0x26d   : > { %1914 = vst.msk [vmem:[%s3428_s3 + $0x90] sm:$0xf] %vm1877_vm2, %v1849_v59  ;;  %v1679_v59 = vld [vmem:[#allocation2 + $0x1f0] sm:$0xff]  ;;  %v1865_v60 = vpack.c.bf16 %v1801_v45, %v1801_v45  ;;  %v1805_v61 = vmax.f32 %v1741_v46, 0.0  ;;  %v1745_v62 = vadd.f32 %v3088_v18, %v1677_v51  ;;  %v1866_v0 = vpack.c.bf16 %v1802_v49, %v1802_v49 }
 0x26e   : > { %1915 = vst.msk [vmem:[%s3428_s3 + $0x94] sm:$0xf] %vm1877_vm2, %v1850_v63  ;;  %v1680_v63 = vld [vmem:[#allocation2 + $0x1f8] sm:$0xff]  ;;  %v1806_v1 = vmax.f32 %v1742_v50, 0.0  ;;  %v1746_v2 = vadd.f32 %v3088_v18, %v1678_v55  ;;  %v1807_v4 = vmax.f32 %v1743_v54, 0.0  ;;  %v1747_v5 = vadd.f32 %v3088_v18, %v1679_v59 }
 0x26f   : > { %1916 = vst.msk [vmem:[%s3428_s3 + $0x98] sm:$0xf] %vm1877_vm2, %v1851_v3  ;;  %v1867_v3 = vpack.c.bf16 %v1803_v53, %v1803_v53  ;;  %v1868_v6 = vpack.c.bf16 %v1804_v57, %v1804_v57  ;;  %v1748_v8 = vadd.f32 %v3088_v18, %v1680_v63  ;;  %v1869_v9 = vpack.c.bf16 %v1805_v61, %v1805_v61 }
 0x270   : > { %1917 = vst.msk [vmem:[%s3428_s3 + $0x9c] sm:$0xf] %vm1877_vm2, %v1852_v7  ;;  %v1808_v7 = vmax.f32 %v1744_v58, 0.0  ;;  %v1809_v10 = vmax.f32 %v1745_v62, 0.0  ;;  %v1810_v12 = vmax.f32 %v1746_v2, 0.0  ;;  %v1871_v18 = vpack.c.bf16 %v1807_v4, %v1807_v4 }
 0x271   : > { %1918 = vst.msk [vmem:[%s3428_s3 + $0xa0] sm:$0xf] %vm1877_vm2, %v1853_v11  ;;  %v1870_v11 = vpack.c.bf16 %v1806_v1, %v1806_v1  ;;  %v1811_v13 = vmax.f32 %v1747_v5, 0.0 }
 0x272   : > { %1919 = vst.msk [vmem:[%s3428_s3 + $0xa4] sm:$0xf] %vm1877_vm2, %v1854_v15  ;;  %v1872_v14 = vpack.c.bf16 %v1808_v7, %v1808_v7  ;;  %v1812_v15 = vmax.f32 %v1748_v8, 0.0  ;;  %v1873_v16 = vpack.c.bf16 %v1809_v10, %v1809_v10  ;;  %v1874_v17 = vpack.c.bf16 %v1810_v12, %v1810_v12 }
 0x273   : > { %1920 = vst.msk [vmem:[%s3428_s3 + $0xa8] sm:$0xf] %vm1877_vm2, %v1855_v20  ;;  %v1875_v19 = vpack.c.bf16 %v1811_v13, %v1811_v13 }
 0x274   : > { %1921 = vst.msk [vmem:[%s3428_s3 + $0xac] sm:$0xf] %vm1877_vm2, %v1856_v24  ;;  %v1876_v20 = vpack.c.bf16 %v1812_v15, %v1812_v15 }
 0x275   : > { %1922 = vst.msk [vmem:[%s3428_s3 + $0xb0] sm:$0xf] %vm1877_vm2, %v1857_v28 }
 0x276   : > { %1923 = vst.msk [vmem:[%s3428_s3 + $0xb4] sm:$0xf] %vm1877_vm2, %v1858_v32 }
 0x277   : > { %1924 = vst.msk [vmem:[%s3428_s3 + $0xb8] sm:$0xf] %vm1877_vm2, %v1859_v36 }
 0x278   : > { %1925 = vst.msk [vmem:[%s3428_s3 + $0xbc] sm:$0xf] %vm1877_vm2, %v1860_v40 }
 0x279   : > { %1926 = vst.msk [vmem:[%s3428_s3 + $0xc0] sm:$0xf] %vm1877_vm2, %v1861_v44 }
 0x27a   : > { %1927 = vst.msk [vmem:[%s3428_s3 + $0xc4] sm:$0xf] %vm1877_vm2, %v1862_v48 }
 0x27b   : > { %1928 = vst.msk [vmem:[%s3428_s3 + $0xc8] sm:$0xf] %vm1877_vm2, %v1863_v52 }
 0x27c   : > { %1929 = vst.msk [vmem:[%s3428_s3 + $0xcc] sm:$0xf] %vm1877_vm2, %v1864_v56 }
 0x27d   : > { %1930 = vst.msk [vmem:[%s3428_s3 + $0xd0] sm:$0xf] %vm1877_vm2, %v1865_v60 }
 0x27e   : > { %1931 = vst.msk [vmem:[%s3428_s3 + $0xd4] sm:$0xf] %vm1877_vm2, %v1866_v0 }
 0x27f   : > { %1932 = vst.msk [vmem:[%s3428_s3 + $0xd8] sm:$0xf] %vm1877_vm2, %v1867_v3 }
 0x280   : > { %1933 = vst.msk [vmem:[%s3428_s3 + $0xdc] sm:$0xf] %vm1877_vm2, %v1868_v6 }
 0x281   : > { %1934 = vst.msk [vmem:[%s3428_s3 + $0xe0] sm:$0xf] %vm1877_vm2, %v1869_v9 }
 0x282   : > { %1935 = vst.msk [vmem:[%s3428_s3 + $0xe4] sm:$0xf] %vm1877_vm2, %v1870_v11 }
 0x283   : > { %1936 = vst.msk [vmem:[%s3428_s3 + $0xe8] sm:$0xf] %vm1877_vm2, %v1871_v18 }
 0x284   : > { %1937 = vst.msk [vmem:[%s3428_s3 + $0xec] sm:$0xf] %vm1877_vm2, %v1872_v14 }
 0x285   : > { %1938 = vst.msk [vmem:[%s3428_s3 + $0xf0] sm:$0xf] %vm1877_vm2, %v1873_v16 }
 0x286   : > { %1939 = vst.msk [vmem:[%s3428_s3 + $0xf4] sm:$0xf] %vm1877_vm2, %v1874_v17 }
 0x287   : > { %1940 = vst.msk [vmem:[%s3428_s3 + $0xf8] sm:$0xf] %vm1877_vm2, %v1875_v19 }
 0x288   : > { %1941 = vst.msk [vmem:[%s3428_s3 + $0xfc] sm:$0xf] %vm1877_vm2, %v1876_v20 }
 0x289 PF: > { %s13_s16 = sadd.s32 1, %s2538_s16   ;;  %s3429_s12 = smov %s2526_s13 }
 0x28a   : > { %p10_p12 = scmp.ge.s32.totalorder %s13_s16, 7   ;;  %s3430_s13 = smov %s2596_s20 }
 0x28b   : > { %s3431_s14 = smov %s2534_s15  ;;  %s3432_s15 = smov %s3434_s17 }
 0x28c   :  { %12 = sbr.rel (!%p10_p12) target bundleno = 3 (0x3), region = 116 }

// kernel: lyft_densenet_forward.28
= control target key start
LH: loop header
LB: loop body
LE: loop exit
PB: predicated region body
PF: predicated region fallthrough
CT: control target
= control target key end

     0   :  { %vm296_vm0 = vcmask 130048   ;;  %vm585_vm1 = vcmask 125952   ;;  %s1539_s0 = inlined_call_operand.vmem [shape: bf16[9,128,16], index: 0, kind: input, shape index: {}]   ;;  %s1540_s1 = inlined_call_operand.vmem [shape: bf16[128,16], index: 1, kind: output, shape index: {}]  }
   0x1   :  { %v607_v0 = vld [vmem:[%s1539_s0] sm:$0xff]   ;;  %v1018_v35 = vld [vmem:[%s1539_s0 + $0x8] sm:$0xff]  }
   0x2   :  { %v901_v1 = vld [vmem:[%s1539_s0 + $0x40] sm:$0xff]   ;;  %v608_v3 = vunpack.c.l.bf16 %v607_v0  ;;  %v609_v19 = vunpack.c.h.bf16 %v607_v0  ;;  %v1023_v36 = vld [vmem:[%s1539_s0 + $0x48] sm:$0xff]   ;;  %v612_v49 = vunpack.c.l.bf16 %v1018_v35 }
   0x3   :  { %v909_v2 = vld [vmem:[%s1539_s0 + $0x80] sm:$0xff]   ;;  %v640_v4 = vunpack.c.l.bf16 %v901_v1  ;;  %v641_v20 = vunpack.c.h.bf16 %v901_v1  ;;  %v910_v41 = vld [vmem:[%s1539_s0 + $0x88] sm:$0xff]   ;;  %v644_v50 = vunpack.c.l.bf16 %v1023_v36 }
   0x4   :  { %v672_v5 = vunpack.c.l.bf16 %v909_v2  ;;  %v917_v6 = vld [vmem:[%s1539_s0 + $0xc0] sm:$0xff]   ;;  %v297_v16 = vsel %vm296_vm0, %v608_v3, -inf  ;;  %v673_v25 = vunpack.c.h.bf16 %v909_v2  ;;  %v314_v32 = vsel %vm296_vm0, %v609_v19, -inf  ;;  %v1031_v42 = vld [vmem:[%s1539_s0 + $0xc8] sm:$0xff]  }
   0x5   :  { %v925_v7 = vld [vmem:[%s1539_s0 + $0x100] sm:$0xff]   ;;  %v704_v9 = vunpack.c.l.bf16 %v917_v6  ;;  %v298_v17 = vsel %vm296_vm0, %v640_v4, -inf  ;;  %v705_v26 = vunpack.c.h.bf16 %v917_v6  ;;  %v315_v33 = vsel %vm296_vm0, %v641_v20, -inf  ;;  %v1041_v51 = vld [vmem:[%s1539_s0 + $0x108] sm:$0xff]  }
   0x6   :  { %v933_v8 = vld [vmem:[%s1539_s0 + $0x140] sm:$0xff]   ;;  %v736_v12 = vunpack.c.l.bf16 %v925_v7  ;;  %v300_v18 = vsel %vm296_vm0, %v672_v5, -inf  ;;  %v299_v22 = vmax.f32 %v297_v16, %v298_v17  ;;  %v737_v31 = vunpack.c.h.bf16 %v925_v7  ;;  %v1051_v60 = vld [vmem:[%s1539_s0 + $0x148] sm:$0xff]  }
   0x7   :  { %v941_v10 = vld [vmem:[%s1539_s0 + $0x180] sm:$0xff]   ;;  %v768_v13 = vunpack.c.l.bf16 %v933_v8  ;;  %v302_v24 = vsel %vm296_vm0, %v704_v9, -inf  ;;  %v317_v34 = vsel %vm296_vm0, %v673_v25, -inf  ;;  %v769_v38 = vunpack.c.h.bf16 %v933_v8  ;;  %v1056_v61 = vld [vmem:[%s1539_s0 + $0x188] sm:$0xff]  }
   0x8   :  { %v949_v11 = vld [vmem:[%s1539_s0 + $0x1c0] sm:$0xff]   ;;  %v800_v14 = vunpack.c.l.bf16 %v941_v10  ;;  %v301_v27 = vmax.f32 %v299_v22, %v300_v18  ;;  %v304_v28 = vsel %vm296_vm0, %v736_v12, -inf  ;;  %v801_v39 = vunpack.c.h.bf16 %v941_v10  ;;  %v1061_v62 = vld [vmem:[%s1539_s0 + $0x1c8] sm:$0xff]  }
   0x9   :  { %v1002_v15 = vld [vmem:[%s1539_s0 + $0x200] sm:$0xff]   ;;  %v832_v21 = vunpack.c.l.bf16 %v949_v11  ;;  %v306_v29 = vsel %vm296_vm0, %v768_v13, -inf  ;;  %v316_v40 = vmax.f32 %v314_v32, %v315_v33  ;;  %v833_v45 = vunpack.c.h.bf16 %v949_v11  ;;  %v1074_v10 = vld [vmem:[%s1539_s0 + $0x208] sm:$0xff]   ;;  %v1090_v32 = vld [vmem:[%s1539_s0 + $0x10] sm:$0xff]  }
   0xa   :  { %v864_v23 = vunpack.c.l.bf16 %v1002_v15  ;;  %v308_v30 = vsel %vm296_vm0, %v800_v14, -inf  ;;  %v303_v37 = vmax.f32 %v301_v27, %v302_v24  ;;  %v319_v46 = vsel %vm296_vm0, %v705_v26, -inf }
   0xb   :  { %v310_v43 = vsel %vm296_vm0, %v832_v21, -inf  ;;  %v318_v48 = vmax.f32 %v316_v40, %v317_v34  ;;  %v865_v52 = vunpack.c.h.bf16 %v1002_v15  ;;  %v321_v53 = vsel %vm296_vm0, %v737_v31, -inf }
   0xc   :  { %v312_v44 = vsel %vm296_vm0, %v864_v23, -inf  ;;  %v305_v47 = vmax.f32 %v303_v37, %v304_v28  ;;  %v676_v54 = vunpack.c.l.bf16 %v910_v41  ;;  %v708_v55 = vunpack.c.l.bf16 %v1031_v42  ;;  %v903_v37 = vld [vmem:[%s1539_s0 + $0x50] sm:$0xff]  }
   0xd   :  { %v320_v57 = vmax.f32 %v318_v48, %v319_v46  ;;  %v323_v58 = vsel %vm296_vm0, %v769_v38, -inf  ;;  %v325_v59 = vsel %vm296_vm0, %v801_v39, -inf  ;;  %v740_v63 = vunpack.c.l.bf16 %v1041_v51 }
   0xe   :  { %v307_v56 = vmax.f32 %v305_v47, %v306_v29  ;;  %v331_v0 = vsel %vm296_vm0, %v612_v49, -inf  ;;  %v332_v1 = vsel %vm296_vm0, %v644_v50, -inf  ;;  %v334_v2 = vsel %vm296_vm0, %v676_v54, -inf }
   0xf   :  { %v322_v4 = vmax.f32 %v320_v57, %v321_v53  ;;  %v327_v5 = vsel %vm296_vm0, %v833_v45, -inf  ;;  %v333_v6 = vmax.f32 %v331_v0, %v332_v1  ;;  %v772_v7 = vunpack.c.l.bf16 %v1051_v60  ;;  %v1142_v0 = vld [vmem:[%s1539_s0 + $0x1d0] sm:$0xff]  }
  0x10   :  { %v309_v3 = vmax.f32 %v307_v56, %v308_v30  ;;  %v804_v8 = vunpack.c.l.bf16 %v1056_v61  ;;  %v836_v9 = vunpack.c.l.bf16 %v1061_v62  ;;  %v336_v11 = vsel %vm296_vm0, %v708_v55, -inf }
  0x11   :  { %v324_v13 = vmax.f32 %v322_v4, %v323_v58  ;;  %v329_v14 = vsel %vm296_vm0, %v865_v52, -inf  ;;  %v335_v15 = vmax.f32 %v333_v6, %v334_v2  ;;  %v338_v16 = vsel %vm296_vm0, %v740_v63, -inf  ;;  %v1119_v52 = vld [vmem:[%s1539_s0 + $0x110] sm:$0xff]  }
  0x12   :  { %v311_v12 = vmax.f32 %v309_v3, %v310_v43  ;;  %v613_v17 = vunpack.c.h.bf16 %v1018_v35  ;;  %v645_v18 = vunpack.c.h.bf16 %v1023_v36  ;;  %v677_v19 = vunpack.c.h.bf16 %v910_v41  ;;  %v1110_v43 = vld [vmem:[%s1539_s0 + $0xd0] sm:$0xff]  }
  0x13   :  { %v326_v21 = vmax.f32 %v324_v13, %v325_v59  ;;  %v868_v22 = vunpack.c.l.bf16 %v1074_v10  ;;  %v337_v23 = vmax.f32 %v335_v15, %v336_v11  ;;  %v340_v24 = vsel %vm296_vm0, %v772_v7, -inf  ;;  %v959_v11 = vld [vmem:[%s1539_s0 + $0x210] sm:$0xff]  }
  0x14   :  { %v313_v20 = vmax.f32 %v311_v12, %v312_v44  ;;  %v342_v25 = vsel %vm296_vm0, %v804_v8, -inf  ;;  %v344_v26 = vsel %vm296_vm0, %v836_v9, -inf  ;;  %v709_v27 = vunpack.c.h.bf16 %v1031_v42  ;;  %v911_v42 = vld [vmem:[%s1539_s0 + $0x90] sm:$0xff]  }
  0x15   :  { %v328_v29 = vmax.f32 %v326_v21, %v327_v5  ;;  %v339_v30 = vmax.f32 %v337_v23, %v338_v16  ;;  %v348_v31 = vsel %vm296_vm0, %v613_v17, -inf  ;;  %v741_v33 = vunpack.c.h.bf16 %v1041_v51 }
  0x16   :  { %v569_v28 = vpack.c.bf16 %v313_v20, %v313_v20  ;;  %v773_v34 = vunpack.c.h.bf16 %v1051_v60  ;;  %v349_v35 = vsel %vm296_vm0, %v645_v18, -inf  ;;  %v351_v36 = vsel %vm296_vm0, %v677_v19, -inf }
  0x17   :  { %v330_v38 = vmax.f32 %v328_v29, %v329_v14  ;;  %v341_v39 = vmax.f32 %v339_v30, %v340_v24  ;;  %v805_v40 = vunpack.c.h.bf16 %v1056_v61  ;;  %v350_v41 = vmax.f32 %v348_v31, %v349_v35  ;;  %v935_v61 = vld [vmem:[%s1539_s0 + $0x150] sm:$0xff]  }
  0x18   :  { %586 = vst.msk [vmem:[%s1540_s1] sm:$0xf] %vm585_vm1, %v569_v28  ;;  %v346_v44 = vsel %vm296_vm0, %v868_v22, -inf  ;;  %v837_v45 = vunpack.c.h.bf16 %v1061_v62  ;;  %v353_v46 = vsel %vm296_vm0, %v709_v27, -inf  ;;  %v616_v47 = vunpack.c.l.bf16 %v1090_v32  ;;  %v1136_v62 = vld [vmem:[%s1539_s0 + $0x190] sm:$0xff]  }
  0x19   :  { %v570_v48 = vpack.c.bf16 %v330_v38, %v330_v38  ;;  %v343_v49 = vmax.f32 %v341_v39, %v342_v25  ;;  %v352_v50 = vmax.f32 %v350_v41, %v351_v36  ;;  %v648_v51 = vunpack.c.l.bf16 %v903_v37  ;;  %v912_v39 = vld [vmem:[%s1539_s0 + $0x98] sm:$0xff]  }
  0x1a   :  { %v869_v53 = vunpack.c.h.bf16 %v1074_v10  ;;  %v355_v54 = vsel %vm296_vm0, %v741_v33, -inf  ;;  %v680_v55 = vunpack.c.l.bf16 %v911_v42  ;;  %v712_v56 = vunpack.c.l.bf16 %v1110_v43  ;;  %v896_v33 = vld [vmem:[%s1539_s0 + $0x18] sm:$0xff]  }
  0x1b   :  { %587 = vst.msk [vmem:[%s1540_s1 + $0x4] sm:$0xf] %vm585_vm1, %v570_v48  ;;  %v345_v57 = vmax.f32 %v343_v49, %v344_v26  ;;  %v354_v58 = vmax.f32 %v352_v50, %v353_v46  ;;  %v357_v59 = vsel %vm296_vm0, %v773_v34, -inf  ;;  %v359_v60 = vsel %vm296_vm0, %v805_v40, -inf  ;;  %v904_v34 = vld [vmem:[%s1539_s0 + $0x58] sm:$0xff]  }
  0x1c   :  { %v744_v63 = vunpack.c.l.bf16 %v1119_v52  ;;  %v365_v1 = vsel %vm296_vm0, %v616_v47, -inf  ;;  %v366_v2 = vsel %vm296_vm0, %v648_v51, -inf  ;;  %v368_v3 = vsel %vm296_vm0, %v680_v55, -inf }
  0x1d   :  { %v347_v4 = vmax.f32 %v345_v57, %v346_v44  ;;  %v356_v5 = vmax.f32 %v354_v58, %v355_v54  ;;  %v361_v6 = vsel %vm296_vm0, %v837_v45, -inf  ;;  %v367_v7 = vmax.f32 %v365_v1, %v366_v2  ;;  %v1184_v44 = vld [vmem:[%s1539_s0 + $0xd8] sm:$0xff]  }
  0x1e   :  { %v363_v8 = vsel %vm296_vm0, %v869_v53, -inf  ;;  %v776_v9 = vunpack.c.l.bf16 %v935_v61  ;;  %v808_v10 = vunpack.c.l.bf16 %v1136_v62  ;;  %v370_v12 = vsel %vm296_vm0, %v712_v56, -inf  ;;  %v928_v53 = vld [vmem:[%s1539_s0 + $0x118] sm:$0xff]  }
  0x1f   :  { %v571_v13 = vpack.c.bf16 %v347_v4, %v347_v4  ;;  %v358_v14 = vmax.f32 %v356_v5, %v357_v59  ;;  %v840_v15 = vunpack.c.l.bf16 %v1142_v0  ;;  %v369_v16 = vmax.f32 %v367_v7, %v368_v3  ;;  %v1196_v58 = vld [vmem:[%s1539_s0 + $0x158] sm:$0xff]  }
  0x20   :  { %v372_v17 = vsel %vm296_vm0, %v744_v63, -inf  ;;  %v617_v18 = vunpack.c.h.bf16 %v1090_v32  ;;  %v649_v19 = vunpack.c.h.bf16 %v903_v37  ;;  %v681_v20 = vunpack.c.h.bf16 %v911_v42  ;;  %v1201_v59 = vld [vmem:[%s1539_s0 + $0x198] sm:$0xff]  }
  0x21   :  { %588 = vst.msk [vmem:[%s1540_s1 + $0x8] sm:$0xf] %vm585_vm1, %v571_v13  ;;  %v360_v21 = vmax.f32 %v358_v14, %v359_v60  ;;  %v872_v22 = vunpack.c.l.bf16 %v959_v11  ;;  %v371_v23 = vmax.f32 %v369_v16, %v370_v12  ;;  %v713_v24 = vunpack.c.h.bf16 %v1110_v43  ;;  %v1212_v63 = vld [vmem:[%s1539_s0 + $0x1d8] sm:$0xff]  }
  0x22   :  { %v374_v25 = vsel %vm296_vm0, %v776_v9, -inf  ;;  %v376_v26 = vsel %vm296_vm0, %v808_v10, -inf  ;;  %v745_v27 = vunpack.c.h.bf16 %v1119_v52  ;;  %v382_v28 = vsel %vm296_vm0, %v617_v18, -inf  ;;  %v1224_v12 = vld [vmem:[%s1539_s0 + $0x218] sm:$0xff]  }
  0x23   :  { %v362_v29 = vmax.f32 %v360_v21, %v361_v6  ;;  %v373_v30 = vmax.f32 %v371_v23, %v372_v17  ;;  %v383_v31 = vsel %vm296_vm0, %v649_v19, -inf  ;;  %v385_v32 = vsel %vm296_vm0, %v681_v20, -inf }
  0x24   :  { %v378_v35 = vsel %vm296_vm0, %v840_v15, -inf  ;;  %v777_v36 = vunpack.c.h.bf16 %v935_v61  ;;  %v809_v37 = vunpack.c.h.bf16 %v1136_v62  ;;  %v384_v38 = vmax.f32 %v382_v28, %v383_v31 }
  0x25   :  { %v364_v40 = vmax.f32 %v362_v29, %v363_v8  ;;  %v375_v41 = vmax.f32 %v373_v30, %v374_v25  ;;  %v841_v42 = vunpack.c.h.bf16 %v1142_v0  ;;  %v387_v43 = vsel %vm296_vm0, %v713_v24, -inf }
  0x26   :  { %v873_v45 = vunpack.c.h.bf16 %v959_v11  ;;  %v386_v46 = vmax.f32 %v384_v38, %v385_v32  ;;  %v620_v47 = vunpack.c.l.bf16 %v896_v33  ;;  %v652_v48 = vunpack.c.l.bf16 %v904_v34 }
  0x27   :  { %v572_v49 = vpack.c.bf16 %v364_v40, %v364_v40  ;;  %v377_v50 = vmax.f32 %v375_v41, %v376_v26  ;;  %v389_v51 = vsel %vm296_vm0, %v745_v27, -inf  ;;  %v684_v52 = vunpack.c.l.bf16 %v912_v39  ;;  %v1255_v41 = vld [vmem:[%s1539_s0 + $0xe0] sm:$0xff]  }
  0x28   :  { %v380_v54 = vsel %vm296_vm0, %v872_v22, -inf  ;;  %v388_v55 = vmax.f32 %v386_v46, %v387_v43  ;;  %v391_v56 = vsel %vm296_vm0, %v777_v36, -inf  ;;  %v716_v57 = vunpack.c.l.bf16 %v1184_v44  ;;  %v913_v36 = vld [vmem:[%s1539_s0 + $0xa0] sm:$0xff]  }
  0x29   :  { %589 = vst.msk [vmem:[%s1540_s1 + $0xc] sm:$0xf] %vm585_vm1, %v572_v49  ;;  %v379_v60 = vmax.f32 %v377_v50, %v378_v35  ;;  %v393_v61 = vsel %vm296_vm0, %v809_v37, -inf  ;;  %v395_v62 = vsel %vm296_vm0, %v841_v42, -inf  ;;  %v399_v0 = vsel %vm296_vm0, %v620_v47, -inf  ;;  %v905_v35 = vld [vmem:[%s1539_s0 + $0x60] sm:$0xff]  }
  0x2a   :  { %v390_v1 = vmax.f32 %v388_v55, %v389_v51  ;;  %v748_v2 = vunpack.c.l.bf16 %v928_v53  ;;  %v400_v3 = vsel %vm296_vm0, %v652_v48, -inf  ;;  %v402_v4 = vsel %vm296_vm0, %v684_v52, -inf  ;;  %v1262_v46 = vld [vmem:[%s1539_s0 + $0x120] sm:$0xff]  }
  0x2b   :  { %v381_v5 = vmax.f32 %v379_v60, %v380_v54  ;;  %v397_v6 = vsel %vm296_vm0, %v873_v45, -inf  ;;  %v780_v7 = vunpack.c.l.bf16 %v1196_v58  ;;  %v401_v8 = vmax.f32 %v399_v0, %v400_v3  ;;  %v1269_v55 = vld [vmem:[%s1539_s0 + $0x160] sm:$0xff]  }
  0x2c   :  { %v392_v9 = vmax.f32 %v390_v1, %v391_v56  ;;  %v812_v10 = vunpack.c.l.bf16 %v1201_v59  ;;  %v844_v11 = vunpack.c.l.bf16 %v1212_v63  ;;  %v404_v13 = vsel %vm296_vm0, %v716_v57, -inf  ;;  %v1282_v60 = vld [vmem:[%s1539_s0 + $0x1a0] sm:$0xff]  }
  0x2d   :  { %v573_v14 = vpack.c.bf16 %v381_v5, %v381_v5  ;;  %v403_v15 = vmax.f32 %v401_v8, %v402_v4  ;;  %v621_v16 = vunpack.c.h.bf16 %v896_v33  ;;  %v653_v17 = vunpack.c.h.bf16 %v904_v34  ;;  %v897_v34 = vld [vmem:[%s1539_s0 + $0x20] sm:$0xff]  }
  0x2e   :  { %v394_v18 = vmax.f32 %v392_v9, %v393_v61  ;;  %v406_v19 = vsel %vm296_vm0, %v748_v2, -inf  ;;  %v685_v20 = vunpack.c.h.bf16 %v912_v39  ;;  %v717_v21 = vunpack.c.h.bf16 %v1184_v44  ;;  %v961_v9 = vld [vmem:[%s1539_s0 + $0x220] sm:$0xff]  }
  0x2f   :  { %590 = vst.msk [vmem:[%s1540_s1 + $0x10] sm:$0xf] %vm585_vm1, %v573_v14  ;;  %v876_v22 = vunpack.c.l.bf16 %v1224_v12  ;;  %v405_v23 = vmax.f32 %v403_v15, %v404_v13  ;;  %v408_v24 = vsel %vm296_vm0, %v780_v7, -inf  ;;  %v749_v25 = vunpack.c.h.bf16 %v928_v53 }
  0x30   :  { %v396_v26 = vmax.f32 %v394_v18, %v395_v62  ;;  %v410_v27 = vsel %vm296_vm0, %v812_v10, -inf  ;;  %v416_v28 = vsel %vm296_vm0, %v621_v16, -inf  ;;  %v417_v29 = vsel %vm296_vm0, %v653_v17, -inf }
  0x31   :  { %v407_v30 = vmax.f32 %v405_v23, %v406_v19  ;;  %v412_v31 = vsel %vm296_vm0, %v844_v11, -inf  ;;  %v418_v32 = vmax.f32 %v416_v28, %v417_v29  ;;  %v419_v33 = vsel %vm296_vm0, %v685_v20, -inf }
  0x32   :  { %v398_v37 = vmax.f32 %v396_v26, %v397_v6  ;;  %v781_v38 = vunpack.c.h.bf16 %v1196_v58  ;;  %v813_v39 = vunpack.c.h.bf16 %v1201_v59  ;;  %v421_v40 = vsel %vm296_vm0, %v717_v21, -inf }
  0x33   :  { %v409_v42 = vmax.f32 %v407_v30, %v408_v24  ;;  %v845_v43 = vunpack.c.h.bf16 %v1212_v63  ;;  %v420_v44 = vmax.f32 %v418_v32, %v419_v33  ;;  %v423_v45 = vsel %vm296_vm0, %v749_v25, -inf  ;;  %v1287_v63 = vld [vmem:[%s1539_s0 + $0x1e0] sm:$0xff]  }
  0x34   :  { %v574_v47 = vpack.c.bf16 %v398_v37, %v398_v37  ;;  %v624_v48 = vunpack.c.l.bf16 %v897_v34  ;;  %v656_v49 = vunpack.c.l.bf16 %v905_v35  ;;  %v688_v50 = vunpack.c.l.bf16 %v913_v36  ;;  %v914_v37 = vld [vmem:[%s1539_s0 + $0xa8] sm:$0xff]  }
  0x35   :  { %v411_v51 = vmax.f32 %v409_v42, %v410_v27  ;;  %v414_v52 = vsel %vm296_vm0, %v876_v22, -inf  ;;  %v422_v53 = vmax.f32 %v420_v44, %v421_v40  ;;  %v720_v54 = vunpack.c.l.bf16 %v1255_v41  ;;  %v1330_v42 = vld [vmem:[%s1539_s0 + $0xe8] sm:$0xff]  }
  0x36   :  { %591 = vst.msk [vmem:[%s1540_s1 + $0x14] sm:$0xf] %vm585_vm1, %v574_v47  ;;  %v877_v56 = vunpack.c.h.bf16 %v1224_v12  ;;  %v425_v57 = vsel %vm296_vm0, %v781_v38, -inf  ;;  %v427_v58 = vsel %vm296_vm0, %v813_v39, -inf  ;;  %v752_v59 = vunpack.c.l.bf16 %v1262_v46 }
  0x37   :  { %v413_v61 = vmax.f32 %v411_v51, %v412_v31  ;;  %v424_v62 = vmax.f32 %v422_v53, %v423_v45  ;;  %v433_v0 = vsel %vm296_vm0, %v624_v48, -inf  ;;  %v434_v1 = vsel %vm296_vm0, %v656_v49, -inf  ;;  %v898_v31 = vld [vmem:[%s1539_s0 + $0x28] sm:$0xff]  }
  0x38   :  { %v429_v2 = vsel %vm296_vm0, %v845_v43, -inf  ;;  %v784_v3 = vunpack.c.l.bf16 %v1269_v55  ;;  %v435_v4 = vmax.f32 %v433_v0, %v434_v1  ;;  %v436_v5 = vsel %vm296_vm0, %v688_v50, -inf  ;;  %v930_v51 = vld [vmem:[%s1539_s0 + $0x128] sm:$0xff]  }
  0x39   :  { %v415_v6 = vmax.f32 %v413_v61, %v414_v52  ;;  %v426_v7 = vmax.f32 %v424_v62, %v425_v57  ;;  %v816_v8 = vunpack.c.l.bf16 %v1282_v60  ;;  %v438_v10 = vsel %vm296_vm0, %v720_v54, -inf  ;;  %v1358_v61 = vld [vmem:[%s1539_s0 + $0x1e8] sm:$0xff]  }
  0x3a   :  { %v848_v11 = vunpack.c.l.bf16 %v1287_v63  ;;  %v437_v12 = vmax.f32 %v435_v4, %v436_v5  ;;  %v440_v13 = vsel %vm296_vm0, %v752_v59, -inf  ;;  %v625_v14 = vunpack.c.h.bf16 %v897_v34 }
  0x3b   :  { %v575_v15 = vpack.c.bf16 %v415_v6, %v415_v6  ;;  %v428_v16 = vmax.f32 %v426_v7, %v427_v58  ;;  %v657_v17 = vunpack.c.h.bf16 %v905_v35  ;;  %v689_v18 = vunpack.c.h.bf16 %v913_v36  ;;  %v906_v36 = vld [vmem:[%s1539_s0 + $0x68] sm:$0xff]  }
  0x3c   :  { %v431_v19 = vsel %vm296_vm0, %v877_v56, -inf  ;;  %v880_v20 = vunpack.c.l.bf16 %v961_v9  ;;  %v439_v21 = vmax.f32 %v437_v12, %v438_v10  ;;  %v721_v22 = vunpack.c.h.bf16 %v1255_v41  ;;  %v1346_v56 = vld [vmem:[%s1539_s0 + $0x168] sm:$0xff]  }
  0x3d   :  { %592 = vst.msk [vmem:[%s1540_s1 + $0x18] sm:$0xf] %vm585_vm1, %v575_v15  ;;  %v430_v23 = vmax.f32 %v428_v16, %v429_v2  ;;  %v442_v24 = vsel %vm296_vm0, %v784_v3, -inf  ;;  %v444_v25 = vsel %vm296_vm0, %v816_v8, -inf  ;;  %v753_v26 = vunpack.c.h.bf16 %v1262_v46  ;;  %v1370_v10 = vld [vmem:[%s1539_s0 + $0x228] sm:$0xff]  }
  0x3e   :  { %v441_v27 = vmax.f32 %v439_v21, %v440_v13  ;;  %v450_v28 = vsel %vm296_vm0, %v625_v14, -inf  ;;  %v451_v29 = vsel %vm296_vm0, %v657_v17, -inf  ;;  %v453_v30 = vsel %vm296_vm0, %v689_v18, -inf }
  0x3f   :  { %v432_v32 = vmax.f32 %v430_v23, %v431_v19  ;;  %v446_v33 = vsel %vm296_vm0, %v848_v11, -inf  ;;  %v785_v34 = vunpack.c.h.bf16 %v1269_v55  ;;  %v452_v35 = vmax.f32 %v450_v28, %v451_v29 }
  0x40   :  { %v443_v38 = vmax.f32 %v441_v27, %v442_v24  ;;  %v817_v39 = vunpack.c.h.bf16 %v1282_v60  ;;  %v849_v40 = vunpack.c.h.bf16 %v1287_v63  ;;  %v455_v41 = vsel %vm296_vm0, %v721_v22, -inf  ;;  %v1353_v60 = vld [vmem:[%s1539_s0 + $0x1a8] sm:$0xff]  }
  0x41   :  { %v576_v43 = vpack.c.bf16 %v432_v32, %v432_v32  ;;  %v881_v44 = vunpack.c.h.bf16 %v961_v9  ;;  %v454_v45 = vmax.f32 %v452_v35, %v453_v30  ;;  %v628_v46 = vunpack.c.l.bf16 %v898_v31  ;;  %v899_v32 = vld [vmem:[%s1539_s0 + $0x30] sm:$0xff]  }
  0x42   :  { %v445_v47 = vmax.f32 %v443_v38, %v444_v25  ;;  %v457_v48 = vsel %vm296_vm0, %v753_v26, -inf  ;;  %v660_v49 = vunpack.c.l.bf16 %v906_v36  ;;  %v692_v50 = vunpack.c.l.bf16 %v914_v37 }
  0x43   :  { %593 = vst.msk [vmem:[%s1540_s1 + $0x1c] sm:$0xf] %vm585_vm1, %v576_v43  ;;  %v448_v52 = vsel %vm296_vm0, %v880_v20, -inf  ;;  %v456_v53 = vmax.f32 %v454_v45, %v455_v41  ;;  %v459_v54 = vsel %vm296_vm0, %v785_v34, -inf  ;;  %v724_v55 = vunpack.c.l.bf16 %v1330_v42  ;;  %v915_v34 = vld [vmem:[%s1539_s0 + $0xb0] sm:$0xff]  }
  0x44   :  { %v447_v57 = vmax.f32 %v445_v47, %v446_v33  ;;  %v461_v58 = vsel %vm296_vm0, %v817_v39, -inf  ;;  %v463_v59 = vsel %vm296_vm0, %v849_v40, -inf  ;;  %v467_v62 = vsel %vm296_vm0, %v628_v46, -inf  ;;  %v907_v33 = vld [vmem:[%s1539_s0 + $0x70] sm:$0xff]  }
  0x45   :  { %v458_v63 = vmax.f32 %v456_v53, %v457_v48  ;;  %v756_v0 = vunpack.c.l.bf16 %v930_v51  ;;  %v468_v1 = vsel %vm296_vm0, %v660_v49, -inf  ;;  %v470_v2 = vsel %vm296_vm0, %v692_v50, -inf  ;;  %v1401_v39 = vld [vmem:[%s1539_s0 + $0xf0] sm:$0xff]  }
  0x46   :  { %v449_v3 = vmax.f32 %v447_v57, %v448_v52  ;;  %v465_v4 = vsel %vm296_vm0, %v881_v44, -inf  ;;  %v788_v5 = vunpack.c.l.bf16 %v1346_v56  ;;  %v469_v6 = vmax.f32 %v467_v62, %v468_v1  ;;  %v1408_v44 = vld [vmem:[%s1539_s0 + $0x130] sm:$0xff]  }
  0x47   :  { %v460_v7 = vmax.f32 %v458_v63, %v459_v54  ;;  %v820_v8 = vunpack.c.l.bf16 %v1353_v60  ;;  %v852_v9 = vunpack.c.l.bf16 %v1358_v61  ;;  %v472_v11 = vsel %vm296_vm0, %v724_v55, -inf }
  0x48   :  { %v577_v12 = vpack.c.bf16 %v449_v3, %v449_v3  ;;  %v471_v13 = vmax.f32 %v469_v6, %v470_v2  ;;  %v629_v14 = vunpack.c.h.bf16 %v898_v31  ;;  %v661_v15 = vunpack.c.h.bf16 %v906_v36 }
  0x49   :  { %v462_v16 = vmax.f32 %v460_v7, %v461_v58  ;;  %v474_v17 = vsel %vm296_vm0, %v756_v0, -inf  ;;  %v693_v18 = vunpack.c.h.bf16 %v914_v37  ;;  %v725_v19 = vunpack.c.h.bf16 %v1330_v42 }
  0x4a   :  { %594 = vst.msk [vmem:[%s1540_s1 + $0x20] sm:$0xf] %vm585_vm1, %v577_v12  ;;  %v884_v20 = vunpack.c.l.bf16 %v1370_v10  ;;  %v473_v21 = vmax.f32 %v471_v13, %v472_v11  ;;  %v476_v22 = vsel %vm296_vm0, %v788_v5, -inf  ;;  %v757_v23 = vunpack.c.h.bf16 %v930_v51  ;;  %v1438_v5 = vld [vmem:[%s1539_s0 + $0x1f0] sm:$0xff]  }
  0x4b   :  { %v464_v24 = vmax.f32 %v462_v16, %v463_v59  ;;  %v478_v25 = vsel %vm296_vm0, %v820_v8, -inf  ;;  %v484_v26 = vsel %vm296_vm0, %v629_v14, -inf  ;;  %v485_v27 = vsel %vm296_vm0, %v661_v15, -inf  ;;  %v1427_v59 = vld [vmem:[%s1539_s0 + $0x1b0] sm:$0xff]  }
  0x4c   :  { %v475_v28 = vmax.f32 %v473_v21, %v474_v17  ;;  %v480_v29 = vsel %vm296_vm0, %v852_v9, -inf  ;;  %v486_v30 = vmax.f32 %v484_v26, %v485_v27  ;;  %v487_v31 = vsel %vm296_vm0, %v693_v18, -inf  ;;  %v1448_v17 = vld [vmem:[%s1539_s0 + $0x230] sm:$0xff]   ;;  %v900_v27 = vld [vmem:[%s1539_s0 + $0x38] sm:$0xff]  }
  0x4d   :  { %v466_v35 = vmax.f32 %v464_v24, %v465_v4  ;;  %v789_v36 = vunpack.c.h.bf16 %v1346_v56  ;;  %v821_v37 = vunpack.c.h.bf16 %v1353_v60  ;;  %v489_v38 = vsel %vm296_vm0, %v725_v19, -inf  ;;  %v1422_v56 = vld [vmem:[%s1539_s0 + $0x170] sm:$0xff]  }
  0x4e   :  { %v477_v40 = vmax.f32 %v475_v28, %v476_v22  ;;  %v853_v41 = vunpack.c.h.bf16 %v1358_v61  ;;  %v488_v42 = vmax.f32 %v486_v30, %v487_v31  ;;  %v491_v43 = vsel %vm296_vm0, %v757_v23, -inf }
  0x4f   :  { %v578_v45 = vpack.c.bf16 %v466_v35, %v466_v35  ;;  %v632_v46 = vunpack.c.l.bf16 %v899_v32  ;;  %v664_v47 = vunpack.c.l.bf16 %v907_v33  ;;  %v696_v48 = vunpack.c.l.bf16 %v915_v34 }
  0x50   :  { %v479_v49 = vmax.f32 %v477_v40, %v478_v25  ;;  %v490_v50 = vmax.f32 %v488_v42, %v489_v38  ;;  %v728_v51 = vunpack.c.l.bf16 %v1401_v39  ;;  %v482_v52 = vsel %vm296_vm0, %v884_v20, -inf  ;;  %v924_v38 = vld [vmem:[%s1539_s0 + $0xf8] sm:$0xff]  }
  0x51   :  { %595 = vst.msk [vmem:[%s1540_s1 + $0x24] sm:$0xf] %vm585_vm1, %v578_v45  ;;  %v885_v53 = vunpack.c.h.bf16 %v1370_v10  ;;  %v493_v54 = vsel %vm296_vm0, %v789_v36, -inf  ;;  %v760_v55 = vunpack.c.l.bf16 %v1408_v44  ;;  %v501_v60 = vsel %vm296_vm0, %v632_v46, -inf }
  0x52   :  { %v481_v57 = vmax.f32 %v479_v49, %v480_v29  ;;  %v492_v58 = vmax.f32 %v490_v50, %v491_v43  ;;  %v502_v61 = vsel %vm296_vm0, %v664_v47, -inf  ;;  %v495_v62 = vsel %vm296_vm0, %v821_v37, -inf  ;;  %v932_v47 = vld [vmem:[%s1539_s0 + $0x138] sm:$0xff]  }
  0x53   :  { %v497_v63 = vsel %vm296_vm0, %v853_v41, -inf  ;;  %v503_v0 = vmax.f32 %v501_v60, %v502_v61  ;;  %v504_v1 = vsel %vm296_vm0, %v696_v48, -inf  ;;  %v792_v4 = vunpack.c.l.bf16 %v1422_v56 }
  0x54   :  { %v483_v2 = vmax.f32 %v481_v57, %v482_v52  ;;  %v494_v3 = vmax.f32 %v492_v58, %v493_v54  ;;  %v506_v6 = vsel %vm296_vm0, %v728_v51, -inf  ;;  %v824_v7 = vunpack.c.l.bf16 %v1427_v59  ;;  %v940_v52 = vld [vmem:[%s1539_s0 + $0x178] sm:$0xff]  }
  0x55   :  { %v505_v8 = vmax.f32 %v503_v0, %v504_v1  ;;  %v508_v9 = vsel %vm296_vm0, %v760_v55, -inf  ;;  %v633_v10 = vunpack.c.h.bf16 %v899_v32  ;;  %v665_v13 = vunpack.c.h.bf16 %v907_v33  ;;  %v908_v32 = vld [vmem:[%s1539_s0 + $0x78] sm:$0xff]  }
  0x56   :  { %v579_v11 = vpack.c.bf16 %v483_v2, %v483_v2  ;;  %v496_v12 = vmax.f32 %v494_v3, %v495_v62  ;;  %v697_v14 = vunpack.c.h.bf16 %v915_v34  ;;  %v499_v15 = vsel %vm296_vm0, %v885_v53, -inf  ;;  %v916_v33 = vld [vmem:[%s1539_s0 + $0xb8] sm:$0xff]  }
  0x57   :  { %v856_v16 = vunpack.c.l.bf16 %v1438_v5  ;;  %v507_v18 = vmax.f32 %v505_v8, %v506_v6  ;;  %v729_v19 = vunpack.c.h.bf16 %v1401_v39  ;;  %v510_v21 = vsel %vm296_vm0, %v792_v4, -inf }
  0x58   :  { %596 = vst.msk [vmem:[%s1540_s1 + $0x28] sm:$0xf] %vm585_vm1, %v579_v11  ;;  %v498_v20 = vmax.f32 %v496_v12, %v497_v63  ;;  %v761_v22 = vunpack.c.h.bf16 %v1408_v44  ;;  %v518_v24 = vsel %vm296_vm0, %v633_v10, -inf  ;;  %v519_v25 = vsel %vm296_vm0, %v665_v13, -inf  ;;  %v964_v12 = vld [vmem:[%s1539_s0 + $0x238] sm:$0xff]  }
  0x59   :  { %v509_v23 = vmax.f32 %v507_v18, %v508_v9  ;;  %v521_v26 = vsel %vm296_vm0, %v697_v14, -inf  ;;  %v888_v29 = vunpack.c.l.bf16 %v1448_v17  ;;  %v512_v30 = vsel %vm296_vm0, %v824_v7, -inf }
  0x5a   :  { %v500_v28 = vmax.f32 %v498_v20, %v499_v15  ;;  %v520_v31 = vmax.f32 %v518_v24, %v519_v25  ;;  %v514_v35 = vsel %vm296_vm0, %v856_v16, -inf  ;;  %v793_v36 = vunpack.c.h.bf16 %v1422_v56  ;;  %v948_v56 = vld [vmem:[%s1539_s0 + $0x1b8] sm:$0xff]  }
  0x5b   :  { %v511_v34 = vmax.f32 %v509_v23, %v510_v21  ;;  %v523_v37 = vsel %vm296_vm0, %v729_v19, -inf  ;;  %v825_v40 = vunpack.c.h.bf16 %v1427_v59  ;;  %v636_v42 = vunpack.c.l.bf16 %v900_v27 }
  0x5c   :  { %v580_v39 = vpack.c.bf16 %v500_v28, %v500_v28  ;;  %v522_v41 = vmax.f32 %v520_v31, %v521_v26  ;;  %v525_v44 = vsel %vm296_vm0, %v761_v22, -inf  ;;  %v668_v45 = vunpack.c.l.bf16 %v908_v32 }
  0x5d   :  { %v513_v43 = vmax.f32 %v511_v34, %v512_v30  ;;  %v700_v46 = vunpack.c.l.bf16 %v916_v33  ;;  %v516_v48 = vsel %vm296_vm0, %v888_v29, -inf  ;;  %v857_v49 = vunpack.c.h.bf16 %v1438_v5  ;;  %v956_v5 = vld [vmem:[%s1539_s0 + $0x1f8] sm:$0xff]  }
  0x5e   :  { %597 = vst.msk [vmem:[%s1540_s1 + $0x2c] sm:$0xf] %vm585_vm1, %v580_v39  ;;  %v524_v50 = vmax.f32 %v522_v41, %v523_v37  ;;  %v732_v51 = vunpack.c.l.bf16 %v924_v38  ;;  %v889_v54 = vunpack.c.h.bf16 %v1448_v17  ;;  %v527_v55 = vsel %vm296_vm0, %v793_v36, -inf }
  0x5f   :  { %v515_v53 = vmax.f32 %v513_v43, %v514_v35  ;;  %v535_v57 = vsel %vm296_vm0, %v636_v42, -inf  ;;  %v764_v59 = vunpack.c.l.bf16 %v932_v47  ;;  %v536_v60 = vsel %vm296_vm0, %v668_v45, -inf }
  0x60   :  { %v526_v58 = vmax.f32 %v524_v50, %v525_v44  ;;  %v538_v61 = vsel %vm296_vm0, %v700_v46, -inf  ;;  %v529_v63 = vsel %vm296_vm0, %v825_v40, -inf  ;;  %v796_v0 = vunpack.c.l.bf16 %v940_v52 }
  0x61   :  { %v517_v62 = vmax.f32 %v515_v53, %v516_v48  ;;  %v537_v1 = vmax.f32 %v535_v57, %v536_v60  ;;  %v531_v3 = vsel %vm296_vm0, %v857_v49, -inf  ;;  %v828_v4 = vunpack.c.l.bf16 %v948_v56 }
  0x62   :  { %v528_v2 = vmax.f32 %v526_v58, %v527_v55  ;;  %v540_v6 = vsel %vm296_vm0, %v732_v51, -inf  ;;  %v637_v9 = vunpack.c.h.bf16 %v900_v27  ;;  %v669_v10 = vunpack.c.h.bf16 %v908_v32 }
  0x63   :  { %v581_v7 = vpack.c.bf16 %v517_v62, %v517_v62  ;;  %v539_v8 = vmax.f32 %v537_v1, %v538_v61  ;;  %v542_v13 = vsel %vm296_vm0, %v764_v59, -inf  ;;  %v701_v14 = vunpack.c.h.bf16 %v916_v33 }
  0x64   :  { %v530_v11 = vmax.f32 %v528_v2, %v529_v63  ;;  %v733_v15 = vunpack.c.h.bf16 %v924_v38  ;;  %v533_v16 = vsel %vm296_vm0, %v889_v54, -inf  ;;  %v860_v17 = vunpack.c.l.bf16 %v956_v5 }
  0x65   :  { %598 = vst.msk [vmem:[%s1540_s1 + $0x30] sm:$0xf] %vm585_vm1, %v581_v7  ;;  %v541_v18 = vmax.f32 %v539_v8, %v540_v6  ;;  %v544_v19 = vsel %vm296_vm0, %v796_v0, -inf  ;;  %v765_v21 = vunpack.c.h.bf16 %v932_v47  ;;  %v552_v22 = vsel %vm296_vm0, %v637_v9, -inf }
  0x66   :  { %v532_v20 = vmax.f32 %v530_v11, %v531_v3  ;;  %v553_v23 = vsel %vm296_vm0, %v669_v10, -inf  ;;  %v892_v24 = vunpack.c.l.bf16 %v964_v12  ;;  %v555_v27 = vsel %vm296_vm0, %v701_v14, -inf }
  0x67   :  { %v543_v25 = vmax.f32 %v541_v18, %v542_v13  ;;  %v554_v26 = vmax.f32 %v552_v22, %v553_v23  ;;  %v546_v29 = vsel %vm296_vm0, %v828_v4, -inf  ;;  %v797_v30 = vunpack.c.h.bf16 %v940_v52 }
  0x68   :  { %v534_v28 = vmax.f32 %v532_v20, %v533_v16  ;;  %v557_v31 = vsel %vm296_vm0, %v733_v15, -inf  ;;  %v548_v35 = vsel %vm296_vm0, %v860_v17, -inf  ;;  %v829_v36 = vunpack.c.h.bf16 %v948_v56 }
  0x69   :  { %v545_v32 = vmax.f32 %v543_v25, %v544_v19  ;;  %v556_v33 = vmax.f32 %v554_v26, %v555_v27  ;;  %v559_v37 = vsel %vm296_vm0, %v765_v21, -inf  ;;  %v550_v40 = vsel %vm296_vm0, %v892_v24, -inf }
  0x6a   :  { %v582_v34 = vpack.c.bf16 %v534_v28, %v534_v28  ;;  %v861_v41 = vunpack.c.h.bf16 %v956_v5  ;;  %v561_v42 = vsel %vm296_vm0, %v797_v30, -inf  ;;  %v893_v45 = vunpack.c.h.bf16 %v964_v12 }
  0x6b   :  { %v547_v38 = vmax.f32 %v545_v32, %v546_v29  ;;  %v558_v39 = vmax.f32 %v556_v33, %v557_v31  ;;  %v563_v46 = vsel %vm296_vm0, %v829_v36, -inf }
  0x6c   :  { %599 = vst.msk [vmem:[%s1540_s1 + $0x34] sm:$0xf] %vm585_vm1, %v582_v34  ;;  %v565_v49 = vsel %vm296_vm0, %v861_v41, -inf  ;;  %v567_v52 = vsel %vm296_vm0, %v893_v45, -inf }
  0x6d   :  { %v549_v43 = vmax.f32 %v547_v38, %v548_v35  ;;  %v560_v44 = vmax.f32 %v558_v39, %v559_v37 }
  0x6f   :  { %v551_v47 = vmax.f32 %v549_v43, %v550_v40  ;;  %v562_v48 = vmax.f32 %v560_v44, %v561_v42 }
  0x71   :  { %v583_v50 = vpack.c.bf16 %v551_v47, %v551_v47  ;;  %v564_v51 = vmax.f32 %v562_v48, %v563_v46 }
  0x73   :  { %600 = vst.msk [vmem:[%s1540_s1 + $0x38] sm:$0xf] %vm585_vm1, %v583_v50  ;;  %v566_v53 = vmax.f32 %v564_v51, %v565_v49 }
  0x75   :  { %v568_v54 = vmax.f32 %v566_v53, %v567_v52 }
  0x77   :  { %v584_v55 = vpack.c.bf16 %v568_v54, %v568_v54 }
  0x79   :  { %601 = vst.msk [vmem:[%s1540_s1 + $0x3c] sm:$0xf] %vm585_vm1, %v584_v55 }

// kernel: lyft_densenet_forward.29
= control target key start
LH: loop header
LB: loop body
LE: loop exit
PB: predicated region body
PF: predicated region fallthrough
CT: control target
= control target key end

     0   :  { %vm25_vm0 = vcmask 130048   ;;  %v419_v2 = vmov 0.0   ;;  %vm339_vm1 = vcmask 125952   ;;  %s660_s1 = inlined_call_operand.vmem [shape: bf16[16,16], index: 1, kind: input, shape index: {}]   ;;  %s661_s0 = inlined_call_operand.vmem [shape: bf16[128,16], index: 0, kind: input, shape index: {}]   ;;  %s662_s2 = inlined_call_operand.vmem [shape: f32[1,16], index: 2, kind: input, shape index: {}]   ;;  %s663_s3 = inlined_call_operand.vmem [shape: f32[1,16], index: 3, kind: input, shape index: {}]   ;;  %s664_s4 = inlined_call_operand.vmem [shape: f32[1,16], index: 4, kind: input, shape index: {}]   ;;  %s665_s5 = inlined_call_operand.vmem [shape: bf16[128,16], index: 5, kind: output, shape index: {}]  }
   0x1   :  { %v372_v0 = vld [vmem:[%s660_s1] sm:$0xff]  ;;  %26 = vst.msk [vmem:[#allocation2] sm:$0xff] %vm25_vm0, %v419_v2  ;;  %v406_v7 = vld [vmem:[%s661_s0 + $0x10] sm:$0xff]   ;;  %v405_v26 = vld [vmem:[%s661_s0 + $0x8] sm:$0xff]  }
   0x2   :  { %v374_v1 = vld [vmem:[%s661_s0] sm:$0xff]   ;;  %194 = vmatpush.bf16.msra.mxu0 %v372_v0  ;;  %412 = vmatpush.bf16.msra.mxu1 %v372_v0  ;;  %v410_v9 = vld [vmem:[%s661_s0 + $0x30] sm:$0xff]   ;;  %27 = vst.msk [vmem:[#allocation2 + $0x8] sm:$0xff] %vm25_vm0, %v419_v2  ;;  %v383_v12 = vunpack.c.l.bf16 %v406_v7  ;;  %v384_v13 = vunpack.c.h.bf16 %v406_v7  ;;  %v407_v35 = vld [vmem:[%s661_s0 + $0x18] sm:$0xff]   ;;  %v379_v39 = vunpack.c.l.bf16 %v405_v26  ;;  %v380_v46 = vunpack.c.h.bf16 %v405_v26 }
   0x3   :  { %v375_v3 = vunpack.c.l.bf16 %v374_v1  ;;  %v376_v4 = vunpack.c.h.bf16 %v374_v1  ;;  %v461_v5 = vld [vmem:[%s662_s2] ss:$0 sm:$0xff]  ;;  %413 = vmatpush.bf16.msra.mxu2 %v372_v0  ;;  %414 = vmatpush.bf16.msra.mxu3 %v372_v0  ;;  %28 = vst.msk [vmem:[#allocation2 + $0x10] sm:$0xff] %vm25_vm0, %v419_v2  ;;  %v399_v16 = vunpack.c.l.bf16 %v410_v9  ;;  %v400_v17 = vunpack.c.h.bf16 %v410_v9  ;;  %v409_v40 = vld [vmem:[%s661_s0 + $0x28] sm:$0xff]   ;;  %v411_v49 = vld [vmem:[%s661_s0 + $0x38] sm:$0xff]  }
   0x4   :  { %v466_v6 = vld [vmem:[%s663_s3] ss:$0 sm:$0xff]  ;;  %29 = vst.msk [vmem:[#allocation2 + $0x18] sm:$0xff] %vm25_vm0, %v419_v2  ;;  %v82_v20 = vmul.f32 %v461_v5, %v383_v12  ;;  %v83_v21 = vmul.f32 %v461_v5, %v384_v13  ;;  %v80_v47 = vmul.f32 %v461_v5, %v379_v39  ;;  %v387_v48 = vunpack.c.l.bf16 %v407_v35 }
   0x5   :  { %v408_v8 = vld [vmem:[%s661_s0 + $0x20] sm:$0xff]   ;;  %v78_v10 = vmul.f32 %v461_v5, %v375_v3  ;;  %v79_v11 = vmul.f32 %v461_v5, %v376_v4  ;;  %30 = vst.msk [vmem:[#allocation2 + $0x20] sm:$0xff] %vm25_vm0, %v419_v2  ;;  %v90_v24 = vmul.f32 %v461_v5, %v399_v16  ;;  %v91_v25 = vmul.f32 %v461_v5, %v400_v17 }
   0x6   :  { %v391_v14 = vunpack.c.l.bf16 %v408_v8  ;;  %v392_v15 = vunpack.c.h.bf16 %v408_v8  ;;  %31 = vst.msk [vmem:[#allocation2 + $0x28] sm:$0xff] %vm25_vm0, %v419_v2  ;;  %v102_v29 = vadd.f32 %v466_v6, %v82_v20  ;;  %v103_v30 = vadd.f32 %v466_v6, %v83_v21 }
   0x7   :  { %v98_v18 = vadd.f32 %v466_v6, %v78_v10  ;;  %v99_v19 = vadd.f32 %v466_v6, %v79_v11  ;;  %32 = vst.msk [vmem:[#allocation2 + $0x30] sm:$0xff] %vm25_vm0, %v419_v2  ;;  %v110_v33 = vadd.f32 %v466_v6, %v90_v24  ;;  %v111_v34 = vadd.f32 %v466_v6, %v91_v25 }
   0x8   :  { %v86_v22 = vmul.f32 %v461_v5, %v391_v14  ;;  %v87_v23 = vmul.f32 %v461_v5, %v392_v15  ;;  %33 = vst.msk [vmem:[#allocation2 + $0x38] sm:$0xff] %vm25_vm0, %v419_v2  ;;  %v118_v37 = vmax.f32 %v102_v29, 0.0  ;;  %v119_v38 = vmax.f32 %v103_v30, 0.0 }
   0x9   :  { %v114_v27 = vmax.f32 %v98_v18, 0.0  ;;  %v115_v28 = vmax.f32 %v99_v19, 0.0  ;;  %34 = vst.msk [vmem:[#allocation2 + $0x40] sm:$0xff] %vm25_vm0, %v419_v2  ;;  %v126_v43 = vmax.f32 %v110_v33, 0.0  ;;  %v127_v44 = vmax.f32 %v111_v34, 0.0  ;;  %v139_v26 = vld [vmem:[#allocation2 + $0x8] sm:$0xff] }
   0xa   :  { %v106_v31 = vadd.f32 %v466_v6, %v86_v22  ;;  %v107_v32 = vadd.f32 %v466_v6, %v87_v23  ;;  %35 = vst.msk [vmem:[#allocation2 + $0x48] sm:$0xff] %vm25_vm0, %v419_v2  ;;  %v132_v45 = vpack.c.bf16 %v119_v38, %v118_v37  ;;  %v388_v52 = vunpack.c.h.bf16 %v407_v35 }
   0xb   :  { %v130_v36 = vpack.c.bf16 %v115_v28, %v114_v27  ;;  %36 = vst.msk [vmem:[#allocation2 + $0x50] sm:$0xff] %vm25_vm0, %v419_v2  ;;  %v136_v51 = vpack.c.bf16 %v127_v44, %v126_v43  ;;  %v395_v53 = vunpack.c.l.bf16 %v409_v40  ;;  %v81_v54 = vmul.f32 %v461_v5, %v380_v46  ;;  %v564_v27 = vld [vmem:[%s664_s4] ss:$0 sm:$0xff] }
   0xc   :  { %v122_v41 = vmax.f32 %v106_v31, 0.0  ;;  %v123_v42 = vmax.f32 %v107_v32, 0.0  ;;  %37 = vst.msk [vmem:[#allocation2 + $0x58] sm:$0xff] %vm25_vm0, %v419_v2  ;;  %366 = vmatmul.msk.bf16.vlgmr.msra.gmra.mxu1 %vm25_vm0, %v132_v45  ;;  %v84_v55 = vmul.f32 %v461_v5, %v387_v48  ;;  %v396_v56 = vunpack.c.h.bf16 %v409_v40  ;;  %v142_v22 = vld [vmem:[#allocation2 + $0x20] sm:$0xff]  ;;  %v140_v48 = vld [vmem:[#allocation2 + $0x10] sm:$0xff] }
   0xd   :  { %364 = vmatmul.msk.bf16.vlgmr.msra.gmra.mxu0 %vm25_vm0, %v130_v36  ;;  %38 = vst.msk [vmem:[#allocation2 + $0x60] sm:$0xff] %vm25_vm0, %v419_v2  ;;  %370 = vmatmul.msk.bf16.vlgmr.msra.gmra.mxu3 %vm25_vm0, %v136_v51  ;;  %v85_v57 = vmul.f32 %v461_v5, %v388_v52  ;;  %v88_v58 = vmul.f32 %v461_v5, %v395_v53  ;;  %v403_v59 = vunpack.c.l.bf16 %v411_v49  ;;  %v404_v60 = vunpack.c.h.bf16 %v411_v49  ;;  %v143_v31 = vld [vmem:[#allocation2 + $0x28] sm:$0xff] }
   0xe   :  { %v134_v50 = vpack.c.bf16 %v123_v42, %v122_v41  ;;  %39 = vst.msk [vmem:[#allocation2 + $0x68] sm:$0xff] %vm25_vm0, %v419_v2  ;;  %v100_v61 = vadd.f32 %v466_v6, %v80_v47  ;;  %v101_v62 = vadd.f32 %v466_v6, %v81_v54  ;;  %v89_v63 = vmul.f32 %v461_v5, %v396_v56 }
   0xf   :  { %40 = vst.msk [vmem:[#allocation2 + $0x70] sm:$0xff] %vm25_vm0, %v419_v2  ;;  %v92_v0 = vmul.f32 %v461_v5, %v403_v59  ;;  %v93_v1 = vmul.f32 %v461_v5, %v404_v60  ;;  %v104_v3 = vadd.f32 %v466_v6, %v84_v55  ;;  %v105_v4 = vadd.f32 %v466_v6, %v85_v57 }
  0x10   :  { %368 = vmatmul.msk.bf16.vlgmr.msra.gmra.mxu2 %vm25_vm0, %v134_v50  ;;  %41 = vst.msk [vmem:[#allocation2 + $0x78] sm:$0xff] %vm25_vm0, %v419_v2  ;;  %v108_v7 = vadd.f32 %v466_v6, %v88_v58  ;;  %v109_v8 = vadd.f32 %v466_v6, %v89_v63  ;;  %v116_v11 = vmax.f32 %v100_v61, 0.0  ;;  %v117_v12 = vmax.f32 %v101_v62, 0.0  ;;  %v146_v28 = vld [vmem:[#allocation2 + $0x40] sm:$0xff]  ;;  %v144_v50 = vld [vmem:[#allocation2 + $0x30] sm:$0xff] }
  0x11   :  { %v112_v9 = vadd.f32 %v466_v6, %v92_v0  ;;  %v113_v10 = vadd.f32 %v466_v6, %v93_v1  ;;  %v120_v13 = vmax.f32 %v104_v3, 0.0  ;;  %v121_v14 = vmax.f32 %v105_v4, 0.0  ;;  %v138_v6 = vld [vmem:[#allocation2] sm:$0xff]  ;;  %v147_v46 = vld [vmem:[#allocation2 + $0x48] sm:$0xff] }
  0x12   :  { %v124_v5 = vmax.f32 %v108_v7, 0.0  ;;  %v125_v15 = vmax.f32 %v109_v8, 0.0  ;;  %v131_v17 = vpack.c.bf16 %v117_v12, %v116_v11 }
  0x13   :  { %v128_v16 = vmax.f32 %v112_v9, 0.0  ;;  %v129_v2 = vmax.f32 %v113_v10, 0.0  ;;  %v133_v18 = vpack.c.bf16 %v121_v14, %v120_v13  ;;  %v148_v10 = vld [vmem:[#allocation2 + $0x50] sm:$0xff]  ;;  %v141_v14 = vld [vmem:[#allocation2 + $0x18] sm:$0xff] }
  0x14   :  { %v135_v19 = vpack.c.bf16 %v125_v15, %v124_v5  ;;  %v150_v29 = vld [vmem:[#allocation2 + $0x60] sm:$0xff] }
  0x15   :  { %v137_v20 = vpack.c.bf16 %v129_v2, %v128_v16  ;;  %v151_v47 = vld [vmem:[#allocation2 + $0x68] sm:$0xff] }
  0x16   :  { %v152_v11 = vld [vmem:[#allocation2 + $0x70] sm:$0xff] }
  0x1c   :  { %367 = vmatmul.msk.bf16.gmra.mxu1 %vm25_vm0, %v133_v18 }
  0x1d   :  { %365 = vmatmul.msk.bf16.gmra.mxu0 %vm25_vm0, %v131_v17  ;;  %371 = vmatmul.msk.bf16.gmra.mxu3 %vm25_vm0, %v137_v20  ;;  %v145_v17 = vld [vmem:[#allocation2 + $0x38] sm:$0xff] }
  0x20   :  { %369 = vmatmul.msk.bf16.gmra.mxu2 %vm25_vm0, %v135_v19 }
  0x89   :  { %v206_v24 = vpop.f32.mrf.mxu1 }
  0x8a   :  { %v196_v21 = vpop.f32.mrf.mxu0  ;;  %v240_v25 = vadd.f32 %v206_v24, %v142_v22 }
  0x8b   :  { %v236_v23 = vadd.f32 %v196_v21, %v138_v6 }
  0x8c   :  { %256 = vst.msk [vmem:[#allocation2 + $0x20] sm:$0xff] %vm25_vm0, %v240_v25 }
  0x8d   :  { %252 = vst.msk [vmem:[#allocation2] sm:$0xff] %vm25_vm0, %v236_v23 }
  0x90   :  { %v226_v33 = vpop.f32.mrf.mxu3 }
  0x91   :  { %v248_v37 = vadd.f32 %v226_v33, %v150_v29  ;;  %v208_v38 = vpop.f32.mrf.mxu1 }
  0x92   :  { %v198_v30 = vpop.f32.mrf.mxu0  ;;  %v241_v40 = vadd.f32 %v208_v38, %v143_v31 }
  0x93   :  { %v216_v32 = vpop.f32.mrf.mxu2  ;;  %v237_v34 = vadd.f32 %v198_v30, %v139_v26  ;;  %v275_v41 = vld [vmem:[#allocation2 + $0x20] sm:$0xff]  ;;  %264 = vst.msk [vmem:[#allocation2 + $0x60] sm:$0xff] %vm25_vm0, %v248_v37  ;;  %v153_v37 = vld [vmem:[#allocation2 + $0x78] sm:$0xff] }
  0x94   :  { %v271_v35 = vld [vmem:[#allocation2] sm:$0xff]  ;;  %v244_v36 = vadd.f32 %v216_v32, %v146_v28  ;;  %v295_v43 = vadd.f32 %v564_v27, %v275_v41  ;;  %257 = vst.msk [vmem:[#allocation2 + $0x28] sm:$0xff] %vm25_vm0, %v241_v40 }
  0x95   :  { %v291_v39 = vadd.f32 %v564_v27, %v271_v35  ;;  %253 = vst.msk [vmem:[#allocation2 + $0x8] sm:$0xff] %vm25_vm0, %v237_v34  ;;  %v149_v34 = vld [vmem:[#allocation2 + $0x58] sm:$0xff] }
  0x96   :  { %260 = vst.msk [vmem:[#allocation2 + $0x40] sm:$0xff] %vm25_vm0, %v244_v36  ;;  %v311_v45 = vmax.f32 %v295_v43, 0.0 }
  0x97   :  { %v307_v42 = vmax.f32 %v291_v39, 0.0 }
  0x98   :  { %v327_v51 = vpack.c.bf16 %v311_v45, %v311_v45  ;;  %v228_v53 = vpop.f32.mrf.mxu3 }
  0x99   :  { %v323_v44 = vpack.c.bf16 %v307_v42, %v307_v42  ;;  %v249_v56 = vadd.f32 %v228_v53, %v151_v47  ;;  %v211_v58 = vpop.f32.mrf.mxu1 }
  0x9a   :  { %v201_v49 = vpop.f32.mrf.mxu0  ;;  %344 = vst.msk [vmem:[%s665_s5 + $0x10] sm:$0xf] %vm339_vm1, %v327_v51  ;;  %v242_v61 = vadd.f32 %v211_v58, %v144_v50  ;;  %v283_v63 = vld [vmem:[#allocation2 + $0x60] sm:$0xff] }
  0x9b   :  { %340 = vst.msk [vmem:[%s665_s5] sm:$0xf] %vm339_vm1, %v323_v44  ;;  %v218_v52 = vpop.f32.mrf.mxu2  ;;  %v238_v57 = vadd.f32 %v201_v49, %v140_v48  ;;  %v303_v0 = vadd.f32 %v564_v27, %v283_v63  ;;  %v276_v3 = vld [vmem:[#allocation2 + $0x28] sm:$0xff] }
  0x9c   :  { %v272_v54 = vld [vmem:[#allocation2 + $0x8] sm:$0xff]  ;;  %v245_v55 = vadd.f32 %v218_v52, %v147_v46  ;;  %265 = vst.msk [vmem:[#allocation2 + $0x68] sm:$0xff] %vm25_vm0, %v249_v56  ;;  %v296_v7 = vadd.f32 %v564_v27, %v276_v3 }
  0x9d   :  { %v279_v59 = vld [vmem:[#allocation2 + $0x40] sm:$0xff]  ;;  %v292_v60 = vadd.f32 %v564_v27, %v272_v54  ;;  %254 = vst.msk [vmem:[#allocation2 + $0x10] sm:$0xff] %vm25_vm0, %v238_v57  ;;  %v319_v8 = vmax.f32 %v303_v0, 0.0 }
  0x9e   :  { %v299_v62 = vadd.f32 %v564_v27, %v279_v59  ;;  %261 = vst.msk [vmem:[#allocation2 + $0x48] sm:$0xff] %vm25_vm0, %v245_v55  ;;  %v312_v13 = vmax.f32 %v296_v7, 0.0 }
  0x9f   :  { %v308_v1 = vmax.f32 %v292_v60, 0.0  ;;  %258 = vst.msk [vmem:[#allocation2 + $0x30] sm:$0xff] %vm25_vm0, %v242_v61  ;;  %v335_v15 = vpack.c.bf16 %v319_v8, %v319_v8 }
  0xa0   :  { %v315_v4 = vmax.f32 %v299_v62, 0.0  ;;  %v231_v2 = vpop.f32.mrf.mxu3  ;;  %v328_v18 = vpack.c.bf16 %v312_v13, %v312_v13 }
  0xa1   :  { %v324_v9 = vpack.c.bf16 %v308_v1, %v308_v1  ;;  %v250_v20 = vadd.f32 %v231_v2, %v152_v11  ;;  %v213_v6 = vpop.f32.mrf.mxu1  ;;  %352 = vst.msk [vmem:[%s665_s5 + $0x30] sm:$0xf] %vm339_vm1, %v335_v15 }
  0xa2   :  { %v331_v12 = vpack.c.bf16 %v315_v4, %v315_v4  ;;  %v203_v5 = vpop.f32.mrf.mxu0  ;;  %345 = vst.msk [vmem:[%s665_s5 + $0x14] sm:$0xf] %vm339_vm1, %v328_v18  ;;  %v243_v25 = vadd.f32 %v213_v6, %v145_v17 }
  0xa3   :  { %341 = vst.msk [vmem:[%s665_s5 + $0x4] sm:$0xf] %vm339_vm1, %v324_v9  ;;  %v221_v16 = vpop.f32.mrf.mxu2  ;;  %v239_v22 = vadd.f32 %v203_v5, %v141_v14  ;;  %v284_v24 = vld [vmem:[#allocation2 + $0x68] sm:$0xff] }
  0xa4   :  { %348 = vst.msk [vmem:[%s665_s5 + $0x20] sm:$0xf] %vm339_vm1, %v331_v12  ;;  %v246_v19 = vadd.f32 %v221_v16, %v148_v10  ;;  %v304_v26 = vadd.f32 %v564_v27, %v284_v24  ;;  %v273_v28 = vld [vmem:[#allocation2 + $0x10] sm:$0xff] }
  0xa5   :  { %v280_v21 = vld [vmem:[#allocation2 + $0x48] sm:$0xff]  ;;  %v293_v30 = vadd.f32 %v564_v27, %v273_v28  ;;  %266 = vst.msk [vmem:[#allocation2 + $0x70] sm:$0xff] %vm25_vm0, %v250_v20 }
  0xa6   :  { %v300_v23 = vadd.f32 %v564_v27, %v280_v21  ;;  %262 = vst.msk [vmem:[#allocation2 + $0x50] sm:$0xff] %vm25_vm0, %v246_v19  ;;  %v277_v31 = vld [vmem:[#allocation2 + $0x30] sm:$0xff]  ;;  %v320_v32 = vmax.f32 %v304_v26, 0.0 }
  0xa7   :  { %v297_v33 = vadd.f32 %v564_v27, %v277_v31  ;;  %255 = vst.msk [vmem:[#allocation2 + $0x18] sm:$0xff] %vm25_vm0, %v239_v22  ;;  %v309_v36 = vmax.f32 %v293_v30, 0.0 }
  0xa8   :  { %v316_v29 = vmax.f32 %v300_v23, 0.0  ;;  %259 = vst.msk [vmem:[#allocation2 + $0x38] sm:$0xff] %vm25_vm0, %v243_v25  ;;  %v336_v38 = vpack.c.bf16 %v320_v32, %v320_v32  ;;  %v233_v41 = vpop.f32.mrf.mxu3 }
  0xa9   :  { %v313_v39 = vmax.f32 %v297_v33, 0.0  ;;  %v325_v42 = vpack.c.bf16 %v309_v36, %v309_v36  ;;  %v251_v45 = vadd.f32 %v233_v41, %v153_v37 }
  0xaa   :  { %v332_v35 = vpack.c.bf16 %v316_v29, %v316_v29  ;;  %353 = vst.msk [vmem:[%s665_s5 + $0x34] sm:$0xf] %vm339_vm1, %v336_v38 }
  0xab   :  { %v223_v40 = vpop.f32.mrf.mxu2  ;;  %v329_v44 = vpack.c.bf16 %v313_v39, %v313_v39  ;;  %342 = vst.msk [vmem:[%s665_s5 + $0x8] sm:$0xf] %vm339_vm1, %v325_v42 }
  0xac   :  { %349 = vst.msk [vmem:[%s665_s5 + $0x24] sm:$0xf] %vm339_vm1, %v332_v35  ;;  %v247_v43 = vadd.f32 %v223_v40, %v149_v34  ;;  %v285_v48 = vld [vmem:[#allocation2 + $0x70] sm:$0xff] }
  0xad   :  { %v281_v46 = vld [vmem:[#allocation2 + $0x50] sm:$0xff]  ;;  %346 = vst.msk [vmem:[%s665_s5 + $0x18] sm:$0xf] %vm339_vm1, %v329_v44  ;;  %v305_v49 = vadd.f32 %v564_v27, %v285_v48 }
  0xae   :  { %v301_v47 = vadd.f32 %v564_v27, %v281_v46  ;;  %v274_v50 = vld [vmem:[#allocation2 + $0x18] sm:$0xff]  ;;  %263 = vst.msk [vmem:[#allocation2 + $0x58] sm:$0xff] %vm25_vm0, %v247_v43 }
  0xaf   :  { %v294_v52 = vadd.f32 %v564_v27, %v274_v50  ;;  %v278_v53 = vld [vmem:[#allocation2 + $0x38] sm:$0xff]  ;;  %267 = vst.msk [vmem:[#allocation2 + $0x78] sm:$0xff] %vm25_vm0, %v251_v45  ;;  %v321_v54 = vmax.f32 %v305_v49, 0.0 }
  0xb0   :  { %v317_v51 = vmax.f32 %v301_v47, 0.0  ;;  %v298_v55 = vadd.f32 %v564_v27, %v278_v53 }
  0xb1   :  { %v310_v57 = vmax.f32 %v294_v52, 0.0  ;;  %v337_v58 = vpack.c.bf16 %v321_v54, %v321_v54 }
  0xb2   :  { %v333_v56 = vpack.c.bf16 %v317_v51, %v317_v51  ;;  %v314_v59 = vmax.f32 %v298_v55, 0.0 }
  0xb3   :  { %v326_v60 = vpack.c.bf16 %v310_v57, %v310_v57  ;;  %354 = vst.msk [vmem:[%s665_s5 + $0x38] sm:$0xf] %vm339_vm1, %v337_v58 }
  0xb4   :  { %350 = vst.msk [vmem:[%s665_s5 + $0x28] sm:$0xf] %vm339_vm1, %v333_v56  ;;  %v330_v61 = vpack.c.bf16 %v314_v59, %v314_v59 }
  0xb5   :  { %343 = vst.msk [vmem:[%s665_s5 + $0xc] sm:$0xf] %vm339_vm1, %v326_v60  ;;  %v282_v62 = vld [vmem:[#allocation2 + $0x58] sm:$0xff] }
  0xb6   :  { %347 = vst.msk [vmem:[%s665_s5 + $0x1c] sm:$0xf] %vm339_vm1, %v330_v61  ;;  %v302_v63 = vadd.f32 %v564_v27, %v282_v62  ;;  %v286_v0 = vld [vmem:[#allocation2 + $0x78] sm:$0xff] }
  0xb7   :  { %v306_v1 = vadd.f32 %v564_v27, %v286_v0 }
  0xb8   :  { %v318_v3 = vmax.f32 %v302_v63, 0.0 }
  0xb9   :  { %v322_v4 = vmax.f32 %v306_v1, 0.0 }
  0xba   :  { %v334_v7 = vpack.c.bf16 %v318_v3, %v318_v3 }
  0xbb   :  { %v338_v8 = vpack.c.bf16 %v322_v4, %v322_v4 }
  0xbc   :  { %351 = vst.msk [vmem:[%s665_s5 + $0x2c] sm:$0xf] %vm339_vm1, %v334_v7 }
  0xbd   :  { %355 = vst.msk [vmem:[%s665_s5 + $0x3c] sm:$0xf] %vm339_vm1, %v338_v8 }

// kernel: lyft_densenet_forward.30
= control target key start
LH: loop header
LB: loop body
LE: loop exit
PB: predicated region body
PF: predicated region fallthrough
CT: control target
= control target key end

     0   :  { %vm212_vm0 = vcmask 130048   ;;  %vm19_vm1 = vcmask 64512   ;;  %v588_v57 = vmov 0.0   ;;  %vm423_vm2 = vcmask 60416   ;;  %s866_s1 = inlined_call_operand.vmem [shape: bf16[144,8], index: 1, kind: input, shape index: {}]   ;;  %s867_s0 = inlined_call_operand.vmem [shape: bf16[128,144], index: 0, kind: input, shape index: {}]   ;;  %s868_s2 = inlined_call_operand.vmem [shape: f32[1,8], index: 2, kind: input, shape index: {}]   ;;  %s869_s3 = inlined_call_operand.vmem [shape: bf16[128,8], index: 3, kind: output, shape index: {}]  }
   0x1   :  { %v575_v0 = vld [vmem:[%s866_s1 + $0x38] sm:$0xff]  ;;  %v576_v1 = vld [vmem:[%s866_s1 + $0x40] sm:$0xff]  ;;  %v448_v3 = vld [vmem:[%s867_s0 + $0x8] sm:$0xf0]  ;;  %20 = vst.msk [vmem:[#allocation2] sm:$0xff] %vm19_vm1, %v588_v57 }
   0x2   :  { %v552_v2 = vld [vmem:[%s867_s0 + $0x4] sm:$0xf]  ;;  %237 = vmatpush.bf16.msra.mxu0 %v575_v0  ;;  %577 = vmatpush.bf16.msra.mxu2 %v575_v0  ;;  %v574_v5 = vld [vmem:[%s866_s1 + $0x30] sm:$0xff]  ;;  %v573_v6 = vld [vmem:[%s866_s1 + $0x28] sm:$0xff]  ;;  %21 = vst.msk [vmem:[#allocation2 + $0x8] sm:$0xff] %vm19_vm1, %v588_v57 }
   0x3   :  { %v451_v4 = vor.u32 %v552_v2, %v448_v3  ;;  %293 = vmatpush.bf16.msra.mxu1 %v576_v1  ;;  %585 = vmatpush.bf16.msra.mxu3 %v576_v1  ;;  %v562_v7 = vld [vmem:[%s867_s0 + $0x54] sm:$0xf]  ;;  %v488_v8 = vld [vmem:[%s867_s0 + $0x58] sm:$0xf0]  ;;  %v572_v10 = vld [vmem:[%s866_s1 + $0x20] sm:$0xff]  ;;  %22 = vst.msk [vmem:[#allocation2 + $0x10] sm:$0xff] %vm19_vm1, %v588_v57 }
   0x4   :  { %v491_v9 = vor.u32 %v562_v7, %v488_v8  ;;  %v571_v11 = vld [vmem:[%s866_s1 + $0x18] sm:$0xff]  ;;  %v554_v12 = vld [vmem:[%s867_s0 + $0x14] sm:$0xf]  ;;  %v569_v16 = vld [vmem:[%s866_s1 + $0x8] sm:$0xff]  ;;  %23 = vst.msk [vmem:[#allocation2 + $0x18] sm:$0xff] %vm19_vm1, %v588_v57 }
   0x5   :  { %v456_v13 = vld [vmem:[%s867_s0 + $0x18] sm:$0xf0]  ;;  %v570_v15 = vld [vmem:[%s866_s1 + $0x10] sm:$0xff]  ;;  %v564_v17 = vld [vmem:[%s867_s0 + $0x64] sm:$0xf]  ;;  %24 = vst.msk [vmem:[#allocation2 + $0x20] sm:$0xff] %vm19_vm1, %v588_v57 }
   0x6   :  { %544 = vmatmul.msk.bf16.vlgmr.msra.gmra.mxu1 %vm212_vm0, %v451_v4  ;;  %238 = vmatpush.bf16.msra.mxu0 %v574_v5  ;;  %v459_v14 = vor.u32 %v554_v12, %v456_v13  ;;  %v496_v18 = vld [vmem:[%s867_s0 + $0x68] sm:$0xf0]  ;;  %v568_v20 = vld [vmem:[%s866_s1] sm:$0xff]  ;;  %v553_v22 = vld [vmem:[%s867_s0 + $0x4] sm:$0xf0]  ;;  %25 = vst.msk [vmem:[#allocation2 + $0x28] sm:$0xff] %vm19_vm1, %v588_v57 }
   0x7   :  { %578 = vmatpush.bf16.msra.mxu2 %v574_v5  ;;  %549 = vmatmul.msk.bf16.vlgmr.msra.gmra.mxu3 %vm212_vm0, %v491_v9  ;;  %v499_v19 = vor.u32 %v564_v17, %v496_v18  ;;  %v446_v21 = vld [vmem:[%s867_s0] sm:$0xf]  ;;  %v561_v24 = vld [vmem:[%s867_s0 + $0x44] sm:$0xf0]  ;;  %v556_v27 = vld [vmem:[%s867_s0 + $0x24] sm:$0xf] }
   0x8   :  { %v478_v23 = vld [vmem:[%s867_s0 + $0x40] sm:$0xf]  ;;  %v447_v25 = vor.u32 %v553_v22, %v446_v21  ;;  %v464_v28 = vld [vmem:[%s867_s0 + $0x28] sm:$0xf0]  ;;  %v566_v30 = vld [vmem:[%s867_s0 + $0x74] sm:$0xf] }
   0x9   :  { %v479_v26 = vor.u32 %v561_v24, %v478_v23  ;;  %v467_v29 = vor.u32 %v556_v27, %v464_v28  ;;  %v504_v31 = vld [vmem:[%s867_s0 + $0x78] sm:$0xf0]  ;;  %v454_v33 = vld [vmem:[%s867_s0 + $0x10] sm:$0xf]  ;;  %v555_v34 = vld [vmem:[%s867_s0 + $0x14] sm:$0xf0] }
   0xa   :  { %239 = vmatpush.bf16.msra.mxu0 %v573_v6  ;;  %v507_v32 = vor.u32 %v566_v30, %v504_v31  ;;  %v486_v35 = vld [vmem:[%s867_s0 + $0x50] sm:$0xf]  ;;  %v563_v36 = vld [vmem:[%s867_s0 + $0x54] sm:$0xf0]  ;;  %v455_v37 = vor.u32 %v555_v34, %v454_v33  ;;  %v558_v39 = vld [vmem:[%s867_s0 + $0x34] sm:$0xf] }
   0xb   :  { %579 = vmatpush.bf16.msra.mxu2 %v573_v6  ;;  %v487_v38 = vor.u32 %v563_v36, %v486_v35  ;;  %v472_v40 = vld [vmem:[%s867_s0 + $0x38] sm:$0xf0]  ;;  %v462_v42 = vld [vmem:[%s867_s0 + $0x20] sm:$0xf]  ;;  %v557_v43 = vld [vmem:[%s867_s0 + $0x24] sm:$0xf0] }
   0xc   :  { %v475_v41 = vor.u32 %v558_v39, %v472_v40  ;;  %v494_v44 = vld [vmem:[%s867_s0 + $0x60] sm:$0xf]  ;;  %v565_v45 = vld [vmem:[%s867_s0 + $0x64] sm:$0xf0]  ;;  %v463_v46 = vor.u32 %v557_v43, %v462_v42  ;;  %v560_v48 = vld [vmem:[%s867_s0 + $0x44] sm:$0xf] }
   0xd   :  { %v495_v47 = vor.u32 %v565_v45, %v494_v44  ;;  %v480_v49 = vld [vmem:[%s867_s0 + $0x48] sm:$0xf0]  ;;  %v470_v51 = vld [vmem:[%s867_s0 + $0x30] sm:$0xf]  ;;  %v559_v52 = vld [vmem:[%s867_s0 + $0x34] sm:$0xf0] }
   0xe   :  { %240 = vmatpush.bf16.msra.mxu0 %v572_v10  ;;  %v483_v50 = vor.u32 %v560_v48, %v480_v49  ;;  %v502_v53 = vld [vmem:[%s867_s0 + $0x70] sm:$0xf]  ;;  %v567_v54 = vld [vmem:[%s867_s0 + $0x74] sm:$0xf0]  ;;  %v471_v55 = vor.u32 %v559_v52, %v470_v51  ;;  %26 = vst.msk [vmem:[#allocation2 + $0x30] sm:$0xff] %vm19_vm1, %v588_v57  ;;  %v52_v62 = vld [vmem:[#allocation2] sm:$0xff] }
   0xf   :  { %580 = vmatpush.bf16.msra.mxu2 %v572_v10  ;;  %v503_v56 = vor.u32 %v567_v54, %v502_v53  ;;  %27 = vst.msk [vmem:[#allocation2 + $0x38] sm:$0xff] %vm19_vm1, %v588_v57  ;;  %v53_v4 = vld [vmem:[#allocation2 + $0x8] sm:$0xff]  ;;  %v760_v6 = vld [vmem:[%s868_s2] ss:$0 sm:$0xff]  ;;  %v55_v27 = vld [vmem:[#allocation2 + $0x18] sm:$0xff] }
  0x10   :  { %28 = vst.msk [vmem:[#allocation2 + $0x40] sm:$0xff] %vm19_vm1, %v588_v57  ;;  %v56_v39 = vld [vmem:[#allocation2 + $0x20] sm:$0xff] }
  0x11   :  { %29 = vst.msk [vmem:[#allocation2 + $0x48] sm:$0xff] %vm19_vm1, %v588_v57 }
  0x12   :  { %241 = vmatpush.bf16.msra.mxu0 %v571_v11  ;;  %30 = vst.msk [vmem:[#allocation2 + $0x50] sm:$0xff] %vm19_vm1, %v588_v57 }
  0x13   :  { %581 = vmatpush.bf16.msra.mxu2 %v571_v11  ;;  %31 = vst.msk [vmem:[#allocation2 + $0x58] sm:$0xff] %vm19_vm1, %v588_v57 }
  0x14   :  { %32 = vst.msk [vmem:[#allocation2 + $0x60] sm:$0xff] %vm19_vm1, %v588_v57 }
  0x15   :  { %33 = vst.msk [vmem:[#allocation2 + $0x68] sm:$0xff] %vm19_vm1, %v588_v57 }
  0x16   :  { %545 = vmatmul.msk.bf16.gmra.mxu1 %vm212_vm0, %v459_v14  ;;  %242 = vmatpush.bf16.msra.mxu0 %v570_v15  ;;  %34 = vst.msk [vmem:[#allocation2 + $0x70] sm:$0xff] %vm19_vm1, %v588_v57 }
  0x17   :  { %582 = vmatpush.bf16.msra.mxu2 %v570_v15  ;;  %550 = vmatmul.msk.bf16.gmra.mxu3 %vm212_vm0, %v499_v19  ;;  %35 = vst.msk [vmem:[#allocation2 + $0x78] sm:$0xff] %vm19_vm1, %v588_v57  ;;  %v54_v15 = vld [vmem:[#allocation2 + $0x10] sm:$0xff]  ;;  %v60_v49 = vld [vmem:[#allocation2 + $0x40] sm:$0xff] }
  0x19   :  { %v62_v23 = vld [vmem:[#allocation2 + $0x50] sm:$0xff] }
  0x1a   :  { %243 = vmatpush.bf16.msra.mxu0 %v569_v16  ;;  %v63_v36 = vld [vmem:[#allocation2 + $0x58] sm:$0xff] }
  0x1b   :  { %583 = vmatpush.bf16.msra.mxu2 %v569_v16  ;;  %v64_v54 = vld [vmem:[#allocation2 + $0x60] sm:$0xff] }
  0x1e   :  { %244 = vmatpush.bf16.msra.mxu0 %v568_v20 }
  0x1f   :  { %584 = vmatpush.bf16.msra.mxu2 %v568_v20 }
  0x21   :  { %245 = vmatmul.bf16.vlgmr.msra.gmra.mxu0 %v447_v25 }
  0x22   :  { %265 = vmatmul.bf16.vlgmr.msra.gmra.mxu2 %v479_v26 }
  0x26   :  { %546 = vmatmul.msk.bf16.gmra.mxu1 %vm212_vm0, %v467_v29 }
  0x27   :  { %551 = vmatmul.msk.bf16.gmra.mxu3 %vm212_vm0, %v507_v32 }
  0x31   :  { %250 = vmatmul.bf16.gmra.mxu0 %v455_v37 }
  0x32   :  { %270 = vmatmul.bf16.gmra.mxu2 %v487_v38 }
  0x36   :  { %547 = vmatmul.msk.bf16.gmra.mxu1 %vm212_vm0, %v475_v41 }
  0x41   :  { %255 = vmatmul.bf16.gmra.mxu0 %v463_v46 }
  0x42   :  { %275 = vmatmul.bf16.gmra.mxu2 %v495_v47 }
  0x46   :  { %548 = vmatmul.msk.bf16.gmra.mxu1 %vm212_vm0, %v483_v50 }
  0x51   :  { %260 = vmatmul.bf16.gmra.mxu0 %v471_v55 }
  0x52   :  { %280 = vmatmul.bf16.gmra.mxu2 %v503_v56 }
  0x83   :  { %v295_v58 = vpop.f32.mrf.mxu1 }
  0x8a   :  { %v320_v12 = vpop.f32.mrf.mxu3 }
  0x8b   :  { %v297_v59 = vpop.f32.mrf.mxu1 }
  0x92   :  { %v322_v25 = vpop.f32.mrf.mxu3 }
  0x93   :  { %v300_v60 = vpop.f32.mrf.mxu1 }
  0x9a   :  { %v325_v41 = vpop.f32.mrf.mxu3 }
  0x9b   :  { %v302_v61 = vpop.f32.mrf.mxu1 }
  0x9e   :  { %v246_v63 = vpop.f32.mrf.mxu0 }
  0x9f   :  { %v296_v0 = vadd.f32 %v295_v58, %v246_v63  ;;  %v57_v58 = vld [vmem:[#allocation2 + $0x28] sm:$0xff] }
  0xa1   :  { %v335_v1 = vadd.f32 %v296_v0, %v52_v62 }
  0xa2   :  { %v327_v63 = vpop.f32.mrf.mxu3 }
  0xa3   :  { %352 = vst.msk [vmem:[#allocation2] sm:$0xff] %vm19_vm1, %v335_v1  ;;  %v305_v2 = vpop.f32.mrf.mxu1 }
  0xa5   :  { %v266_v3 = vpop.f32.mrf.mxu2 }
  0xa6   :  { %v248_v5 = vpop.f32.mrf.mxu0 }
  0xa7   :  { %v298_v7 = vadd.f32 %v297_v59, %v248_v5 }
  0xa9   :  { %v336_v8 = vadd.f32 %v298_v7, %v53_v4  ;;  %v61_v4 = vld [vmem:[#allocation2 + $0x48] sm:$0xff] }
  0xaa   :  { %v371_v9 = vld [vmem:[#allocation2] sm:$0xff] }
  0xab   :  { %v391_v10 = vadd.f32 %v760_v6, %v371_v9  ;;  %353 = vst.msk [vmem:[#allocation2 + $0x8] sm:$0xff] %vm19_vm1, %v336_v8  ;;  %v307_v11 = vpop.f32.mrf.mxu1 }
  0xad   :  { %v407_v13 = vpack.c.bf16 %v391_v10, %v391_v10  ;;  %v764_v14 = vpop.f32.mrf.mxu2  ;;  %v65_v10 = vld [vmem:[#allocation2 + $0x68] sm:$0xff] }
  0xae   :  { %v251_v16 = vpop.f32.mrf.mxu0 }
  0xaf   :  { %424 = vst.msk [vmem:[%s869_s3] sm:$0xf] %vm423_vm2, %v407_v13  ;;  %v301_v17 = vadd.f32 %v300_v60, %v251_v16 }
  0xb1   :  { %v337_v18 = vadd.f32 %v301_v17, %v54_v15  ;;  %v58_v15 = vld [vmem:[#allocation2 + $0x30] sm:$0xff] }
  0xb2   :  { %v372_v19 = vld [vmem:[#allocation2 + $0x8] sm:$0xff] }
  0xb3   :  { %v392_v20 = vadd.f32 %v760_v6, %v372_v19  ;;  %354 = vst.msk [vmem:[#allocation2 + $0x10] sm:$0xff] %vm19_vm1, %v337_v18  ;;  %v772_v21 = vpop.f32.mrf.mxu1 }
  0xb5   :  { %v408_v22 = vpack.c.bf16 %v392_v20, %v392_v20  ;;  %v271_v24 = vpop.f32.mrf.mxu2 }
  0xb6   :  { %v321_v26 = vadd.f32 %v320_v12, %v271_v24  ;;  %v253_v28 = vpop.f32.mrf.mxu0 }
  0xb7   :  { %425 = vst.msk [vmem:[%s869_s3 + $0x4] sm:$0xf] %vm423_vm2, %v408_v22  ;;  %v303_v29 = vadd.f32 %v302_v61, %v253_v28 }
  0xb8   :  { %v345_v30 = vadd.f32 %v321_v26, %v62_v23 }
  0xb9   :  { %v338_v31 = vadd.f32 %v303_v29, %v55_v27  ;;  %v330_v27 = vpop.f32.mrf.mxu3  ;;  %v66_v29 = vld [vmem:[#allocation2 + $0x70] sm:$0xff] }
  0xba   :  { %v373_v32 = vld [vmem:[#allocation2 + $0x10] sm:$0xff]  ;;  %362 = vst.msk [vmem:[#allocation2 + $0x50] sm:$0xff] %vm19_vm1, %v345_v30 }
  0xbb   :  { %v393_v33 = vadd.f32 %v760_v6, %v373_v32  ;;  %355 = vst.msk [vmem:[#allocation2 + $0x18] sm:$0xff] %vm19_vm1, %v338_v31  ;;  %v781_v34 = vpop.f32.mrf.mxu1  ;;  %v59_v32 = vld [vmem:[#allocation2 + $0x38] sm:$0xff] }
  0xbd   :  { %v409_v35 = vpack.c.bf16 %v393_v33, %v393_v33  ;;  %v273_v37 = vpop.f32.mrf.mxu2 }
  0xbe   :  { %v323_v38 = vadd.f32 %v322_v25, %v273_v37  ;;  %v256_v40 = vpop.f32.mrf.mxu0 }
  0xbf   :  { %426 = vst.msk [vmem:[%s869_s3 + $0x8] sm:$0xf] %vm423_vm2, %v409_v35  ;;  %v306_v42 = vadd.f32 %v305_v2, %v256_v40 }
  0xc0   :  { %v346_v43 = vadd.f32 %v323_v38, %v63_v36 }
  0xc1   :  { %v381_v44 = vld [vmem:[#allocation2 + $0x50] sm:$0xff]  ;;  %v339_v45 = vadd.f32 %v306_v42, %v56_v39 }
  0xc2   :  { %v401_v46 = vadd.f32 %v760_v6, %v381_v44  ;;  %v374_v47 = vld [vmem:[#allocation2 + $0x18] sm:$0xff]  ;;  %363 = vst.msk [vmem:[#allocation2 + $0x58] sm:$0xff] %vm19_vm1, %v346_v43 }
  0xc3   :  { %v394_v48 = vadd.f32 %v760_v6, %v374_v47  ;;  %356 = vst.msk [vmem:[#allocation2 + $0x20] sm:$0xff] %vm19_vm1, %v339_v45  ;;  %v315_v50 = vpop.f32.mrf.mxu1  ;;  %v67_v47 = vld [vmem:[#allocation2 + $0x78] sm:$0xff] }
  0xc4   :  { %v417_v51 = vpack.c.bf16 %v401_v46, %v401_v46  ;;  %v316_v52 = vadd.f32 %v315_v50, %v266_v3  ;;  %v332_v46 = vpop.f32.mrf.mxu3 }
  0xc5   :  { %v410_v53 = vpack.c.bf16 %v394_v48, %v394_v48  ;;  %v276_v55 = vpop.f32.mrf.mxu2 }
  0xc6   :  { %434 = vst.msk [vmem:[%s869_s3 + $0x28] sm:$0xf] %vm423_vm2, %v417_v51  ;;  %v343_v56 = vadd.f32 %v316_v52, %v60_v49  ;;  %v326_v57 = vadd.f32 %v325_v41, %v276_v55  ;;  %v258_v59 = vpop.f32.mrf.mxu0 }
  0xc7   :  { %427 = vst.msk [vmem:[%s869_s3 + $0xc] sm:$0xf] %vm423_vm2, %v410_v53  ;;  %v308_v60 = vadd.f32 %v307_v11, %v258_v59 }
  0xc8   :  { %360 = vst.msk [vmem:[#allocation2 + $0x40] sm:$0xff] %vm19_vm1, %v343_v56  ;;  %v347_v61 = vadd.f32 %v326_v57, %v64_v54 }
  0xc9   :  { %v382_v62 = vld [vmem:[#allocation2 + $0x58] sm:$0xff]  ;;  %v340_v0 = vadd.f32 %v308_v60, %v57_v58 }
  0xca   :  { %v402_v1 = vadd.f32 %v760_v6, %v382_v62  ;;  %v375_v2 = vld [vmem:[#allocation2 + $0x20] sm:$0xff]  ;;  %364 = vst.msk [vmem:[#allocation2 + $0x60] sm:$0xff] %vm19_vm1, %v347_v61 }
  0xcb   :  { %v395_v3 = vadd.f32 %v760_v6, %v375_v2  ;;  %357 = vst.msk [vmem:[#allocation2 + $0x28] sm:$0xff] %vm19_vm1, %v340_v0  ;;  %v317_v5 = vpop.f32.mrf.mxu1 }
  0xcc   :  { %v418_v7 = vpack.c.bf16 %v402_v1, %v402_v1  ;;  %v318_v8 = vadd.f32 %v317_v5, %v764_v14 }
  0xcd   :  { %v411_v9 = vpack.c.bf16 %v395_v3, %v395_v3  ;;  %v278_v11 = vpop.f32.mrf.mxu2 }
  0xce   :  { %435 = vst.msk [vmem:[%s869_s3 + $0x2c] sm:$0xf] %vm423_vm2, %v418_v7  ;;  %v344_v12 = vadd.f32 %v318_v8, %v61_v4  ;;  %v328_v13 = vadd.f32 %v327_v63, %v278_v11  ;;  %v261_v16 = vpop.f32.mrf.mxu0 }
  0xcf   :  { %428 = vst.msk [vmem:[%s869_s3 + $0x10] sm:$0xf] %vm423_vm2, %v411_v9  ;;  %v379_v17 = vld [vmem:[#allocation2 + $0x40] sm:$0xff]  ;;  %v311_v14 = vadd.f32 %v772_v21, %v261_v16 }
  0xd0   :  { %v399_v18 = vadd.f32 %v760_v6, %v379_v17  ;;  %361 = vst.msk [vmem:[#allocation2 + $0x48] sm:$0xff] %vm19_vm1, %v344_v12  ;;  %v348_v19 = vadd.f32 %v328_v13, %v65_v10 }
  0xd1   :  { %v383_v20 = vld [vmem:[#allocation2 + $0x60] sm:$0xff]  ;;  %v341_v22 = vadd.f32 %v311_v14, %v58_v15 }
  0xd2   :  { %v415_v23 = vpack.c.bf16 %v399_v18, %v399_v18  ;;  %v403_v24 = vadd.f32 %v760_v6, %v383_v20  ;;  %v376_v25 = vld [vmem:[#allocation2 + $0x28] sm:$0xff]  ;;  %365 = vst.msk [vmem:[#allocation2 + $0x68] sm:$0xff] %vm19_vm1, %v348_v19 }
  0xd3   :  { %v396_v26 = vadd.f32 %v760_v6, %v376_v25  ;;  %358 = vst.msk [vmem:[#allocation2 + $0x30] sm:$0xff] %vm19_vm1, %v341_v22 }
  0xd4   :  { %432 = vst.msk [vmem:[%s869_s3 + $0x20] sm:$0xf] %vm423_vm2, %v415_v23  ;;  %v419_v21 = vpack.c.bf16 %v403_v24, %v403_v24 }
  0xd5   :  { %v412_v28 = vpack.c.bf16 %v396_v26, %v396_v26  ;;  %v281_v30 = vpop.f32.mrf.mxu2 }
  0xd6   :  { %436 = vst.msk [vmem:[%s869_s3 + $0x30] sm:$0xf] %vm423_vm2, %v419_v21  ;;  %v331_v31 = vadd.f32 %v330_v27, %v281_v30  ;;  %v263_v33 = vpop.f32.mrf.mxu0 }
  0xd7   :  { %429 = vst.msk [vmem:[%s869_s3 + $0x14] sm:$0xf] %vm423_vm2, %v412_v28  ;;  %v380_v35 = vld [vmem:[#allocation2 + $0x48] sm:$0xff]  ;;  %v313_v36 = vadd.f32 %v781_v34, %v263_v33 }
  0xd8   :  { %v400_v37 = vadd.f32 %v760_v6, %v380_v35  ;;  %v349_v38 = vadd.f32 %v331_v31, %v66_v29 }
  0xd9   :  { %v384_v39 = vld [vmem:[#allocation2 + $0x68] sm:$0xff]  ;;  %v342_v40 = vadd.f32 %v313_v36, %v59_v32 }
  0xda   :  { %v416_v41 = vpack.c.bf16 %v400_v37, %v400_v37  ;;  %v404_v42 = vadd.f32 %v760_v6, %v384_v39  ;;  %v377_v43 = vld [vmem:[#allocation2 + $0x30] sm:$0xff]  ;;  %366 = vst.msk [vmem:[#allocation2 + $0x70] sm:$0xff] %vm19_vm1, %v349_v38 }
  0xdb   :  { %v397_v44 = vadd.f32 %v760_v6, %v377_v43  ;;  %359 = vst.msk [vmem:[#allocation2 + $0x38] sm:$0xff] %vm19_vm1, %v342_v40 }
  0xdc   :  { %433 = vst.msk [vmem:[%s869_s3 + $0x24] sm:$0xf] %vm423_vm2, %v416_v41  ;;  %v420_v34 = vpack.c.bf16 %v404_v42, %v404_v42 }
  0xdd   :  { %v413_v45 = vpack.c.bf16 %v397_v44, %v397_v44  ;;  %v283_v48 = vpop.f32.mrf.mxu2 }
  0xde   :  { %437 = vst.msk [vmem:[%s869_s3 + $0x34] sm:$0xf] %vm423_vm2, %v420_v34  ;;  %v333_v49 = vadd.f32 %v332_v46, %v283_v48 }
  0xdf   :  { %430 = vst.msk [vmem:[%s869_s3 + $0x18] sm:$0xf] %vm423_vm2, %v413_v45 }
  0xe0   :  { %v350_v50 = vadd.f32 %v333_v49, %v67_v47 }
  0xe1   :  { %v385_v51 = vld [vmem:[#allocation2 + $0x70] sm:$0xff] }
  0xe2   :  { %v405_v52 = vadd.f32 %v760_v6, %v385_v51  ;;  %v378_v53 = vld [vmem:[#allocation2 + $0x38] sm:$0xff]  ;;  %367 = vst.msk [vmem:[#allocation2 + $0x78] sm:$0xff] %vm19_vm1, %v350_v50 }
  0xe3   :  { %v398_v54 = vadd.f32 %v760_v6, %v378_v53 }
  0xe4   :  { %v421_v55 = vpack.c.bf16 %v405_v52, %v405_v52 }
  0xe5   :  { %v414_v56 = vpack.c.bf16 %v398_v54, %v398_v54 }
  0xe6   :  { %438 = vst.msk [vmem:[%s869_s3 + $0x38] sm:$0xf] %vm423_vm2, %v421_v55 }
  0xe7   :  { %431 = vst.msk [vmem:[%s869_s3 + $0x1c] sm:$0xf] %vm423_vm2, %v414_v56 }
  0xe9   :  { %v386_v57 = vld [vmem:[#allocation2 + $0x78] sm:$0xff] }
  0xea   :  { %v406_v58 = vadd.f32 %v760_v6, %v386_v57 }
  0xec   :  { %v422_v59 = vpack.c.bf16 %v406_v58, %v406_v58 }
  0xee   :  { %439 = vst.msk [vmem:[%s869_s3 + $0x3c] sm:$0xf] %vm423_vm2, %v422_v59 }

// kernel: lyft_densenet_forward.31
= control target key start
LH: loop header
LB: loop body
LE: loop exit
PB: predicated region body
PF: predicated region fallthrough
CT: control target
= control target key end

     0   :  { %vm191_vm0 = vcmask 1043456   ;;  %vm25_vm1 = vcmask 130048   ;;  %vm166_vm2 = vcmask 195584   ;;  %v431_v9 = vmov 0.0   ;;  %s676_s1 = inlined_call_operand.vmem [shape: bf16[24,16], index: 1, kind: input, shape index: {}]   ;;  %s677_s0 = inlined_call_operand.vmem [shape: bf16[128,24], index: 0, kind: input, shape index: {}]   ;;  %s678_s2 = inlined_call_operand.vmem [shape: f32[1,24], index: 2, kind: input, shape index: {}]   ;;  %s679_s3 = inlined_call_operand.vmem [shape: f32[1,24], index: 3, kind: input, shape index: {}]   ;;  %s680_s4 = inlined_call_operand.vmem [shape: f32[1,16], index: 4, kind: input, shape index: {}]   ;;  %s681_s5 = inlined_call_operand.vmem [shape: bf16[128,16], index: 5, kind: output, shape index: {}]  }
   0x1   :  { %v156_v0 = vld [vmem:[%s676_s1 + $0x8] sm:$0xf]  ;;  %v383_v1 = vld [vmem:[%s677_s0] sm:$0xff]   ;;  %v415_v7 = vld [vmem:[%s677_s0 + $0x10] sm:$0xff]   ;;  %26 = vst.msk [vmem:[#allocation2] sm:$0xff] %vm25_vm1, %v431_v9  ;;  %vm348_vm3 = vcmask 125952  }
   0x2   :  { %v162_v2 = vunpack.c.l.b16 %v156_v0  ;;  %v384_v3 = vunpack.c.l.bf16 %v383_v1  ;;  %v385_v4 = vunpack.c.h.bf16 %v383_v1  ;;  %v471_v5 = vld [vmem:[%s678_s2] ss:$0 sm:$0xff]  ;;  %v392_v13 = vunpack.c.l.bf16 %v415_v7  ;;  %v419_v14 = vld [vmem:[%s677_s0 + $0x30] sm:$0xff]   ;;  %27 = vst.msk [vmem:[#allocation2 + $0x8] sm:$0xff] %vm25_vm1, %v431_v9  ;;  %v414_v28 = vld [vmem:[%s677_s0 + $0x8] sm:$0xff]  }
   0x3   :  { %v476_v6 = vld [vmem:[%s679_s3] ss:$0 sm:$0xff]  ;;  %v393_v15 = vunpack.c.h.bf16 %v415_v7  ;;  %v408_v18 = vunpack.c.l.bf16 %v419_v14  ;;  %28 = vst.msk [vmem:[#allocation2 + $0x10] sm:$0xff] %vm25_vm1, %v431_v9  ;;  %v409_v27 = vunpack.c.h.bf16 %v419_v14  ;;  %v416_v37 = vld [vmem:[%s677_s0 + $0x18] sm:$0xff]   ;;  %v388_v41 = vunpack.c.l.bf16 %v414_v28  ;;  %v418_v46 = vld [vmem:[%s677_s0 + $0x28] sm:$0xff]  }
   0x4   :  { %v417_v8 = vld [vmem:[%s677_s0 + $0x20] sm:$0xff]   ;;  %v164_v10 = vpack.c.b16 %v162_v2, %v162_v2  ;;  %v78_v11 = vmul.f32 %v471_v5, %v384_v3  ;;  %v79_v12 = vmul.f32 %v471_v5, %v385_v4  ;;  %v82_v22 = vmul.f32 %v471_v5, %v392_v13  ;;  %29 = vst.msk [vmem:[#allocation2 + $0x18] sm:$0xff] %vm25_vm1, %v431_v9  ;;  %v420_v50 = vld [vmem:[%s677_s0 + $0x38] sm:$0xff]  }
   0x5   :  { %v400_v16 = vunpack.c.l.bf16 %v417_v8  ;;  %v401_v17 = vunpack.c.h.bf16 %v417_v8  ;;  %v381_v23 = vld [vmem:[%s676_s1] sm:$0xff]  ;;  %v83_v24 = vmul.f32 %v471_v5, %v393_v15  ;;  %v90_v32 = vmul.f32 %v471_v5, %v408_v18  ;;  %30 = vst.msk [vmem:[#allocation2 + $0x20] sm:$0xff] %vm25_vm1, %v431_v9 }
   0x6   :  { %v193_v19 = vsel %vm191_vm0, %v164_v10, 0  ;;  %v98_v20 = vadd.f32 %v476_v6, %v78_v11  ;;  %v99_v21 = vadd.f32 %v476_v6, %v79_v12  ;;  %v102_v31 = vadd.f32 %v476_v6, %v82_v22  ;;  %31 = vst.msk [vmem:[#allocation2 + $0x28] sm:$0xff] %vm25_vm1, %v431_v9 }
   0x7   :  { %201 = vmatpush.bf16.msra.mxu0 %v193_v19  ;;  %421 = vmatpush.bf16.msra.mxu1 %v193_v19  ;;  %v86_v25 = vmul.f32 %v471_v5, %v400_v16  ;;  %v87_v26 = vmul.f32 %v471_v5, %v401_v17  ;;  %v103_v33 = vadd.f32 %v476_v6, %v83_v24  ;;  %v389_v48 = vunpack.c.h.bf16 %v414_v28 }
   0x8   :  { %422 = vmatpush.bf16.msra.mxu2 %v193_v19  ;;  %423 = vmatpush.bf16.msra.mxu3 %v193_v19  ;;  %v114_v29 = vmax.f32 %v98_v20, 0.0  ;;  %v115_v30 = vmax.f32 %v99_v21, 0.0  ;;  %v91_v36 = vmul.f32 %v471_v5, %v409_v27  ;;  %v118_v39 = vmax.f32 %v102_v31, 0.0  ;;  %32 = vst.msk [vmem:[#allocation2 + $0x30] sm:$0xff] %vm25_vm1, %v431_v9 }
   0x9   :  { %v106_v34 = vadd.f32 %v476_v6, %v86_v25  ;;  %v107_v35 = vadd.f32 %v476_v6, %v87_v26  ;;  %v110_v40 = vadd.f32 %v476_v6, %v90_v32  ;;  %v119_v42 = vmax.f32 %v103_v33, 0.0  ;;  %33 = vst.msk [vmem:[#allocation2 + $0x38] sm:$0xff] %vm25_vm1, %v431_v9  ;;  %v139_v31 = vld [vmem:[#allocation2 + $0x8] sm:$0xff]  ;;  %v580_v32 = vld [vmem:[%s680_s4] ss:$0 sm:$0xff] }
   0xa   :  { %v130_v38 = vpack.c.bf16 %v115_v30, %v114_v29  ;;  %v111_v45 = vadd.f32 %v476_v6, %v91_v36  ;;  %v396_v49 = vunpack.c.l.bf16 %v416_v37  ;;  %34 = vst.msk [vmem:[#allocation2 + $0x40] sm:$0xff] %vm25_vm1, %v431_v9  ;;  %v397_v54 = vunpack.c.h.bf16 %v416_v37 }
   0xb   :  { %202 = vmatpush.bf16.msra.mxu0 %v381_v23  ;;  %424 = vmatpush.bf16.msra.mxu1 %v381_v23  ;;  %v122_v43 = vmax.f32 %v106_v34, 0.0  ;;  %v123_v44 = vmax.f32 %v107_v35, 0.0  ;;  %v126_v47 = vmax.f32 %v110_v40, 0.0  ;;  %v132_v51 = vpack.c.bf16 %v119_v42, %v118_v39  ;;  %35 = vst.msk [vmem:[#allocation2 + $0x48] sm:$0xff] %vm25_vm1, %v431_v9 }
   0xc   :  { %425 = vmatpush.bf16.msra.mxu2 %v381_v23  ;;  %426 = vmatpush.bf16.msra.mxu3 %v381_v23  ;;  %v127_v53 = vmax.f32 %v111_v45, 0.0  ;;  %v80_v55 = vmul.f32 %v471_v5, %v388_v41  ;;  %v81_v56 = vmul.f32 %v471_v5, %v389_v48  ;;  %v84_v57 = vmul.f32 %v471_v5, %v396_v49 }
   0xd   :  { %v134_v52 = vpack.c.bf16 %v123_v44, %v122_v43  ;;  %v404_v58 = vunpack.c.l.bf16 %v418_v46  ;;  %36 = vst.msk [vmem:[#allocation2 + $0x50] sm:$0xff] %vm25_vm1, %v431_v9  ;;  %v85_v60 = vmul.f32 %v471_v5, %v397_v54  ;;  %v405_v61 = vunpack.c.h.bf16 %v418_v46  ;;  %v143_v35 = vld [vmem:[#allocation2 + $0x28] sm:$0xff] }
   0xe   :  { %373 = vmatmul.msk.bf16.vlgmr.msra.gmra.mxu0 %vm166_vm2, %v130_v38  ;;  %375 = vmatmul.msk.bf16.vlgmr.msra.gmra.mxu1 %vm166_vm2, %v132_v51  ;;  %v136_v59 = vpack.c.bf16 %v127_v53, %v126_v47  ;;  %v412_v62 = vunpack.c.l.bf16 %v420_v50  ;;  %37 = vst.msk [vmem:[#allocation2 + $0x58] sm:$0xff] %vm25_vm1, %v431_v9  ;;  %v413_v1 = vunpack.c.h.bf16 %v420_v50  ;;  %v100_v3 = vadd.f32 %v476_v6, %v80_v55  ;;  %v140_v50 = vld [vmem:[#allocation2 + $0x10] sm:$0xff] }
   0xf   :  { %377 = vmatmul.msk.bf16.vlgmr.msra.gmra.mxu2 %vm166_vm2, %v134_v52  ;;  %v88_v63 = vmul.f32 %v471_v5, %v404_v58  ;;  %38 = vst.msk [vmem:[#allocation2 + $0x60] sm:$0xff] %vm25_vm1, %v431_v9  ;;  %v89_v0 = vmul.f32 %v471_v5, %v405_v61  ;;  %v101_v4 = vadd.f32 %v476_v6, %v81_v56  ;;  %v144_v54 = vld [vmem:[#allocation2 + $0x30] sm:$0xff] }
  0x10   :  { %379 = vmatmul.msk.bf16.vlgmr.msra.gmra.mxu3 %vm166_vm2, %v136_v59  ;;  %v92_v2 = vmul.f32 %v471_v5, %v412_v62  ;;  %39 = vst.msk [vmem:[#allocation2 + $0x68] sm:$0xff] %vm25_vm1, %v431_v9  ;;  %v104_v7 = vadd.f32 %v476_v6, %v84_v57  ;;  %v105_v8 = vadd.f32 %v476_v6, %v85_v60  ;;  %v116_v15 = vmax.f32 %v100_v3, 0.0 }
  0x11   :  { %40 = vst.msk [vmem:[#allocation2 + $0x70] sm:$0xff] %vm25_vm1, %v431_v9  ;;  %v108_v10 = vadd.f32 %v476_v6, %v88_v63  ;;  %v109_v11 = vadd.f32 %v476_v6, %v89_v0  ;;  %v93_v12 = vmul.f32 %v471_v5, %v413_v1  ;;  %v117_v16 = vmax.f32 %v101_v4, 0.0  ;;  %v138_v5 = vld [vmem:[#allocation2] sm:$0xff] }
  0x12   :  { %41 = vst.msk [vmem:[#allocation2 + $0x78] sm:$0xff] %vm25_vm1, %v431_v9  ;;  %v112_v13 = vadd.f32 %v476_v6, %v92_v2  ;;  %v120_v17 = vmax.f32 %v104_v7, 0.0  ;;  %v121_v18 = vmax.f32 %v105_v8, 0.0  ;;  %v146_v30 = vld [vmem:[#allocation2 + $0x40] sm:$0xff]  ;;  %v147_v48 = vld [vmem:[#allocation2 + $0x48] sm:$0xff] }
  0x13   :  { %v113_v14 = vadd.f32 %v476_v6, %v93_v12  ;;  %v124_v19 = vmax.f32 %v108_v10, 0.0  ;;  %v125_v20 = vmax.f32 %v109_v11, 0.0  ;;  %v131_v23 = vpack.c.bf16 %v117_v16, %v116_v15  ;;  %v142_v6 = vld [vmem:[#allocation2 + $0x20] sm:$0xff] }
  0x14   :  { %v128_v21 = vmax.f32 %v112_v13, 0.0  ;;  %v133_v24 = vpack.c.bf16 %v121_v18, %v120_v17  ;;  %v148_v12 = vld [vmem:[#allocation2 + $0x50] sm:$0xff] }
  0x15   :  { %v129_v22 = vmax.f32 %v113_v14, 0.0  ;;  %v135_v25 = vpack.c.bf16 %v125_v20, %v124_v19  ;;  %v141_v19 = vld [vmem:[#allocation2 + $0x18] sm:$0xff] }
  0x16   :  { %v150_v34 = vld [vmem:[#allocation2 + $0x60] sm:$0xff] }
  0x17   :  { %v137_v26 = vpack.c.bf16 %v129_v22, %v128_v21  ;;  %v151_v53 = vld [vmem:[#allocation2 + $0x68] sm:$0xff] }
  0x18   :  { %v152_v18 = vld [vmem:[#allocation2 + $0x70] sm:$0xff] }
  0x1e   :  { %374 = vmatmul.msk.bf16.gmra.mxu0 %vm166_vm2, %v131_v23  ;;  %376 = vmatmul.msk.bf16.gmra.mxu1 %vm166_vm2, %v133_v24  ;;  %v145_v23 = vld [vmem:[#allocation2 + $0x38] sm:$0xff] }
  0x1f   :  { %378 = vmatmul.msk.bf16.gmra.mxu2 %vm166_vm2, %v135_v25 }
  0x20   :  { %380 = vmatmul.msk.bf16.gmra.mxu3 %vm166_vm2, %v137_v26 }
  0x8b   :  { %v204_v9 = vpop.f32.mrf.mxu0  ;;  %v214_v28 = vpop.f32.mrf.mxu1 }
  0x8c   :  { %v244_v27 = vadd.f32 %v204_v9, %v138_v5  ;;  %v248_v29 = vadd.f32 %v214_v28, %v142_v6 }
  0x8e   :  { %261 = vst.msk [vmem:[#allocation2] sm:$0xff] %vm25_vm1, %v244_v27 }
  0x8f   :  { %265 = vst.msk [vmem:[#allocation2 + $0x20] sm:$0xff] %vm25_vm1, %v248_v29 }
  0x92   :  { %v224_v33 = vpop.f32.mrf.mxu2 }
  0x93   :  { %v252_v36 = vadd.f32 %v224_v33, %v146_v30  ;;  %v206_v37 = vpop.f32.mrf.mxu0  ;;  %v234_v38 = vpop.f32.mrf.mxu3 }
  0x94   :  { %v245_v39 = vadd.f32 %v206_v37, %v139_v31  ;;  %v216_v40 = vpop.f32.mrf.mxu1  ;;  %v256_v42 = vadd.f32 %v234_v38, %v150_v34  ;;  %v149_v38 = vld [vmem:[#allocation2 + $0x58] sm:$0xff] }
  0x95   :  { %v280_v41 = vld [vmem:[#allocation2] sm:$0xff]  ;;  %269 = vst.msk [vmem:[#allocation2 + $0x40] sm:$0xff] %vm25_vm1, %v252_v36  ;;  %v249_v43 = vadd.f32 %v216_v40, %v143_v35 }
  0x96   :  { %v300_v44 = vadd.f32 %v580_v32, %v280_v41  ;;  %v284_v45 = vld [vmem:[#allocation2 + $0x20] sm:$0xff]  ;;  %262 = vst.msk [vmem:[#allocation2 + $0x8] sm:$0xff] %vm25_vm1, %v245_v39 }
  0x97   :  { %v304_v46 = vadd.f32 %v580_v32, %v284_v45  ;;  %273 = vst.msk [vmem:[#allocation2 + $0x60] sm:$0xff] %vm25_vm1, %v256_v42  ;;  %v153_v42 = vld [vmem:[#allocation2 + $0x78] sm:$0xff] }
  0x98   :  { %v316_v47 = vmax.f32 %v300_v44, 0.0  ;;  %266 = vst.msk [vmem:[#allocation2 + $0x28] sm:$0xff] %vm25_vm1, %v249_v43 }
  0x99   :  { %v320_v49 = vmax.f32 %v304_v46, 0.0 }
  0x9a   :  { %v332_v51 = vpack.c.bf16 %v316_v47, %v316_v47  ;;  %v226_v52 = vpop.f32.mrf.mxu2 }
  0x9b   :  { %v336_v55 = vpack.c.bf16 %v320_v49, %v320_v49  ;;  %v253_v56 = vadd.f32 %v226_v52, %v147_v48  ;;  %v209_v57 = vpop.f32.mrf.mxu0  ;;  %v236_v59 = vpop.f32.mrf.mxu3 }
  0x9c   :  { %349 = vst.msk [vmem:[%s681_s5] sm:$0xf] %vm348_vm3, %v332_v51  ;;  %v288_v58 = vld [vmem:[#allocation2 + $0x40] sm:$0xff]  ;;  %v246_v60 = vadd.f32 %v209_v57, %v140_v50  ;;  %v219_v61 = vpop.f32.mrf.mxu1  ;;  %v257_v0 = vadd.f32 %v236_v59, %v151_v53 }
  0x9d   :  { %353 = vst.msk [vmem:[%s681_s5 + $0x10] sm:$0xf] %vm348_vm3, %v336_v55  ;;  %v308_v62 = vadd.f32 %v580_v32, %v288_v58  ;;  %v281_v63 = vld [vmem:[#allocation2 + $0x8] sm:$0xff]  ;;  %v250_v1 = vadd.f32 %v219_v61, %v144_v54 }
  0x9e   :  { %v292_v2 = vld [vmem:[#allocation2 + $0x60] sm:$0xff]  ;;  %v301_v3 = vadd.f32 %v580_v32, %v281_v63  ;;  %270 = vst.msk [vmem:[#allocation2 + $0x48] sm:$0xff] %vm25_vm1, %v253_v56 }
  0x9f   :  { %v324_v4 = vmax.f32 %v308_v62, 0.0  ;;  %v312_v7 = vadd.f32 %v580_v32, %v292_v2  ;;  %v285_v8 = vld [vmem:[#allocation2 + $0x28] sm:$0xff]  ;;  %274 = vst.msk [vmem:[#allocation2 + $0x68] sm:$0xff] %vm25_vm1, %v257_v0 }
  0xa0   :  { %v317_v10 = vmax.f32 %v301_v3, 0.0  ;;  %v305_v11 = vadd.f32 %v580_v32, %v285_v8  ;;  %263 = vst.msk [vmem:[#allocation2 + $0x10] sm:$0xff] %vm25_vm1, %v246_v60 }
  0xa1   :  { %v340_v13 = vpack.c.bf16 %v324_v4, %v324_v4  ;;  %v328_v14 = vmax.f32 %v312_v7, 0.0  ;;  %267 = vst.msk [vmem:[#allocation2 + $0x30] sm:$0xff] %vm25_vm1, %v250_v1 }
  0xa2   :  { %v333_v15 = vpack.c.bf16 %v317_v10, %v317_v10  ;;  %v321_v16 = vmax.f32 %v305_v11, 0.0  ;;  %v229_v17 = vpop.f32.mrf.mxu2 }
  0xa3   :  { %357 = vst.msk [vmem:[%s681_s5 + $0x20] sm:$0xf] %vm348_vm3, %v340_v13  ;;  %v344_v20 = vpack.c.bf16 %v328_v14, %v328_v14  ;;  %v254_v21 = vadd.f32 %v229_v17, %v148_v12  ;;  %v211_v22 = vpop.f32.mrf.mxu0  ;;  %v239_v25 = vpop.f32.mrf.mxu3 }
  0xa4   :  { %350 = vst.msk [vmem:[%s681_s5 + $0x4] sm:$0xf] %vm348_vm3, %v333_v15  ;;  %v337_v24 = vpack.c.bf16 %v321_v16, %v321_v16  ;;  %v221_v26 = vpop.f32.mrf.mxu1  ;;  %v258_v6 = vadd.f32 %v239_v25, %v152_v18  ;;  %v247_v9 = vadd.f32 %v211_v22, %v141_v19 }
  0xa5   :  { %361 = vst.msk [vmem:[%s681_s5 + $0x30] sm:$0xf] %vm348_vm3, %v344_v20  ;;  %v289_v5 = vld [vmem:[#allocation2 + $0x48] sm:$0xff]  ;;  %v251_v29 = vadd.f32 %v221_v26, %v145_v23 }
  0xa6   :  { %354 = vst.msk [vmem:[%s681_s5 + $0x14] sm:$0xf] %vm348_vm3, %v337_v24  ;;  %v309_v27 = vadd.f32 %v580_v32, %v289_v5  ;;  %v293_v28 = vld [vmem:[#allocation2 + $0x68] sm:$0xff] }
  0xa7   :  { %v313_v30 = vadd.f32 %v580_v32, %v293_v28  ;;  %v282_v31 = vld [vmem:[#allocation2 + $0x10] sm:$0xff]  ;;  %271 = vst.msk [vmem:[#allocation2 + $0x50] sm:$0xff] %vm25_vm1, %v254_v21 }
  0xa8   :  { %v325_v33 = vmax.f32 %v309_v27, 0.0  ;;  %v302_v34 = vadd.f32 %v580_v32, %v282_v31  ;;  %v286_v35 = vld [vmem:[#allocation2 + $0x30] sm:$0xff]  ;;  %275 = vst.msk [vmem:[#allocation2 + $0x70] sm:$0xff] %vm25_vm1, %v258_v6 }
  0xa9   :  { %v329_v36 = vmax.f32 %v313_v30, 0.0  ;;  %v306_v37 = vadd.f32 %v580_v32, %v286_v35  ;;  %264 = vst.msk [vmem:[#allocation2 + $0x18] sm:$0xff] %vm25_vm1, %v247_v9 }
  0xaa   :  { %v341_v39 = vpack.c.bf16 %v325_v33, %v325_v33  ;;  %v318_v40 = vmax.f32 %v302_v34, 0.0  ;;  %268 = vst.msk [vmem:[#allocation2 + $0x38] sm:$0xff] %vm25_vm1, %v251_v29  ;;  %v231_v41 = vpop.f32.mrf.mxu2 }
  0xab   :  { %v345_v43 = vpack.c.bf16 %v329_v36, %v329_v36  ;;  %v322_v44 = vmax.f32 %v306_v37, 0.0  ;;  %v255_v46 = vadd.f32 %v231_v41, %v149_v38  ;;  %v241_v47 = vpop.f32.mrf.mxu3 }
  0xac   :  { %358 = vst.msk [vmem:[%s681_s5 + $0x24] sm:$0xf] %vm348_vm3, %v341_v39  ;;  %v334_v45 = vpack.c.bf16 %v318_v40, %v318_v40  ;;  %v259_v49 = vadd.f32 %v241_v47, %v153_v42 }
  0xad   :  { %362 = vst.msk [vmem:[%s681_s5 + $0x34] sm:$0xf] %vm348_vm3, %v345_v43  ;;  %v338_v48 = vpack.c.bf16 %v322_v44, %v322_v44 }
  0xae   :  { %351 = vst.msk [vmem:[%s681_s5 + $0x8] sm:$0xf] %vm348_vm3, %v334_v45  ;;  %v290_v50 = vld [vmem:[#allocation2 + $0x50] sm:$0xff] }
  0xaf   :  { %355 = vst.msk [vmem:[%s681_s5 + $0x18] sm:$0xf] %vm348_vm3, %v338_v48  ;;  %v310_v51 = vadd.f32 %v580_v32, %v290_v50  ;;  %v294_v52 = vld [vmem:[#allocation2 + $0x70] sm:$0xff] }
  0xb0   :  { %v314_v53 = vadd.f32 %v580_v32, %v294_v52  ;;  %v283_v54 = vld [vmem:[#allocation2 + $0x18] sm:$0xff]  ;;  %272 = vst.msk [vmem:[#allocation2 + $0x58] sm:$0xff] %vm25_vm1, %v255_v46 }
  0xb1   :  { %v326_v55 = vmax.f32 %v310_v51, 0.0  ;;  %v303_v56 = vadd.f32 %v580_v32, %v283_v54  ;;  %v287_v57 = vld [vmem:[#allocation2 + $0x38] sm:$0xff]  ;;  %276 = vst.msk [vmem:[#allocation2 + $0x78] sm:$0xff] %vm25_vm1, %v259_v49 }
  0xb2   :  { %v330_v58 = vmax.f32 %v314_v53, 0.0  ;;  %v307_v59 = vadd.f32 %v580_v32, %v287_v57 }
  0xb3   :  { %v342_v60 = vpack.c.bf16 %v326_v55, %v326_v55  ;;  %v319_v61 = vmax.f32 %v303_v56, 0.0 }
  0xb4   :  { %v346_v62 = vpack.c.bf16 %v330_v58, %v330_v58  ;;  %v323_v63 = vmax.f32 %v307_v59, 0.0 }
  0xb5   :  { %359 = vst.msk [vmem:[%s681_s5 + $0x28] sm:$0xf] %vm348_vm3, %v342_v60  ;;  %v335_v0 = vpack.c.bf16 %v319_v61, %v319_v61 }
  0xb6   :  { %363 = vst.msk [vmem:[%s681_s5 + $0x38] sm:$0xf] %vm348_vm3, %v346_v62  ;;  %v339_v1 = vpack.c.bf16 %v323_v63, %v323_v63 }
  0xb7   :  { %352 = vst.msk [vmem:[%s681_s5 + $0xc] sm:$0xf] %vm348_vm3, %v335_v0  ;;  %v291_v2 = vld [vmem:[#allocation2 + $0x58] sm:$0xff] }
  0xb8   :  { %356 = vst.msk [vmem:[%s681_s5 + $0x1c] sm:$0xf] %vm348_vm3, %v339_v1  ;;  %v311_v3 = vadd.f32 %v580_v32, %v291_v2  ;;  %v295_v4 = vld [vmem:[#allocation2 + $0x78] sm:$0xff] }
  0xb9   :  { %v315_v7 = vadd.f32 %v580_v32, %v295_v4 }
  0xba   :  { %v327_v8 = vmax.f32 %v311_v3, 0.0 }
  0xbb   :  { %v331_v10 = vmax.f32 %v315_v7, 0.0 }
  0xbc   :  { %v343_v11 = vpack.c.bf16 %v327_v8, %v327_v8 }
  0xbd   :  { %v347_v12 = vpack.c.bf16 %v331_v10, %v331_v10 }
  0xbe   :  { %360 = vst.msk [vmem:[%s681_s5 + $0x2c] sm:$0xf] %vm348_vm3, %v343_v11 }
  0xbf   :  { %364 = vst.msk [vmem:[%s681_s5 + $0x3c] sm:$0xf] %vm348_vm3, %v347_v12 }

// kernel: lyft_densenet_forward.34
= control target key start
LH: loop header
LB: loop body
LE: loop exit
PB: predicated region body
PF: predicated region fallthrough
CT: control target
= control target key end

     0   :  { %vm40_vm0 = vcmask 130048   ;;  %vm77_vm1 = vcmask 125952   ;;  %s191_s0 = inlined_call_operand.vmem [shape: bf16[4,32,16], index: 0, kind: input, shape index: {}]   ;;  %s192_s1 = inlined_call_operand.vmem [shape: bf16[32,16], index: 1, kind: output, shape index: {}]  }
   0x1   :  { %v87_v0 = vld [vmem:[%s191_s0] sm:$0xff]   ;;  %v119_v1 = vld [vmem:[%s191_s0 + $0x10] sm:$0xff]   ;;  %v118_v12 = vld [vmem:[%s191_s0 + $0x8] sm:$0xff]  }
   0x2   :  { %v121_v2 = vld [vmem:[%s191_s0 + $0x20] sm:$0xff]   ;;  %v88_v3 = vunpack.c.l.bf16 %v87_v0  ;;  %v96_v4 = vunpack.c.l.bf16 %v119_v1  ;;  %v123_v6 = vld [vmem:[%s191_s0 + $0x30] sm:$0xff]   ;;  %v89_v7 = vunpack.c.h.bf16 %v87_v0  ;;  %v97_v9 = vunpack.c.h.bf16 %v119_v1  ;;  %v120_v13 = vld [vmem:[%s191_s0 + $0x18] sm:$0xff]  }
   0x3   :  { %v104_v5 = vunpack.c.l.bf16 %v121_v2  ;;  %v112_v8 = vunpack.c.l.bf16 %v123_v6  ;;  %v105_v10 = vunpack.c.h.bf16 %v121_v2  ;;  %v113_v11 = vunpack.c.h.bf16 %v123_v6  ;;  %v122_v18 = vld [vmem:[%s191_s0 + $0x28] sm:$0xff]   ;;  %v124_v19 = vld [vmem:[%s191_s0 + $0x38] sm:$0xff]  }
   0x4   :  { %v41_v14 = vsel %vm40_vm0, %v88_v3, 0.0  ;;  %v42_v15 = vsel %vm40_vm0, %v96_v4, 0.0  ;;  %v48_v17 = vsel %vm40_vm0, %v89_v7, 0.0  ;;  %v49_v22 = vsel %vm40_vm0, %v97_v9, 0.0 }
   0x5   :  { %v44_v16 = vsel %vm40_vm0, %v104_v5, 0.0  ;;  %v43_v20 = vadd.f32 %v42_v15, %v41_v14  ;;  %v46_v21 = vsel %vm40_vm0, %v112_v8, 0.0  ;;  %v51_v23 = vsel %vm40_vm0, %v105_v10, 0.0 }
   0x6   :  { %v50_v24 = vadd.f32 %v49_v22, %v48_v17  ;;  %v53_v25 = vsel %vm40_vm0, %v113_v11, 0.0  ;;  %v92_v26 = vunpack.c.l.bf16 %v118_v12  ;;  %v100_v27 = vunpack.c.l.bf16 %v120_v13 }
   0x7   :  { %v45_v28 = vadd.f32 %v44_v16, %v43_v20  ;;  %v108_v29 = vunpack.c.l.bf16 %v122_v18  ;;  %v116_v30 = vunpack.c.l.bf16 %v124_v19  ;;  %v93_v31 = vunpack.c.h.bf16 %v118_v12 }
   0x8   :  { %v52_v32 = vadd.f32 %v51_v23, %v50_v24  ;;  %v55_v33 = vsel %vm40_vm0, %v92_v26, 0.0  ;;  %v56_v34 = vsel %vm40_vm0, %v100_v27, 0.0  ;;  %v101_v35 = vunpack.c.h.bf16 %v120_v13 }
   0x9   :  { %v47_v36 = vadd.f32 %v46_v21, %v45_v28  ;;  %v57_v37 = vadd.f32 %v56_v34, %v55_v33  ;;  %v58_v38 = vsel %vm40_vm0, %v108_v29, 0.0  ;;  %v60_v39 = vsel %vm40_vm0, %v116_v30, 0.0 }
   0xa   :  { %v54_v40 = vadd.f32 %v53_v25, %v52_v32  ;;  %v109_v41 = vunpack.c.h.bf16 %v122_v18  ;;  %v117_v42 = vunpack.c.h.bf16 %v124_v19  ;;  %v62_v43 = vsel %vm40_vm0, %v93_v31, 0.0 }
   0xb   :  { %v69_v44 = vmul.f32 0.25, %v47_v36  ;;  %v59_v45 = vadd.f32 %v58_v38, %v57_v37  ;;  %v63_v46 = vsel %vm40_vm0, %v101_v35, 0.0 }
   0xc   :  { %v70_v47 = vmul.f32 0.25, %v54_v40  ;;  %v64_v48 = vadd.f32 %v63_v46, %v62_v43  ;;  %v65_v49 = vsel %vm40_vm0, %v109_v41, 0.0  ;;  %v67_v52 = vsel %vm40_vm0, %v117_v42, 0.0 }
   0xd   :  { %v73_v50 = vpack.c.bf16 %v69_v44, %v69_v44  ;;  %v61_v51 = vadd.f32 %v60_v39, %v59_v45 }
   0xe   :  { %v74_v53 = vpack.c.bf16 %v70_v47, %v70_v47  ;;  %v66_v54 = vadd.f32 %v65_v49, %v64_v48 }
   0xf   :  { %78 = vst.msk [vmem:[%s192_s1] sm:$0xf] %vm77_vm1, %v73_v50  ;;  %v71_v55 = vmul.f32 0.25, %v61_v51 }
  0x10   :  { %79 = vst.msk [vmem:[%s192_s1 + $0x4] sm:$0xf] %vm77_vm1, %v74_v53  ;;  %v68_v56 = vadd.f32 %v67_v52, %v66_v54 }
  0x11   :  { %v75_v57 = vpack.c.bf16 %v71_v55, %v71_v55 }
  0x12   :  { %v72_v58 = vmul.f32 0.25, %v68_v56 }
  0x13   :  { %80 = vst.msk [vmem:[%s192_s1 + $0x8] sm:$0xf] %vm77_vm1, %v75_v57 }
  0x14   :  { %v76_v59 = vpack.c.bf16 %v72_v58, %v72_v58 }
  0x16   :  { %81 = vst.msk [vmem:[%s192_s1 + $0xc] sm:$0xf] %vm77_vm1, %v76_v59 }

// kernel: lyft_densenet_forward.33
= control target key start
LH: loop header
LB: loop body
LE: loop exit
PB: predicated region body
PF: predicated region fallthrough
CT: control target
= control target key end

     0   :  { %vm25_vm0 = vcmask 130048   ;;  %vm170_vm1 = vcmask 261120   ;;  %v420_v9 = vmov 0.0   ;;  %vm332_vm2 = vcmask 125952   ;;  %s664_s1 = inlined_call_operand.vmem [shape: bf16[32,16], index: 1, kind: input, shape index: {}]   ;;  %s665_s0 = inlined_call_operand.vmem [shape: bf16[128,32], index: 0, kind: input, shape index: {}]   ;;  %s666_s2 = inlined_call_operand.vmem [shape: f32[1,32], index: 2, kind: input, shape index: {}]   ;;  %s667_s3 = inlined_call_operand.vmem [shape: f32[1,32], index: 3, kind: input, shape index: {}]   ;;  %s668_s4 = inlined_call_operand.vmem [shape: f32[1,16], index: 4, kind: input, shape index: {}]   ;;  %s669_s5 = inlined_call_operand.vmem [shape: bf16[128,16], index: 5, kind: output, shape index: {}]  }
   0x1   :  { %v370_v0 = vld [vmem:[%s664_s1 + $0x8] sm:$0xff]  ;;  %v369_v1 = vld [vmem:[%s664_s1] sm:$0xff]  ;;  %v404_v7 = vld [vmem:[%s665_s0 + $0x10] sm:$0xff]   ;;  %26 = vst.msk [vmem:[#allocation2] sm:$0xff] %vm25_vm0, %v420_v9 }
   0x2   :  { %v372_v2 = vld [vmem:[%s665_s0] sm:$0xff]   ;;  %201 = vmatpush.bf16.msra.mxu0 %v370_v0  ;;  %410 = vmatpush.bf16.msra.mxu1 %v370_v0  ;;  %v381_v12 = vunpack.c.l.bf16 %v404_v7  ;;  %v382_v13 = vunpack.c.h.bf16 %v404_v7  ;;  %v408_v14 = vld [vmem:[%s665_s0 + $0x30] sm:$0xff]   ;;  %v403_v15 = vld [vmem:[%s665_s0 + $0x8] sm:$0xff]   ;;  %27 = vst.msk [vmem:[#allocation2 + $0x8] sm:$0xff] %vm25_vm0, %v420_v9 }
   0x3   :  { %v373_v3 = vunpack.c.l.bf16 %v372_v2  ;;  %v374_v4 = vunpack.c.h.bf16 %v372_v2  ;;  %v463_v5 = vld [vmem:[%s666_s2] ss:$0 sm:$0xff]  ;;  %411 = vmatpush.bf16.msra.mxu2 %v370_v0  ;;  %412 = vmatpush.bf16.msra.mxu3 %v370_v0  ;;  %v397_v18 = vunpack.c.l.bf16 %v408_v14  ;;  %v398_v19 = vunpack.c.h.bf16 %v408_v14  ;;  %28 = vst.msk [vmem:[#allocation2 + $0x10] sm:$0xff] %vm25_vm0, %v420_v9  ;;  %v405_v36 = vld [vmem:[%s665_s0 + $0x18] sm:$0xff]   ;;  %v407_v41 = vld [vmem:[%s665_s0 + $0x28] sm:$0xff]  }
   0x4   :  { %v468_v6 = vld [vmem:[%s667_s3] ss:$0 sm:$0xff]  ;;  %v82_v22 = vmul.f32 %v463_v5, %v381_v12  ;;  %v83_v23 = vmul.f32 %v463_v5, %v382_v13  ;;  %29 = vst.msk [vmem:[#allocation2 + $0x18] sm:$0xff] %vm25_vm0, %v420_v9  ;;  %v377_v27 = vunpack.c.l.bf16 %v403_v15  ;;  %v378_v40 = vunpack.c.h.bf16 %v403_v15  ;;  %v409_v50 = vld [vmem:[%s665_s0 + $0x38] sm:$0xff]  }
   0x5   :  { %v406_v8 = vld [vmem:[%s665_s0 + $0x20] sm:$0xff]   ;;  %v78_v10 = vmul.f32 %v463_v5, %v373_v3  ;;  %v79_v11 = vmul.f32 %v463_v5, %v374_v4  ;;  %v90_v26 = vmul.f32 %v463_v5, %v397_v18  ;;  %30 = vst.msk [vmem:[#allocation2 + $0x20] sm:$0xff] %vm25_vm0, %v420_v9  ;;  %v91_v34 = vmul.f32 %v463_v5, %v398_v19 }
   0x6   :  { %v389_v16 = vunpack.c.l.bf16 %v406_v8  ;;  %v390_v17 = vunpack.c.h.bf16 %v406_v8  ;;  %202 = vmatpush.bf16.msra.mxu0 %v369_v1  ;;  %413 = vmatpush.bf16.msra.mxu1 %v369_v1  ;;  %v102_v30 = vadd.f32 %v468_v6, %v82_v22  ;;  %v103_v31 = vadd.f32 %v468_v6, %v83_v23  ;;  %31 = vst.msk [vmem:[#allocation2 + $0x28] sm:$0xff] %vm25_vm0, %v420_v9 }
   0x7   :  { %v98_v20 = vadd.f32 %v468_v6, %v78_v10  ;;  %v99_v21 = vadd.f32 %v468_v6, %v79_v11  ;;  %414 = vmatpush.bf16.msra.mxu2 %v369_v1  ;;  %415 = vmatpush.bf16.msra.mxu3 %v369_v1  ;;  %v110_v35 = vadd.f32 %v468_v6, %v90_v26  ;;  %v385_v49 = vunpack.c.l.bf16 %v405_v36 }
   0x8   :  { %v86_v24 = vmul.f32 %v463_v5, %v389_v16  ;;  %v87_v25 = vmul.f32 %v463_v5, %v390_v17  ;;  %v118_v38 = vmax.f32 %v102_v30, 0.0  ;;  %v119_v39 = vmax.f32 %v103_v31, 0.0  ;;  %32 = vst.msk [vmem:[#allocation2 + $0x30] sm:$0xff] %vm25_vm0, %v420_v9 }
   0x9   :  { %v114_v28 = vmax.f32 %v98_v20, 0.0  ;;  %v115_v29 = vmax.f32 %v99_v21, 0.0  ;;  %v111_v44 = vadd.f32 %v468_v6, %v91_v34  ;;  %v126_v45 = vmax.f32 %v110_v35, 0.0  ;;  %33 = vst.msk [vmem:[#allocation2 + $0x38] sm:$0xff] %vm25_vm0, %v420_v9 }
   0xa   :  { %v106_v32 = vadd.f32 %v468_v6, %v86_v24  ;;  %v107_v33 = vadd.f32 %v468_v6, %v87_v25  ;;  %v132_v46 = vpack.c.bf16 %v119_v39, %v118_v38  ;;  %v80_v47 = vmul.f32 %v463_v5, %v377_v27  ;;  %34 = vst.msk [vmem:[#allocation2 + $0x40] sm:$0xff] %vm25_vm0, %v420_v9  ;;  %v139_v27 = vld [vmem:[#allocation2 + $0x8] sm:$0xff] }
   0xb   :  { %v130_v37 = vpack.c.bf16 %v115_v29, %v114_v28  ;;  %v81_v48 = vmul.f32 %v463_v5, %v378_v40  ;;  %v127_v52 = vmax.f32 %v111_v44, 0.0  ;;  %v386_v53 = vunpack.c.h.bf16 %v405_v36  ;;  %35 = vst.msk [vmem:[#allocation2 + $0x48] sm:$0xff] %vm25_vm0, %v420_v9  ;;  %v568_v28 = vld [vmem:[%s668_s4] ss:$0 sm:$0xff] }
   0xc   :  { %v122_v42 = vmax.f32 %v106_v32, 0.0  ;;  %v123_v43 = vmax.f32 %v107_v33, 0.0  ;;  %v393_v54 = vunpack.c.l.bf16 %v407_v41  ;;  %363 = vmatmul.msk.bf16.vlgmr.msra.gmra.mxu1 %vm170_vm1, %v132_v46  ;;  %v84_v55 = vmul.f32 %v463_v5, %v385_v49  ;;  %36 = vst.msk [vmem:[#allocation2 + $0x50] sm:$0xff] %vm25_vm0, %v420_v9  ;;  %v142_v23 = vld [vmem:[#allocation2 + $0x20] sm:$0xff] }
   0xd   :  { %361 = vmatmul.msk.bf16.vlgmr.msra.gmra.mxu0 %vm170_vm1, %v130_v37  ;;  %v394_v56 = vunpack.c.h.bf16 %v407_v41  ;;  %v136_v57 = vpack.c.bf16 %v127_v52, %v126_v45  ;;  %v85_v58 = vmul.f32 %v463_v5, %v386_v53  ;;  %v401_v60 = vunpack.c.l.bf16 %v409_v50  ;;  %37 = vst.msk [vmem:[#allocation2 + $0x58] sm:$0xff] %vm25_vm0, %v420_v9  ;;  %v143_v31 = vld [vmem:[#allocation2 + $0x28] sm:$0xff]  ;;  %v140_v45 = vld [vmem:[#allocation2 + $0x10] sm:$0xff] }
   0xe   :  { %v134_v51 = vpack.c.bf16 %v123_v43, %v122_v42  ;;  %v88_v59 = vmul.f32 %v463_v5, %v393_v54  ;;  %v100_v61 = vadd.f32 %v468_v6, %v80_v47  ;;  %v101_v62 = vadd.f32 %v468_v6, %v81_v48  ;;  %38 = vst.msk [vmem:[#allocation2 + $0x60] sm:$0xff] %vm25_vm0, %v420_v9 }
   0xf   :  { %v89_v63 = vmul.f32 %v463_v5, %v394_v56  ;;  %367 = vmatmul.msk.bf16.vlgmr.msra.gmra.mxu3 %vm170_vm1, %v136_v57  ;;  %v402_v0 = vunpack.c.h.bf16 %v409_v50  ;;  %v92_v1 = vmul.f32 %v463_v5, %v401_v60  ;;  %39 = vst.msk [vmem:[#allocation2 + $0x68] sm:$0xff] %vm25_vm0, %v420_v9  ;;  %v104_v2 = vadd.f32 %v468_v6, %v84_v55  ;;  %v144_v49 = vld [vmem:[#allocation2 + $0x30] sm:$0xff] }
  0x10   :  { %365 = vmatmul.msk.bf16.vlgmr.msra.gmra.mxu2 %vm170_vm1, %v134_v51  ;;  %v105_v3 = vadd.f32 %v468_v6, %v85_v58  ;;  %40 = vst.msk [vmem:[#allocation2 + $0x70] sm:$0xff] %vm25_vm0, %v420_v9  ;;  %v108_v4 = vadd.f32 %v468_v6, %v88_v59  ;;  %v116_v10 = vmax.f32 %v100_v61, 0.0  ;;  %v117_v11 = vmax.f32 %v101_v62, 0.0 }
  0x11   :  { %v109_v7 = vadd.f32 %v468_v6, %v89_v63  ;;  %v93_v8 = vmul.f32 %v463_v5, %v402_v0  ;;  %41 = vst.msk [vmem:[#allocation2 + $0x78] sm:$0xff] %vm25_vm0, %v420_v9  ;;  %v112_v12 = vadd.f32 %v468_v6, %v92_v1  ;;  %v120_v14 = vmax.f32 %v104_v2, 0.0  ;;  %v138_v9 = vld [vmem:[#allocation2] sm:$0xff] }
  0x12   :  { %v121_v15 = vmax.f32 %v105_v3, 0.0  ;;  %v124_v16 = vmax.f32 %v108_v4, 0.0  ;;  %v131_v18 = vpack.c.bf16 %v117_v11, %v116_v10  ;;  %v146_v29 = vld [vmem:[#allocation2 + $0x40] sm:$0xff]  ;;  %v147_v47 = vld [vmem:[#allocation2 + $0x48] sm:$0xff]  ;;  %v141_v4 = vld [vmem:[#allocation2 + $0x18] sm:$0xff] }
  0x13   :  { %v113_v13 = vadd.f32 %v468_v6, %v93_v8  ;;  %v125_v17 = vmax.f32 %v109_v7, 0.0  ;;  %v128_v19 = vmax.f32 %v112_v12, 0.0  ;;  %v148_v8 = vld [vmem:[#allocation2 + $0x50] sm:$0xff]  ;;  %v145_v12 = vld [vmem:[#allocation2 + $0x38] sm:$0xff] }
  0x14   :  { %v133_v21 = vpack.c.bf16 %v121_v15, %v120_v14 }
  0x15   :  { %v129_v20 = vmax.f32 %v113_v13, 0.0  ;;  %v135_v22 = vpack.c.bf16 %v125_v17, %v124_v16  ;;  %v150_v33 = vld [vmem:[#allocation2 + $0x60] sm:$0xff] }
  0x16   :  { %v151_v51 = vld [vmem:[#allocation2 + $0x68] sm:$0xff] }
  0x17   :  { %v137_v5 = vpack.c.bf16 %v129_v20, %v128_v19  ;;  %v152_v14 = vld [vmem:[#allocation2 + $0x70] sm:$0xff] }
  0x1c   :  { %364 = vmatmul.msk.bf16.gmra.mxu1 %vm170_vm1, %v133_v21 }
  0x1d   :  { %362 = vmatmul.msk.bf16.gmra.mxu0 %vm170_vm1, %v131_v18 }
  0x1f   :  { %368 = vmatmul.msk.bf16.gmra.mxu3 %vm170_vm1, %v137_v5 }
  0x20   :  { %366 = vmatmul.msk.bf16.gmra.mxu2 %vm170_vm1, %v135_v22 }
  0x89   :  { %v214_v25 = vpop.f32.mrf.mxu1 }
  0x8a   :  { %v204_v6 = vpop.f32.mrf.mxu0  ;;  %v248_v26 = vadd.f32 %v214_v25, %v142_v23 }
  0x8b   :  { %v244_v24 = vadd.f32 %v204_v6, %v138_v9 }
  0x8c   :  { %265 = vst.msk [vmem:[#allocation2 + $0x20] sm:$0xff] %vm25_vm0, %v248_v26 }
  0x8d   :  { %261 = vst.msk [vmem:[#allocation2] sm:$0xff] %vm25_vm0, %v244_v24 }
  0x91   :  { %v216_v37 = vpop.f32.mrf.mxu1 }
  0x92   :  { %v206_v30 = vpop.f32.mrf.mxu0  ;;  %v234_v39 = vpop.f32.mrf.mxu3  ;;  %v249_v40 = vadd.f32 %v216_v37, %v143_v31 }
  0x93   :  { %v224_v32 = vpop.f32.mrf.mxu2  ;;  %v245_v34 = vadd.f32 %v206_v30, %v139_v27  ;;  %v284_v41 = vld [vmem:[#allocation2 + $0x20] sm:$0xff]  ;;  %v256_v42 = vadd.f32 %v234_v39, %v150_v33  ;;  %v149_v30 = vld [vmem:[#allocation2 + $0x58] sm:$0xff] }
  0x94   :  { %v280_v35 = vld [vmem:[#allocation2] sm:$0xff]  ;;  %v252_v36 = vadd.f32 %v224_v32, %v146_v29  ;;  %v304_v44 = vadd.f32 %v568_v28, %v284_v41  ;;  %266 = vst.msk [vmem:[#allocation2 + $0x28] sm:$0xff] %vm25_vm0, %v249_v40  ;;  %v153_v33 = vld [vmem:[#allocation2 + $0x78] sm:$0xff] }
  0x95   :  { %v300_v38 = vadd.f32 %v568_v28, %v280_v35  ;;  %262 = vst.msk [vmem:[#allocation2 + $0x8] sm:$0xff] %vm25_vm0, %v245_v34 }
  0x96   :  { %269 = vst.msk [vmem:[#allocation2 + $0x40] sm:$0xff] %vm25_vm0, %v252_v36  ;;  %v320_v46 = vpack.c.bf16 %v304_v44, %v304_v44 }
  0x97   :  { %v316_v43 = vpack.c.bf16 %v300_v38, %v300_v38  ;;  %273 = vst.msk [vmem:[#allocation2 + $0x60] sm:$0xff] %vm25_vm0, %v256_v42 }
  0x98   :  { %337 = vst.msk [vmem:[%s669_s5 + $0x10] sm:$0xf] %vm332_vm2, %v320_v46 }
  0x99   :  { %333 = vst.msk [vmem:[%s669_s5] sm:$0xf] %vm332_vm2, %v316_v43  ;;  %v219_v55 = vpop.f32.mrf.mxu1 }
  0x9a   :  { %v209_v48 = vpop.f32.mrf.mxu0  ;;  %v236_v58 = vpop.f32.mrf.mxu3  ;;  %v250_v59 = vadd.f32 %v219_v55, %v144_v49 }
  0x9b   :  { %v226_v50 = vpop.f32.mrf.mxu2  ;;  %v246_v52 = vadd.f32 %v209_v48, %v140_v45  ;;  %v285_v61 = vld [vmem:[#allocation2 + $0x28] sm:$0xff]  ;;  %v257_v62 = vadd.f32 %v236_v58, %v151_v51 }
  0x9c   :  { %v281_v53 = vld [vmem:[#allocation2 + $0x8] sm:$0xff]  ;;  %v253_v54 = vadd.f32 %v226_v50, %v147_v47  ;;  %v305_v1 = vadd.f32 %v568_v28, %v285_v61  ;;  %267 = vst.msk [vmem:[#allocation2 + $0x30] sm:$0xff] %vm25_vm0, %v250_v59 }
  0x9d   :  { %v288_v56 = vld [vmem:[#allocation2 + $0x40] sm:$0xff]  ;;  %v301_v57 = vadd.f32 %v568_v28, %v281_v53  ;;  %263 = vst.msk [vmem:[#allocation2 + $0x10] sm:$0xff] %vm25_vm0, %v246_v52 }
  0x9e   :  { %v308_v60 = vadd.f32 %v568_v28, %v288_v56  ;;  %270 = vst.msk [vmem:[#allocation2 + $0x48] sm:$0xff] %vm25_vm0, %v253_v54  ;;  %v292_v63 = vld [vmem:[#allocation2 + $0x60] sm:$0xff]  ;;  %v321_v7 = vpack.c.bf16 %v305_v1, %v305_v1 }
  0x9f   :  { %v317_v0 = vpack.c.bf16 %v301_v57, %v301_v57  ;;  %v312_v3 = vadd.f32 %v568_v28, %v292_v63  ;;  %274 = vst.msk [vmem:[#allocation2 + $0x68] sm:$0xff] %vm25_vm0, %v257_v62 }
  0xa0   :  { %v324_v2 = vpack.c.bf16 %v308_v60, %v308_v60  ;;  %338 = vst.msk [vmem:[%s669_s5 + $0x14] sm:$0xf] %vm332_vm2, %v321_v7 }
  0xa1   :  { %334 = vst.msk [vmem:[%s669_s5 + $0x4] sm:$0xf] %vm332_vm2, %v317_v0  ;;  %v328_v10 = vpack.c.bf16 %v312_v3, %v312_v3  ;;  %v221_v18 = vpop.f32.mrf.mxu1 }
  0xa2   :  { %341 = vst.msk [vmem:[%s669_s5 + $0x20] sm:$0xf] %vm332_vm2, %v324_v2  ;;  %v211_v11 = vpop.f32.mrf.mxu0  ;;  %v239_v21 = vpop.f32.mrf.mxu3  ;;  %v251_v22 = vadd.f32 %v221_v18, %v145_v12 }
  0xa3   :  { %v229_v13 = vpop.f32.mrf.mxu2  ;;  %v247_v15 = vadd.f32 %v211_v11, %v141_v4  ;;  %345 = vst.msk [vmem:[%s669_s5 + $0x30] sm:$0xf] %vm332_vm2, %v328_v10  ;;  %v286_v9 = vld [vmem:[#allocation2 + $0x30] sm:$0xff]  ;;  %v258_v6 = vadd.f32 %v239_v21, %v152_v14 }
  0xa4   :  { %v282_v16 = vld [vmem:[#allocation2 + $0x10] sm:$0xff]  ;;  %v254_v17 = vadd.f32 %v229_v13, %v148_v8  ;;  %v306_v25 = vadd.f32 %v568_v28, %v286_v9  ;;  %268 = vst.msk [vmem:[#allocation2 + $0x38] sm:$0xff] %vm25_vm0, %v251_v22 }
  0xa5   :  { %v289_v19 = vld [vmem:[#allocation2 + $0x48] sm:$0xff]  ;;  %v302_v20 = vadd.f32 %v568_v28, %v282_v16  ;;  %264 = vst.msk [vmem:[#allocation2 + $0x18] sm:$0xff] %vm25_vm0, %v247_v15 }
  0xa6   :  { %v309_v5 = vadd.f32 %v568_v28, %v289_v19  ;;  %271 = vst.msk [vmem:[#allocation2 + $0x50] sm:$0xff] %vm25_vm0, %v254_v17  ;;  %v293_v23 = vld [vmem:[#allocation2 + $0x68] sm:$0xff]  ;;  %v322_v29 = vpack.c.bf16 %v306_v25, %v306_v25 }
  0xa7   :  { %v318_v24 = vpack.c.bf16 %v302_v20, %v302_v20  ;;  %v313_v27 = vadd.f32 %v568_v28, %v293_v23  ;;  %275 = vst.msk [vmem:[#allocation2 + $0x70] sm:$0xff] %vm25_vm0, %v258_v6 }
  0xa8   :  { %v325_v26 = vpack.c.bf16 %v309_v5, %v309_v5  ;;  %339 = vst.msk [vmem:[%s669_s5 + $0x18] sm:$0xf] %vm332_vm2, %v322_v29 }
  0xa9   :  { %335 = vst.msk [vmem:[%s669_s5 + $0x8] sm:$0xf] %vm332_vm2, %v318_v24  ;;  %v329_v31 = vpack.c.bf16 %v313_v27, %v313_v27 }
  0xaa   :  { %342 = vst.msk [vmem:[%s669_s5 + $0x24] sm:$0xf] %vm332_vm2, %v325_v26  ;;  %v241_v38 = vpop.f32.mrf.mxu3 }
  0xab   :  { %v231_v32 = vpop.f32.mrf.mxu2  ;;  %346 = vst.msk [vmem:[%s669_s5 + $0x34] sm:$0xf] %vm332_vm2, %v329_v31  ;;  %v287_v40 = vld [vmem:[#allocation2 + $0x38] sm:$0xff]  ;;  %v259_v41 = vadd.f32 %v241_v38, %v153_v33 }
  0xac   :  { %v283_v34 = vld [vmem:[#allocation2 + $0x18] sm:$0xff]  ;;  %v255_v35 = vadd.f32 %v231_v32, %v149_v30  ;;  %v307_v44 = vadd.f32 %v568_v28, %v287_v40 }
  0xad   :  { %v290_v36 = vld [vmem:[#allocation2 + $0x50] sm:$0xff]  ;;  %v303_v37 = vadd.f32 %v568_v28, %v283_v34  ;;  %276 = vst.msk [vmem:[#allocation2 + $0x78] sm:$0xff] %vm25_vm0, %v259_v41 }
  0xae   :  { %v310_v39 = vadd.f32 %v568_v28, %v290_v36  ;;  %272 = vst.msk [vmem:[#allocation2 + $0x58] sm:$0xff] %vm25_vm0, %v255_v35  ;;  %v294_v42 = vld [vmem:[#allocation2 + $0x70] sm:$0xff]  ;;  %v323_v47 = vpack.c.bf16 %v307_v44, %v307_v44 }
  0xaf   :  { %v319_v43 = vpack.c.bf16 %v303_v37, %v303_v37  ;;  %v314_v46 = vadd.f32 %v568_v28, %v294_v42 }
  0xb0   :  { %v326_v45 = vpack.c.bf16 %v310_v39, %v310_v39  ;;  %340 = vst.msk [vmem:[%s669_s5 + $0x1c] sm:$0xf] %vm332_vm2, %v323_v47 }
  0xb1   :  { %336 = vst.msk [vmem:[%s669_s5 + $0xc] sm:$0xf] %vm332_vm2, %v319_v43  ;;  %v330_v48 = vpack.c.bf16 %v314_v46, %v314_v46 }
  0xb2   :  { %343 = vst.msk [vmem:[%s669_s5 + $0x28] sm:$0xf] %vm332_vm2, %v326_v45 }
  0xb3   :  { %347 = vst.msk [vmem:[%s669_s5 + $0x38] sm:$0xf] %vm332_vm2, %v330_v48 }
  0xb4   :  { %v295_v51 = vld [vmem:[#allocation2 + $0x78] sm:$0xff] }
  0xb5   :  { %v291_v49 = vld [vmem:[#allocation2 + $0x58] sm:$0xff]  ;;  %v315_v53 = vadd.f32 %v568_v28, %v295_v51 }
  0xb6   :  { %v311_v50 = vadd.f32 %v568_v28, %v291_v49 }
  0xb7   :  { %v331_v54 = vpack.c.bf16 %v315_v53, %v315_v53 }
  0xb8   :  { %v327_v52 = vpack.c.bf16 %v311_v50, %v311_v50 }
  0xb9   :  { %348 = vst.msk [vmem:[%s669_s5 + $0x3c] sm:$0xf] %vm332_vm2, %v331_v54 }
  0xba   :  { %344 = vst.msk [vmem:[%s669_s5 + $0x2c] sm:$0xf] %vm332_vm2, %v327_v52 }

// kernel: lyft_densenet_forward.35
= control target key start
LH: loop header
LB: loop body
LE: loop exit
PB: predicated region body
PF: predicated region fallthrough
CT: control target
= control target key end

     0   :  { %vm25_vm0 = vcmask 130048   ;;  %v159_v2 = vmov 0.0   ;;  %vm129_vm1 = vcmask 125952   ;;  %s230_s1 = inlined_call_operand.vmem [shape: bf16[16,16], index: 1, kind: input, shape index: {}]   ;;  %s231_s0 = inlined_call_operand.vmem [shape: bf16[32,16], index: 0, kind: input, shape index: {}]   ;;  %s232_s2 = inlined_call_operand.vmem [shape: f32[1,16], index: 2, kind: input, shape index: {}]   ;;  %s233_s3 = inlined_call_operand.vmem [shape: f32[1,16], index: 3, kind: input, shape index: {}]   ;;  %s234_s4 = inlined_call_operand.vmem [shape: f32[1,16], index: 4, kind: input, shape index: {}]   ;;  %s235_s5 = inlined_call_operand.vmem [shape: bf16[32,16], index: 5, kind: output, shape index: {}]  }
   0x1   :  { %v144_v0 = vld [vmem:[%s230_s1] sm:$0xff]  ;;  %26 = vst.msk [vmem:[#allocation2] sm:$0xff] %vm25_vm0, %v159_v2  ;;  %v153_v7 = vld [vmem:[%s231_s0 + $0x8] sm:$0xff]  }
   0x2   :  { %v146_v1 = vld [vmem:[%s231_s0] sm:$0xff]   ;;  %86 = vmatpush.bf16.msra.mxu0 %v144_v0  ;;  %154 = vmatpush.bf16.msra.mxu1 %v144_v0  ;;  %27 = vst.msk [vmem:[#allocation2 + $0x8] sm:$0xff] %vm25_vm0, %v159_v2  ;;  %v151_v10 = vunpack.c.l.bf16 %v153_v7  ;;  %v152_v11 = vunpack.c.h.bf16 %v153_v7 }
   0x3   :  { %v147_v3 = vunpack.c.l.bf16 %v146_v1  ;;  %v148_v4 = vunpack.c.h.bf16 %v146_v1  ;;  %v156_v5 = vld [vmem:[%s232_s2] ss:$0 sm:$0xff]  ;;  %28 = vst.msk [vmem:[#allocation2 + $0x10] sm:$0xff] %vm25_vm0, %v159_v2 }
   0x4   :  { %v157_v6 = vld [vmem:[%s233_s3] ss:$0 sm:$0xff]  ;;  %29 = vst.msk [vmem:[#allocation2 + $0x18] sm:$0xff] %vm25_vm0, %v159_v2  ;;  %v44_v14 = vmul.f32 %v156_v5, %v151_v10  ;;  %v45_v15 = vmul.f32 %v156_v5, %v152_v11 }
   0x5   :  { %v42_v8 = vmul.f32 %v156_v5, %v147_v3  ;;  %v43_v9 = vmul.f32 %v156_v5, %v148_v4  ;;  %v158_v31 = vld [vmem:[%s234_s4] ss:$0 sm:$0xff] }
   0x6   :  { %v52_v18 = vadd.f32 %v157_v6, %v44_v14  ;;  %v53_v19 = vadd.f32 %v157_v6, %v45_v15 }
   0x7   :  { %v50_v12 = vadd.f32 %v157_v6, %v42_v8  ;;  %v51_v13 = vadd.f32 %v157_v6, %v43_v9 }
   0x8   :  { %v56_v21 = vmax.f32 %v52_v18, 0.0  ;;  %v57_v22 = vmax.f32 %v53_v19, 0.0  ;;  %v60_v24 = vld [vmem:[#allocation2] sm:$0xff] }
   0x9   :  { %v54_v16 = vmax.f32 %v50_v12, 0.0  ;;  %v55_v17 = vmax.f32 %v51_v13, 0.0  ;;  %v61_v30 = vld [vmem:[#allocation2 + $0x8] sm:$0xff] }
   0xa   :  { %v59_v23 = vpack.c.bf16 %v57_v22, %v56_v21  ;;  %v62_v26 = vld [vmem:[#allocation2 + $0x10] sm:$0xff] }
   0xb   :  { %v58_v20 = vpack.c.bf16 %v55_v17, %v54_v16  ;;  %v63_v33 = vld [vmem:[#allocation2 + $0x18] sm:$0xff] }
   0xc   :  { %143 = vmatmul.msk.bf16.vlgmr.msra.gmra.mxu1 %vm25_vm0, %v59_v23 }
   0xd   :  { %142 = vmatmul.msk.bf16.vlgmr.msra.gmra.mxu0 %vm25_vm0, %v58_v20 }
  0x89   :  { %v93_v28 = vpop.f32.mrf.mxu1 }
  0x8a   :  { %v88_v25 = vpop.f32.mrf.mxu0  ;;  %v100_v29 = vadd.f32 %v93_v28, %v62_v26 }
  0x8b   :  { %v98_v27 = vadd.f32 %v88_v25, %v60_v24 }
  0x8c   :  { %104 = vst.msk [vmem:[#allocation2 + $0x10] sm:$0xff] %vm25_vm0, %v100_v29 }
  0x8d   :  { %102 = vst.msk [vmem:[#allocation2] sm:$0xff] %vm25_vm0, %v98_v27 }
  0x91   :  { %v95_v36 = vpop.f32.mrf.mxu1 }
  0x92   :  { %v90_v32 = vpop.f32.mrf.mxu0  ;;  %v101_v38 = vadd.f32 %v95_v36, %v63_v33 }
  0x93   :  { %v99_v34 = vadd.f32 %v90_v32, %v61_v30  ;;  %v111_v39 = vld [vmem:[#allocation2 + $0x10] sm:$0xff] }
  0x94   :  { %v109_v35 = vld [vmem:[#allocation2] sm:$0xff]  ;;  %v119_v41 = vadd.f32 %v158_v31, %v111_v39  ;;  %105 = vst.msk [vmem:[#allocation2 + $0x18] sm:$0xff] %vm25_vm0, %v101_v38 }
  0x95   :  { %v117_v37 = vadd.f32 %v158_v31, %v109_v35  ;;  %103 = vst.msk [vmem:[#allocation2 + $0x8] sm:$0xff] %vm25_vm0, %v99_v34 }
  0x96   :  { %v123_v43 = vmax.f32 %v119_v41, 0.0 }
  0x97   :  { %v121_v40 = vmax.f32 %v117_v37, 0.0 }
  0x98   :  { %v127_v44 = vpack.c.bf16 %v123_v43, %v123_v43 }
  0x99   :  { %v125_v42 = vpack.c.bf16 %v121_v40, %v121_v40 }
  0x9a   :  { %132 = vst.msk [vmem:[%s235_s5 + $0x8] sm:$0xf] %vm129_vm1, %v127_v44 }
  0x9b   :  { %130 = vst.msk [vmem:[%s235_s5] sm:$0xf] %vm129_vm1, %v125_v42  ;;  %v112_v47 = vld [vmem:[#allocation2 + $0x18] sm:$0xff] }
  0x9c   :  { %v110_v45 = vld [vmem:[#allocation2 + $0x8] sm:$0xff]  ;;  %v120_v49 = vadd.f32 %v158_v31, %v112_v47 }
  0x9d   :  { %v118_v46 = vadd.f32 %v158_v31, %v110_v45 }
  0x9e   :  { %v124_v51 = vmax.f32 %v120_v49, 0.0 }
  0x9f   :  { %v122_v48 = vmax.f32 %v118_v46, 0.0 }
  0xa0   :  { %v128_v52 = vpack.c.bf16 %v124_v51, %v124_v51 }
  0xa1   :  { %v126_v50 = vpack.c.bf16 %v122_v48, %v122_v48 }
  0xa2   :  { %133 = vst.msk [vmem:[%s235_s5 + $0xc] sm:$0xf] %vm129_vm1, %v128_v52 }
  0xa3   :  { %131 = vst.msk [vmem:[%s235_s5 + $0x4] sm:$0xf] %vm129_vm1, %v126_v50 }

// kernel: lyft_densenet_forward.37
= control target key start
LH: loop header
LB: loop body
LE: loop exit
PB: predicated region body
PF: predicated region fallthrough
CT: control target
= control target key end

     0   :  { %vm25_vm0 = vcmask 130048   ;;  %vm83_vm1 = vcmask 1043456   ;;  %v169_v2 = vmov 0.0   ;;  %vm76_vm2 = vcmask 195584   ;;  %s242_s1 = inlined_call_operand.vmem [shape: bf16[24,16], index: 1, kind: input, shape index: {}]   ;;  %s243_s0 = inlined_call_operand.vmem [shape: bf16[32,24], index: 0, kind: input, shape index: {}]   ;;  %s244_s2 = inlined_call_operand.vmem [shape: f32[1,24], index: 2, kind: input, shape index: {}]   ;;  %s245_s3 = inlined_call_operand.vmem [shape: f32[1,24], index: 3, kind: input, shape index: {}]   ;;  %s246_s4 = inlined_call_operand.vmem [shape: f32[1,16], index: 4, kind: input, shape index: {}]   ;;  %s247_s5 = inlined_call_operand.vmem [shape: bf16[32,16], index: 5, kind: output, shape index: {}]  }
   0x1   :  { %v66_v0 = vld [vmem:[%s242_s1 + $0x8] sm:$0xf]  ;;  %v155_v1 = vld [vmem:[%s243_s0] sm:$0xff]   ;;  %26 = vst.msk [vmem:[#allocation2] sm:$0xff] %vm25_vm0, %v169_v2  ;;  %vm138_vm3 = vcmask 125952  }
   0x2   :  { %v72_v3 = vunpack.c.l.b16 %v66_v0  ;;  %v156_v4 = vunpack.c.l.bf16 %v155_v1  ;;  %v157_v5 = vunpack.c.h.bf16 %v155_v1  ;;  %v166_v6 = vld [vmem:[%s244_s2] ss:$0 sm:$0xff]  ;;  %v162_v8 = vld [vmem:[%s243_s0 + $0x8] sm:$0xff]   ;;  %27 = vst.msk [vmem:[#allocation2 + $0x8] sm:$0xff] %vm25_vm0, %v169_v2 }
   0x3   :  { %v167_v7 = vld [vmem:[%s245_s3] ss:$0 sm:$0xff]  ;;  %v160_v12 = vunpack.c.l.bf16 %v162_v8  ;;  %28 = vst.msk [vmem:[#allocation2 + $0x10] sm:$0xff] %vm25_vm0, %v169_v2  ;;  %v161_v13 = vunpack.c.h.bf16 %v162_v8 }
   0x4   :  { %v74_v9 = vpack.c.b16 %v72_v3, %v72_v3  ;;  %v42_v10 = vmul.f32 %v166_v6, %v156_v4  ;;  %v43_v11 = vmul.f32 %v166_v6, %v157_v5  ;;  %29 = vst.msk [vmem:[#allocation2 + $0x18] sm:$0xff] %vm25_vm0, %v169_v2  ;;  %v153_v18 = vld [vmem:[%s242_s1] sm:$0xff] }
   0x5   :  { %v44_v17 = vmul.f32 %v166_v6, %v160_v12  ;;  %v45_v19 = vmul.f32 %v166_v6, %v161_v13  ;;  %v168_v35 = vld [vmem:[%s246_s4] ss:$0 sm:$0xff] }
   0x6   :  { %v85_v14 = vsel %vm83_vm1, %v74_v9, 0  ;;  %v50_v15 = vadd.f32 %v167_v7, %v42_v10  ;;  %v51_v16 = vadd.f32 %v167_v7, %v43_v11 }
   0x7   :  { %93 = vmatpush.bf16.msra.mxu0 %v85_v14  ;;  %163 = vmatpush.bf16.msra.mxu1 %v85_v14  ;;  %v52_v22 = vadd.f32 %v167_v7, %v44_v17  ;;  %v53_v23 = vadd.f32 %v167_v7, %v45_v19 }
   0x8   :  { %v54_v20 = vmax.f32 %v50_v15, 0.0  ;;  %v55_v21 = vmax.f32 %v51_v16, 0.0  ;;  %v60_v28 = vld [vmem:[#allocation2] sm:$0xff] }
   0x9   :  { %v56_v25 = vmax.f32 %v52_v22, 0.0  ;;  %v57_v26 = vmax.f32 %v53_v23, 0.0  ;;  %v61_v34 = vld [vmem:[#allocation2 + $0x8] sm:$0xff] }
   0xa   :  { %v58_v24 = vpack.c.bf16 %v55_v21, %v54_v20  ;;  %v62_v29 = vld [vmem:[#allocation2 + $0x10] sm:$0xff] }
   0xb   :  { %94 = vmatpush.bf16.msra.mxu0 %v153_v18  ;;  %164 = vmatpush.bf16.msra.mxu1 %v153_v18  ;;  %v59_v27 = vpack.c.bf16 %v57_v26, %v56_v25  ;;  %v63_v36 = vld [vmem:[#allocation2 + $0x18] sm:$0xff] }
   0xe   :  { %151 = vmatmul.msk.bf16.vlgmr.msra.gmra.mxu0 %vm76_vm2, %v58_v24  ;;  %152 = vmatmul.msk.bf16.vlgmr.msra.gmra.mxu1 %vm76_vm2, %v59_v27 }
  0x8b   :  { %v96_v30 = vpop.f32.mrf.mxu0  ;;  %v101_v32 = vpop.f32.mrf.mxu1 }
  0x8c   :  { %v106_v31 = vadd.f32 %v96_v30, %v60_v28  ;;  %v108_v33 = vadd.f32 %v101_v32, %v62_v29 }
  0x8e   :  { %111 = vst.msk [vmem:[#allocation2] sm:$0xff] %vm25_vm0, %v106_v31 }
  0x8f   :  { %113 = vst.msk [vmem:[#allocation2 + $0x10] sm:$0xff] %vm25_vm0, %v108_v33 }
  0x93   :  { %v98_v37 = vpop.f32.mrf.mxu0  ;;  %v103_v39 = vpop.f32.mrf.mxu1 }
  0x94   :  { %v107_v38 = vadd.f32 %v98_v37, %v61_v34  ;;  %v109_v41 = vadd.f32 %v103_v39, %v63_v36 }
  0x95   :  { %v118_v40 = vld [vmem:[#allocation2] sm:$0xff] }
  0x96   :  { %v126_v42 = vadd.f32 %v168_v35, %v118_v40  ;;  %v120_v43 = vld [vmem:[#allocation2 + $0x10] sm:$0xff]  ;;  %112 = vst.msk [vmem:[#allocation2 + $0x8] sm:$0xff] %vm25_vm0, %v107_v38 }
  0x97   :  { %v128_v44 = vadd.f32 %v168_v35, %v120_v43  ;;  %114 = vst.msk [vmem:[#allocation2 + $0x18] sm:$0xff] %vm25_vm0, %v109_v41 }
  0x98   :  { %v130_v45 = vmax.f32 %v126_v42, 0.0 }
  0x99   :  { %v132_v46 = vmax.f32 %v128_v44, 0.0 }
  0x9a   :  { %v134_v47 = vpack.c.bf16 %v130_v45, %v130_v45 }
  0x9b   :  { %v136_v48 = vpack.c.bf16 %v132_v46, %v132_v46 }
  0x9c   :  { %139 = vst.msk [vmem:[%s247_s5] sm:$0xf] %vm138_vm3, %v134_v47 }
  0x9d   :  { %141 = vst.msk [vmem:[%s247_s5 + $0x8] sm:$0xf] %vm138_vm3, %v136_v48  ;;  %v119_v49 = vld [vmem:[#allocation2 + $0x8] sm:$0xff] }
  0x9e   :  { %v127_v50 = vadd.f32 %v168_v35, %v119_v49  ;;  %v121_v51 = vld [vmem:[#allocation2 + $0x18] sm:$0xff] }
  0x9f   :  { %v129_v52 = vadd.f32 %v168_v35, %v121_v51 }
  0xa0   :  { %v131_v53 = vmax.f32 %v127_v50, 0.0 }
  0xa1   :  { %v133_v54 = vmax.f32 %v129_v52, 0.0 }
  0xa2   :  { %v135_v55 = vpack.c.bf16 %v131_v53, %v131_v53 }
  0xa3   :  { %v137_v56 = vpack.c.bf16 %v133_v54, %v133_v54 }
  0xa4   :  { %140 = vst.msk [vmem:[%s247_s5 + $0x4] sm:$0xf] %vm138_vm3, %v135_v55 }
  0xa5   :  { %142 = vst.msk [vmem:[%s247_s5 + $0xc] sm:$0xf] %vm138_vm3, %v137_v56 }

// kernel: lyft_densenet_forward.36
= control target key start
LH: loop header
LB: loop body
LE: loop exit
PB: predicated region body
PF: predicated region fallthrough
CT: control target
= control target key end

     0   :  { %vm122_vm0 = vcmask 130048   ;;  %vm19_vm1 = vcmask 64512   ;;  %v281_v21 = vmov 0.0   ;;  %vm195_vm2 = vcmask 60416   ;;  %s382_s1 = inlined_call_operand.vmem [shape: bf16[144,8], index: 1, kind: input, shape index: {}]   ;;  %s383_s0 = inlined_call_operand.vmem [shape: bf16[32,144], index: 0, kind: input, shape index: {}]   ;;  %s384_s2 = inlined_call_operand.vmem [shape: f32[1,8], index: 2, kind: input, shape index: {}]   ;;  %s385_s3 = inlined_call_operand.vmem [shape: bf16[32,8], index: 3, kind: output, shape index: {}]  }
   0x1   :  { %v269_v0 = vld [vmem:[%s382_s1 + $0x38] sm:$0xff]  ;;  %v270_v1 = vld [vmem:[%s382_s1 + $0x40] sm:$0xff]  ;;  %v268_v3 = vld [vmem:[%s382_s1 + $0x30] sm:$0xff]  ;;  %20 = vst.msk [vmem:[#allocation2] sm:$0xff] %vm19_vm1, %v281_v21 }
   0x2   :  { %v258_v2 = vld [vmem:[%s383_s0 + $0x4] sm:$0xf]  ;;  %129 = vmatpush.bf16.msra.mxu0 %v269_v0  ;;  %271 = vmatpush.bf16.msra.mxu2 %v269_v0  ;;  %v208_v4 = vld [vmem:[%s383_s0 + $0x8] sm:$0xf0]  ;;  %v265_v8 = vld [vmem:[%s382_s1 + $0x18] sm:$0xff]  ;;  %21 = vst.msk [vmem:[#allocation2 + $0x8] sm:$0xff] %vm19_vm1, %v281_v21 }
   0x3   :  { %155 = vmatpush.bf16.msra.mxu1 %v270_v1  ;;  %v211_v5 = vor.u32 %v258_v2, %v208_v4  ;;  %v267_v6 = vld [vmem:[%s382_s1 + $0x28] sm:$0xff]  ;;  %v266_v7 = vld [vmem:[%s382_s1 + $0x20] sm:$0xff]  ;;  %v260_v9 = vld [vmem:[%s383_s0 + $0x14] sm:$0xf]  ;;  %22 = vst.msk [vmem:[#allocation2 + $0x10] sm:$0xff] %vm19_vm1, %v281_v21 }
   0x4   :  { %v216_v10 = vld [vmem:[%s383_s0 + $0x18] sm:$0xf0]  ;;  %v264_v11 = vld [vmem:[%s382_s1 + $0x10] sm:$0xff]  ;;  %v263_v13 = vld [vmem:[%s382_s1 + $0x8] sm:$0xff]  ;;  %23 = vst.msk [vmem:[#allocation2 + $0x18] sm:$0xff] %vm19_vm1, %v281_v21 }
   0x5   :  { %v219_v12 = vor.u32 %v260_v9, %v216_v10  ;;  %v262_v14 = vld [vmem:[%s382_s1] sm:$0xff]  ;;  %v259_v16 = vld [vmem:[%s383_s0 + $0x4] sm:$0xf0]  ;;  %v214_v17 = vld [vmem:[%s383_s0 + $0x10] sm:$0xf] }
   0x6   :  { %130 = vmatpush.bf16.msra.mxu0 %v268_v3  ;;  %272 = vmatpush.bf16.msra.mxu2 %v268_v3  ;;  %v206_v15 = vld [vmem:[%s383_s0] sm:$0xf]  ;;  %v261_v18 = vld [vmem:[%s383_s0 + $0x14] sm:$0xf0] }
   0x7   :  { %256 = vmatmul.msk.bf16.vlgmr.msra.gmra.mxu1 %vm122_vm0, %v211_v5  ;;  %v207_v19 = vor.u32 %v259_v16, %v206_v15  ;;  %v215_v20 = vor.u32 %v261_v18, %v214_v17  ;;  %v280_v34 = vld [vmem:[%s384_s2] ss:$0 sm:$0xff] }
   0x8   :  { %v28_v24 = vld [vmem:[#allocation2] sm:$0xff] }
   0x9   :  { %v29_v32 = vld [vmem:[#allocation2 + $0x8] sm:$0xff] }
   0xa   :  { %131 = vmatpush.bf16.msra.mxu0 %v267_v6  ;;  %273 = vmatpush.bf16.msra.mxu2 %v267_v6  ;;  %v30_v29 = vld [vmem:[#allocation2 + $0x10] sm:$0xff] }
   0xb   :  { %v31_v41 = vld [vmem:[#allocation2 + $0x18] sm:$0xff] }
   0xe   :  { %132 = vmatpush.bf16.msra.mxu0 %v266_v7  ;;  %274 = vmatpush.bf16.msra.mxu2 %v266_v7 }
  0x12   :  { %133 = vmatpush.bf16.msra.mxu0 %v265_v8  ;;  %275 = vmatpush.bf16.msra.mxu2 %v265_v8 }
  0x16   :  { %134 = vmatpush.bf16.msra.mxu0 %v264_v11  ;;  %276 = vmatpush.bf16.msra.mxu2 %v264_v11 }
  0x17   :  { %257 = vmatmul.msk.bf16.gmra.mxu1 %vm122_vm0, %v219_v12 }
  0x1a   :  { %135 = vmatpush.bf16.msra.mxu0 %v263_v13  ;;  %277 = vmatpush.bf16.msra.mxu2 %v263_v13 }
  0x1e   :  { %136 = vmatpush.bf16.msra.mxu0 %v262_v14  ;;  %278 = vmatpush.bf16.msra.mxu2 %v262_v14 }
  0x21   :  { %137 = vmatmul.bf16.vlgmr.msra.gmra.mxu0 %v207_v19  ;;  %142 = vmatmul.bf16.vlgmr.msra.gmra.mxu2 %v215_v20 }
  0x84   :  { %v157_v22 = vpop.f32.mrf.mxu1 }
  0x8c   :  { %v159_v23 = vpop.f32.mrf.mxu1 }
  0x94   :  { %v162_v28 = vpop.f32.mrf.mxu1 }
  0x9c   :  { %v164_v40 = vpop.f32.mrf.mxu1 }
  0x9e   :  { %v138_v25 = vpop.f32.mrf.mxu0 }
  0x9f   :  { %v158_v26 = vadd.f32 %v157_v22, %v138_v25 }
  0xa1   :  { %v167_v27 = vadd.f32 %v158_v26, %v28_v24 }
  0xa3   :  { %172 = vst.msk [vmem:[#allocation2] sm:$0xff] %vm19_vm1, %v167_v27 }
  0xa4   :  { %v143_v30 = vpop.f32.mrf.mxu2 }
  0xa5   :  { %v163_v31 = vadd.f32 %v162_v28, %v143_v30 }
  0xa6   :  { %v140_v33 = vpop.f32.mrf.mxu0 }
  0xa7   :  { %v169_v35 = vadd.f32 %v163_v31, %v30_v29  ;;  %v160_v36 = vadd.f32 %v159_v23, %v140_v33 }
  0xa9   :  { %174 = vst.msk [vmem:[#allocation2 + $0x10] sm:$0xff] %vm19_vm1, %v169_v35  ;;  %v168_v37 = vadd.f32 %v160_v36, %v29_v32 }
  0xaa   :  { %v179_v38 = vld [vmem:[#allocation2] sm:$0xff] }
  0xab   :  { %v187_v39 = vadd.f32 %v280_v34, %v179_v38  ;;  %173 = vst.msk [vmem:[#allocation2 + $0x8] sm:$0xff] %vm19_vm1, %v168_v37 }
  0xac   :  { %v145_v42 = vpop.f32.mrf.mxu2 }
  0xad   :  { %v191_v43 = vpack.c.bf16 %v187_v39, %v187_v39  ;;  %v165_v44 = vadd.f32 %v164_v40, %v145_v42 }
  0xaf   :  { %196 = vst.msk [vmem:[%s385_s3] sm:$0xf] %vm195_vm2, %v191_v43  ;;  %v170_v45 = vadd.f32 %v165_v44, %v31_v41 }
  0xb0   :  { %v181_v46 = vld [vmem:[#allocation2 + $0x10] sm:$0xff] }
  0xb1   :  { %v189_v47 = vadd.f32 %v280_v34, %v181_v46  ;;  %175 = vst.msk [vmem:[#allocation2 + $0x18] sm:$0xff] %vm19_vm1, %v170_v45 }
  0xb2   :  { %v180_v48 = vld [vmem:[#allocation2 + $0x8] sm:$0xff] }
  0xb3   :  { %v193_v49 = vpack.c.bf16 %v189_v47, %v189_v47  ;;  %v188_v50 = vadd.f32 %v280_v34, %v180_v48 }
  0xb5   :  { %198 = vst.msk [vmem:[%s385_s3 + $0x8] sm:$0xf] %vm195_vm2, %v193_v49  ;;  %v192_v51 = vpack.c.bf16 %v188_v50, %v188_v50 }
  0xb7   :  { %197 = vst.msk [vmem:[%s385_s3 + $0x4] sm:$0xf] %vm195_vm2, %v192_v51 }
  0xb8   :  { %v182_v52 = vld [vmem:[#allocation2 + $0x18] sm:$0xff] }
  0xb9   :  { %v190_v53 = vadd.f32 %v280_v34, %v182_v52 }
  0xbb   :  { %v194_v54 = vpack.c.bf16 %v190_v53, %v190_v53 }
  0xbd   :  { %199 = vst.msk [vmem:[%s385_s3 + $0xc] sm:$0xf] %vm195_vm2, %v194_v54 }

// kernel: lyft_densenet_forward.39
= control target key start
LH: loop header
LB: loop body
LE: loop exit
PB: predicated region body
PF: predicated region fallthrough
CT: control target
= control target key end

     0   :  { %vm25_vm0 = vcmask 130048   ;;  %v170_v3 = vmov 0.0   ;;  %vm80_vm1 = vcmask 261120   ;;  %vm134_vm2 = vcmask 125952   ;;  %s242_s1 = inlined_call_operand.vmem [shape: bf16[32,16], index: 1, kind: input, shape index: {}]   ;;  %s243_s0 = inlined_call_operand.vmem [shape: bf16[32,32], index: 0, kind: input, shape index: {}]   ;;  %s244_s2 = inlined_call_operand.vmem [shape: f32[1,32], index: 2, kind: input, shape index: {}]   ;;  %s245_s3 = inlined_call_operand.vmem [shape: f32[1,32], index: 3, kind: input, shape index: {}]   ;;  %s246_s4 = inlined_call_operand.vmem [shape: f32[1,16], index: 4, kind: input, shape index: {}]   ;;  %s247_s5 = inlined_call_operand.vmem [shape: bf16[32,16], index: 5, kind: output, shape index: {}]  }
   0x1   :  { %v154_v0 = vld [vmem:[%s242_s1 + $0x8] sm:$0xff]  ;;  %v153_v1 = vld [vmem:[%s242_s1] sm:$0xff]  ;;  %26 = vst.msk [vmem:[#allocation2] sm:$0xff] %vm25_vm0, %v170_v3 }
   0x2   :  { %v156_v2 = vld [vmem:[%s243_s0] sm:$0xff]   ;;  %93 = vmatpush.bf16.msra.mxu0 %v154_v0  ;;  %164 = vmatpush.bf16.msra.mxu1 %v154_v0  ;;  %v163_v8 = vld [vmem:[%s243_s0 + $0x8] sm:$0xff]   ;;  %27 = vst.msk [vmem:[#allocation2 + $0x8] sm:$0xff] %vm25_vm0, %v170_v3 }
   0x3   :  { %v157_v4 = vunpack.c.l.bf16 %v156_v2  ;;  %v158_v5 = vunpack.c.h.bf16 %v156_v2  ;;  %v167_v6 = vld [vmem:[%s244_s2] ss:$0 sm:$0xff]  ;;  %v161_v11 = vunpack.c.l.bf16 %v163_v8  ;;  %v162_v12 = vunpack.c.h.bf16 %v163_v8  ;;  %28 = vst.msk [vmem:[#allocation2 + $0x10] sm:$0xff] %vm25_vm0, %v170_v3 }
   0x4   :  { %v168_v7 = vld [vmem:[%s245_s3] ss:$0 sm:$0xff]  ;;  %29 = vst.msk [vmem:[#allocation2 + $0x18] sm:$0xff] %vm25_vm0, %v170_v3 }
   0x5   :  { %v42_v9 = vmul.f32 %v167_v6, %v157_v4  ;;  %v43_v10 = vmul.f32 %v167_v6, %v158_v5  ;;  %v44_v15 = vmul.f32 %v167_v6, %v161_v11  ;;  %v45_v16 = vmul.f32 %v167_v6, %v162_v12  ;;  %v169_v32 = vld [vmem:[%s246_s4] ss:$0 sm:$0xff] }
   0x6   :  { %94 = vmatpush.bf16.msra.mxu0 %v153_v1  ;;  %165 = vmatpush.bf16.msra.mxu1 %v153_v1 }
   0x7   :  { %v50_v13 = vadd.f32 %v168_v7, %v42_v9  ;;  %v51_v14 = vadd.f32 %v168_v7, %v43_v10  ;;  %v52_v19 = vadd.f32 %v168_v7, %v44_v15  ;;  %v53_v20 = vadd.f32 %v168_v7, %v45_v16 }
   0x8   :  { %v60_v25 = vld [vmem:[#allocation2] sm:$0xff] }
   0x9   :  { %v54_v17 = vmax.f32 %v50_v13, 0.0  ;;  %v55_v18 = vmax.f32 %v51_v14, 0.0  ;;  %v56_v22 = vmax.f32 %v52_v19, 0.0  ;;  %v57_v23 = vmax.f32 %v53_v20, 0.0  ;;  %v61_v31 = vld [vmem:[#allocation2 + $0x8] sm:$0xff] }
   0xa   :  { %v62_v27 = vld [vmem:[#allocation2 + $0x10] sm:$0xff] }
   0xb   :  { %v58_v21 = vpack.c.bf16 %v55_v18, %v54_v17  ;;  %v59_v24 = vpack.c.bf16 %v57_v23, %v56_v22  ;;  %v63_v34 = vld [vmem:[#allocation2 + $0x18] sm:$0xff] }
   0xd   :  { %151 = vmatmul.msk.bf16.vlgmr.msra.gmra.mxu0 %vm80_vm1, %v58_v21  ;;  %152 = vmatmul.msk.bf16.vlgmr.msra.gmra.mxu1 %vm80_vm1, %v59_v24 }
  0x8a   :  { %v96_v26 = vpop.f32.mrf.mxu0  ;;  %v101_v29 = vpop.f32.mrf.mxu1 }
  0x8b   :  { %v106_v28 = vadd.f32 %v96_v26, %v60_v25  ;;  %v108_v30 = vadd.f32 %v101_v29, %v62_v27 }
  0x8d   :  { %111 = vst.msk [vmem:[#allocation2] sm:$0xff] %vm25_vm0, %v106_v28 }
  0x8e   :  { %113 = vst.msk [vmem:[#allocation2 + $0x10] sm:$0xff] %vm25_vm0, %v108_v30 }
  0x92   :  { %v98_v33 = vpop.f32.mrf.mxu0  ;;  %v103_v37 = vpop.f32.mrf.mxu1 }
  0x93   :  { %v107_v35 = vadd.f32 %v98_v33, %v61_v31  ;;  %v109_v39 = vadd.f32 %v103_v37, %v63_v34 }
  0x94   :  { %v118_v36 = vld [vmem:[#allocation2] sm:$0xff] }
  0x95   :  { %v126_v38 = vadd.f32 %v169_v32, %v118_v36  ;;  %112 = vst.msk [vmem:[#allocation2 + $0x8] sm:$0xff] %vm25_vm0, %v107_v35  ;;  %v120_v40 = vld [vmem:[#allocation2 + $0x10] sm:$0xff] }
  0x96   :  { %v128_v42 = vadd.f32 %v169_v32, %v120_v40  ;;  %114 = vst.msk [vmem:[#allocation2 + $0x18] sm:$0xff] %vm25_vm0, %v109_v39 }
  0x97   :  { %v130_v41 = vpack.c.bf16 %v126_v38, %v126_v38 }
  0x98   :  { %v132_v43 = vpack.c.bf16 %v128_v42, %v128_v42 }
  0x99   :  { %135 = vst.msk [vmem:[%s247_s5] sm:$0xf] %vm134_vm2, %v130_v41 }
  0x9a   :  { %137 = vst.msk [vmem:[%s247_s5 + $0x8] sm:$0xf] %vm134_vm2, %v132_v43 }
  0x9c   :  { %v119_v44 = vld [vmem:[#allocation2 + $0x8] sm:$0xff] }
  0x9d   :  { %v127_v45 = vadd.f32 %v169_v32, %v119_v44  ;;  %v121_v46 = vld [vmem:[#allocation2 + $0x18] sm:$0xff] }
  0x9e   :  { %v129_v48 = vadd.f32 %v169_v32, %v121_v46 }
  0x9f   :  { %v131_v47 = vpack.c.bf16 %v127_v45, %v127_v45 }
  0xa0   :  { %v133_v49 = vpack.c.bf16 %v129_v48, %v129_v48 }
  0xa1   :  { %136 = vst.msk [vmem:[%s247_s5 + $0x4] sm:$0xf] %vm134_vm2, %v131_v47 }
  0xa2   :  { %138 = vst.msk [vmem:[%s247_s5 + $0xc] sm:$0xf] %vm134_vm2, %v133_v49 }

// kernel: lyft_densenet_forward.41
= control target key start
LH: loop header
LB: loop body
LE: loop exit
PB: predicated region body
PF: predicated region fallthrough
CT: control target
= control target key end

     0   :  { %10 = vsyncpa [#allocation4], 0  ;;  %s234_s0 = inlined_call_operand.vmem [shape: bf16[8,16], index: 0, kind: input, shape index: {}]   ;;  %s235_s1 = inlined_call_operand.vmem [shape: bf16[16,16], index: 1, kind: input, shape index: {}]   ;;  %s236_s2 = inlined_call_operand.vmem [shape: f32[1,16], index: 2, kind: input, shape index: {}]   ;;  %s237_s3 = inlined_call_operand.hbm [shape: f32[1,16], index: 3, kind: input, shape index: {}]   ;;  %s238_s4 = inlined_call_operand.hbm [shape: f32[1,16], index: 4, kind: input, shape index: {}]   ;;  %s239_s5 = inlined_call_operand.vmem [shape: bf16[8,16], index: 5, kind: output, shape index: {}]  }
   0x1   :  { %s23_s20 = sshll.u32 %s237_s3, 4  ;;  %s24_s20 = int_to_ptr.hbm [resolvable:$true] %s23_s20 }
   0x2   :  { %11 = vsyncpa [#allocation6], 0  ;;  %s180_s21 = smov [#allocation3]   ;;  %s34_s25 = sshll.u32 %s238_s4, 4  ;;  %s35_s25 = int_to_ptr.hbm [resolvable:$true] %s34_s25 }
   0x3   :  { %s25_s22 = sshll.u32 %s180_s21, 4  ;;  %s181_s26 = smov [#allocation5]   ;;  %s26_s22 = int_to_ptr.vmem [resolvable:$true] %s25_s22 }
   0x4   :  { %28 = dma.hbm_to_vmem [thread:$0]  %s24_s20, 16, %s26_s22, [#allocation4]  }
   0x5   :  { %s36_s27 = sshll.u32 %s181_s26, 4  ;;  %s37_s27 = int_to_ptr.vmem [resolvable:$true] %s36_s27 }
   0x6   :  { %39 = dma.hbm_to_vmem [thread:$0]  %s35_s25, 16, %s37_s27, [#allocation6]  }
   0x7   :  { %176 = dma.done.wait [#allocation4], 16  }
   0x8   :  { %177 = vsyncadd [#allocation4], 4294967280 }
   0x9   :  { %178 = dma.done.wait [#allocation6], 16  }
   0xa   :  { %179 = vsyncadd [#allocation6], 4294967280  ;;  %vm53_vm0 = vcmask 130048   ;;  %v182_v0 = vmov 0.0   ;;  %v121_v1 = vld [vmem:[%s235_s1] sm:$0xff]  ;;  %vm108_vm1 = vcmask 125952  }
   0xb   :  { %54 = vst.msk [vmem:[#allocation2] sm:$0xff] %vm53_vm0, %v182_v0  ;;  %v55_v2 = vld [vmem:[%s234_s0] sm:$0xf]  ;;  %v126_v5 = vld [vmem:[#allocation3] ss:$0 sm:$0xff]  ;;  %89 = vmatpush.bf16.msra.mxu0 %v121_v1 }
   0xc   :  { %v56_v3 = vunpack.c.l.bf16 %v55_v2  ;;  %v125_v4 = vld [vmem:[%s236_s2] ss:$0 sm:$0xff]  ;;  %v127_v13 = vld [vmem:[#allocation5] ss:$0 sm:$0xff] }
   0xe   :  { %v61_v6 = vmul.f32 %v125_v4, %v56_v3 }
  0x10   :  { %v66_v7 = vadd.f32 %v126_v5, %v61_v6 }
  0x12   :  { %v67_v8 = vmax.f32 %v66_v7, 0.0  ;;  %v69_v10 = vld [vmem:[#allocation2] sm:$0xff] }
  0x14   :  { %v68_v9 = vpack.c.bf16 %v67_v8, %v67_v8 }
  0x16   :  { %120 = vmatmul.msk.bf16.vlgmr.msra.gmra.mxu0 %vm53_vm0, %v68_v9 }
  0x93   :  { %v91_v11 = vpop.f32.mrf.mxu0 }
  0x94   :  { %v95_v12 = vadd.f32 %v91_v11, %v69_v10 }
  0x96   :  { %96 = vst.msk [vmem:[#allocation2] sm:$0xff] %vm53_vm0, %v95_v12 }
  0x9b   :  { %v93_v14 = vpop.f32.mrf.mxu0 }
  0x9d   :  { %v100_v15 = vld [vmem:[#allocation2] sm:$0xff] }
  0x9e   :  { %v105_v16 = vadd.f32 %v127_v13, %v100_v15 }
  0xa0   :  { %v106_v17 = vmax.f32 %v105_v16, 0.0 }
  0xa2   :  { %v107_v18 = vpack.c.bf16 %v106_v17, %v106_v17 }
  0xa4   :  { %109 = vst.msk [vmem:[%s239_s5] sm:$0xf] %vm108_vm1, %v107_v18 }
  0xa5   :  { %114 = vsyncpa [#allocation4], 1 }
  0xa6   :  { %115 = vsyncpa [#allocation6], 1 }

// kernel: lyft_densenet_forward.40
= control target key start
LH: loop header
LB: loop body
LE: loop exit
PB: predicated region body
PF: predicated region fallthrough
CT: control target
= control target key end

     0   :  { %vm16_vm0 = vcmask 130048   ;;  %vm26_vm1 = vcmask 125952   ;;  %s60_s0 = inlined_call_operand.vmem [shape: bf16[4,8,16], index: 0, kind: input, shape index: {}]   ;;  %s61_s1 = inlined_call_operand.vmem [shape: bf16[8,16], index: 1, kind: output, shape index: {}]  }
   0x1   :  { %v33_v0 = vld [vmem:[%s60_s0] sm:$0xff]   ;;  %v40_v1 = vld [vmem:[%s60_s0 + $0x8] sm:$0xff]  }
   0x2   :  { %v34_v2 = vunpack.c.l.bf16 %v33_v0  ;;  %v35_v3 = vunpack.c.h.bf16 %v33_v0  ;;  %v38_v4 = vunpack.c.l.bf16 %v40_v1  ;;  %v39_v5 = vunpack.c.h.bf16 %v40_v1 }
   0x4   :  { %v17_v6 = vsel %vm16_vm0, %v34_v2, 0.0  ;;  %v18_v7 = vsel %vm16_vm0, %v35_v3, 0.0  ;;  %v20_v8 = vsel %vm16_vm0, %v38_v4, 0.0  ;;  %v22_v10 = vsel %vm16_vm0, %v39_v5, 0.0 }
   0x5   :  { %v19_v9 = vadd.f32 %v18_v7, %v17_v6 }
   0x7   :  { %v21_v11 = vadd.f32 %v20_v8, %v19_v9 }
   0x9   :  { %v23_v12 = vadd.f32 %v22_v10, %v21_v11 }
   0xb   :  { %v24_v13 = vmul.f32 0.25, %v23_v12 }
   0xd   :  { %v25_v14 = vpack.c.bf16 %v24_v13, %v24_v13 }
   0xf   :  { %27 = vst.msk [vmem:[%s61_s1] sm:$0xf] %vm26_vm1, %v25_v14 }

// kernel: lyft_densenet_forward.42
= control target key start
LH: loop header
LB: loop body
LE: loop exit
PB: predicated region body
PF: predicated region fallthrough
CT: control target
= control target key end

     0   :  { %vm101_vm0 = vcmask 130048   ;;  %vm19_vm1 = vcmask 64512   ;;  %v198_v14 = vmov 0.0   ;;  %vm144_vm2 = vcmask 60416   ;;  %s255_s1 = inlined_call_operand.vmem [shape: bf16[144,8], index: 1, kind: input, shape index: {}]   ;;  %s256_s0 = inlined_call_operand.vmem [shape: bf16[8,144], index: 0, kind: input, shape index: {}]   ;;  %s257_s2 = inlined_call_operand.vmem [shape: f32[1,8], index: 2, kind: input, shape index: {}]   ;;  %s258_s3 = inlined_call_operand.vmem [shape: bf16[8,8], index: 3, kind: output, shape index: {}]  }
   0x1   :  { %v194_v0 = vld [vmem:[%s255_s1 + $0x38] sm:$0xff]  ;;  %v193_v1 = vld [vmem:[%s255_s1 + $0x30] sm:$0xff]  ;;  %v195_v2 = vld [vmem:[%s255_s1 + $0x40] sm:$0xff]  ;;  %20 = vst.msk [vmem:[#allocation2] sm:$0xff] %vm19_vm1, %v198_v14 }
   0x2   :  { %105 = vmatpush.bf16.msra.mxu0 %v194_v0  ;;  %v21_v3 = vld [vmem:[%s256_s0] sm:$0xff]  ;;  %125 = vmatpush.bf16.msra.mxu1 %v195_v2  ;;  %v192_v6 = vld [vmem:[%s255_s1 + $0x28] sm:$0xff]  ;;  %v190_v8 = vld [vmem:[%s255_s1 + $0x18] sm:$0xff] }
   0x3   :  { %v43_v4 = vunpack.c.h.b16 %v21_v3  ;;  %v191_v7 = vld [vmem:[%s255_s1 + $0x20] sm:$0xff]  ;;  %v189_v9 = vld [vmem:[%s255_s1 + $0x10] sm:$0xff]  ;;  %v188_v10 = vld [vmem:[%s255_s1 + $0x8] sm:$0xff]  ;;  %v42_v11 = vunpack.c.l.b16 %v21_v3 }
   0x4   :  { %v187_v12 = vld [vmem:[%s255_s1] sm:$0xff] }
   0x5   :  { %v45_v5 = vpack.c.b16 %v43_v4, %v43_v4  ;;  %v44_v13 = vpack.c.b16 %v42_v11, %v42_v11  ;;  %v197_v22 = vld [vmem:[%s257_s2] ss:$0 sm:$0xff] }
   0x6   :  { %106 = vmatpush.bf16.msra.mxu0 %v193_v1 }
   0x7   :  { %186 = vmatmul.msk.bf16.vlgmr.msra.gmra.mxu1 %vm101_vm0, %v45_v5 }
   0x8   :  { %v22_v17 = vld [vmem:[#allocation2] sm:$0xff] }
   0xa   :  { %107 = vmatpush.bf16.msra.mxu0 %v192_v6 }
   0xe   :  { %108 = vmatpush.bf16.msra.mxu0 %v191_v7 }
  0x12   :  { %109 = vmatpush.bf16.msra.mxu0 %v190_v8 }
  0x16   :  { %110 = vmatpush.bf16.msra.mxu0 %v189_v9 }
  0x1a   :  { %111 = vmatpush.bf16.msra.mxu0 %v188_v10 }
  0x1e   :  { %112 = vmatpush.bf16.msra.mxu0 %v187_v12 }
  0x21   :  { %113 = vmatmul.bf16.vlgmr.msra.gmra.mxu0 %v44_v13 }
  0x84   :  { %v127_v15 = vpop.f32.mrf.mxu1 }
  0x8c   :  { %v129_v16 = vpop.f32.mrf.mxu1 }
  0x9e   :  { %v114_v18 = vpop.f32.mrf.mxu0 }
  0x9f   :  { %v128_v19 = vadd.f32 %v127_v15, %v114_v18 }
  0xa1   :  { %v131_v20 = vadd.f32 %v128_v19, %v22_v17 }
  0xa3   :  { %133 = vst.msk [vmem:[#allocation2] sm:$0xff] %vm19_vm1, %v131_v20 }
  0xa6   :  { %v116_v21 = vpop.f32.mrf.mxu0 }
  0xaa   :  { %v137_v23 = vld [vmem:[#allocation2] sm:$0xff] }
  0xab   :  { %v142_v24 = vadd.f32 %v197_v22, %v137_v23 }
  0xad   :  { %v143_v25 = vpack.c.bf16 %v142_v24, %v142_v24 }
  0xaf   :  { %145 = vst.msk [vmem:[%s258_s3] sm:$0xf] %vm144_vm2, %v143_v25 }

// kernel: lyft_densenet_forward.43
= control target key start
LH: loop header
LB: loop body
LE: loop exit
PB: predicated region body
PF: predicated region fallthrough
CT: control target
= control target key end

     0   :  { %10 = vsyncpa [#allocation4], 0  ;;  %s284_s0 = inlined_call_operand.vmem [shape: bf16[8,24], index: 0, kind: input, shape index: {}]   ;;  %s285_s1 = inlined_call_operand.vmem [shape: bf16[24,16], index: 1, kind: input, shape index: {}]   ;;  %s286_s2 = inlined_call_operand.hbm [shape: f32[1,24], index: 2, kind: input, shape index: {}]   ;;  %s287_s3 = inlined_call_operand.hbm [shape: f32[1,24], index: 3, kind: input, shape index: {}]   ;;  %s288_s4 = inlined_call_operand.hbm [shape: f32[1,16], index: 4, kind: input, shape index: {}]   ;;  %s289_s5 = inlined_call_operand.vmem [shape: bf16[8,16], index: 5, kind: output, shape index: {}]  }
   0x1   :  { %11 = vsyncpa [#allocation6], 0  ;;  %s32_s20 = sshll.u32 %s287_s3, 4  ;;  %s227_s21 = smov [#allocation5]   ;;  %s33_s20 = int_to_ptr.hbm [resolvable:$true] %s32_s20 }
   0x2   :  { %s34_s22 = sshll.u32 %s227_s21, 4  ;;  %s21_s25 = sshll.u32 %s286_s2, 4  ;;  %s35_s22 = int_to_ptr.vmem [resolvable:$true] %s34_s22  ;;  %s22_s25 = int_to_ptr.hbm [resolvable:$true] %s21_s25 }
   0x3   :  { %37 = dma.hbm_to_vmem [thread:$0]  %s33_s20, 16, %s35_s22, [#allocation6]  }
   0x4   :  { %s228_s26 = smov [#allocation3]   ;;  %s43_s30 = sshll.u32 %s288_s4, 4  ;;  %s44_s30 = int_to_ptr.hbm [resolvable:$true] %s43_s30 }
   0x5   :  { %s23_s27 = sshll.u32 %s228_s26, 4  ;;  %s229_s3 = smov [#allocation7]   ;;  %s24_s27 = int_to_ptr.vmem [resolvable:$true] %s23_s27 }
   0x6   :  { %26 = dma.hbm_to_vmem [thread:$0]  %s22_s25, 16, %s24_s27, [#allocation4]  }
   0x7   :  { %s45_s6 = sshll.u32 %s229_s3, 4  ;;  %s46_s6 = int_to_ptr.vmem [resolvable:$true] %s45_s6 }
   0x8   :  { %48 = dma.hbm_to_vmem [thread:$0]  %s44_s30, 16, %s46_s6, [#allocation6]  }
   0x9   :  { %223 = dma.done.wait [#allocation4], 16  }
   0xa   :  { %224 = vsyncadd [#allocation4], 4294967280 }
   0xb   :  { %225 = dma.done.wait [#allocation6], 32  }
   0xc   :  { %226 = vsyncadd [#allocation6], 4294967264  ;;  %vm66_vm0 = vcmask 130048   ;;  %v230_v0 = vmov 0.0   ;;  %v85_v1 = vld [vmem:[%s285_s1 + $0x8] sm:$0xf] }
   0xd   :  { %67 = vst.msk [vmem:[#allocation2] sm:$0xff] %vm66_vm0, %v230_v0  ;;  %v68_v2 = vld [vmem:[%s284_s0] sm:$0xf]  ;;  %v91_v3 = vunpack.c.l.b16 %v85_v1  ;;  %v148_v5 = vld [vmem:[#allocation3] ss:$0 sm:$0xff]  ;;  %vm99_vm1 = vcmask 1043456  }
   0xe   :  { %v69_v4 = vunpack.c.l.bf16 %v68_v2  ;;  %v149_v6 = vld [vmem:[#allocation5] ss:$0 sm:$0xff]  ;;  %v143_v11 = vld [vmem:[%s285_s1] sm:$0xff]  ;;  %vm95_vm2 = vcmask 195584   ;;  %v150_v17 = vld [vmem:[#allocation7] ss:$0 sm:$0xff] }
   0xf   :  { %v93_v7 = vpack.c.b16 %v91_v3, %v91_v3  ;;  %vm130_vm3 = vcmask 125952  }
  0x10   :  { %v74_v8 = vmul.f32 %v148_v5, %v69_v4 }
  0x11   :  { %v101_v9 = vsel %vm99_vm1, %v93_v7, 0 }
  0x12   :  { %v79_v10 = vadd.f32 %v149_v6, %v74_v8  ;;  %109 = vmatpush.bf16.msra.mxu0 %v101_v9 }
  0x14   :  { %v80_v12 = vmax.f32 %v79_v10, 0.0  ;;  %v82_v14 = vld [vmem:[#allocation2] sm:$0xff] }
  0x16   :  { %v81_v13 = vpack.c.bf16 %v80_v12, %v80_v12  ;;  %110 = vmatpush.bf16.msra.mxu0 %v143_v11 }
  0x19   :  { %142 = vmatmul.msk.bf16.vlgmr.msra.gmra.mxu0 %vm95_vm2, %v81_v13 }
  0x96   :  { %v112_v15 = vpop.f32.mrf.mxu0 }
  0x97   :  { %v116_v16 = vadd.f32 %v112_v15, %v82_v14 }
  0x99   :  { %118 = vst.msk [vmem:[#allocation2] sm:$0xff] %vm66_vm0, %v116_v16 }
  0x9e   :  { %v114_v18 = vpop.f32.mrf.mxu0 }
  0xa0   :  { %v122_v19 = vld [vmem:[#allocation2] sm:$0xff] }
  0xa1   :  { %v127_v20 = vadd.f32 %v150_v17, %v122_v19 }
  0xa3   :  { %v128_v21 = vmax.f32 %v127_v20, 0.0 }
  0xa5   :  { %v129_v22 = vpack.c.bf16 %v128_v21, %v128_v21 }
  0xa7   :  { %131 = vst.msk [vmem:[%s289_s5] sm:$0xf] %vm130_vm3, %v129_v22 }
  0xa8   :  { %136 = vsyncpa [#allocation4], 1 }
  0xa9   :  { %137 = vsyncpa [#allocation6], 1 }

// kernel: lyft_densenet_forward.45
= control target key start
LH: loop header
LB: loop body
LE: loop exit
PB: predicated region body
PF: predicated region fallthrough
CT: control target
= control target key end

     0   :  { %10 = vsyncpa [#allocation4], 0  ;;  %s249_s0 = inlined_call_operand.vmem [shape: bf16[8,32], index: 0, kind: input, shape index: {}]   ;;  %s250_s1 = inlined_call_operand.vmem [shape: bf16[32,16], index: 1, kind: input, shape index: {}]   ;;  %s251_s2 = inlined_call_operand.hbm [shape: f32[1,32], index: 2, kind: input, shape index: {}]   ;;  %s252_s3 = inlined_call_operand.hbm [shape: f32[1,32], index: 3, kind: input, shape index: {}]   ;;  %s253_s4 = inlined_call_operand.vmem [shape: f32[1,16], index: 4, kind: input, shape index: {}]   ;;  %s254_s5 = inlined_call_operand.vmem [shape: bf16[8,16], index: 5, kind: output, shape index: {}]  }
   0x1   :  { %s21_s20 = sshll.u32 %s251_s2, 4  ;;  %s22_s20 = int_to_ptr.hbm [resolvable:$true] %s21_s20 }
   0x2   :  { %11 = vsyncpa [#allocation6], 0  ;;  %s193_s21 = smov [#allocation3]   ;;  %s32_s25 = sshll.u32 %s252_s3, 4  ;;  %s33_s25 = int_to_ptr.hbm [resolvable:$true] %s32_s25 }
   0x3   :  { %s23_s22 = sshll.u32 %s193_s21, 4  ;;  %s194_s26 = smov [#allocation5]   ;;  %s24_s22 = int_to_ptr.vmem [resolvable:$true] %s23_s22 }
   0x4   :  { %26 = dma.hbm_to_vmem [thread:$0]  %s22_s20, 16, %s24_s22, [#allocation4]  }
   0x5   :  { %s34_s27 = sshll.u32 %s194_s26, 4  ;;  %s35_s27 = int_to_ptr.vmem [resolvable:$true] %s34_s27 }
   0x6   :  { %37 = dma.hbm_to_vmem [thread:$0]  %s33_s25, 16, %s35_s27, [#allocation6]  }
   0x7   :  { %189 = dma.done.wait [#allocation4], 16  }
   0x8   :  { %190 = vsyncadd [#allocation4], 4294967280 }
   0x9   :  { %191 = dma.done.wait [#allocation6], 16  }
   0xa   :  { %192 = vsyncadd [#allocation6], 4294967280  ;;  %vm53_vm0 = vcmask 130048   ;;  %v195_v0 = vmov 0.0   ;;  %v134_v1 = vld [vmem:[%s250_s1 + $0x8] sm:$0xff]  ;;  %v133_v5 = vld [vmem:[%s250_s1] sm:$0xff] }
   0xb   :  { %54 = vst.msk [vmem:[#allocation2] sm:$0xff] %vm53_vm0, %v195_v0  ;;  %v55_v2 = vld [vmem:[%s249_s0] sm:$0xf]  ;;  %v138_v4 = vld [vmem:[#allocation3] ss:$0 sm:$0xff]  ;;  %96 = vmatpush.bf16.msra.mxu0 %v134_v1  ;;  %vm86_vm1 = vcmask 261120  }
   0xc   :  { %v56_v3 = vunpack.c.l.bf16 %v55_v2  ;;  %v139_v6 = vld [vmem:[#allocation5] ss:$0 sm:$0xff]  ;;  %v140_v14 = vld [vmem:[%s253_s4] ss:$0 sm:$0xff]  ;;  %vm116_vm2 = vcmask 125952  }
   0xe   :  { %v61_v7 = vmul.f32 %v138_v4, %v56_v3 }
   0xf   :  { %97 = vmatpush.bf16.msra.mxu0 %v133_v5 }
  0x10   :  { %v66_v8 = vadd.f32 %v139_v6, %v61_v7 }
  0x12   :  { %v67_v9 = vmax.f32 %v66_v8, 0.0  ;;  %v69_v11 = vld [vmem:[#allocation2] sm:$0xff] }
  0x14   :  { %v68_v10 = vpack.c.bf16 %v67_v9, %v67_v9 }
  0x16   :  { %132 = vmatmul.msk.bf16.vlgmr.msra.gmra.mxu0 %vm86_vm1, %v68_v10 }
  0x93   :  { %v99_v12 = vpop.f32.mrf.mxu0 }
  0x94   :  { %v103_v13 = vadd.f32 %v99_v12, %v69_v11 }
  0x96   :  { %105 = vst.msk [vmem:[#allocation2] sm:$0xff] %vm53_vm0, %v103_v13 }
  0x9b   :  { %v101_v15 = vpop.f32.mrf.mxu0 }
  0x9d   :  { %v109_v16 = vld [vmem:[#allocation2] sm:$0xff] }
  0x9e   :  { %v114_v17 = vadd.f32 %v140_v14, %v109_v16 }
  0xa0   :  { %v115_v18 = vpack.c.bf16 %v114_v17, %v114_v17 }
  0xa2   :  { %117 = vst.msk [vmem:[%s254_s5] sm:$0xf] %vm116_vm2, %v115_v18 }
  0xa3   :  { %122 = vsyncpa [#allocation4], 1 }
  0xa4   :  { %123 = vsyncpa [#allocation6], 1 }

// kernel: lyft_densenet_forward.47
= control target key start
LH: loop header
LB: loop body
LE: loop exit
PB: predicated region body
PF: predicated region fallthrough
CT: control target
= control target key end

     0   :  { %10 = vsyncpa [#allocation4], 0  ;;  %s273_s0 = inlined_call_operand.vmem [shape: bf16[8,16], index: 0, kind: input, shape index: {}]   ;;  %s274_s1 = inlined_call_operand.vmem [shape: bf16[16,16], index: 1, kind: input, shape index: {}]   ;;  %s275_s2 = inlined_call_operand.hbm [shape: f32[1,16], index: 2, kind: input, shape index: {}]   ;;  %s276_s3 = inlined_call_operand.hbm [shape: f32[1,16], index: 3, kind: input, shape index: {}]   ;;  %s277_s4 = inlined_call_operand.hbm [shape: f32[1,16], index: 4, kind: input, shape index: {}]   ;;  %s278_s5 = inlined_call_operand.vmem [shape: bf16[8,16], index: 5, kind: output, shape index: {}]  }
   0x1   :  { %11 = vsyncpa [#allocation6], 0  ;;  %s32_s20 = sshll.u32 %s276_s3, 4  ;;  %s218_s21 = smov [#allocation5]   ;;  %s33_s20 = int_to_ptr.hbm [resolvable:$true] %s32_s20 }
   0x2   :  { %s34_s22 = sshll.u32 %s218_s21, 4  ;;  %s21_s25 = sshll.u32 %s275_s2, 4  ;;  %s35_s22 = int_to_ptr.vmem [resolvable:$true] %s34_s22  ;;  %s22_s25 = int_to_ptr.hbm [resolvable:$true] %s21_s25 }
   0x3   :  { %37 = dma.hbm_to_vmem [thread:$0]  %s33_s20, 16, %s35_s22, [#allocation6]  }
   0x4   :  { %s219_s26 = smov [#allocation3]   ;;  %s43_s30 = sshll.u32 %s277_s4, 4  ;;  %s44_s30 = int_to_ptr.hbm [resolvable:$true] %s43_s30 }
   0x5   :  { %s23_s27 = sshll.u32 %s219_s26, 4  ;;  %s220_s3 = smov [#allocation7]   ;;  %s24_s27 = int_to_ptr.vmem [resolvable:$true] %s23_s27 }
   0x6   :  { %26 = dma.hbm_to_vmem [thread:$0]  %s22_s25, 16, %s24_s27, [#allocation4]  }
   0x7   :  { %s45_s6 = sshll.u32 %s220_s3, 4  ;;  %s46_s6 = int_to_ptr.vmem [resolvable:$true] %s45_s6 }
   0x8   :  { %48 = dma.hbm_to_vmem [thread:$0]  %s44_s30, 16, %s46_s6, [#allocation6]  }
   0x9   :  { %214 = dma.done.wait [#allocation4], 16  }
   0xa   :  { %215 = vsyncadd [#allocation4], 4294967280 }
   0xb   :  { %216 = dma.done.wait [#allocation6], 32  }
   0xc   :  { %217 = vsyncadd [#allocation6], 4294967264  ;;  %vm66_vm0 = vcmask 130048   ;;  %v221_v0 = vmov 0.0   ;;  %v134_v1 = vld [vmem:[%s274_s1] sm:$0xff]  ;;  %vm121_vm1 = vcmask 125952  }
   0xd   :  { %67 = vst.msk [vmem:[#allocation2] sm:$0xff] %vm66_vm0, %v221_v0  ;;  %v68_v2 = vld [vmem:[%s273_s0] sm:$0xf]  ;;  %v139_v4 = vld [vmem:[#allocation3] ss:$0 sm:$0xff]  ;;  %102 = vmatpush.bf16.msra.mxu0 %v134_v1 }
   0xe   :  { %v69_v3 = vunpack.c.l.bf16 %v68_v2  ;;  %v140_v5 = vld [vmem:[#allocation5] ss:$0 sm:$0xff]  ;;  %v141_v13 = vld [vmem:[#allocation7] ss:$0 sm:$0xff] }
  0x10   :  { %v74_v6 = vmul.f32 %v139_v4, %v69_v3 }
  0x12   :  { %v79_v7 = vadd.f32 %v140_v5, %v74_v6 }
  0x14   :  { %v80_v8 = vmax.f32 %v79_v7, 0.0  ;;  %v82_v10 = vld [vmem:[#allocation2] sm:$0xff] }
  0x16   :  { %v81_v9 = vpack.c.bf16 %v80_v8, %v80_v8 }
  0x18   :  { %133 = vmatmul.msk.bf16.vlgmr.msra.gmra.mxu0 %vm66_vm0, %v81_v9 }
  0x95   :  { %v104_v11 = vpop.f32.mrf.mxu0 }
  0x96   :  { %v108_v12 = vadd.f32 %v104_v11, %v82_v10 }
  0x98   :  { %109 = vst.msk [vmem:[#allocation2] sm:$0xff] %vm66_vm0, %v108_v12 }
  0x9d   :  { %v106_v14 = vpop.f32.mrf.mxu0 }
  0x9f   :  { %v113_v15 = vld [vmem:[#allocation2] sm:$0xff] }
  0xa0   :  { %v118_v16 = vadd.f32 %v141_v13, %v113_v15 }
  0xa2   :  { %v119_v17 = vmax.f32 %v118_v16, 0.0 }
  0xa4   :  { %v120_v18 = vpack.c.bf16 %v119_v17, %v119_v17 }
  0xa6   :  { %122 = vst.msk [vmem:[%s278_s5] sm:$0xf] %vm121_vm1, %v120_v18 }
  0xa7   :  { %127 = vsyncpa [#allocation4], 1 }
  0xa8   :  { %128 = vsyncpa [#allocation6], 1 }

// kernel: lyft_densenet_forward.52
= control target key start
LH: loop header
LB: loop body
LE: loop exit
PB: predicated region body
PF: predicated region fallthrough
CT: control target
= control target key end

     0   :  { %8 = vsyncpa [#allocation4], 0  ;;  %s128_s15 = smov [#allocation3]   ;;  %s168_s0 = inlined_call_operand.vmem [shape: bf16[8,32], index: 0, kind: input, shape index: {}]   ;;  %s169_s1 = inlined_call_operand.vmem [shape: bf16[32,33], index: 1, kind: input, shape index: {}]   ;;  %s170_s2 = inlined_call_operand.hbm [shape: f32[1,33], index: 2, kind: input, shape index: {}]   ;;  %s171_s3 = inlined_call_operand.vmem [shape: f32[8,33], index: 3, kind: output, shape index: {}]  }
   0x1   :  { %s18_s14 = sshll.u32 %s170_s2, 4  ;;  %s20_s16 = sshll.u32 %s128_s15, 4  ;;  %s19_s14 = int_to_ptr.hbm [resolvable:$true] %s18_s14  ;;  %s21_s16 = int_to_ptr.vmem [resolvable:$true] %s20_s16 }
   0x2   :  { %23 = dma.hbm_to_vmem [thread:$0]  %s19_s14, 16, %s21_s16, [#allocation4]  }
   0x3   :  { %126 = dma.done.wait [#allocation4], 16  }
   0x4   :  { %127 = vsyncadd [#allocation4], 4294967280  ;;  %vm33_vm0 = vcmask 269312   ;;  %v129_v0 = vmov 0.0   ;;  %v98_v1 = vld [vmem:[%s169_s1 + $0x8] sm:$0xff]  ;;  %v97_v2 = vld [vmem:[%s169_s1] sm:$0xff] }
   0x5   :  { %34 = vst.msk [vmem:[#allocation2] sm:$0xff] %vm33_vm0, %v129_v0  ;;  %63 = vmatpush.bf16.msra.mxu0 %v98_v1  ;;  %v35_v3 = vld [vmem:[%s168_s0] sm:$0xf]  ;;  %vm53_vm1 = vcmask 261120   ;;  %v101_v7 = vld [vmem:[#allocation3] ss:$0 sm:$0xff] }
   0x9   :  { %64 = vmatpush.bf16.msra.mxu0 %v97_v2 }
   0xc   :  { %96 = vmatmul.msk.bf16.vlgmr.msra.gmra.mxu0 %vm53_vm1, %v35_v3  ;;  %v36_v4 = vld [vmem:[#allocation2] sm:$0xff] }
  0x89   :  { %v66_v5 = vpop.f32.mrf.mxu0 }
  0x8a   :  { %v70_v6 = vadd.f32 %v66_v5, %v36_v4 }
  0x8c   :  { %72 = vst.msk [vmem:[#allocation2] sm:$0xff] %vm33_vm0, %v70_v6 }
  0x91   :  { %v68_v8 = vpop.f32.mrf.mxu0 }
  0x93   :  { %v76_v9 = vld [vmem:[#allocation2] sm:$0xff] }
  0x94   :  { %v81_v10 = vadd.f32 %v101_v7, %v76_v9 }
  0x96   :  { %82 = vst.msk [vmem:[%s171_s3] sm:$0xff] %vm33_vm0, %v81_v10 }
  0x97   :  { %87 = vsyncpa [#allocation4], 1 }

// kernel: lyft_densenet_forward.51
= control target key start
LH: loop header
LB: loop body
LE: loop exit
PB: predicated region body
PF: predicated region fallthrough
CT: control target
= control target key end

     0   :  { %8 = vsyncpa [#allocation3], 0  ;;  %s162_s0 = inlined_call_operand.vmem [shape: bf16[2,1,32], index: 0, kind: input, shape index: {}]   ;;  %s163_s1 = inlined_call_operand.hbm [shape: f32[1,1,32], index: 1, kind: input, shape index: {}]   ;;  %s164_s2 = inlined_call_operand.hbm [shape: f32[1,1,32], index: 2, kind: input, shape index: {}]   ;;  %s165_s3 = inlined_call_operand.vmem [shape: f32[2,32], index: 3, kind: output, shape index: {}]  }
   0x1   :  { %s17_s14 = sshll.u32 %s163_s1, 4  ;;  %s18_s14 = int_to_ptr.hbm [resolvable:$true] %s17_s14 }
   0x2   :  { %9 = vsyncpa [#allocation5], 0  ;;  %s125_s15 = smov [#allocation2]   ;;  %s28_s19 = sshll.u32 %s164_s2, 4  ;;  %s29_s19 = int_to_ptr.hbm [resolvable:$true] %s28_s19 }
   0x3   :  { %s19_s16 = sshll.u32 %s125_s15, 4  ;;  %s126_s20 = smov [#allocation4]   ;;  %s20_s16 = int_to_ptr.vmem [resolvable:$true] %s19_s16 }
   0x4   :  { %22 = dma.hbm_to_vmem [thread:$0]  %s18_s14, 16, %s20_s16, [#allocation3]  }
   0x5   :  { %s30_s21 = sshll.u32 %s126_s20, 4  ;;  %s31_s21 = int_to_ptr.vmem [resolvable:$true] %s30_s21 }
   0x6   :  { %33 = dma.hbm_to_vmem [thread:$0]  %s29_s19, 16, %s31_s21, [#allocation5]  }
   0x7   :  { %121 = dma.done.wait [#allocation3], 16  }
   0x8   :  { %122 = vsyncadd [#allocation3], 4294967280 }
   0x9   :  { %123 = dma.done.wait [#allocation5], 16  }
   0xa   :  { %124 = vsyncadd [#allocation5], 4294967280  ;;  %v42_v0 = vld [vmem:[%s162_s0] sm:$0x1]  ;;  %v43_v1 = vld [vmem:[%s162_s0 + $0x1] sm:$0x1] }
   0xb   :  { %v46_v2 = vld [vmem:[#allocation2] sm:$0x1]  ;;  %v44_v3 = vunpack.c.l.bf16 %v42_v0  ;;  %v45_v4 = vunpack.c.l.bf16 %v43_v1  ;;  %v49_v5 = vld [vmem:[#allocation4] sm:$0x1]  ;;  %vm60_vm0 = vcmask 1041409   ;;  %vm63_vm1 = vcmask 254976  }
   0xd   :  { %v47_v6 = vmul.f32 %v46_v2, %v44_v3  ;;  %v48_v7 = vmul.f32 %v46_v2, %v45_v4 }
   0xf   :  { %v50_v8 = vadd.f32 %v49_v5, %v47_v6  ;;  %v51_v9 = vadd.f32 %v49_v5, %v48_v7 }
  0x11   :  { %v52_v10 = vmax.f32 %v50_v8, 0.0  ;;  %v53_v11 = vmax.f32 %v51_v9, 0.0 }
  0x13   :  { %v58_v12 = vperm.slane %v52_v10, 0  ;;  %v59_v13 = vperm.slane %v53_v11, 0 }
  0x15   :  { %v61_v14 = vsel %vm60_vm0, %v59_v13, %v58_v12 }
  0x16   :  { %64 = vst.msk [vmem:[%s165_s3] sm:$0x3] %vm63_vm1, %v61_v14 }
  0x17   :  { %69 = vsyncpa [#allocation3], 1 }
  0x18   :  { %70 = vsyncpa [#allocation5], 1 }

// kernel: lyft_densenet_forward.53
= control target key start
LH: loop header
LB: loop body
LE: loop exit
PB: predicated region body
PF: predicated region fallthrough
CT: control target
= control target key end

     0   :  { %vm10_vm0 = vcmask 17408   ;;  %s90_s0 = inlined_call_operand.vmem [shape: f32[2,3], index: 0, kind: input, shape index: {}]   ;;  %s91_s1 = inlined_call_operand.hbm [shape: f32[2,3], index: 1, kind: output, shape index: {}]  }
   0x1   :  { %v9_v0 = vld [vmem:[%s90_s0] sm:$0x3] }
   0x2   :  { %6 = vsyncpa [#allocation3], 0  ;;  %v11_v1 = vsel %vm10_vm0, %v9_v0, -inf  ;;  %s70_s8 = smov [#allocation2]   ;;  %s30_s0 = sshll.u32 %s91_s1, 4  ;;  %s31_s0 = int_to_ptr.hbm [resolvable:$true] %s30_s0 }
   0x3   :  { %12 = vmax.xlane.f32.xlu0 %v11_v1  ;;  %s28_s9 = sshll.u32 %s70_s8, 4  ;;  %s29_s9 = int_to_ptr.vmem [resolvable:$true] %s28_s9 }
  0x76   :  { %v13_v2 = vpop.xlane.xlu0 %12 }
  0x77   :  { %v14_v3 = vsub.f32 %v9_v0, %v13_v2 }
  0x79   :  { %v15_v4 = vmul.f32 1.442695, %v14_v3 }
  0x7b   :  { %40 = vpow2.f32 %v15_v4 }
  0x81   :  { %v41_v5 = vpop.eup %40 }
  0x82   :  { %v17_v6 = vsel %vm10_vm0, %v41_v5, 0.0 }
  0x83   :  { %18 = vadd.xlane.f32.xlu0 %v17_v6 }
  0xf6   :  { %v19_v7 = vpop.xlane.xlu0 %18 }
  0xf7   :  { %42 = vrcp.f32 %v19_v7 }
  0xfd   :  { %v43_v8 = vpop.eup %42 }
  0xfe   :  { %v21_v9 = vmul.f32 %v43_v8, %v41_v5 }
 0x100   :  { %22 = vst.msk [vmem:[#allocation2] sm:$0x3] %vm10_vm0, %v21_v9 }
 0x101   :  { %33 = dma.vmem_to_hbm [thread:$0]  %s29_s9, 32, %s31_s0, [#allocation3]  }
 0x102   :  { %68 = dma.done.wait [#allocation3], 32  }
 0x103   :  { %69 = vsyncadd [#allocation3], 4294967264 }
 0x104   :  { %38 = vsyncpa [#allocation3], 1 }

</bundles_post_ra>
